<compile_context>
chip_gen: v5e
topology: v5e:2x2
jax: 0.10.0
libtpu: 0.0.40
codegen_flags: <defaults>
</compile_context>

<pallas_src>
import math
from functools import partial

import numpy as np
import jax
import jax.numpy as jnp
from jax.experimental import pallas as pl
from jax.experimental.pallas import tpu as pltpu

# ----------------------------- module configuration ------------------------------------
NUM_RES_BLOCKS = 2
WIDTHS = [32, 64, 32]                   # widths[0] == widths[-1], as the module asserts
NUM_LAYERS = len(WIDTHS) - 1
FEATURE_DIM = WIDTHS[-1]                # 32
NUM_TOKENS = 4
TOKEN_DIM = FEATURE_DIM // NUM_TOKENS   # 8
NUM_HEADS = 2                           # token_dim % num_heads == 0 -> head_dim = 4
HEAD_DIM = TOKEN_DIM // NUM_HEADS
SCORE_W = NUM_TOKENS * NUM_HEADS * NUM_TOKENS   # score lanes: (query tok, head) x key tok
LN_EPS = 1e-5

PACK = 4                                # samples per packed row -> 32*4 = 128 lanes
PF = FEATURE_DIM * PACK                 # 128: packed feature width
PSW = SCORE_W * PACK                    # 128: packed score width

BATCH = 512                             # demo batch (kernel streams any multiple of PACK*TILE_R)
TILE_R = 64                             # packed rows per grid step (= 256 samples / step)

assert WIDTHS[0] == WIDTHS[-1]
assert FEATURE_DIM % NUM_TOKENS == 0 and TOKEN_DIM % NUM_HEADS == 0
assert PF % 128 == 0 and PSW % 128 == 0
assert TILE_R % 8 == 0 and BATCH % (PACK * TILE_R) == 0


# ----------------------------- host-side parameter packing ------------------------------
class _Packer:
    """Packs many f32 parameters of one lane width into a single row-stacked slab.

    Every entry is padded to a multiple of 8 rows so each in-kernel slice starts on a
    sublane-tile boundary (clean, unshifted loads)."""

    def __init__(self, width):
        self.width = width
        self._chunks = []
        self.offsets = {}
        self._row = 0

    def add(self, name, arr):
        arr = np.asarray(arr, np.float32).reshape(-1, self.width)
        rows = arr.shape[0]
        self.offsets[name] = (self._row, rows)
        pad = (-rows) % 8
        if pad:
            arr = np.concatenate([arr, np.zeros((pad, self.width), np.float32)], axis=0)
        self._chunks.append(arr)
        self._row += rows + pad

    def finalize(self):
        return jnp.asarray(np.concatenate(self._chunks, axis=0))


def _block_diag(mat, n):
    r, c = mat.shape
    out = np.zeros((n * r, n * c), np.float32)
    for t in range(n):
        out[t * r:(t + 1) * r, t * c:(t + 1) * c] = mat
    return out


def pack_params(params):
    """Fuse / pre-transpose all parameters host-side, expand them to PACK-sample
    block-diagonal (lane-dense) form, and pack them into per-width slabs."""
    T, E, H, HD, F = NUM_TOKENS, TOKEN_DIM, NUM_HEADS, HEAD_DIM, FEATURE_DIM
    inv_sqrt2 = 1.0 / math.sqrt(2.0)
    inv_sqrt_hd = 1.0 / math.sqrt(HD)

    packers = {}

    def add(width, name, arr):
        if width not in packers:
            packers[width] = _Packer(width)
        packers[width].add(name, arr)

    def add_vec(name, v):                       # per-sample vector -> tiled PACK-wide row
        v = np.asarray(v, np.float32).reshape(-1)
        add(v.size * PACK, name, np.tile(v, PACK))

    def add_mat(name, m):                       # per-sample matrix -> PACK block-diagonal
        m = np.asarray(m, np.float32)
        add(m.shape[1] * PACK, name, _block_diag(m, PACK))

    def lane_s(t, h, j):                 # score lane for (query token t, head h, key tok j)
        return (t * H + h) * T + j

    # ---- shared per-sample constants (block independent) ----
    # per-sample group-mean matrices for LayerNorm in the packed layout
    for w in sorted(set(WIDTHS[:-1])):
        add_mat(f"Mmean{w}", np.full((w, w), 1.0 / w, np.float32))
    # R{j}: head-dim segment-sum -> score lane (t,h,j);  P{j} = R{j}.T (prob -> value lanes)
    for j in range(T):
        R = np.zeros((F, SCORE_W), np.float32)
        for t in range(T):
            for h in range(H):
                for d in range(HD):
                    R[E * t + HD * h + d, lane_s(t, h, j)] = 1.0
        add_mat(f"R{j}", R)
        add_mat(f"P{j}", R.T)
    # softmax denominator: sum over each key group of T score lanes, broadcast back
    add_mat("Dsum", _block_diag(np.ones((T, T), np.float32), H * T))

    fs = np.asarray(params["final_scale"], np.float32)
    nb = len(params["blocks"])
    for i, blk in enumerate(params["blocks"]):
        # ---- residual MLP layers (weights pre-transposed to (in, out)) ----
        for jl, ((g, b), sw, (W, bias)) in enumerate(zip(blk["ln"], blk["sw"], blk["lin"])):
            add_vec(f"ln_g{i}_{jl}", g)
            add_vec(f"ln_b{i}_{jl}", b)
            add_vec(f"sw_b{i}_{jl}", sw)
            add_mat(f"wT{i}_{jl}", np.asarray(W, np.float32).T)
            add_vec(f"b{i}_{jl}", bias)

        # ---- fused token-projection + QKV in_proj; G{j} folded into K/V weights ----
        Wp, bp = (np.asarray(a, np.float32) for a in blk["proj"])
        Wi, bi, Wo, bo = (np.asarray(a, np.float32) for a in blk["attn"])
        WpT = Wp.T

        G = []                                   # replicate key/value token j into all slots
        for j in range(T):
            Gj = np.zeros((F, F), np.float32)
            for t in range(T):
                for m in range(E):
                    Gj[E * j + m, E * t + m] = 1.0
            G.append(Gj)

        def fused(sl, scale):
            Wx, bx = Wi[sl], bi[sl]
            Bbd = _block_diag(Wx.T, T)                        # (F, F)
            return (WpT @ Bbd) * scale, (bp @ Bbd + np.tile(bx, T)) * scale

        Aq, cq = fused(slice(0, E), inv_sqrt_hd)              # 1/sqrt(head_dim) folded into Q
        Ak, ck = fused(slice(E, 2 * E), 1.0)
        Av, cv = fused(slice(2 * E, 3 * E), 1.0)
        add_mat(f"Aq{i}", Aq)
        add_vec(f"cq{i}", cq)
        for j in range(T):
            add_mat(f"AkG{i}_{j}", Ak @ G[j])                 # x -> K of token j, replicated
            add_vec(f"ckG{i}_{j}", ck @ G[j])
            add_mat(f"AvG{i}_{j}", Av @ G[j])                 # x -> V of token j, replicated
            add_vec(f"cvG{i}_{j}", cv @ G[j])
        add_mat(f"Bo{i}", _block_diag(Wo.T, T))
        add_vec(f"co{i}", np.tile(bo, T))

        # 1/sqrt(2) post-scale; fold the final Scale layer into the last block's scale
        post = np.full((F,), inv_sqrt2, np.float32)
        if i == nb - 1:
            post = post * fs
        add_vec(f"post{i}", post)

    widths_order = tuple(sorted(packers))
    slabs = [packers[w].finalize() for w in widths_order]
    offsets = {w: packers[w].offsets for w in widths_order}
    return slabs, widths_order, offsets


# ------------------------------------ Pallas kernel -------------------------------------
def resnet_kernel(*refs, widths_order, offsets, num_blocks):
    x_ref, *slab_refs, o_ref = refs
    slab = dict(zip(widths_order, slab_refs))
    f32 = jnp.float32
    T = NUM_TOKENS

    def getp(width, name):               # lazy, static, sublane-aligned slab slice
        off, rows = offsets[width][name]
        return slab[width][off:off + rows, :]

    def mm(a, b):
        return jnp.dot(a, b, preferred_element_type=f32)

    def ln_swish(h, w_in, gamma, beta, sw_beta):
        """Pre-activation LayerNorm + Swish, per-sample groups in the packed lane layout.

        Group mean/var are computed with the block-diagonal Mmean matmul (MXU), NOT a
        full-lane reduction -- required for correctness with PACK samples per row."""
        mmean = getp(w_in * PACK, f"Mmean{w_in}")
        mu = mm(h, mmean)
        d = h - mu
        var = mm(d * d, mmean)
        hn = d * jax.lax.rsqrt(var + LN_EPS) * gamma + beta
        return hn * jax.nn.sigmoid(sw_beta * hn)

    x = x_ref[...].astype(f32)           # (TILE_R, PF): PACK samples per 128-lane row

    for i in range(num_blocks):
        # ---- residual MLP: [LayerNorm -> Swish -> weight-normed Linear] per width pair.
        #      Dropout / drop_path are identity at inference. ----
        h = x
        for jl in range(NUM_LAYERS):
            w_in, w_out = WIDTHS[jl], WIDTHS[jl + 1]
            pin, pout = w_in * PACK, w_out * PACK
            h = ln_swish(h, w_in, getp(pin, f"ln_g{i}_{jl}"), getp(pin, f"ln_b{i}_{jl}"),
                         getp(pin, f"sw_b{i}_{jl}"))
            h = mm(h, getp(pout, f"wT{i}_{jl}")) + getp(pout, f"b{i}_{jl}")
        x = x + h

        # ---- token self-attention, entirely in the packed flat layout (no (B,T,E) stack).
        #      Q comes from one fused matmul; K/V token replication (G{j}) is folded into
        #      the per-j projection matrices so kf/vf never materialize. ----
        qf = mm(x, getp(PF, f"Aq{i}")) + getp(PF, f"cq{i}")

        # scores: s[:, (t,h,j)] = q_t[head h] . k_j[head h]   (per sample group)
        s = None
        for j in range(T):
            krep = mm(x, getp(PF, f"AkG{i}_{j}")) + getp(PF, f"ckG{i}_{j}")
            sj = mm(qf * krep, getp(PSW, f"R{j}"))
            s = sj if s is None else s + sj

        # Softmax over each key group of T lanes.  Subtracting the GLOBAL per-row max is
        # exact for every group softmax (one constant per row => constant within each
        # group); it only assumes per-row score ranges stay inside the f32 exp range.
        s = s - jnp.max(s, axis=-1, keepdims=True)
        p = jnp.exp(s)
        den = mm(p, getp(PSW, "Dsum"))
        # EUP approximate reciprocal (free slot) + one Newton step -> f32-level accuracy,
        # keeping the 1e-4 self-check while avoiding VPU divide work.
        r = pl.reciprocal(den, approx=True)
        r = r * (2.0 - den * r)
        p = p * r

        # context: ctx[:, (t, e)] = sum_j p[:, (t,h,j)] * v_j[e],  e = head*HD + d
        ctx = None
        for j in range(T):
            vrep = mm(x, getp(PF, f"AvG{i}_{j}")) + getp(PF, f"cvG{i}_{j}")
            pexp = mm(p, getp(PF, f"P{j}"))
            contrib = pexp * vrep
            ctx = contrib if ctx is None else ctx + contrib
        attn = mm(ctx, getp(PF, f"Bo{i}")) + getp(PF, f"co{i}")

        # NOTE: the reference forward computes sigmoid(attention_gates[i]) and owns
        # residual_scales[i] but never applies either -> plain residual add (preserved).
        # post{i} = 1/sqrt(2), with the final Scale layer folded into the last block.
        x = (x + attn) * getp(PF, f"post{i}")

    o_ref[...] = x.astype(o_ref.dtype)   # (TILE_R, 128): lane-dense, unmasked full stores


def make_forward(widths_order, offsets, tile_r=TILE_R):
    kern = partial(resnet_kernel, widths_order=widths_order, offsets=offsets,
                   num_blocks=NUM_RES_BLOCKS)

    @jax.jit
    def fwd(x, *slabs):
        B, F = x.shape
        assert F == FEATURE_DIM and B % (PACK * tile_r) == 0, (B, F, tile_r)
        rows = B // PACK
        xp = x.reshape(rows, PF)                     # free, contiguous lane-dense view
        grid = (rows // tile_r,)
        in_specs = [pl.BlockSpec((tile_r, PF), lambda b: (b, 0))]
        # parameter slabs: whole array, constant block index -> resident across grid steps
        in_specs += [pl.BlockSpec(s.shape, lambda b: (0, 0)) for s in slabs]
        yp = pl.pallas_call(
            kern,
            out_shape=jax.ShapeDtypeStruct((rows, PF), x.dtype),
            grid_spec=pltpu.PrefetchScalarGridSpec(
                num_scalar_prefetch=0,
                grid=grid,
                in_specs=in_specs,
                out_specs=pl.BlockSpec((tile_r, PF), lambda b: (b, 0)),
            ),
            compiler_params=pltpu.CompilerParams(
                # batch tiles are independent -> shard across both TensorCores on v7x
                dimension_semantics=("parallel",),
                # ~3.5 MB of resident slabs (x2 buffering) + tiles: well under this cap
                vmem_limit_bytes=32 * 1024 * 1024,
            ),
        )(xp, *slabs)
        return yp.reshape(B, F)                      # free view back to (B, feature_dim)

    return fwd


# ------------------------- deterministic "PyTorch-layout" parameters --------------------
def init_params(key):
    E, F = TOKEN_DIM, FEATURE_DIM
    keys = iter(jax.random.split(key, NUM_RES_BLOCKS * 6))
    blocks = []
    for _ in range(NUM_RES_BLOCKS):
        ln, sw, lin = [], [], []
        for j in range(NUM_LAYERS):
            w_in, w_out = WIDTHS[j], WIDTHS[j + 1]
            ln.append((jnp.ones((w_in,), jnp.float32), jnp.zeros((w_in,), jnp.float32)))
            sw.append(jnp.ones((w_in,), jnp.float32))          # Swish beta (assumed init 1)
            bound = math.sqrt(2.81 * 3 / w_in)
            # weight_norm(linear): effective weight equals the uniform-initialised weight
            W = jax.random.uniform(next(keys), (w_out, w_in), jnp.float32, -bound, bound)
            lin.append((W, jnp.zeros((w_out,), jnp.float32)))
        lim = 1.0 / math.sqrt(F)                               # token projection: nn.Linear
        Wp = jax.random.uniform(next(keys), (F, F), jnp.float32, -lim, lim)
        bp = jax.random.uniform(next(keys), (F,), jnp.float32, -lim, lim)
        xav = math.sqrt(6.0 / (3 * E + E))                     # MHA in_proj: xavier_uniform
        Wi = jax.random.uniform(next(keys), (3 * E, E), jnp.float32, -xav, xav)
        bi = jnp.zeros((3 * E,), jnp.float32)
        lim_o = 1.0 / math.sqrt(E)
        Wo = jax.random.uniform(next(keys), (E, E), jnp.float32, -lim_o, lim_o)
        bo = jnp.zeros((E,), jnp.float32)
        blocks.append(dict(ln=ln, sw=sw, lin=lin, proj=(Wp, bp), attn=(Wi, bi, Wo, bo)))
    return dict(blocks=blocks, final_scale=jnp.ones((F,), jnp.float32))


# ------------------- independent pure-JAX reference (natural PyTorch math) --------------
def reference_forward(x, params):
    x = x.astype(jnp.float32)
    B = x.shape[0]
    T, E, H, HD, F = NUM_TOKENS, TOKEN_DIM, NUM_HEADS, HEAD_DIM, FEATURE_DIM
    inv_sqrt2 = 1.0 / math.sqrt(2.0)
    for blk in params["blocks"]:
        identity = x
        h = x
        for (g, b), sw, (W, bias) in zip(blk["ln"], blk["sw"], blk["lin"]):
            mu = jnp.mean(h, axis=-1, keepdims=True)
            var = jnp.mean(jnp.square(h - mu), axis=-1, keepdims=True)
            h = (h - mu) * jax.lax.rsqrt(var + LN_EPS) * g + b
            h = h * jax.nn.sigmoid(sw * h)
            h = h @ W.T + bias
        x = identity + h                                       # drop_path identity (eval)

        Wp, bp = blk["proj"]
        Wi, bi, Wo, bo = blk["attn"]
        tok = (x @ Wp.T + bp).reshape(B, T, E)
        q = (tok @ Wi[0:E].T + bi[0:E]).reshape(B, T, H, HD)
        k = (tok @ Wi[E:2 * E].T + bi[E:2 * E]).reshape(B, T, H, HD)
        v = (tok @ Wi[2 * E:3 * E].T + bi[2 * E:3 * E]).reshape(B, T, H, HD)
        s = jnp.einsum("bthd,bshd->bhts", q, k) / math.sqrt(HD)
        p = jax.nn.softmax(s, axis=-1)
        ctx = jnp.einsum("bhts,bshd->bthd", p, v).reshape(B, T, E)
        attn = (ctx @ Wo.T + bo).reshape(B, F)
        # attention_gates / residual_scales are never applied in the reference forward
        x = (x + attn) * inv_sqrt2
    return x * params["final_scale"]


# -------------------------------------- main ---------------------------------------------
if __name__ == "__main__":
    key = jax.random.PRNGKey(0)
    kx, kp = jax.random.split(key)
    x = jax.random.normal(kx, (BATCH, FEATURE_DIM), jnp.float32)
    params = init_params(kp)

    slabs, widths_order, offsets = pack_params(params)
    forward = make_forward(widths_order, offsets, tile_r=TILE_R)

    y = jax.block_until_ready(forward(x, *slabs))

    # Independent reference (un-fused, un-transposed parameters, natural einsum math) ->
    # also validates the host-side fusion / lane-dense block-diagonal packing, not just
    # the Pallas lowering.
    y_ref = reference_forward(x, params)
    assert y.shape == (BATCH, FEATURE_DIM)
    assert bool(jnp.all(jnp.isfinite(y)))
    max_err = float(jnp.max(jnp.abs(y - y_ref)))
    # f32 everywhere + Newton-refined reciprocal -> 1e-4 stays achievable and catches
    # layout / precision regressions (host fusion reassociation is ~1e-6 level).
    assert bool(jnp.allclose(y, y_ref, rtol=1e-4, atol=1e-4)), max_err
    print("KERNEL_OK")
</pallas_src>

<mosaic_0001>
module attributes {stable_mosaic.version = 11 : i64} {
  func.func @resnet_kernel(%arg0: i32, %arg1: memref<64x128xf32, #tpu.memory_space<vmem>>, %arg2: memref<4592x128xf32, #tpu.memory_space<vmem>>, %arg3: memref<576x256xf32, #tpu.memory_space<vmem>>, %arg4: memref<64x128xf32, #tpu.memory_space<vmem>>) attributes {dimension_semantics = [#tpu.dimension_semantics<parallel>], iteration_bounds = array<i64: 2>, scalar_prefetch = 0 : i64, scratch_operands = 0 : i64, tpu.core_type = #tpu.core_type<tc>, window_params = [{transform_indices = @transform_0, window_bounds = array<i64: 64, 128>}, {pipeline_mode = #tpu.pipeline_mode<synchronous>, transform_indices = @transform_1, window_bounds = array<i64: 4592, 128>}, {pipeline_mode = #tpu.pipeline_mode<synchronous>, transform_indices = @transform_2, window_bounds = array<i64: 576, 256>}, {transform_indices = @transform_3, window_bounds = array<i64: 64, 128>}]} {
    %c0 = arith.constant 0 : index
    %c0_0 = arith.constant 0 : index
    %0 = vector.load %arg1[%c0, %c0_0] : memref<64x128xf32, #tpu.memory_space<vmem>>, vector<64x128xf32>
    %c1280 = arith.constant 1280 : index
    %c0_1 = arith.constant 0 : index
    %1 = vector.load %arg2[%c1280, %c0_1] : memref<4592x128xf32, #tpu.memory_space<vmem>>, vector<1x128xf32>
    %c1288 = arith.constant 1288 : index
    %c0_2 = arith.constant 0 : index
    %2 = vector.load %arg2[%c1288, %c0_2] : memref<4592x128xf32, #tpu.memory_space<vmem>>, vector<1x128xf32>
    %c1296 = arith.constant 1296 : index
    %c0_3 = arith.constant 0 : index
    %3 = vector.load %arg2[%c1296, %c0_3] : memref<4592x128xf32, #tpu.memory_space<vmem>>, vector<1x128xf32>
    %c0_4 = arith.constant 0 : index
    %c0_5 = arith.constant 0 : index
    %4 = vector.load %arg2[%c0_4, %c0_5] : memref<4592x128xf32, #tpu.memory_space<vmem>>, vector<128x128xf32>
    %cst = arith.constant dense<0.000000e+00> : vector<64x128xf32>
    %5 = tpu.matmul %0, %4, %cst {dimension_numbers = #tpu.dot_dimension_numbers<[1], [0], [0], [1], [0, 0, 1, 1], [], []>} : vector<64x128xf32>, vector<128x128xf32>, vector<64x128xf32> -> vector<64x128xf32>
    %6 = arith.subf %0, %5 : vector<64x128xf32>
    %7 = arith.mulf %6, %6 : vector<64x128xf32>
    %cst_6 = arith.constant dense<0.000000e+00> : vector<64x128xf32>
    %8 = tpu.matmul %7, %4, %cst_6 {dimension_numbers = #tpu.dot_dimension_numbers<[1], [0], [0], [1], [0, 0, 1, 1], [], []>} : vector<64x128xf32>, vector<128x128xf32>, vector<64x128xf32> -> vector<64x128xf32>
    %cst_7 = arith.constant 9.99999974E-6 : f32
    %9 = vector.broadcast %cst_7 : f32 to vector<64x128xf32>
    %10 = arith.addf %8, %9 : vector<64x128xf32>
    %11 = math.rsqrt %10 : vector<64x128xf32>
    %12 = arith.mulf %6, %11 : vector<64x128xf32>
    %13 = vector.broadcast %1 : vector<1x128xf32> to vector<64x128xf32>
    %14 = arith.mulf %12, %13 : vector<64x128xf32>
    %15 = vector.broadcast %2 : vector<1x128xf32> to vector<64x128xf32>
    %16 = arith.addf %14, %15 : vector<64x128xf32>
    %17 = vector.broadcast %3 : vector<1x128xf32> to vector<64x128xf32>
    %18 = arith.mulf %17, %16 : vector<64x128xf32>
    %19 = arith.negf %18 : vector<64x128xf32>
    %20 = math.exp %19 : vector<64x128xf32>
    %cst_8 = arith.constant 1.000000e+00 : f32
    %21 = vector.broadcast %cst_8 : f32 to vector<64x128xf32>
    %22 = arith.addf %21, %20 : vector<64x128xf32>
    %23 = arith.divf %21, %22 : vector<64x128xf32>
    %24 = arith.mulf %16, %23 : vector<64x128xf32>
    %c256 = arith.constant 256 : index
    %c0_9 = arith.constant 0 : index
    %25 = vector.load %arg3[%c256, %c0_9] : memref<576x256xf32, #tpu.memory_space<vmem>>, vector<128x256xf32>
    %cst_10 = arith.constant dense<0.000000e+00> : vector<64x256xf32>
    %26 = tpu.matmul %24, %25, %cst_10 {dimension_numbers = #tpu.dot_dimension_numbers<[1], [0], [0], [1], [0, 0, 1, 1], [], []>} : vector<64x128xf32>, vector<128x256xf32>, vector<64x256xf32> -> vector<64x256xf32>
    %c384 = arith.constant 384 : index
    %c0_11 = arith.constant 0 : index
    %27 = vector.load %arg3[%c384, %c0_11] : memref<576x256xf32, #tpu.memory_space<vmem>>, vector<1x256xf32>
    %28 = vector.broadcast %27 : vector<1x256xf32> to vector<64x256xf32>
    %29 = arith.addf %26, %28 : vector<64x256xf32>
    %c392 = arith.constant 392 : index
    %c0_12 = arith.constant 0 : index
    %30 = vector.load %arg3[%c392, %c0_12] : memref<576x256xf32, #tpu.memory_space<vmem>>, vector<1x256xf32>
    %c400 = arith.constant 400 : index
    %c0_13 = arith.constant 0 : index
    %31 = vector.load %arg3[%c400, %c0_13] : memref<576x256xf32, #tpu.memory_space<vmem>>, vector<1x256xf32>
    %c408 = arith.constant 408 : index
    %c0_14 = arith.constant 0 : index
    %32 = vector.load %arg3[%c408, %c0_14] : memref<576x256xf32, #tpu.memory_space<vmem>>, vector<1x256xf32>
    %c0_15 = arith.constant 0 : index
    %c0_16 = arith.constant 0 : index
    %33 = vector.load %arg3[%c0_15, %c0_16] : memref<576x256xf32, #tpu.memory_space<vmem>>, vector<256x256xf32>
    %cst_17 = arith.constant dense<0.000000e+00> : vector<64x256xf32>
    %34 = tpu.matmul %29, %33, %cst_17 {dimension_numbers = #tpu.dot_dimension_numbers<[1], [0], [0], [1], [0, 0, 1, 1], [], []>} : vector<64x256xf32>, vector<256x256xf32>, vector<64x256xf32> -> vector<64x256xf32>
    %35 = arith.subf %29, %34 : vector<64x256xf32>
    %36 = arith.mulf %35, %35 : vector<64x256xf32>
    %cst_18 = arith.constant dense<0.000000e+00> : vector<64x256xf32>
    %37 = tpu.matmul %36, %33, %cst_18 {dimension_numbers = #tpu.dot_dimension_numbers<[1], [0], [0], [1], [0, 0, 1, 1], [], []>} : vector<64x256xf32>, vector<256x256xf32>, vector<64x256xf32> -> vector<64x256xf32>
    %cst_19 = arith.constant 9.99999974E-6 : f32
    %38 = vector.broadcast %cst_19 : f32 to vector<64x256xf32>
    %39 = arith.addf %37, %38 : vector<64x256xf32>
    %40 = math.rsqrt %39 : vector<64x256xf32>
    %41 = arith.mulf %35, %40 : vector<64x256xf32>
    %42 = vector.broadcast %30 : vector<1x256xf32> to vector<64x256xf32>
    %43 = arith.mulf %41, %42 : vector<64x256xf32>
    %44 = vector.broadcast %31 : vector<1x256xf32> to vector<64x256xf32>
    %45 = arith.addf %43, %44 : vector<64x256xf32>
    %46 = vector.broadcast %32 : vector<1x256xf32> to vector<64x256xf32>
    %47 = arith.mulf %46, %45 : vector<64x256xf32>
    %48 = arith.negf %47 : vector<64x256xf32>
    %49 = math.exp %48 : vector<64x256xf32>
    %cst_20 = arith.constant 1.000000e+00 : f32
    %50 = vector.broadcast %cst_20 : f32 to vector<64x256xf32>
    %51 = arith.addf %50, %49 : vector<64x256xf32>
    %52 = arith.divf %50, %51 : vector<64x256xf32>
    %53 = arith.mulf %45, %52 : vector<64x256xf32>
    %c1304 = arith.constant 1304 : index
    %c0_21 = arith.constant 0 : index
    %54 = vector.load %arg2[%c1304, %c0_21] : memref<4592x128xf32, #tpu.memory_space<vmem>>, vector<256x128xf32>
    %cst_22 = arith.constant dense<0.000000e+00> : vector<64x128xf32>
    %55 = tpu.matmul %53, %54, %cst_22 {dimension_numbers = #tpu.dot_dimension_numbers<[1], [0], [0], [1], [0, 0, 1, 1], [], []>} : vector<64x256xf32>, vector<256x128xf32>, vector<64x128xf32> -> vector<64x128xf32>
    %c1560 = arith.constant 1560 : index
    %c0_23 = arith.constant 0 : index
    %56 = vector.load %arg2[%c1560, %c0_23] : memref<4592x128xf32, #tpu.memory_space<vmem>>, vector<1x128xf32>
    %57 = vector.broadcast %56 : vector<1x128xf32> to vector<64x128xf32>
    %58 = arith.addf %55, %57 : vector<64x128xf32>
    %59 = arith.addf %0, %58 : vector<64x128xf32>
    %c1568 = arith.constant 1568 : index
    %c0_24 = arith.constant 0 : index
    %60 = vector.load %arg2[%c1568, %c0_24] : memref<4592x128xf32, #tpu.memory_space<vmem>>, vector<128x128xf32>
    %cst_25 = arith.constant dense<0.000000e+00> : vector<64x128xf32>
    %61 = tpu.matmul %59, %60, %cst_25 {dimension_numbers = #tpu.dot_dimension_numbers<[1], [0], [0], [1], [0, 0, 1, 1], [], []>} : vector<64x128xf32>, vector<128x128xf32>, vector<64x128xf32> -> vector<64x128xf32>
    %c1696 = arith.constant 1696 : index
    %c0_26 = arith.constant 0 : index
    %62 = vector.load %arg2[%c1696, %c0_26] : memref<4592x128xf32, #tpu.memory_space<vmem>>, vector<1x128xf32>
    %63 = vector.broadcast %62 : vector<1x128xf32> to vector<64x128xf32>
    %64 = arith.addf %61, %63 : vector<64x128xf32>
    %c1704 = arith.constant 1704 : index
    %c0_27 = arith.constant 0 : index
    %65 = vector.load %arg2[%c1704, %c0_27] : memref<4592x128xf32, #tpu.memory_space<vmem>>, vector<128x128xf32>
    %cst_28 = arith.constant dense<0.000000e+00> : vector<64x128xf32>
    %66 = tpu.matmul %59, %65, %cst_28 {dimension_numbers = #tpu.dot_dimension_numbers<[1], [0], [0], [1], [0, 0, 1, 1], [], []>} : vector<64x128xf32>, vector<128x128xf32>, vector<64x128xf32> -> vector<64x128xf32>
    %c1832 = arith.constant 1832 : index
    %c0_29 = arith.constant 0 : index
    %67 = vector.load %arg2[%c1832, %c0_29] : memref<4592x128xf32, #tpu.memory_space<vmem>>, vector<1x128xf32>
    %68 = vector.broadcast %67 : vector<1x128xf32> to vector<64x128xf32>
    %69 = arith.addf %66, %68 : vector<64x128xf32>
    %70 = arith.mulf %64, %69 : vector<64x128xf32>
    %c128 = arith.constant 128 : index
    %c0_30 = arith.constant 0 : index
    %71 = vector.load %arg2[%c128, %c0_30] : memref<4592x128xf32, #tpu.memory_space<vmem>>, vector<128x128xf32>
    %cst_31 = arith.constant dense<0.000000e+00> : vector<64x128xf32>
    %72 = tpu.matmul %70, %71, %cst_31 {dimension_numbers = #tpu.dot_dimension_numbers<[1], [0], [0], [1], [0, 0, 1, 1], [], []>} : vector<64x128xf32>, vector<128x128xf32>, vector<64x128xf32> -> vector<64x128xf32>
    %c1976 = arith.constant 1976 : index
    %c0_32 = arith.constant 0 : index
    %73 = vector.load %arg2[%c1976, %c0_32] : memref<4592x128xf32, #tpu.memory_space<vmem>>, vector<128x128xf32>
    %cst_33 = arith.constant dense<0.000000e+00> : vector<64x128xf32>
    %74 = tpu.matmul %59, %73, %cst_33 {dimension_numbers = #tpu.dot_dimension_numbers<[1], [0], [0], [1], [0, 0, 1, 1], [], []>} : vector<64x128xf32>, vector<128x128xf32>, vector<64x128xf32> -> vector<64x128xf32>
    %c2104 = arith.constant 2104 : index
    %c0_34 = arith.constant 0 : index
    %75 = vector.load %arg2[%c2104, %c0_34] : memref<4592x128xf32, #tpu.memory_space<vmem>>, vector<1x128xf32>
    %76 = vector.broadcast %75 : vector<1x128xf32> to vector<64x128xf32>
    %77 = arith.addf %74, %76 : vector<64x128xf32>
    %78 = arith.mulf %64, %77 : vector<64x128xf32>
    %c384_35 = arith.constant 384 : index
    %c0_36 = arith.constant 0 : index
    %79 = vector.load %arg2[%c384_35, %c0_36] : memref<4592x128xf32, #tpu.memory_space<vmem>>, vector<128x128xf32>
    %cst_37 = arith.constant dense<0.000000e+00> : vector<64x128xf32>
    %80 = tpu.matmul %78, %79, %cst_37 {dimension_numbers = #tpu.dot_dimension_numbers<[1], [0], [0], [1], [0, 0, 1, 1], [], []>} : vector<64x128xf32>, vector<128x128xf32>, vector<64x128xf32> -> vector<64x128xf32>
    %81 = arith.addf %72, %80 : vector<64x128xf32>
    %c2248 = arith.constant 2248 : index
    %c0_38 = arith.constant 0 : index
    %82 = vector.load %arg2[%c2248, %c0_38] : memref<4592x128xf32, #tpu.memory_space<vmem>>, vector<128x128xf32>
    %cst_39 = arith.constant dense<0.000000e+00> : vector<64x128xf32>
    %83 = tpu.matmul %59, %82, %cst_39 {dimension_numbers = #tpu.dot_dimension_numbers<[1], [0], [0], [1], [0, 0, 1, 1], [], []>} : vector<64x128xf32>, vector<128x128xf32>, vector<64x128xf32> -> vector<64x128xf32>
    %c2376 = arith.constant 2376 : index
    %c0_40 = arith.constant 0 : index
    %84 = vector.load %arg2[%c2376, %c0_40] : memref<4592x128xf32, #tpu.memory_space<vmem>>, vector<1x128xf32>
    %85 = vector.broadcast %84 : vector<1x128xf32> to vector<64x128xf32>
    %86 = arith.addf %83, %85 : vector<64x128xf32>
    %87 = arith.mulf %64, %86 : vector<64x128xf32>
    %c640 = arith.constant 640 : index
    %c0_41 = arith.constant 0 : index
    %88 = vector.load %arg2[%c640, %c0_41] : memref<4592x128xf32, #tpu.memory_space<vmem>>, vector<128x128xf32>
    %cst_42 = arith.constant dense<0.000000e+00> : vector<64x128xf32>
    %89 = tpu.matmul %87, %88, %cst_42 {dimension_numbers = #tpu.dot_dimension_numbers<[1], [0], [0], [1], [0, 0, 1, 1], [], []>} : vector<64x128xf32>, vector<128x128xf32>, vector<64x128xf32> -> vector<64x128xf32>
    %90 = arith.addf %81, %89 : vector<64x128xf32>
    %c2520 = arith.constant 2520 : index
    %c0_43 = arith.constant 0 : index
    %91 = vector.load %arg2[%c2520, %c0_43] : memref<4592x128xf32, #tpu.memory_space<vmem>>, vector<128x128xf32>
    %cst_44 = arith.constant dense<0.000000e+00> : vector<64x128xf32>
    %92 = tpu.matmul %59, %91, %cst_44 {dimension_numbers = #tpu.dot_dimension_numbers<[1], [0], [0], [1], [0, 0, 1, 1], [], []>} : vector<64x128xf32>, vector<128x128xf32>, vector<64x128xf32> -> vector<64x128xf32>
    %c2648 = arith.constant 2648 : index
    %c0_45 = arith.constant 0 : index
    %93 = vector.load %arg2[%c2648, %c0_45] : memref<4592x128xf32, #tpu.memory_space<vmem>>, vector<1x128xf32>
    %94 = vector.broadcast %93 : vector<1x128xf32> to vector<64x128xf32>
    %95 = arith.addf %92, %94 : vector<64x128xf32>
    %96 = arith.mulf %64, %95 : vector<64x128xf32>
    %c896 = arith.constant 896 : index
    %c0_46 = arith.constant 0 : index
    %97 = vector.load %arg2[%c896, %c0_46] : memref<4592x128xf32, #tpu.memory_space<vmem>>, vector<128x128xf32>
    %cst_47 = arith.constant dense<0.000000e+00> : vector<64x128xf32>
    %98 = tpu.matmul %96, %97, %cst_47 {dimension_numbers = #tpu.dot_dimension_numbers<[1], [0], [0], [1], [0, 0, 1, 1], [], []>} : vector<64x128xf32>, vector<128x128xf32>, vector<64x128xf32> -> vector<64x128xf32>
    %99 = arith.addf %90, %98 : vector<64x128xf32>
    %cst_48 = arith.constant dense<0xFF800000> : vector<64xf32>
    %100 = vector.multi_reduction <maximumf>, %99, %cst_48 [1] : vector<64x128xf32> to vector<64xf32>
    %101 = vector.shape_cast %100 : vector<64xf32> to vector<64x1xf32>
    %102 = vector.broadcast %101 : vector<64x1xf32> to vector<64x128xf32>
    %103 = arith.subf %99, %102 : vector<64x128xf32>
    %104 = math.exp %103 : vector<64x128xf32>
    %c1152 = arith.constant 1152 : index
    %c0_49 = arith.constant 0 : index
    %105 = vector.load %arg2[%c1152, %c0_49] : memref<4592x128xf32, #tpu.memory_space<vmem>>, vector<128x128xf32>
    %cst_50 = arith.constant dense<0.000000e+00> : vector<64x128xf32>
    %106 = tpu.matmul %104, %105, %cst_50 {dimension_numbers = #tpu.dot_dimension_numbers<[1], [0], [0], [1], [0, 0, 1, 1], [], []>} : vector<64x128xf32>, vector<128x128xf32>, vector<64x128xf32> -> vector<64x128xf32>
    %107 = tpu.reciprocal %106 {approx = true} : vector<64x128xf32> -> vector<64x128xf32>
    %108 = arith.mulf %106, %107 : vector<64x128xf32>
    %cst_51 = arith.constant 2.000000e+00 : f32
    %109 = vector.broadcast %cst_51 : f32 to vector<64x128xf32>
    %110 = arith.subf %109, %108 : vector<64x128xf32>
    %111 = arith.mulf %107, %110 : vector<64x128xf32>
    %112 = arith.mulf %104, %111 : vector<64x128xf32>
    %c1840 = arith.constant 1840 : index
    %c0_52 = arith.constant 0 : index
    %113 = vector.load %arg2[%c1840, %c0_52] : memref<4592x128xf32, #tpu.memory_space<vmem>>, vector<128x128xf32>
    %cst_53 = arith.constant dense<0.000000e+00> : vector<64x128xf32>
    %114 = tpu.matmul %59, %113, %cst_53 {dimension_numbers = #tpu.dot_dimension_numbers<[1], [0], [0], [1], [0, 0, 1, 1], [], []>} : vector<64x128xf32>, vector<128x128xf32>, vector<64x128xf32> -> vector<64x128xf32>
    %c1968 = arith.constant 1968 : index
    %c0_54 = arith.constant 0 : index
    %115 = vector.load %arg2[%c1968, %c0_54] : memref<4592x128xf32, #tpu.memory_space<vmem>>, vector<1x128xf32>
    %116 = vector.broadcast %115 : vector<1x128xf32> to vector<64x128xf32>
    %117 = arith.addf %114, %116 : vector<64x128xf32>
    %c256_55 = arith.constant 256 : index
    %c0_56 = arith.constant 0 : index
    %118 = vector.load %arg2[%c256_55, %c0_56] : memref<4592x128xf32, #tpu.memory_space<vmem>>, vector<128x128xf32>
    %cst_57 = arith.constant dense<0.000000e+00> : vector<64x128xf32>
    %119 = tpu.matmul %112, %118, %cst_57 {dimension_numbers = #tpu.dot_dimension_numbers<[1], [0], [0], [1], [0, 0, 1, 1], [], []>} : vector<64x128xf32>, vector<128x128xf32>, vector<64x128xf32> -> vector<64x128xf32>
    %120 = arith.mulf %119, %117 : vector<64x128xf32>
    %c2112 = arith.constant 2112 : index
    %c0_58 = arith.constant 0 : index
    %121 = vector.load %arg2[%c2112, %c0_58] : memref<4592x128xf32, #tpu.memory_space<vmem>>, vector<128x128xf32>
    %cst_59 = arith.constant dense<0.000000e+00> : vector<64x128xf32>
    %122 = tpu.matmul %59, %121, %cst_59 {dimension_numbers = #tpu.dot_dimension_numbers<[1], [0], [0], [1], [0, 0, 1, 1], [], []>} : vector<64x128xf32>, vector<128x128xf32>, vector<64x128xf32> -> vector<64x128xf32>
    %c2240 = arith.constant 2240 : index
    %c0_60 = arith.constant 0 : index
    %123 = vector.load %arg2[%c2240, %c0_60] : memref<4592x128xf32, #tpu.memory_space<vmem>>, vector<1x128xf32>
    %124 = vector.broadcast %123 : vector<1x128xf32> to vector<64x128xf32>
    %125 = arith.addf %122, %124 : vector<64x128xf32>
    %c512 = arith.constant 512 : index
    %c0_61 = arith.constant 0 : index
    %126 = vector.load %arg2[%c512, %c0_61] : memref<4592x128xf32, #tpu.memory_space<vmem>>, vector<128x128xf32>
    %cst_62 = arith.constant dense<0.000000e+00> : vector<64x128xf32>
    %127 = tpu.matmul %112, %126, %cst_62 {dimension_numbers = #tpu.dot_dimension_numbers<[1], [0], [0], [1], [0, 0, 1, 1], [], []>} : vector<64x128xf32>, vector<128x128xf32>, vector<64x128xf32> -> vector<64x128xf32>
    %128 = arith.mulf %127, %125 : vector<64x128xf32>
    %129 = arith.addf %120, %128 : vector<64x128xf32>
    %c2384 = arith.constant 2384 : index
    %c0_63 = arith.constant 0 : index
    %130 = vector.load %arg2[%c2384, %c0_63] : memref<4592x128xf32, #tpu.memory_space<vmem>>, vector<128x128xf32>
    %cst_64 = arith.constant dense<0.000000e+00> : vector<64x128xf32>
    %131 = tpu.matmul %59, %130, %cst_64 {dimension_numbers = #tpu.dot_dimension_numbers<[1], [0], [0], [1], [0, 0, 1, 1], [], []>} : vector<64x128xf32>, vector<128x128xf32>, vector<64x128xf32> -> vector<64x128xf32>
    %c2512 = arith.constant 2512 : index
    %c0_65 = arith.constant 0 : index
    %132 = vector.load %arg2[%c2512, %c0_65] : memref<4592x128xf32, #tpu.memory_space<vmem>>, vector<1x128xf32>
    %133 = vector.broadcast %132 : vector<1x128xf32> to vector<64x128xf32>
    %134 = arith.addf %131, %133 : vector<64x128xf32>
    %c768 = arith.constant 768 : index
    %c0_66 = arith.constant 0 : index
    %135 = vector.load %arg2[%c768, %c0_66] : memref<4592x128xf32, #tpu.memory_space<vmem>>, vector<128x128xf32>
    %cst_67 = arith.constant dense<0.000000e+00> : vector<64x128xf32>
    %136 = tpu.matmul %112, %135, %cst_67 {dimension_numbers = #tpu.dot_dimension_numbers<[1], [0], [0], [1], [0, 0, 1, 1], [], []>} : vector<64x128xf32>, vector<128x128xf32>, vector<64x128xf32> -> vector<64x128xf32>
    %137 = arith.mulf %136, %134 : vector<64x128xf32>
    %138 = arith.addf %129, %137 : vector<64x128xf32>
    %c2656 = arith.constant 2656 : index
    %c0_68 = arith.constant 0 : index
    %139 = vector.load %arg2[%c2656, %c0_68] : memref<4592x128xf32, #tpu.memory_space<vmem>>, vector<128x128xf32>
    %cst_69 = arith.constant dense<0.000000e+00> : vector<64x128xf32>
    %140 = tpu.matmul %59, %139, %cst_69 {dimension_numbers = #tpu.dot_dimension_numbers<[1], [0], [0], [1], [0, 0, 1, 1], [], []>} : vector<64x128xf32>, vector<128x128xf32>, vector<64x128xf32> -> vector<64x128xf32>
    %c2784 = arith.constant 2784 : index
    %c0_70 = arith.constant 0 : index
    %141 = vector.load %arg2[%c2784, %c0_70] : memref<4592x128xf32, #tpu.memory_space<vmem>>, vector<1x128xf32>
    %142 = vector.broadcast %141 : vector<1x128xf32> to vector<64x128xf32>
    %143 = arith.addf %140, %142 : vector<64x128xf32>
    %c1024 = arith.constant 1024 : index
    %c0_71 = arith.constant 0 : index
    %144 = vector.load %arg2[%c1024, %c0_71] : memref<4592x128xf32, #tpu.memory_space<vmem>>, vector<128x128xf32>
    %cst_72 = arith.constant dense<0.000000e+00> : vector<64x128xf32>
    %145 = tpu.matmul %112, %144, %cst_72 {dimension_numbers = #tpu.dot_dimension_numbers<[1], [0], [0], [1], [0, 0, 1, 1], [], []>} : vector<64x128xf32>, vector<128x128xf32>, vector<64x128xf32> -> vector<64x128xf32>
    %146 = arith.mulf %145, %143 : vector<64x128xf32>
    %147 = arith.addf %138, %146 : vector<64x128xf32>
    %c2792 = arith.constant 2792 : index
    %c0_73 = arith.constant 0 : index
    %148 = vector.load %arg2[%c2792, %c0_73] : memref<4592x128xf32, #tpu.memory_space<vmem>>, vector<128x128xf32>
    %cst_74 = arith.constant dense<0.000000e+00> : vector<64x128xf32>
    %149 = tpu.matmul %147, %148, %cst_74 {dimension_numbers = #tpu.dot_dimension_numbers<[1], [0], [0], [1], [0, 0, 1, 1], [], []>} : vector<64x128xf32>, vector<128x128xf32>, vector<64x128xf32> -> vector<64x128xf32>
    %c2920 = arith.constant 2920 : index
    %c0_75 = arith.constant 0 : index
    %150 = vector.load %arg2[%c2920, %c0_75] : memref<4592x128xf32, #tpu.memory_space<vmem>>, vector<1x128xf32>
    %151 = vector.broadcast %150 : vector<1x128xf32> to vector<64x128xf32>
    %152 = arith.addf %149, %151 : vector<64x128xf32>
    %153 = arith.addf %59, %152 : vector<64x128xf32>
    %c2928 = arith.constant 2928 : index
    %c0_76 = arith.constant 0 : index
    %154 = vector.load %arg2[%c2928, %c0_76] : memref<4592x128xf32, #tpu.memory_space<vmem>>, vector<1x128xf32>
    %155 = vector.broadcast %154 : vector<1x128xf32> to vector<64x128xf32>
    %156 = arith.mulf %153, %155 : vector<64x128xf32>
    %c2936 = arith.constant 2936 : index
    %c0_77 = arith.constant 0 : index
    %157 = vector.load %arg2[%c2936, %c0_77] : memref<4592x128xf32, #tpu.memory_space<vmem>>, vector<1x128xf32>
    %c2944 = arith.constant 2944 : index
    %c0_78 = arith.constant 0 : index
    %158 = vector.load %arg2[%c2944, %c0_78] : memref<4592x128xf32, #tpu.memory_space<vmem>>, vector<1x128xf32>
    %c2952 = arith.constant 2952 : index
    %c0_79 = arith.constant 0 : index
    %159 = vector.load %arg2[%c2952, %c0_79] : memref<4592x128xf32, #tpu.memory_space<vmem>>, vector<1x128xf32>
    %c0_80 = arith.constant 0 : index
    %c0_81 = arith.constant 0 : index
    %160 = vector.load %arg2[%c0_80, %c0_81] : memref<4592x128xf32, #tpu.memory_space<vmem>>, vector<128x128xf32>
    %cst_82 = arith.constant dense<0.000000e+00> : vector<64x128xf32>
    %161 = tpu.matmul %156, %160, %cst_82 {dimension_numbers = #tpu.dot_dimension_numbers<[1], [0], [0], [1], [0, 0, 1, 1], [], []>} : vector<64x128xf32>, vector<128x128xf32>, vector<64x128xf32> -> vector<64x128xf32>
    %162 = arith.subf %156, %161 : vector<64x128xf32>
    %163 = arith.mulf %162, %162 : vector<64x128xf32>
    %cst_83 = arith.constant dense<0.000000e+00> : vector<64x128xf32>
    %164 = tpu.matmul %163, %160, %cst_83 {dimension_numbers = #tpu.dot_dimension_numbers<[1], [0], [0], [1], [0, 0, 1, 1], [], []>} : vector<64x128xf32>, vector<128x128xf32>, vector<64x128xf32> -> vector<64x128xf32>
    %cst_84 = arith.constant 9.99999974E-6 : f32
    %165 = vector.broadcast %cst_84 : f32 to vector<64x128xf32>
    %166 = arith.addf %164, %165 : vector<64x128xf32>
    %167 = math.rsqrt %166 : vector<64x128xf32>
    %168 = arith.mulf %162, %167 : vector<64x128xf32>
    %169 = vector.broadcast %157 : vector<1x128xf32> to vector<64x128xf32>
    %170 = arith.mulf %168, %169 : vector<64x128xf32>
    %171 = vector.broadcast %158 : vector<1x128xf32> to vector<64x128xf32>
    %172 = arith.addf %170, %171 : vector<64x128xf32>
    %173 = vector.broadcast %159 : vector<1x128xf32> to vector<64x128xf32>
    %174 = arith.mulf %173, %172 : vector<64x128xf32>
    %175 = arith.negf %174 : vector<64x128xf32>
    %176 = math.exp %175 : vector<64x128xf32>
    %cst_85 = arith.constant 1.000000e+00 : f32
    %177 = vector.broadcast %cst_85 : f32 to vector<64x128xf32>
    %178 = arith.addf %177, %176 : vector<64x128xf32>
    %179 = arith.divf %177, %178 : vector<64x128xf32>
    %180 = arith.mulf %172, %179 : vector<64x128xf32>
    %c416 = arith.constant 416 : index
    %c0_86 = arith.constant 0 : index
    %181 = vector.load %arg3[%c416, %c0_86] : memref<576x256xf32, #tpu.memory_space<vmem>>, vector<128x256xf32>
    %cst_87 = arith.constant dense<0.000000e+00> : vector<64x256xf32>
    %182 = tpu.matmul %180, %181, %cst_87 {dimension_numbers = #tpu.dot_dimension_numbers<[1], [0], [0], [1], [0, 0, 1, 1], [], []>} : vector<64x128xf32>, vector<128x256xf32>, vector<64x256xf32> -> vector<64x256xf32>
    %c544 = arith.constant 544 : index
    %c0_88 = arith.constant 0 : index
    %183 = vector.load %arg3[%c544, %c0_88] : memref<576x256xf32, #tpu.memory_space<vmem>>, vector<1x256xf32>
    %184 = vector.broadcast %183 : vector<1x256xf32> to vector<64x256xf32>
    %185 = arith.addf %182, %184 : vector<64x256xf32>
    %c552 = arith.constant 552 : index
    %c0_89 = arith.constant 0 : index
    %186 = vector.load %arg3[%c552, %c0_89] : memref<576x256xf32, #tpu.memory_space<vmem>>, vector<1x256xf32>
    %c560 = arith.constant 560 : index
    %c0_90 = arith.constant 0 : index
    %187 = vector.load %arg3[%c560, %c0_90] : memref<576x256xf32, #tpu.memory_space<vmem>>, vector<1x256xf32>
    %c568 = arith.constant 568 : index
    %c0_91 = arith.constant 0 : index
    %188 = vector.load %arg3[%c568, %c0_91] : memref<576x256xf32, #tpu.memory_space<vmem>>, vector<1x256xf32>
    %c0_92 = arith.constant 0 : index
    %c0_93 = arith.constant 0 : index
    %189 = vector.load %arg3[%c0_92, %c0_93] : memref<576x256xf32, #tpu.memory_space<vmem>>, vector<256x256xf32>
    %cst_94 = arith.constant dense<0.000000e+00> : vector<64x256xf32>
    %190 = tpu.matmul %185, %189, %cst_94 {dimension_numbers = #tpu.dot_dimension_numbers<[1], [0], [0], [1], [0, 0, 1, 1], [], []>} : vector<64x256xf32>, vector<256x256xf32>, vector<64x256xf32> -> vector<64x256xf32>
    %191 = arith.subf %185, %190 : vector<64x256xf32>
    %192 = arith.mulf %191, %191 : vector<64x256xf32>
    %cst_95 = arith.constant dense<0.000000e+00> : vector<64x256xf32>
    %193 = tpu.matmul %192, %189, %cst_95 {dimension_numbers = #tpu.dot_dimension_numbers<[1], [0], [0], [1], [0, 0, 1, 1], [], []>} : vector<64x256xf32>, vector<256x256xf32>, vector<64x256xf32> -> vector<64x256xf32>
    %cst_96 = arith.constant 9.99999974E-6 : f32
    %194 = vector.broadcast %cst_96 : f32 to vector<64x256xf32>
    %195 = arith.addf %193, %194 : vector<64x256xf32>
    %196 = math.rsqrt %195 : vector<64x256xf32>
    %197 = arith.mulf %191, %196 : vector<64x256xf32>
    %198 = vector.broadcast %186 : vector<1x256xf32> to vector<64x256xf32>
    %199 = arith.mulf %197, %198 : vector<64x256xf32>
    %200 = vector.broadcast %187 : vector<1x256xf32> to vector<64x256xf32>
    %201 = arith.addf %199, %200 : vector<64x256xf32>
    %202 = vector.broadcast %188 : vector<1x256xf32> to vector<64x256xf32>
    %203 = arith.mulf %202, %201 : vector<64x256xf32>
    %204 = arith.negf %203 : vector<64x256xf32>
    %205 = math.exp %204 : vector<64x256xf32>
    %cst_97 = arith.constant 1.000000e+00 : f32
    %206 = vector.broadcast %cst_97 : f32 to vector<64x256xf32>
    %207 = arith.addf %206, %205 : vector<64x256xf32>
    %208 = arith.divf %206, %207 : vector<64x256xf32>
    %209 = arith.mulf %201, %208 : vector<64x256xf32>
    %c2960 = arith.constant 2960 : index
    %c0_98 = arith.constant 0 : index
    %210 = vector.load %arg2[%c2960, %c0_98] : memref<4592x128xf32, #tpu.memory_space<vmem>>, vector<256x128xf32>
    %cst_99 = arith.constant dense<0.000000e+00> : vector<64x128xf32>
    %211 = tpu.matmul %209, %210, %cst_99 {dimension_numbers = #tpu.dot_dimension_numbers<[1], [0], [0], [1], [0, 0, 1, 1], [], []>} : vector<64x256xf32>, vector<256x128xf32>, vector<64x128xf32> -> vector<64x128xf32>
    %c3216 = arith.constant 3216 : index
    %c0_100 = arith.constant 0 : index
    %212 = vector.load %arg2[%c3216, %c0_100] : memref<4592x128xf32, #tpu.memory_space<vmem>>, vector<1x128xf32>
    %213 = vector.broadcast %212 : vector<1x128xf32> to vector<64x128xf32>
    %214 = arith.addf %211, %213 : vector<64x128xf32>
    %215 = arith.addf %156, %214 : vector<64x128xf32>
    %c3224 = arith.constant 3224 : index
    %c0_101 = arith.constant 0 : index
    %216 = vector.load %arg2[%c3224, %c0_101] : memref<4592x128xf32, #tpu.memory_space<vmem>>, vector<128x128xf32>
    %cst_102 = arith.constant dense<0.000000e+00> : vector<64x128xf32>
    %217 = tpu.matmul %215, %216, %cst_102 {dimension_numbers = #tpu.dot_dimension_numbers<[1], [0], [0], [1], [0, 0, 1, 1], [], []>} : vector<64x128xf32>, vector<128x128xf32>, vector<64x128xf32> -> vector<64x128xf32>
    %c3352 = arith.constant 3352 : index
    %c0_103 = arith.constant 0 : index
    %218 = vector.load %arg2[%c3352, %c0_103] : memref<4592x128xf32, #tpu.memory_space<vmem>>, vector<1x128xf32>
    %219 = vector.broadcast %218 : vector<1x128xf32> to vector<64x128xf32>
    %220 = arith.addf %217, %219 : vector<64x128xf32>
    %c3360 = arith.constant 3360 : index
    %c0_104 = arith.constant 0 : index
    %221 = vector.load %arg2[%c3360, %c0_104] : memref<4592x128xf32, #tpu.memory_space<vmem>>, vector<128x128xf32>
    %cst_105 = arith.constant dense<0.000000e+00> : vector<64x128xf32>
    %222 = tpu.matmul %215, %221, %cst_105 {dimension_numbers = #tpu.dot_dimension_numbers<[1], [0], [0], [1], [0, 0, 1, 1], [], []>} : vector<64x128xf32>, vector<128x128xf32>, vector<64x128xf32> -> vector<64x128xf32>
    %c3488 = arith.constant 3488 : index
    %c0_106 = arith.constant 0 : index
    %223 = vector.load %arg2[%c3488, %c0_106] : memref<4592x128xf32, #tpu.memory_space<vmem>>, vector<1x128xf32>
    %224 = vector.broadcast %223 : vector<1x128xf32> to vector<64x128xf32>
    %225 = arith.addf %222, %224 : vector<64x128xf32>
    %226 = arith.mulf %220, %225 : vector<64x128xf32>
    %c128_107 = arith.constant 128 : index
    %c0_108 = arith.constant 0 : index
    %227 = vector.load %arg2[%c128_107, %c0_108] : memref<4592x128xf32, #tpu.memory_space<vmem>>, vector<128x128xf32>
    %cst_109 = arith.constant dense<0.000000e+00> : vector<64x128xf32>
    %228 = tpu.matmul %226, %227, %cst_109 {dimension_numbers = #tpu.dot_dimension_numbers<[1], [0], [0], [1], [0, 0, 1, 1], [], []>} : vector<64x128xf32>, vector<128x128xf32>, vector<64x128xf32> -> vector<64x128xf32>
    %c3632 = arith.constant 3632 : index
    %c0_110 = arith.constant 0 : index
    %229 = vector.load %arg2[%c3632, %c0_110] : memref<4592x128xf32, #tpu.memory_space<vmem>>, vector<128x128xf32>
    %cst_111 = arith.constant dense<0.000000e+00> : vector<64x128xf32>
    %230 = tpu.matmul %215, %229, %cst_111 {dimension_numbers = #tpu.dot_dimension_numbers<[1], [0], [0], [1], [0, 0, 1, 1], [], []>} : vector<64x128xf32>, vector<128x128xf32>, vector<64x128xf32> -> vector<64x128xf32>
    %c3760 = arith.constant 3760 : index
    %c0_112 = arith.constant 0 : index
    %231 = vector.load %arg2[%c3760, %c0_112] : memref<4592x128xf32, #tpu.memory_space<vmem>>, vector<1x128xf32>
    %232 = vector.broadcast %231 : vector<1x128xf32> to vector<64x128xf32>
    %233 = arith.addf %230, %232 : vector<64x128xf32>
    %234 = arith.mulf %220, %233 : vector<64x128xf32>
    %c384_113 = arith.constant 384 : index
    %c0_114 = arith.constant 0 : index
    %235 = vector.load %arg2[%c384_113, %c0_114] : memref<4592x128xf32, #tpu.memory_space<vmem>>, vector<128x128xf32>
    %cst_115 = arith.constant dense<0.000000e+00> : vector<64x128xf32>
    %236 = tpu.matmul %234, %235, %cst_115 {dimension_numbers = #tpu.dot_dimension_numbers<[1], [0], [0], [1], [0, 0, 1, 1], [], []>} : vector<64x128xf32>, vector<128x128xf32>, vector<64x128xf32> -> vector<64x128xf32>
    %237 = arith.addf %228, %236 : vector<64x128xf32>
    %c3904 = arith.constant 3904 : index
    %c0_116 = arith.constant 0 : index
    %238 = vector.load %arg2[%c3904, %c0_116] : memref<4592x128xf32, #tpu.memory_space<vmem>>, vector<128x128xf32>
    %cst_117 = arith.constant dense<0.000000e+00> : vector<64x128xf32>
    %239 = tpu.matmul %215, %238, %cst_117 {dimension_numbers = #tpu.dot_dimension_numbers<[1], [0], [0], [1], [0, 0, 1, 1], [], []>} : vector<64x128xf32>, vector<128x128xf32>, vector<64x128xf32> -> vector<64x128xf32>
    %c4032 = arith.constant 4032 : index
    %c0_118 = arith.constant 0 : index
    %240 = vector.load %arg2[%c4032, %c0_118] : memref<4592x128xf32, #tpu.memory_space<vmem>>, vector<1x128xf32>
    %241 = vector.broadcast %240 : vector<1x128xf32> to vector<64x128xf32>
    %242 = arith.addf %239, %241 : vector<64x128xf32>
    %243 = arith.mulf %220, %242 : vector<64x128xf32>
    %c640_119 = arith.constant 640 : index
    %c0_120 = arith.constant 0 : index
    %244 = vector.load %arg2[%c640_119, %c0_120] : memref<4592x128xf32, #tpu.memory_space<vmem>>, vector<128x128xf32>
    %cst_121 = arith.constant dense<0.000000e+00> : vector<64x128xf32>
    %245 = tpu.matmul %243, %244, %cst_121 {dimension_numbers = #tpu.dot_dimension_numbers<[1], [0], [0], [1], [0, 0, 1, 1], [], []>} : vector<64x128xf32>, vector<128x128xf32>, vector<64x128xf32> -> vector<64x128xf32>
    %246 = arith.addf %237, %245 : vector<64x128xf32>
    %c4176 = arith.constant 4176 : index
    %c0_122 = arith.constant 0 : index
    %247 = vector.load %arg2[%c4176, %c0_122] : memref<4592x128xf32, #tpu.memory_space<vmem>>, vector<128x128xf32>
    %cst_123 = arith.constant dense<0.000000e+00> : vector<64x128xf32>
    %248 = tpu.matmul %215, %247, %cst_123 {dimension_numbers = #tpu.dot_dimension_numbers<[1], [0], [0], [1], [0, 0, 1, 1], [], []>} : vector<64x128xf32>, vector<128x128xf32>, vector<64x128xf32> -> vector<64x128xf32>
    %c4304 = arith.constant 4304 : index
    %c0_124 = arith.constant 0 : index
    %249 = vector.load %arg2[%c4304, %c0_124] : memref<4592x128xf32, #tpu.memory_space<vmem>>, vector<1x128xf32>
    %250 = vector.broadcast %249 : vector<1x128xf32> to vector<64x128xf32>
    %251 = arith.addf %248, %250 : vector<64x128xf32>
    %252 = arith.mulf %220, %251 : vector<64x128xf32>
    %c896_125 = arith.constant 896 : index
    %c0_126 = arith.constant 0 : index
    %253 = vector.load %arg2[%c896_125, %c0_126] : memref<4592x128xf32, #tpu.memory_space<vmem>>, vector<128x128xf32>
    %cst_127 = arith.constant dense<0.000000e+00> : vector<64x128xf32>
    %254 = tpu.matmul %252, %253, %cst_127 {dimension_numbers = #tpu.dot_dimension_numbers<[1], [0], [0], [1], [0, 0, 1, 1], [], []>} : vector<64x128xf32>, vector<128x128xf32>, vector<64x128xf32> -> vector<64x128xf32>
    %255 = arith.addf %246, %254 : vector<64x128xf32>
    %cst_128 = arith.constant dense<0xFF800000> : vector<64xf32>
    %256 = vector.multi_reduction <maximumf>, %255, %cst_128 [1] : vector<64x128xf32> to vector<64xf32>
    %257 = vector.shape_cast %256 : vector<64xf32> to vector<64x1xf32>
    %258 = vector.broadcast %257 : vector<64x1xf32> to vector<64x128xf32>
    %259 = arith.subf %255, %258 : vector<64x128xf32>
    %260 = math.exp %259 : vector<64x128xf32>
    %c1152_129 = arith.constant 1152 : index
    %c0_130 = arith.constant 0 : index
    %261 = vector.load %arg2[%c1152_129, %c0_130] : memref<4592x128xf32, #tpu.memory_space<vmem>>, vector<128x128xf32>
    %cst_131 = arith.constant dense<0.000000e+00> : vector<64x128xf32>
    %262 = tpu.matmul %260, %261, %cst_131 {dimension_numbers = #tpu.dot_dimension_numbers<[1], [0], [0], [1], [0, 0, 1, 1], [], []>} : vector<64x128xf32>, vector<128x128xf32>, vector<64x128xf32> -> vector<64x128xf32>
    %263 = tpu.reciprocal %262 {approx = true} : vector<64x128xf32> -> vector<64x128xf32>
    %264 = arith.mulf %262, %263 : vector<64x128xf32>
    %cst_132 = arith.constant 2.000000e+00 : f32
    %265 = vector.broadcast %cst_132 : f32 to vector<64x128xf32>
    %266 = arith.subf %265, %264 : vector<64x128xf32>
    %267 = arith.mulf %263, %266 : vector<64x128xf32>
    %268 = arith.mulf %260, %267 : vector<64x128xf32>
    %c3496 = arith.constant 3496 : index
    %c0_133 = arith.constant 0 : index
    %269 = vector.load %arg2[%c3496, %c0_133] : memref<4592x128xf32, #tpu.memory_space<vmem>>, vector<128x128xf32>
    %cst_134 = arith.constant dense<0.000000e+00> : vector<64x128xf32>
    %270 = tpu.matmul %215, %269, %cst_134 {dimension_numbers = #tpu.dot_dimension_numbers<[1], [0], [0], [1], [0, 0, 1, 1], [], []>} : vector<64x128xf32>, vector<128x128xf32>, vector<64x128xf32> -> vector<64x128xf32>
    %c3624 = arith.constant 3624 : index
    %c0_135 = arith.constant 0 : index
    %271 = vector.load %arg2[%c3624, %c0_135] : memref<4592x128xf32, #tpu.memory_space<vmem>>, vector<1x128xf32>
    %272 = vector.broadcast %271 : vector<1x128xf32> to vector<64x128xf32>
    %273 = arith.addf %270, %272 : vector<64x128xf32>
    %c256_136 = arith.constant 256 : index
    %c0_137 = arith.constant 0 : index
    %274 = vector.load %arg2[%c256_136, %c0_137] : memref<4592x128xf32, #tpu.memory_space<vmem>>, vector<128x128xf32>
    %cst_138 = arith.constant dense<0.000000e+00> : vector<64x128xf32>
    %275 = tpu.matmul %268, %274, %cst_138 {dimension_numbers = #tpu.dot_dimension_numbers<[1], [0], [0], [1], [0, 0, 1, 1], [], []>} : vector<64x128xf32>, vector<128x128xf32>, vector<64x128xf32> -> vector<64x128xf32>
    %276 = arith.mulf %275, %273 : vector<64x128xf32>
    %c3768 = arith.constant 3768 : index
    %c0_139 = arith.constant 0 : index
    %277 = vector.load %arg2[%c3768, %c0_139] : memref<4592x128xf32, #tpu.memory_space<vmem>>, vector<128x128xf32>
    %cst_140 = arith.constant dense<0.000000e+00> : vector<64x128xf32>
    %278 = tpu.matmul %215, %277, %cst_140 {dimension_numbers = #tpu.dot_dimension_numbers<[1], [0], [0], [1], [0, 0, 1, 1], [], []>} : vector<64x128xf32>, vector<128x128xf32>, vector<64x128xf32> -> vector<64x128xf32>
    %c3896 = arith.constant 3896 : index
    %c0_141 = arith.constant 0 : index
    %279 = vector.load %arg2[%c3896, %c0_141] : memref<4592x128xf32, #tpu.memory_space<vmem>>, vector<1x128xf32>
    %280 = vector.broadcast %279 : vector<1x128xf32> to vector<64x128xf32>
    %281 = arith.addf %278, %280 : vector<64x128xf32>
    %c512_142 = arith.constant 512 : index
    %c0_143 = arith.constant 0 : index
    %282 = vector.load %arg2[%c512_142, %c0_143] : memref<4592x128xf32, #tpu.memory_space<vmem>>, vector<128x128xf32>
    %cst_144 = arith.constant dense<0.000000e+00> : vector<64x128xf32>
    %283 = tpu.matmul %268, %282, %cst_144 {dimension_numbers = #tpu.dot_dimension_numbers<[1], [0], [0], [1], [0, 0, 1, 1], [], []>} : vector<64x128xf32>, vector<128x128xf32>, vector<64x128xf32> -> vector<64x128xf32>
    %284 = arith.mulf %283, %281 : vector<64x128xf32>
    %285 = arith.addf %276, %284 : vector<64x128xf32>
    %c4040 = arith.constant 4040 : index
    %c0_145 = arith.constant 0 : index
    %286 = vector.load %arg2[%c4040, %c0_145] : memref<4592x128xf32, #tpu.memory_space<vmem>>, vector<128x128xf32>
    %cst_146 = arith.constant dense<0.000000e+00> : vector<64x128xf32>
    %287 = tpu.matmul %215, %286, %cst_146 {dimension_numbers = #tpu.dot_dimension_numbers<[1], [0], [0], [1], [0, 0, 1, 1], [], []>} : vector<64x128xf32>, vector<128x128xf32>, vector<64x128xf32> -> vector<64x128xf32>
    %c4168 = arith.constant 4168 : index
    %c0_147 = arith.constant 0 : index
    %288 = vector.load %arg2[%c4168, %c0_147] : memref<4592x128xf32, #tpu.memory_space<vmem>>, vector<1x128xf32>
    %289 = vector.broadcast %288 : vector<1x128xf32> to vector<64x128xf32>
    %290 = arith.addf %287, %289 : vector<64x128xf32>
    %c768_148 = arith.constant 768 : index
    %c0_149 = arith.constant 0 : index
    %291 = vector.load %arg2[%c768_148, %c0_149] : memref<4592x128xf32, #tpu.memory_space<vmem>>, vector<128x128xf32>
    %cst_150 = arith.constant dense<0.000000e+00> : vector<64x128xf32>
    %292 = tpu.matmul %268, %291, %cst_150 {dimension_numbers = #tpu.dot_dimension_numbers<[1], [0], [0], [1], [0, 0, 1, 1], [], []>} : vector<64x128xf32>, vector<128x128xf32>, vector<64x128xf32> -> vector<64x128xf32>
    %293 = arith.mulf %292, %290 : vector<64x128xf32>
    %294 = arith.addf %285, %293 : vector<64x128xf32>
    %c4312 = arith.constant 4312 : index
    %c0_151 = arith.constant 0 : index
    %295 = vector.load %arg2[%c4312, %c0_151] : memref<4592x128xf32, #tpu.memory_space<vmem>>, vector<128x128xf32>
    %cst_152 = arith.constant dense<0.000000e+00> : vector<64x128xf32>
    %296 = tpu.matmul %215, %295, %cst_152 {dimension_numbers = #tpu.dot_dimension_numbers<[1], [0], [0], [1], [0, 0, 1, 1], [], []>} : vector<64x128xf32>, vector<128x128xf32>, vector<64x128xf32> -> vector<64x128xf32>
    %c4440 = arith.constant 4440 : index
    %c0_153 = arith.constant 0 : index
    %297 = vector.load %arg2[%c4440, %c0_153] : memref<4592x128xf32, #tpu.memory_space<vmem>>, vector<1x128xf32>
    %298 = vector.broadcast %297 : vector<1x128xf32> to vector<64x128xf32>
    %299 = arith.addf %296, %298 : vector<64x128xf32>
    %c1024_154 = arith.constant 1024 : index
    %c0_155 = arith.constant 0 : index
    %300 = vector.load %arg2[%c1024_154, %c0_155] : memref<4592x128xf32, #tpu.memory_space<vmem>>, vector<128x128xf32>
    %cst_156 = arith.constant dense<0.000000e+00> : vector<64x128xf32>
    %301 = tpu.matmul %268, %300, %cst_156 {dimension_numbers = #tpu.dot_dimension_numbers<[1], [0], [0], [1], [0, 0, 1, 1], [], []>} : vector<64x128xf32>, vector<128x128xf32>, vector<64x128xf32> -> vector<64x128xf32>
    %302 = arith.mulf %301, %299 : vector<64x128xf32>
    %303 = arith.addf %294, %302 : vector<64x128xf32>
    %c4448 = arith.constant 4448 : index
    %c0_157 = arith.constant 0 : index
    %304 = vector.load %arg2[%c4448, %c0_157] : memref<4592x128xf32, #tpu.memory_space<vmem>>, vector<128x128xf32>
    %cst_158 = arith.constant dense<0.000000e+00> : vector<64x128xf32>
    %305 = tpu.matmul %303, %304, %cst_158 {dimension_numbers = #tpu.dot_dimension_numbers<[1], [0], [0], [1], [0, 0, 1, 1], [], []>} : vector<64x128xf32>, vector<128x128xf32>, vector<64x128xf32> -> vector<64x128xf32>
    %c4576 = arith.constant 4576 : index
    %c0_159 = arith.constant 0 : index
    %306 = vector.load %arg2[%c4576, %c0_159] : memref<4592x128xf32, #tpu.memory_space<vmem>>, vector<1x128xf32>
    %307 = vector.broadcast %306 : vector<1x128xf32> to vector<64x128xf32>
    %308 = arith.addf %305, %307 : vector<64x128xf32>
    %309 = arith.addf %215, %308 : vector<64x128xf32>
    %c4584 = arith.constant 4584 : index
    %c0_160 = arith.constant 0 : index
    %310 = vector.load %arg2[%c4584, %c0_160] : memref<4592x128xf32, #tpu.memory_space<vmem>>, vector<1x128xf32>
    %311 = vector.broadcast %310 : vector<1x128xf32> to vector<64x128xf32>
    %312 = arith.mulf %309, %311 : vector<64x128xf32>
    %c0_161 = arith.constant 0 : index
    %c0_162 = arith.constant 0 : index
    %313 = vector.load %arg4[%c0_161, %c0_162] : memref<64x128xf32, #tpu.memory_space<vmem>>, vector<64x128xf32>
    tpu.vector_store %arg4[%c0_161, %c0_162], %312 {strides = array<i32>} : memref<64x128xf32, #tpu.memory_space<vmem>>, vector<64x128xf32>,
    return
  }
  func.func @transform_0(%arg0: i32) -> (i32, i32) {
    %c0_i32 = arith.constant 0 : i32
    %c0_i32_0 = arith.constant 0 : i32
    return %arg0, %c0_i32 : i32, i32
  }
  func.func @transform_1(%arg0: i32) -> (i32, i32) {
    %c0_i32 = arith.constant 0 : i32
    %c0_i32_0 = arith.constant 0 : i32
    %c0_i32_1 = arith.constant 0 : i32
    return %c0_i32, %c0_i32_0 : i32, i32
  }
  func.func @transform_2(%arg0: i32) -> (i32, i32) {
    %c0_i32 = arith.constant 0 : i32
    %c0_i32_0 = arith.constant 0 : i32
    %c0_i32_1 = arith.constant 0 : i32
    return %c0_i32, %c0_i32_0 : i32, i32
  }
  func.func @transform_3(%arg0: i32) -> (i32, i32) {
    %c0_i32 = arith.constant 0 : i32
    %c0_i32_0 = arith.constant 0 : i32
    return %arg0, %c0_i32 : i32, i32
  }
}

</mosaic_0001>

<bundles_post_ra>
// kernel: fwd.1
= control target key start
LH: loop header
LB: loop body
LE: loop exit
PB: predicated region body
PF: predicated region fallthrough
CT: control target
= control target key end

     0   :  { %8 = vsyncpa [#allocation3], 0  ;;  %s10684_s0 = inlined_call_operand.vmem [shape: f32[128,128], index: 0, kind: input, shape index: {}]   ;;  %s10685_s1 = inlined_call_operand.hbm [shape: f32[4592,128], index: 1, kind: input, shape index: {}]   ;;  %s10686_s2 = inlined_call_operand.hbm [shape: f32[576,256], index: 2, kind: input, shape index: {}]   ;;  %s10687_s3 = inlined_call_operand.vmem [shape: f32[128,128], index: 3, kind: output, shape index: {}]  }
   0x1   :  { %9 = vsyncpa [#allocation5], 0  ;;  %s6800_s12 = smov 0  }
   0x2 LB: > { %s125_s15 = sshll.u32 %s10685_s1, 4  ;;  %s5940_s16 = sadd.s32 4294967295, %s6772_s12   ;;  %s6772_s12 = sphi %s6800_s12, %s15_s12   ;;  %s126_s15 = int_to_ptr.hbm [resolvable:$true] %s125_s15 }
   0x3   : > { %p5942_p0 = scmp.ge.s32.totalorder %s6772_s12, 1  ;;  %p114_p1 = scmp.lt.s32.totalorder %s6772_s12, 3 }
   0x4   : > { %p6813_p2 = scmp.eq.s32.totalorder %s5940_s16, 0  ;;  %s6774_s19 = smov [#allocation2]  }
   0x5   : > { %p6817_p3 = pnand %p5942_p0, %p114_p1  ;;  %s127_s20 = sshll.u32 %s6774_s19, 4  ;;  %s128_s20 = int_to_ptr.vmem [resolvable:$true] %s127_s20 }
   0x6   : > { %s139_s23 = sshll.u32 %s10686_s2, 4  ;;  %s6775_s24 = smov [#allocation4]   ;;  %s140_s23 = int_to_ptr.hbm [resolvable:$true] %s139_s23 }
   0x7   : > { %p6043_p4 = pneg %p6817_p3  ;;  %s141_s25 = sshll.u32 %s6775_s24, 4  ;;  %s142_s25 = int_to_ptr.vmem [resolvable:$true] %s141_s25 }
   0x8   : > { %s6776_s26 = smov 128   ;;  %s6777_s27 = smov 8  }
   0x9   : > { %p6044_p5 = pnand %p6813_p2, %p6043_p4  ;;  %s6778_s28 = smov 256  }
   0xa   : > { %s6779_s29 = smov 16   ;;  %166 = sbr.rel (%p6817_p3) target bundleno = 4154 (0x103a), region = 32 }
   0xb   : > { %6046 = dma.hbm_to_vmem [thread:$0]  (!%p6044_p5), %s126_s15, 73472, %s128_s20, [#allocation3], %s6776_s26, %s6776_s26, %s6777_s27  }
   0xc   : > { %6049 = dma.hbm_to_vmem [thread:$0]  (!%p6044_p5), %s140_s23, 18432, %s142_s25, [#allocation5], %s6778_s28, %s6778_s28, %s6779_s29  }
   0xf   : > { %6763 = dma.done.wait (%p6813_p2), [#allocation3], 73472  }
  0x10   : > { %6765 = vsyncadd (%p6813_p2), [#allocation3], 4294893824 }
  0x11   : > { %6767 = dma.done.wait (%p6813_p2), [#allocation5], 18432  }
  0x12   : > { %6769 = vsyncadd (%p6813_p2), [#allocation5], 4294948864  ;;  %v234_v0 = vld [vmem:[#allocation2 + $0x78] sm:$0xff]  ;;  %v233_v1 = vld [vmem:[#allocation2 + $0x70] sm:$0xff]  ;;  %s6840_s30 = sshll.u32 %s5940_s16, 3 }
  0x13   : > { %235 = vmatpush.msra.mxu0 %v234_v0  ;;  %6003 = vmatpush.msra.mxu2 %v234_v0  ;;  %v232_v2 = vld [vmem:[#allocation2 + $0x68] sm:$0xff]  ;;  %v231_v3 = vld [vmem:[#allocation2 + $0x60] sm:$0xff]  ;;  %v230_v4 = vld [vmem:[#allocation2 + $0x58] sm:$0xff]  ;;  %p197_p6 = scmp.lt.s32.totalorder %s6840_s30, 15 }
  0x14   : > { %292 = vmatpush.msra.mxu1 %v234_v0  ;;  %6019 = vmatpush.msra.mxu3 %v234_v0  ;;  %v229_v5 = vld [vmem:[#allocation2 + $0x50] sm:$0xff]  ;;  %v228_v6 = vld [vmem:[#allocation2 + $0x48] sm:$0xff]  ;;  %v227_v7 = vld [vmem:[#allocation2 + $0x40] sm:$0xff] }
  0x15   : > { %236 = vmatpush.msra.mxu0 %v233_v1  ;;  %6004 = vmatpush.msra.mxu2 %v233_v1  ;;  %v226_v8 = vld [vmem:[#allocation2 + $0x38] sm:$0xff]  ;;  %v225_v9 = vld [vmem:[#allocation2 + $0x30] sm:$0xff]  ;;  %v224_v10 = vld [vmem:[#allocation2 + $0x28] sm:$0xff]  ;;  %s10903_s30 = smov (!%p197_p6, %s6840_s30), 15 }
  0x16   : > { %293 = vmatpush.msra.mxu1 %v233_v1  ;;  %6020 = vmatpush.msra.mxu3 %v233_v1  ;;  %v223_v11 = vld [vmem:[#allocation2 + $0x20] sm:$0xff]  ;;  %v222_v12 = vld [vmem:[#allocation2 + $0x18] sm:$0xff]  ;;  %s5950_s4 = sshll.u32 %s10903_s30, 3  ;;  %v221_v13 = vld [vmem:[#allocation2 + $0x10] sm:$0xff] }
  0x17   : > { %237 = vmatpush.msra.mxu0 %v232_v2  ;;  %6005 = vmatpush.msra.mxu2 %v232_v2  ;;  %v220_v14 = vld [vmem:[#allocation2 + $0x8] sm:$0xff]  ;;  %s6852_s7 = scalar_lea.vmem %s10684_s0, %s5950_s4  ;;  %v219_v15 = vld [vmem:[#allocation2] sm:$0xff]  ;;  %v636_v50 = vld [vmem:[#allocation4 + $0x2e0] sm:$0xff]  ;;  %s10664_s10 = scalar_lea.vmem %s10687_s3, %s5950_s4 }
  0x18   : > { %294 = vmatpush.msra.mxu1 %v232_v2  ;;  %6021 = vmatpush.msra.mxu3 %v232_v2  ;;  %v208_v16 = vld [vmem:[%s6852_s7] sm:$0xff]  ;;  %v209_v18 = vld [vmem:[%s6852_s7 + $0x8] sm:$0xff]  ;;  %v210_v20 = vld [vmem:[%s6852_s7 + $0x10] sm:$0xff] }
  0x19   : > { %238 = vmatpush.msra.mxu0 %v231_v3  ;;  %6006 = vmatpush.msra.mxu2 %v231_v3  ;;  %v212_v17 = vld [vmem:[%s6852_s7 + $0x20] sm:$0xff]  ;;  %v213_v19 = vld [vmem:[%s6852_s7 + $0x28] sm:$0xff]  ;;  %v214_v21 = vld [vmem:[%s6852_s7 + $0x30] sm:$0xff] }
  0x1a   : > { %295 = vmatpush.msra.mxu1 %v231_v3  ;;  %6022 = vmatpush.msra.mxu3 %v231_v3  ;;  %v211_v22 = vld [vmem:[%s6852_s7 + $0x18] sm:$0xff]  ;;  %v638_v48 = vld [vmem:[#allocation4 + $0x2f0] sm:$0xff]  ;;  %v639_v49 = vld [vmem:[#allocation4 + $0x2f8] sm:$0xff] }
  0x1b   : > { %239 = vmatpush.msra.mxu0 %v230_v4  ;;  %6007 = vmatpush.msra.mxu2 %v230_v4  ;;  %v215_v23 = vld [vmem:[%s6852_s7 + $0x38] sm:$0xff]  ;;  %v634_v52 = vld [vmem:[#allocation4 + $0x2d0] sm:$0xff]  ;;  %v635_v53 = vld [vmem:[#allocation4 + $0x2d8] sm:$0xff] }
  0x1c   : > { %296 = vmatpush.msra.mxu1 %v230_v4  ;;  %6023 = vmatpush.msra.mxu3 %v230_v4  ;;  %v637_v51 = vld [vmem:[#allocation4 + $0x2e8] sm:$0xff]  ;;  %v632_v56 = vld [vmem:[#allocation4 + $0x2c0] sm:$0xff]  ;;  %v630_v58 = vld [vmem:[#allocation4 + $0x2b0] sm:$0xff] }
  0x1d   : > { %240 = vmatpush.msra.mxu0 %v229_v5  ;;  %6008 = vmatpush.msra.mxu2 %v229_v5  ;;  %v633_v57 = vld [vmem:[#allocation4 + $0x2c8] sm:$0xff]  ;;  %v631_v59 = vld [vmem:[#allocation4 + $0x2b8] sm:$0xff]  ;;  %v628_v60 = vld [vmem:[#allocation4 + $0x2a0] sm:$0xff] }
  0x1e   : > { %297 = vmatpush.msra.mxu1 %v229_v5  ;;  %6024 = vmatpush.msra.mxu3 %v229_v5  ;;  %v629_v61 = vld [vmem:[#allocation4 + $0x2a8] sm:$0xff]  ;;  %v626_v62 = vld [vmem:[#allocation4 + $0x290] sm:$0xff]  ;;  %v627_v63 = vld [vmem:[#allocation4 + $0x298] sm:$0xff] }
  0x1f   : > { %241 = vmatpush.msra.mxu0 %v228_v6  ;;  %6009 = vmatpush.msra.mxu2 %v228_v6  ;;  %v624_v3 = vld [vmem:[#allocation4 + $0x280] sm:$0xff]  ;;  %v625_v4 = vld [vmem:[#allocation4 + $0x288] sm:$0xff] }
  0x20   : > { %298 = vmatpush.msra.mxu1 %v228_v6  ;;  %6025 = vmatpush.msra.mxu3 %v228_v6  ;;  %v622_v6 = vld [vmem:[#allocation4 + $0x270] sm:$0xff] }
  0x21   : > { %242 = vmatpush.msra.mxu0 %v227_v7  ;;  %6010 = vmatpush.msra.mxu2 %v227_v7 }
  0x22   : > { %299 = vmatpush.msra.mxu1 %v227_v7  ;;  %6026 = vmatpush.msra.mxu3 %v227_v7  ;;  %v623_v7 = vld [vmem:[#allocation4 + $0x278] sm:$0xff] }
  0x23   : > { %243 = vmatpush.msra.mxu0 %v226_v8  ;;  %6011 = vmatpush.msra.mxu2 %v226_v8 }
  0x24   : > { %300 = vmatpush.msra.mxu1 %v226_v8  ;;  %6027 = vmatpush.msra.mxu3 %v226_v8 }
  0x25   : > { %244 = vmatpush.msra.mxu0 %v225_v9  ;;  %6012 = vmatpush.msra.mxu2 %v225_v9 }
  0x26   : > { %301 = vmatpush.msra.mxu1 %v225_v9  ;;  %6028 = vmatpush.msra.mxu3 %v225_v9 }
  0x27   : > { %245 = vmatpush.msra.mxu0 %v224_v10  ;;  %6013 = vmatpush.msra.mxu2 %v224_v10 }
  0x28   : > { %302 = vmatpush.msra.mxu1 %v224_v10  ;;  %6029 = vmatpush.msra.mxu3 %v224_v10 }
  0x29   : > { %246 = vmatpush.msra.mxu0 %v223_v11  ;;  %6014 = vmatpush.msra.mxu2 %v223_v11 }
  0x2a   : > { %303 = vmatpush.msra.mxu1 %v223_v11  ;;  %6030 = vmatpush.msra.mxu3 %v223_v11  ;;  %v620_v11 = vld [vmem:[#allocation4 + $0x260] sm:$0xff] }
  0x2b   : > { %247 = vmatpush.msra.mxu0 %v222_v12  ;;  %6015 = vmatpush.msra.mxu2 %v222_v12 }
  0x2c   : > { %304 = vmatpush.msra.mxu1 %v222_v12  ;;  %6031 = vmatpush.msra.mxu3 %v222_v12  ;;  %v621_v12 = vld [vmem:[#allocation4 + $0x268] sm:$0xff] }
  0x2d   : > { %248 = vmatpush.msra.mxu0 %v221_v13  ;;  %6016 = vmatpush.msra.mxu2 %v221_v13 }
  0x2e   : > { %305 = vmatpush.msra.mxu1 %v221_v13  ;;  %6032 = vmatpush.msra.mxu3 %v221_v13 }
  0x2f   : > { %249 = vmatpush.msra.mxu0 %v220_v14  ;;  %6017 = vmatpush.msra.mxu2 %v220_v14 }
  0x30   : > { %306 = vmatpush.msra.mxu1 %v220_v14  ;;  %6033 = vmatpush.msra.mxu3 %v220_v14  ;;  %v618_v14 = vld [vmem:[#allocation4 + $0x250] sm:$0xff] }
  0x31   : > { %250 = vmatpush.msra.mxu0 %v219_v15  ;;  %6018 = vmatpush.msra.mxu2 %v219_v15 }
  0x32   : > { %251 = vmatmul.f32.vlgmr.msra.gmra.mxu0 %v208_v16  ;;  %263 = vmatmul.f32.vlgmr.msra.gmra.mxu2 %v212_v17 }
  0x33   : > { %307 = vmatpush.msra.mxu1 %v219_v15  ;;  %6034 = vmatpush.msra.mxu3 %v219_v15  ;;  %v619_v15 = vld [vmem:[#allocation4 + $0x258] sm:$0xff] }
  0x34   : > { %647 = vmatpush.msrb.mxu2 %v638_v48  ;;  %v608_v48 = vld [vmem:[#allocation4 + $0x200] sm:$0xff] }
  0x35   : > { %688 = vmatpush.msrb.mxu3 %v639_v49  ;;  %v609_v49 = vld [vmem:[#allocation4 + $0x208] sm:$0xff] }
  0x36   : > { %648 = vmatpush.msrb.mxu2 %v636_v50 }
  0x37   : > { %689 = vmatpush.msrb.mxu3 %v637_v51  ;;  %v6918_v51 = vld [vmem:[#allocation2 + $0x510] ss:$0 sm:$0xff] }
  0x38   : > { %649 = vmatpush.msrb.mxu2 %v634_v52 }
  0x39   : > { %690 = vmatpush.msrb.mxu3 %v635_v53 }
  0x3a   : > { %254 = vmatmul.f32.gmra.mxu0 %v209_v18  ;;  %266 = vmatmul.f32.gmra.mxu2 %v213_v19 }
  0x3b   : > { %650 = vmatpush.msrb.mxu2 %v632_v56  ;;  %691 = vmatpush.msrb.mxu3 %v633_v57 }
  0x3d   : > { %651 = vmatpush.msrb.mxu2 %v630_v58  ;;  %692 = vmatpush.msrb.mxu3 %v631_v59 }
  0x3f   : > { %652 = vmatpush.msrb.mxu2 %v628_v60  ;;  %693 = vmatpush.msrb.mxu3 %v629_v61 }
  0x41   : > { %653 = vmatpush.msrb.mxu2 %v626_v62  ;;  %694 = vmatpush.msrb.mxu3 %v627_v63 }
  0x42   : > { %257 = vmatmul.f32.gmra.mxu0 %v210_v20  ;;  %269 = vmatmul.f32.gmra.mxu2 %v214_v21 }
  0x43   : > { %654 = vmatpush.msrb.mxu2 %v624_v3  ;;  %695 = vmatpush.msrb.mxu3 %v625_v4 }
  0x45   : > { %655 = vmatpush.msrb.mxu2 %v622_v6  ;;  %696 = vmatpush.msrb.mxu3 %v623_v7 }
  0x47   : > { %656 = vmatpush.msrb.mxu2 %v620_v11  ;;  %697 = vmatpush.msrb.mxu3 %v621_v12 }
  0x49   : > { %657 = vmatpush.msrb.mxu2 %v618_v14  ;;  %698 = vmatpush.msrb.mxu3 %v619_v15 }
  0x4a   : > { %260 = vmatmul.f32.gmra.mxu0 %v211_v22  ;;  %272 = vmatmul.f32.gmra.mxu2 %v215_v23 }
  0xaf   : > { %v252_v24 = vpop.f32.mrf.mxu0 }
  0xb0   : > { %v6862_v25 = vsub.f32 %v208_v16, %v252_v24  ;;  %v6906_v24 = vld [vmem:[#allocation2 + $0x500] ss:$0 sm:$0xff] }
  0xb2   : > { %v284_v26 = vmul.f32 %v6862_v25, %v6862_v25 }
  0xb4   : > { %308 = vmatmul.f32.vlgmr.msra.gmra.mxu1 %v284_v26  ;;  %v614_v26 = vld [vmem:[#allocation4 + $0x230] sm:$0xff] }
  0xb5   : > { %v264_v27 = vpop.f32.mrf.mxu2 }
  0xb6   : > { %v6866_v28 = vsub.f32 %v212_v17, %v264_v27  ;;  %v615_v27 = vld [vmem:[#allocation4 + $0x238] sm:$0xff] }
  0xb7   : > { %v255_v29 = vpop.f32.mrf.mxu0 }
  0xb8   : > { %v6868_v30 = vsub.f32 %v209_v18, %v255_v29  ;;  %v288_v31 = vmul.f32 %v6866_v28, %v6866_v28 }
  0xba   : > { %320 = vmatmul.f32.vlgmr.msra.gmra.mxu3 %v288_v31  ;;  %v285_v32 = vmul.f32 %v6868_v30, %v6868_v30 }
  0xbc   : > { %311 = vmatmul.f32.gmra.mxu1 %v285_v32 }
  0xbd   : > { %v267_v33 = vpop.f32.mrf.mxu2 }
  0xbe   : > { %v6874_v34 = vsub.f32 %v213_v19, %v267_v33 }
  0xbf   : > { %v258_v35 = vpop.f32.mrf.mxu0 }
  0xc0   : > { %v6876_v36 = vsub.f32 %v210_v20, %v258_v35  ;;  %v289_v37 = vmul.f32 %v6874_v34, %v6874_v34  ;;  %v616_v20 = vld [vmem:[#allocation4 + $0x240] sm:$0xff] }
  0xc1   : > { %658 = vmatpush.msrb.mxu2 %v616_v20 }
  0xc2   : > { %323 = vmatmul.f32.gmra.mxu3 %v289_v37  ;;  %v286_v38 = vmul.f32 %v6876_v36, %v6876_v36  ;;  %v612_v37 = vld [vmem:[#allocation4 + $0x220] sm:$0xff] }
  0xc3   : > { %659 = vmatpush.msrb.mxu2 %v614_v26 }
  0xc4   : > { %314 = vmatmul.f32.gmra.mxu1 %v286_v38  ;;  %v613_v38 = vld [vmem:[#allocation4 + $0x228] sm:$0xff] }
  0xc5   : > { %v270_v39 = vpop.f32.mrf.mxu2  ;;  %660 = vmatpush.msrb.mxu2 %v612_v37 }
  0xc6   : > { %v6882_v40 = vsub.f32 %v214_v21, %v270_v39  ;;  %v617_v21 = vld [vmem:[#allocation4 + $0x248] sm:$0xff] }
  0xc7   : > { %v261_v41 = vpop.f32.mrf.mxu0  ;;  %699 = vmatpush.msrb.mxu3 %v617_v21 }
  0xc8   : > { %v6884_v42 = vsub.f32 %v211_v22, %v261_v41  ;;  %v290_v43 = vmul.f32 %v6882_v40, %v6882_v40  ;;  %v6913_v41 = vld [vmem:[#allocation2 + $0x508] ss:$0 sm:$0xff] }
  0xc9   : > { %700 = vmatpush.msrb.mxu3 %v615_v27 }
  0xca   : > { %326 = vmatmul.f32.gmra.mxu3 %v290_v43  ;;  %v287_v44 = vmul.f32 %v6884_v42, %v6884_v42 }
  0xcb   : > { %701 = vmatpush.msrb.mxu3 %v613_v38 }
  0xcc   : > { %317 = vmatmul.f32.gmra.mxu1 %v287_v44 }
  0xcd   : > { %v273_v45 = vpop.f32.mrf.mxu2 }
  0xce   : > { %v6890_v46 = vsub.f32 %v215_v23, %v273_v45  ;;  %v610_v45 = vld [vmem:[#allocation4 + $0x210] sm:$0xff] }
  0xcf   : > { %661 = vmatpush.msrb.mxu2 %v610_v45 }
  0xd0   : > { %v291_v47 = vmul.f32 %v6890_v46, %v6890_v46 }
  0xd1   : > { %662 = vmatpush.msrb.mxu2 %v608_v48 }
  0xd2   : > { %329 = vmatmul.f32.gmra.mxu3 %v291_v47  ;;  %v611_v47 = vld [vmem:[#allocation4 + $0x218] sm:$0xff] }
  0xd3   : > { %702 = vmatpush.msrb.mxu3 %v611_v47 }
  0xd5   : > { %703 = vmatpush.msrb.mxu3 %v609_v49 }
 0x131   : > { %v309_v54 = vpop.f32.mrf.mxu1 }
 0x132   : > { %v310_v55 = vadd.f32 1e-05, %v309_v54 }
 0x134   : > { %6098 = vrsqrt.f32 %v310_v55  ;;  %vm339_vm1 = vweird.f32 %v310_v55 }
 0x139   : > { %v312_v0 = vpop.f32.mrf.mxu1 }
 0x13a   : > { %v6099_v1 = vpop.eup %6098  ;;  %v6894_v2 = vadd.f32 1e-05, %v312_v0 }
 0x13b   : > { %v334_v5 = vmul.f32 %v6099_v1, %v310_v55  ;;  %vm340_vm0 = vweird.f32 %v6099_v1 }
 0x13c   : > { %6100 = vrsqrt.f32 %v6894_v2  ;;  %vm341_vm2 = vmor %vm339_vm1, %vm340_vm0  ;;  %vm349_vm4 = vweird.f32 %v6894_v2 }
 0x13d   : > { %v335_v8 = vmul.f32 %v6099_v1, %v334_v5  ;;  %v321_v9 = vpop.f32.mrf.mxu3 }
 0x13e   : > { %v6897_v10 = vadd.f32 1e-05, %v321_v9 }
 0x13f   : > { %v336_v13 = vmul.f32 0.5, %v335_v8 }
 0x140   : > { %6102 = vrsqrt.f32 %v6897_v10  ;;  %vm379_vm5 = vweird.f32 %v6897_v10 }
 0x141   : > { %v337_v16 = vsub.f32 1.5, %v336_v13  ;;  %v315_v17 = vpop.f32.mrf.mxu1 }
 0x142   : > { %v6900_v18 = vpop.eup %6100  ;;  %v6902_v19 = vadd.f32 1e-05, %v315_v17 }
 0x143   : > { %v338_v22 = vmul.f32 %v6099_v1, %v337_v16  ;;  %v344_v23 = vmul.f32 %v6900_v18, %v6894_v2  ;;  %vm350_vm3 = vweird.f32 %v6900_v18 }
 0x144   : > { %6104 = vrsqrt.f32 %v6902_v19  ;;  %vm351_vm7 = vmor %vm349_vm4, %vm350_vm3  ;;  %vm359_vm10 = vweird.f32 %v6902_v19 }
 0x145   : > { %v342_v29 = vsel %vm341_vm2, %v6099_v1, %v338_v22  ;;  %v345_v31 = vmul.f32 %v6900_v18, %v344_v23  ;;  %v324_v32 = vpop.f32.mrf.mxu3 }
 0x146   : > { %v6103_v33 = vpop.eup %6102  ;;  %v6910_v35 = vadd.f32 1e-05, %v324_v32  ;;  %v413_v39 = vmul.f32 %v342_v29, %v6862_v25 }
 0x147   : > { %v346_v43 = vmul.f32 0.5, %v345_v31  ;;  %v374_v44 = vmul.f32 %v6103_v33, %v6897_v10  ;;  %vm380_vm6 = vweird.f32 %v6103_v33 }
 0x148   : > { %6106 = vrsqrt.f32 %v6910_v35  ;;  %v422_v50 = vmul.f32 %v6906_v24, %v413_v39  ;;  %vm6940_vm8 = vmor %vm379_vm5, %vm380_vm6  ;;  %vm389_vm12 = vweird.f32 %v6910_v35 }
 0x149   : > { %v347_v52 = vsub.f32 1.5, %v346_v43  ;;  %v375_v25 = vmul.f32 %v6103_v33, %v374_v44  ;;  %v318_v53 = vpop.f32.mrf.mxu1 }
 0x14a   : > { %v6105_v54 = vpop.eup %6104  ;;  %v6923_v55 = vadd.f32 1e-05, %v318_v53  ;;  %v6926_v56 = vadd.f32 %v6913_v41, %v422_v50 }
 0x14b   : > { %v348_v57 = vmul.f32 %v6900_v18, %v347_v52  ;;  %v376_v58 = vmul.f32 0.5, %v375_v25  ;;  %v354_v59 = vmul.f32 %v6105_v54, %v6902_v19  ;;  %vm360_vm9 = vweird.f32 %v6105_v54 }
 0x14c   : > { %6108 = vrsqrt.f32 %v6923_v55  ;;  %v440_v60 = vmul.f32 %v6918_v51, %v6926_v56  ;;  %vm361_vm11 = vmor %vm359_vm10, %vm360_vm9  ;;  %vm369_vm0 = vweird.f32 %v6923_v55 }
 0x14d   : > { %v377_v61 = vsub.f32 1.5, %v376_v58  ;;  %v355_v62 = vmul.f32 %v6105_v54, %v354_v59  ;;  %v327_v63 = vpop.f32.mrf.mxu3  ;;  %v352_v0 = vsel %vm351_vm7, %v6900_v18, %v348_v57 }
 0x14e   : > { %v6936_v1 = vpop.eup %6106  ;;  %v6944_v3 = vadd.f32 1e-05, %v327_v63  ;;  %v5953_v4 = vmul.f32 -1.442695, %v440_v60  ;;  %v414_v5 = vmul.f32 %v352_v0, %v6868_v30 }
 0x14f   : > { %v378_v6 = vmul.f32 %v6103_v33, %v377_v61  ;;  %v356_v7 = vmul.f32 0.5, %v355_v62  ;;  %v384_v8 = vmul.f32 %v6936_v1, %v6910_v35  ;;  %vm390_vm13 = vweird.f32 %v6936_v1 }
 0x150   : > { %6110 = vrsqrt.f32 %v6944_v3  ;;  %v423_v9 = vmul.f32 %v6906_v24, %v414_v5  ;;  %vm6984_vm15 = vmor %vm389_vm12, %vm390_vm13  ;;  %vm399_vm2 = vweird.f32 %v6944_v3 }
 0x151   : > { %v357_v10 = vsub.f32 1.5, %v356_v7  ;;  %v385_v11 = vmul.f32 %v6936_v1, %v384_v8  ;;  %6112 = vpow2.f32 %v5953_v4  ;;  %v382_v12 = vsel %vm6940_vm8, %v6103_v33, %v378_v6 }
 0x152   : > { %v6109_v13 = vpop.eup %6108  ;;  %v6955_v30 = vadd.f32 %v6913_v41, %v423_v9  ;;  %v417_v14 = vmul.f32 %v382_v12, %v6866_v28 }
 0x153   : > { %v358_v15 = vmul.f32 %v6105_v54, %v357_v10  ;;  %v386_v16 = vmul.f32 0.5, %v385_v11  ;;  %v364_v17 = vmul.f32 %v6109_v13, %v6923_v55  ;;  %vm370_vm14 = vweird.f32 %v6109_v13 }
 0x154   : > { %v441_v18 = vmul.f32 %v6918_v51, %v6955_v30  ;;  %v426_v20 = vmul.f32 %v6906_v24, %v417_v14  ;;  %vm371_vm1 = vmor %vm369_vm0, %vm370_vm14 }
 0x155   : > { %v387_v21 = vsub.f32 1.5, %v386_v16  ;;  %v365_v22 = vmul.f32 %v6109_v13, %v364_v17  ;;  %v330_v23 = vpop.f32.mrf.mxu3  ;;  %v362_v28 = vsel %vm361_vm11, %v6105_v54, %v358_v15 }
 0x156   : > { %v6965_v26 = vpop.eup %6110  ;;  %v6967_v19 = vadd.f32 1e-05, %v330_v23  ;;  %v5954_v27 = vmul.f32 -1.442695, %v441_v18  ;;  %v415_v29 = vmul.f32 %v362_v28, %v6876_v36  ;;  %v6971_v31 = vadd.f32 %v6913_v41, %v426_v20 }
 0x157   : > { %v6113_v32 = vpop.eup %6112  ;;  %v366_v33 = vmul.f32 0.5, %v365_v22  ;;  %v394_v37 = vmul.f32 %v6965_v26, %v6944_v3  ;;  %v388_v38 = vmul.f32 %v6936_v1, %v387_v21  ;;  %vm400_vm3 = vweird.f32 %v6965_v26 }
 0x158   : > { %6114 = vrsqrt.f32 %v6967_v19  ;;  %v6977_v39 = vadd.f32 1.0, %v6113_v32  ;;  %v424_v43 = vmul.f32 %v6906_v24, %v415_v29  ;;  %v444_v47 = vmul.f32 %v6918_v51, %v6971_v31  ;;  %vm7015_vm4 = vmor %vm399_vm2, %vm400_vm3 }
 0x159   : > { %v367_v44 = vsub.f32 1.5, %v366_v33  ;;  %v395_v45 = vmul.f32 %v6965_v26, %v394_v37  ;;  %6116 = vpow2.f32 %v5954_v27  ;;  %v392_v52 = vsel %vm6984_vm15, %v6936_v1, %v388_v38 }
 0x15a   : > { %6118 = vrcp.f32 %v6977_v39  ;;  %v6994_v50 = vadd.f32 %v6913_v41, %v424_v43  ;;  %v5957_v35 = vmul.f32 -1.442695, %v444_v47  ;;  %v418_v58 = vmul.f32 %v392_v52, %v6874_v34 }
 0x15b   : > { %v368_v48 = vmul.f32 %v6109_v13, %v367_v44  ;;  %v396_v49 = vmul.f32 0.5, %v395_v45  ;;  %v491_v4 = vand.u32 2147483648, %v6977_v39  ;;  %v489_v10 = vand.u32 2147483647, %v6977_v39 }
 0x15c   : > { %v442_v53 = vmul.f32 %v6918_v51, %v6994_v50  ;;  %6120 = vpow2.f32 %v5957_v35  ;;  %v427_v2 = vmul.f32 %v6906_v24, %v418_v58  ;;  %vm409_vm6 = vweird.f32 %v6967_v19 }
 0x15d   : > { %v397_v25 = vsub.f32 1.5, %v396_v49  ;;  %v372_v54 = vsel %vm371_vm1, %v6109_v13, %v368_v48  ;;  %vm485_vm8 = vweird.f32 %v6977_v39  ;;  %v492_v20 = vor.u32 1.1754944e-38, %v491_v4 }
 0x15e   : > { %v7002_v55 = vpop.eup %6114  ;;  %v416_v57 = vmul.f32 %v372_v54, %v6884_v42  ;;  %v5955_v61 = vmul.f32 -1.442695, %v442_v53  ;;  %v7027_v9 = vadd.f32 %v6913_v41, %v427_v2  ;;  %vm490_vm11 = vcmp.eq.f32.partialorder %v489_v10, 8.507059e+37 }
 0x15f   : > { %v6117_v59 = vpop.eup %6116  ;;  %v404_v60 = vmul.f32 %v7002_v55, %v6967_v19  ;;  %v398_v63 = vmul.f32 %v6965_v26, %v397_v25  ;;  %vm410_vm7 = vweird.f32 %v7002_v55 }
 0x160   : > { %v6119_v62 = vpop.eup %6118  ;;  %v7011_v0 = vadd.f32 1.0, %v6117_v59  ;;  %v425_v1 = vmul.f32 %v6906_v24, %v416_v57  ;;  %6122 = vpow2.f32 %v5955_v61  ;;  %v445_v16 = vmul.f32 %v6918_v51, %v7027_v9  ;;  %vm7046_vm10 = vmor %vm409_vm6, %vm410_vm7 }
 0x161   : > { %v405_v34 = vmul.f32 %v7002_v55, %v404_v60  ;;  %v481_v42 = vmul.f32 %v6119_v62, %v6977_v39  ;;  %vm486_vm5 = vweird.f32 %v6119_v62  ;;  %v402_v12 = vsel %vm7015_vm4, %v6965_v26, %v398_v63 }
 0x162   : > { %6124 = vrcp.f32 %v7011_v0  ;;  %v6121_v5 = vpop.eup %6120  ;;  %v7024_v8 = vadd.f32 %v6913_v41, %v425_v1  ;;  %v5958_v22 = vmul.f32 -1.442695, %v445_v16  ;;  %vm487_vm9 = vmor %vm485_vm8, %vm486_vm5  ;;  %v419_v27 = vmul.f32 %v402_v12, %v6882_v40 }
 0x163   : > { %v406_v6 = vmul.f32 0.5, %v405_v34  ;;  %v482_v7 = vsub.f32 1.0, %v481_v42  ;;  %v7030_v11 = vadd.f32 1.0, %v6121_v5  ;;  %v506_v39 = vand.u32 2147483648, %v7011_v0 }
 0x164   : > { %v443_v15 = vmul.f32 %v6918_v51, %v7024_v8  ;;  %v428_v43 = vmul.f32 %v6906_v24, %v419_v27  ;;  %v504_v44 = vand.u32 2147483647, %v7011_v0  ;;  %vm500_vm13 = vweird.f32 %v7011_v0 }
 0x165   : > { %v407_v13 = vsub.f32 1.5, %v406_v6  ;;  %v483_v14 = vmul.f32 %v6119_v62, %v482_v7  ;;  %6126 = vrcp.f32 %v7030_v11  ;;  %v507_v52 = vor.u32 1.1754944e-38, %v506_v39 }
 0x166   : > { %v6123_v17 = vpop.eup %6122  ;;  %v5956_v21 = vmul.f32 -1.442695, %v443_v15  ;;  %vm505_vm15 = vcmp.eq.f32.partialorder %v504_v44, 8.507059e+37  ;;  %v551_v19 = vand.u32 2147483648, %v7030_v11  ;;  %v7115_v44 = vld [vmem:[#allocation4 + $0x1e8] sm:$0xff] }
 0x167   : > { %v484_v18 = vadd.f32 %v6119_v62, %v483_v14  ;;  %v408_v28 = vmul.f32 %v7002_v55, %v407_v13  ;;  %v474_v26 = vadd.f32 1.0, %v6123_v17 }
 0x168   : > { %v6125_v23 = vpop.eup %6124  ;;  %6128 = vpow2.f32 %v5956_v21 }
 0x169   : > { %v488_v29 = vsel %vm487_vm9, %v6119_v62, %v484_v18  ;;  %v496_v32 = vmul.f32 %v6125_v23, %v7011_v0  ;;  %6130 = vrcp.f32 %v474_v26  ;;  %v412_v40 = vsel %vm7046_vm10, %v7002_v55, %v408_v28 }
 0x16a   : > { %v493_v33 = vsel %vm490_vm11, %v492_v20, %v488_v29  ;;  %6132 = vpow2.f32 %v5958_v22  ;;  %vm501_vm12 = vweird.f32 %v6125_v23  ;;  %v420_v47 = vmul.f32 %v412_v40, %v6890_v46 }
 0x16b   : > { %v600_v37 = vmul.f32 %v493_v33, %v6926_v56  ;;  %v497_v38 = vsub.f32 1.0, %v496_v32  ;;  %v7058_v45 = vpop.eup %6126  ;;  %v7061_v56 = vadd.f32 %v6913_v41, %v428_v43  ;;  %vm502_vm14 = vmor %vm500_vm13, %vm501_vm12  ;;  %v521_v61 = vand.u32 2147483648, %v474_v26  ;;  %v7107_v43 = vld [vmem:[#allocation4 + $0x1f8] sm:$0xff] }
 0x16c   : > { %v429_v54 = vmul.f32 %v6906_v24, %v420_v47  ;;  %v541_v62 = vmul.f32 %v7058_v45, %v7030_v11  ;;  %v519_v2 = vand.u32 2147483647, %v474_v26  ;;  %vm515_vm1 = vweird.f32 %v474_v26  ;;  %922 = vmatpush.msra.mxu3 %v7107_v43  ;;  %v7119_v47 = vld [vmem:[#allocation4 + $0xd8] sm:$0xff] }
 0x16d   : > { %663 = vmatmul.f32.vlgmr.msrb.gmra.mxu2 %v600_v37  ;;  %704 = vmatmul.f32.vlgmr.msrb.gmra.mxu3 %v600_v37  ;;  %v498_v36 = vmul.f32 %v6125_v23, %v497_v38  ;;  %v446_v53 = vmul.f32 %v6918_v51, %v7061_v56  ;;  %v522_v34 = vor.u32 1.1754944e-38, %v521_v61  ;;  %vm546_vm7 = vweird.f32 %v7058_v45  ;;  %v7149_v61 = vld [vmem:[#allocation4 + $0xf0] sm:$0xff]  ;;  %v7235_v37 = vld [vmem:[#allocation4 + $0xa0] sm:$0xff] }
 0x16e   : > { %v6129_v48 = vpop.eup %6128  ;;  %v7074_v1 = vadd.f32 %v6913_v41, %v429_v54  ;;  %v542_v42 = vsub.f32 1.0, %v541_v62  ;;  %vm520_vm3 = vcmp.eq.f32.partialorder %v519_v2, 8.507059e+37  ;;  %vm545_vm9 = vweird.f32 %v7030_v11  ;;  %923 = vmatpush.msra.mxu3 %v7115_v44  ;;  %v7151_v62 = vld [vmem:[#allocation4 + $0x1f0] sm:$0xff]  ;;  %v7161_v2 = vld [vmem:[#allocation4 + $0x1a8] sm:$0xff]  ;;  %799 = vmatpush.msrb.mxu0 %v7149_v61 }
 0x16f   : > { %v499_v49 = vadd.f32 %v6125_v23, %v498_v36  ;;  %v6131_v35 = vpop.eup %6130  ;;  %v475_v25 = vadd.f32 1.0, %v6129_v48  ;;  %v5959_v0 = vmul.f32 -1.442695, %v446_v53  ;;  %v549_v32 = vand.u32 2147483647, %v7030_v11  ;;  %vm7096_vm10 = vmor %vm545_vm9, %vm546_vm7  ;;  %v7109_v11 = vld [vmem:[#allocation4 + $0xe8] sm:$0xff]  ;;  %840 = vmatpush.msrb.mxu1 %v7151_v62 }
 0x170   : > { %v6133_v55 = vpop.eup %6132  ;;  %v511_v58 = vmul.f32 %v6131_v35, %v474_v26  ;;  %vm516_vm0 = vweird.f32 %v6131_v35  ;;  %v447_v4 = vmul.f32 %v6918_v51, %v7074_v1  ;;  %v543_v15 = vmul.f32 %v7058_v45, %v542_v42  ;;  %v7121_v48 = vld [vmem:[#allocation4 + $0x1d8] sm:$0xff]  ;;  %v7129_v53 = vld [vmem:[#allocation4 + $0x1c8] sm:$0xff] }
 0x171   : > { %v503_v57 = vsel %vm502_vm14, %v6125_v23, %v499_v49  ;;  %6134 = vrcp.f32 %v475_v25  ;;  %v7071_v63 = vadd.f32 1.0, %v6133_v55  ;;  %vm517_vm2 = vmor %vm515_vm1, %vm516_vm0  ;;  %v536_v14 = vand.u32 2147483648, %v475_v25  ;;  %924 = vmatpush.msra.mxu3 %v7121_v48  ;;  %v7169_v42 = vld [vmem:[#allocation4 + $0x98] sm:$0xff] }
 0x172   : > { %v508_v59 = vsel %vm505_vm15, %v507_v52, %v503_v57  ;;  %v512_v60 = vsub.f32 1.0, %v511_v58  ;;  %v5960_v7 = vmul.f32 -1.442695, %v447_v4  ;;  %v534_v51 = vand.u32 2147483647, %v475_v25  ;;  %v7171_v4 = vld [vmem:[#allocation4 + $0x198] sm:$0xff] }
 0x173   : > { %v601_v46 = vmul.f32 %v508_v59, %v6955_v30  ;;  %6136 = vrcp.f32 %v7071_v63  ;;  %vm530_vm5 = vweird.f32 %v475_v25  ;;  %v544_v23 = vadd.f32 %v7058_v45, %v543_v15  ;;  %v7139_v59 = vld [vmem:[#allocation4 + $0xb8] sm:$0xff]  ;;  %925 = vmatpush.msra.mxu3 %v7129_v53 }
 0x174   : > { %v513_v24 = vmul.f32 %v6131_v35, %v512_v60  ;;  %6138 = vpow2.f32 %v5959_v0  ;;  %vm535_vm8 = vcmp.eq.f32.partialorder %v534_v51, 8.507059e+37  ;;  %v552_v36 = vor.u32 1.1754944e-38, %v551_v19  ;;  %v7197_v51 = vld [vmem:[#allocation4 + $0x178] sm:$0xff]  ;;  %v7274_v60 = vld [vmem:[#allocation4 + $0x80] sm:$0xff] }
 0x175   : > { %666 = vmatmul.f32.gmra.mxu2 %v601_v46  ;;  %707 = vmatmul.f32.gmra.mxu3 %v601_v46  ;;  %6140 = vpow2.f32 %v5960_v7  ;;  %v548_v38 = vsel %vm7096_vm10, %v7058_v45, %v544_v23  ;;  %vm550_vm11 = vcmp.eq.f32.partialorder %v549_v32, 8.507059e+37  ;;  %v566_v54 = vand.u32 2147483648, %v7071_v63  ;;  %v7141_v46 = vld [vmem:[#allocation4 + $0x1b8] sm:$0xff]  ;;  %v7219_v23 = vld [vmem:[#allocation4 + $0x168] sm:$0xff] }
 0x176   : > { %v514_v3 = vadd.f32 %v6131_v35, %v513_v24  ;;  %v553_v49 = vsel %vm550_vm11, %v552_v36, %v548_v38  ;;  %vm560_vm13 = vweird.f32 %v7071_v63  ;;  %v564_v58 = vand.u32 2147483647, %v7071_v63  ;;  %v7159_v24 = vld [vmem:[#allocation4 + $0xa8] sm:$0xff]  ;;  %926 = vmatpush.msra.mxu3 %v7141_v46  ;;  %v7229_v19 = vld [vmem:[#allocation4 + $0x58] sm:$0xff]  ;;  %v7237_v38 = vld [vmem:[#allocation4 + $0x1a0] sm:$0xff] }
 0x177   : > { %v6135_v30 = vpop.eup %6134  ;;  %v604_v57 = vmul.f32 %v553_v49, %v6971_v31  ;;  %v7245_v36 = vld [vmem:[#allocation4 + $0x148] sm:$0xff] }
 0x178   : > { %v518_v5 = vsel %vm517_vm2, %v6131_v35, %v514_v3  ;;  %v526_v41 = vmul.f32 %v6135_v30, %v475_v25  ;;  %vm531_vm4 = vweird.f32 %v6135_v30  ;;  %v7127_v25 = vld [vmem:[#allocation4 + $0xc8] sm:$0xff]  ;;  %v567_v3 = vor.u32 1.1754944e-38, %v566_v54  ;;  %927 = vmatpush.msra.mxu3 %v7161_v2  ;;  %v7257_v54 = vld [vmem:[#allocation4 + $0x190] sm:$0xff] }
 0x179   : > { %v523_v6 = vsel %vm520_vm3, %v522_v34, %v518_v5  ;;  %v7080_v13 = vpop.eup %6136  ;;  %vm532_vm6 = vmor %vm530_vm5, %vm531_vm4  ;;  %v7167_v34 = vld [vmem:[#allocation4 + $0x1e0] sm:$0xff]  ;;  %vm565_vm15 = vcmp.eq.f32.partialorder %v564_v58, 8.507059e+37 }
 0x17a   : > { %v602_v10 = vmul.f32 %v523_v6, %v6994_v50  ;;  %v527_v12 = vsub.f32 1.0, %v526_v41  ;;  %v6139_v16 = vpop.eup %6138  ;;  %v556_v18 = vmul.f32 %v7080_v13, %v7071_v63  ;;  %v537_v50 = vor.u32 1.1754944e-38, %v536_v14  ;;  %v7177_v41 = vld [vmem:[#allocation4 + $0xd0] sm:$0xff]  ;;  %841 = vmatpush.msrb.mxu1 %v7167_v34  ;;  %928 = vmatpush.msra.mxu3 %v7171_v4 }
 0x17b   : > { %v7085_v20 = vadd.f32 1.0, %v6139_v16  ;;  %v6141_v26 = vpop.eup %6140  ;;  %vm561_vm12 = vweird.f32 %v7080_v13  ;;  %v7179_v6 = vld [vmem:[#allocation4 + $0x1d0] sm:$0xff] }
 0x17c   : > { %v528_v17 = vmul.f32 %v6135_v30, %v527_v12  ;;  %v557_v28 = vsub.f32 1.0, %v556_v18  ;;  %v7094_v33 = vadd.f32 1.0, %v6141_v26  ;;  %vm7143_vm14 = vmor %vm560_vm13, %vm561_vm12  ;;  %v7183_v12 = vld [vmem:[#allocation4 + $0x88] sm:$0xff]  ;;  %842 = vmatpush.msrb.mxu1 %v7179_v6  ;;  %v7223_v26 = vld [vmem:[#allocation4 + $0xb0] sm:$0xff] }
 0x17d   : > { %669 = vmatmul.f32.gmra.mxu2 %v602_v10  ;;  %710 = vmatmul.f32.gmra.mxu3 %v602_v10  ;;  %6142 = vrcp.f32 %v7085_v20  ;;  %v581_v14 = vand.u32 2147483648, %v7085_v20  ;;  %vm575_vm1 = vweird.f32 %v7085_v20  ;;  %v579_v16 = vand.u32 2147483647, %v7085_v20 }
 0x17e   : > { %v529_v21 = vadd.f32 %v6135_v30, %v528_v17  ;;  %v558_v39 = vmul.f32 %v7080_v13, %v557_v28  ;;  %6144 = vrcp.f32 %v7094_v33  ;;  %v7195_v17 = vld [vmem:[#allocation4 + $0x78] sm:$0xff]  ;;  %vm590_vm5 = vweird.f32 %v7094_v33 }
 0x17f   : > { %v582_v28 = vor.u32 1.1754944e-38, %v581_v14  ;;  %vm580_vm3 = vcmp.eq.f32.partialorder %v579_v16, 8.507059e+37  ;;  %v770_v14 = vld [vmem:[#allocation4 + $0x118] sm:$0xff]  ;;  %v7294_v16 = vld [vmem:[#allocation4 + $0x160] sm:$0xff] }
 0x180   : > { %v533_v22 = vsel %vm532_vm6, %v6135_v30, %v529_v21  ;;  %v559_v35 = vadd.f32 %v7080_v13, %v558_v39  ;;  %v7165_v30 = vld [vmem:[#allocation4 + $0xe0] sm:$0xff] }
 0x181   : > { %v538_v27 = vsel %vm535_vm8, %v537_v50, %v533_v22  ;;  %800 = vmatpush.msrb.mxu0 %v7165_v30  ;;  %v7217_v22 = vld [vmem:[#allocation4 + $0x68] sm:$0xff] }
 0x182   : > { %v603_v29 = vmul.f32 %v538_v27, %v7024_v8  ;;  %v7105_v8 = vld [vmem:[#allocation4 + $0xf8] sm:$0xff]  ;;  %v563_v31 = vsel %vm7143_vm14, %v7080_v13, %v559_v35  ;;  %v7185_v13 = vld [vmem:[#allocation4 + $0x188] sm:$0xff]  ;;  %v7225_v27 = vld [vmem:[#allocation4 + $0x1b0] sm:$0xff]  ;;  %v594_v35 = vand.u32 2147483647, %v7094_v33 }
 0x183   : > { %v7111_v40 = vpop.eup %6142  ;;  %881 = vmatpush.msra.mxu2 %v7105_v8  ;;  %v568_v5 = vsel %vm565_vm15, %v567_v3, %v563_v31  ;;  %801 = vmatpush.msrb.mxu0 %v7177_v41  ;;  %v7276_v31 = vld [vmem:[#allocation4 + $0x180] sm:$0xff]  ;;  %v7282_v3 = vld [vmem:[#allocation4 + $0x128] sm:$0xff] }
 0x184   : > { %v571_v45 = vmul.f32 %v7111_v40, %v7085_v20  ;;  %v7134_v55 = vpop.eup %6144  ;;  %vm576_vm0 = vweird.f32 %v7111_v40  ;;  %v605_v15 = vmul.f32 %v568_v5, %v7027_v9  ;;  %929 = vmatpush.msra.mxu3 %v7185_v13  ;;  %v7209_v9 = vld [vmem:[#allocation4 + $0xc0] sm:$0xff]  ;;  %vm595_vm7 = vcmp.eq.f32.partialorder %v594_v35, 8.507059e+37  ;;  %v7286_v5 = vld [vmem:[#allocation4 + $0x70] sm:$0xff] }
 0x185   : > { %672 = vmatmul.f32.gmra.mxu2 %v603_v29  ;;  %713 = vmatmul.f32.gmra.mxu3 %v603_v29  ;;  %v586_v0 = vmul.f32 %v7134_v55, %v7094_v33  ;;  %vm7203_vm2 = vmor %vm575_vm1, %vm576_vm0  ;;  %v7211_v20 = vld [vmem:[#allocation4 + $0x1c0] sm:$0xff]  ;;  %v7231_v29 = vld [vmem:[#allocation4 + $0x158] sm:$0xff]  ;;  %vm591_vm4 = vweird.f32 %v7134_v55 }
 0x186   : > { %882 = vmatpush.msra.mxu2 %v7109_v11  ;;  %v572_v52 = vsub.f32 1.0, %v571_v45  ;;  %930 = vmatpush.msra.mxu3 %v7197_v51  ;;  %v596_v45 = vand.u32 2147483648, %v7094_v33  ;;  %vm7261_vm6 = vmor %vm590_vm5, %vm591_vm4  ;;  %v7269_v33 = vld [vmem:[#allocation4 + $0x138] sm:$0xff]  ;;  %v7319_v35 = vld [vmem:[#allocation4 + $0x20] sm:$0xff] }
 0x187   : > { %v587_v10 = vsub.f32 1.0, %v586_v0  ;;  %802 = vmatpush.msrb.mxu0 %v7209_v9  ;;  %843 = vmatpush.msrb.mxu1 %v7211_v20  ;;  %v7280_v0 = vld [vmem:[#allocation4 + $0x28] sm:$0xff] }
 0x188   : > { %883 = vmatpush.msra.mxu2 %v7119_v47  ;;  %v573_v63 = vmul.f32 %v7111_v40, %v572_v52  ;;  %931 = vmatpush.msra.mxu3 %v7219_v23  ;;  %v7255_v52 = vld [vmem:[#allocation4 + $0x90] sm:$0xff] }
 0x189   : > { %v588_v50 = vmul.f32 %v7134_v55, %v587_v10  ;;  %803 = vmatpush.msrb.mxu0 %v7223_v26  ;;  %844 = vmatpush.msrb.mxu1 %v7225_v27  ;;  %v738_v10 = vld [vmem:[#allocation4 + $0x18] sm:$0xff] }
 0x18a   : > { %884 = vmatpush.msra.mxu2 %v7127_v25  ;;  %v574_v7 = vadd.f32 %v7111_v40, %v573_v63  ;;  %932 = vmatpush.msra.mxu3 %v7231_v29  ;;  %v597_v63 = vor.u32 1.1754944e-38, %v596_v45  ;;  %v7309_v45 = vld [vmem:[#allocation4 + $0x140] sm:$0xff] }
 0x18b   : > { %v589_v39 = vadd.f32 %v7134_v55, %v588_v50  ;;  %804 = vmatpush.msrb.mxu0 %v7235_v37  ;;  %845 = vmatpush.msrb.mxu1 %v7237_v38  ;;  %v7303_v50 = vld [vmem:[#allocation4 + $0x150] sm:$0xff] }
 0x18c   : > { %885 = vmatpush.msra.mxu2 %v7139_v59  ;;  %v578_v21 = vsel %vm7203_vm2, %v7111_v40, %v574_v7  ;;  %v7243_v40 = vld [vmem:[#allocation4 + $0x48] sm:$0xff]  ;;  %933 = vmatpush.msra.mxu3 %v7245_v36 }
 0x18d   : > { %675 = vmatmul.f32.gmra.mxu2 %v604_v57  ;;  %716 = vmatmul.f32.gmra.mxu3 %v604_v57  ;;  %v583_v32 = vsel %vm580_vm3, %v582_v28, %v578_v21  ;;  %v593_v58 = vsel %vm7261_vm6, %v7134_v55, %v589_v39  ;;  %v7288_v55 = vld [vmem:[#allocation4 + $0x170] sm:$0xff]  ;;  %v736_v28 = vld [vmem:[#allocation4 + $0x8] sm:$0xff]  ;;  %v7307_v39 = vld [vmem:[#allocation4 + $0x40] sm:$0xff] }
 0x18e   : > { %886 = vmatpush.msra.mxu2 %v7159_v24  ;;  %v606_v49 = vmul.f32 %v583_v32, %v7061_v56  ;;  %v7267_v56 = vld [vmem:[#allocation4 + $0x38] sm:$0xff]  ;;  %805 = vmatpush.msrb.mxu0 %v7255_v52  ;;  %v598_v7 = vsel %vm595_vm7, %v597_v63, %v593_v58  ;;  %v7301_v21 = vld [vmem:[#allocation4 + $0x50] sm:$0xff]  ;;  %v768_v32 = vld [vmem:[#allocation4 + $0x108] sm:$0xff] }
 0x18f   : > { %846 = vmatpush.msrb.mxu1 %v7257_v54  ;;  %934 = vmatpush.msra.mxu3 %v7269_v33  ;;  %v607_v18 = vmul.f32 %v598_v7, %v7074_v1  ;;  %v7313_v1 = vld [vmem:[#allocation4 + $0x30] sm:$0xff]  ;;  %v7321_v57 = vld [vmem:[#allocation4 + $0x120] sm:$0xff] }
 0x190   : > { %887 = vmatpush.msra.mxu2 %v7169_v42  ;;  %806 = vmatpush.msrb.mxu0 %v7274_v60 }
 0x191   : > { %847 = vmatpush.msrb.mxu1 %v7276_v31  ;;  %935 = vmatpush.msra.mxu3 %v7282_v3 }
 0x192   : > { %888 = vmatpush.msra.mxu2 %v7183_v12  ;;  %807 = vmatpush.msrb.mxu0 %v7286_v5 }
 0x193   : > { %848 = vmatpush.msrb.mxu1 %v7288_v55  ;;  %936 = vmatpush.msra.mxu3 %v770_v14 }
 0x194   : > { %889 = vmatpush.msra.mxu2 %v7195_v17 }
 0x195   : > { %678 = vmatmul.f32.gmra.mxu2 %v605_v15  ;;  %719 = vmatmul.f32.gmra.mxu3 %v605_v15  ;;  %v7292_v15 = vld [vmem:[#allocation4 + $0x60] sm:$0xff] }
 0x196   : > { %890 = vmatpush.msra.mxu2 %v7217_v22  ;;  %808 = vmatpush.msrb.mxu0 %v7292_v15 }
 0x197   : > { %849 = vmatpush.msrb.mxu1 %v7294_v16  ;;  %937 = vmatpush.msra.mxu3 %v768_v32 }
 0x198   : > { %891 = vmatpush.msra.mxu2 %v7229_v19  ;;  %809 = vmatpush.msrb.mxu0 %v7301_v21 }
 0x199   : > { %850 = vmatpush.msrb.mxu1 %v7303_v50  ;;  %1118 = vmatpush.msrb.mxu3 %v7107_v43  ;;  %v769_v43 = vld [vmem:[#allocation4 + $0x110] sm:$0xff] }
 0x19a   : > { %892 = vmatpush.msra.mxu2 %v7243_v40  ;;  %810 = vmatpush.msrb.mxu0 %v7307_v39 }
 0x19b   : > { %851 = vmatpush.msrb.mxu1 %v7309_v45  ;;  %1119 = vmatpush.msrb.mxu3 %v7115_v44  ;;  %v767_v44 = vld [vmem:[#allocation4 + $0x100] sm:$0xff] }
 0x19c   : > { %893 = vmatpush.msra.mxu2 %v7267_v56  ;;  %811 = vmatpush.msrb.mxu0 %v7313_v1 }
 0x19d   : > { %681 = vmatmul.f32.gmra.mxu2 %v606_v49  ;;  %722 = vmatmul.f32.gmra.mxu3 %v606_v49  ;;  %v7315_v49 = vld [vmem:[#allocation4 + $0x130] sm:$0xff] }
 0x19e   : > { %894 = vmatpush.msra.mxu2 %v7280_v0  ;;  %852 = vmatpush.msrb.mxu1 %v7315_v49 }
 0x19f   : > { %812 = vmatpush.msrb.mxu0 %v7319_v35  ;;  %1120 = vmatpush.msrb.mxu3 %v7121_v48 }
 0x1a0   : > { %895 = vmatpush.msra.mxu2 %v738_v10  ;;  %853 = vmatpush.msrb.mxu1 %v7321_v57 }
 0x1a1   : > { %1121 = vmatpush.msrb.mxu3 %v7129_v53 }
 0x1a2   : > { %896 = vmatpush.msra.mxu2 %v736_v28  ;;  %854 = vmatpush.msrb.mxu1 %v769_v43 }
 0x1a3   : > { %1122 = vmatpush.msrb.mxu3 %v7141_v46 }
 0x1a4   : > { %1077 = vmatpush.msrb.mxu2 %v7105_v8  ;;  %v737_v8 = vld [vmem:[#allocation4 + $0x10] sm:$0xff]  ;;  %855 = vmatpush.msrb.mxu1 %v767_v44 }
 0x1a5   : > { %684 = vmatmul.f32.gmra.mxu2 %v607_v18  ;;  %725 = vmatmul.f32.gmra.mxu3 %v607_v18 }
 0x1a6   : > { %1078 = vmatpush.msrb.mxu2 %v7109_v11  ;;  %1123 = vmatpush.msrb.mxu3 %v7161_v2  ;;  %v735_v11 = vld [vmem:[#allocation4] sm:$0xff] }
 0x1a7   : > { %813 = vmatpush.msrb.mxu0 %v737_v8  ;;  %1036 = vmatpush.msra.mxu1 %v7151_v62 }
 0x1a8   : > { %1079 = vmatpush.msrb.mxu2 %v7119_v47  ;;  %1124 = vmatpush.msrb.mxu3 %v7171_v4  ;;  %v641_v47 = vld [vmem:[#allocation4 + $0x300] ss:$8 sm:$0x3] }
 0x1a9   : > { %814 = vmatpush.msrb.mxu0 %v735_v11  ;;  %1037 = vmatpush.msra.mxu1 %v7167_v34  ;;  %v7379_v48 = vperm.slane %v641_v47, 0 }
 0x1aa   : > { %1080 = vmatpush.msrb.mxu2 %v7127_v25  ;;  %1125 = vmatpush.msrb.mxu3 %v7185_v13  ;;  %v7381_v25 = vperm.slane %v641_v47, 1 }
 0x1ab   : > { %995 = vmatpush.msra.mxu0 %v7149_v61  ;;  %1038 = vmatpush.msra.mxu1 %v7179_v6 }
 0x1ac   : > { %1081 = vmatpush.msrb.mxu2 %v7139_v59  ;;  %1126 = vmatpush.msrb.mxu3 %v7197_v51 }
 0x1ad   : > { %996 = vmatpush.msra.mxu0 %v7165_v30  ;;  %1039 = vmatpush.msra.mxu1 %v7211_v20 }
 0x1ae   : > { %1082 = vmatpush.msrb.mxu2 %v7159_v24  ;;  %1127 = vmatpush.msrb.mxu3 %v7219_v23 }
 0x1af   : > { %997 = vmatpush.msra.mxu0 %v7177_v41  ;;  %1040 = vmatpush.msra.mxu1 %v7225_v27 }
 0x1b0   : > { %1083 = vmatpush.msrb.mxu2 %v7169_v42  ;;  %1128 = vmatpush.msrb.mxu3 %v7231_v29 }
 0x1b1   : > { %998 = vmatpush.msra.mxu0 %v7209_v9  ;;  %1041 = vmatpush.msra.mxu1 %v7237_v38 }
 0x1b2   : > { %1084 = vmatpush.msrb.mxu2 %v7183_v12  ;;  %1129 = vmatpush.msrb.mxu3 %v7245_v36 }
 0x1b3   : > { %999 = vmatpush.msra.mxu0 %v7223_v26  ;;  %1042 = vmatpush.msra.mxu1 %v7257_v54 }
 0x1b4   : > { %1085 = vmatpush.msrb.mxu2 %v7195_v17  ;;  %1130 = vmatpush.msrb.mxu3 %v7269_v33 }
 0x1b5   : > { %1000 = vmatpush.msra.mxu0 %v7235_v37  ;;  %1043 = vmatpush.msra.mxu1 %v7276_v31 }
 0x1b6   : > { %1086 = vmatpush.msrb.mxu2 %v7217_v22  ;;  %1131 = vmatpush.msrb.mxu3 %v7282_v3 }
 0x1b7   : > { %1001 = vmatpush.msra.mxu0 %v7255_v52  ;;  %1044 = vmatpush.msra.mxu1 %v7288_v55 }
 0x1b8   : > { %1087 = vmatpush.msrb.mxu2 %v7229_v19  ;;  %1132 = vmatpush.msrb.mxu3 %v770_v14 }
 0x1b9   : > { %1002 = vmatpush.msra.mxu0 %v7274_v60  ;;  %1045 = vmatpush.msra.mxu1 %v7294_v16 }
 0x1ba   : > { %1088 = vmatpush.msrb.mxu2 %v7243_v40  ;;  %1133 = vmatpush.msrb.mxu3 %v768_v32 }
 0x1bb   : > { %1003 = vmatpush.msra.mxu0 %v7286_v5  ;;  %1046 = vmatpush.msra.mxu1 %v7303_v50 }
 0x1bc   : > { %1089 = vmatpush.msrb.mxu2 %v7267_v56 }
 0x1bd   : > { %1004 = vmatpush.msra.mxu0 %v7292_v15  ;;  %1047 = vmatpush.msra.mxu1 %v7309_v45 }
 0x1be   : > { %1090 = vmatpush.msrb.mxu2 %v7280_v0 }
 0x1bf   : > { %1005 = vmatpush.msra.mxu0 %v7301_v21  ;;  %1048 = vmatpush.msra.mxu1 %v7315_v49 }
 0x1c0   : > { %1091 = vmatpush.msrb.mxu2 %v738_v10 }
 0x1c1   : > { %1006 = vmatpush.msra.mxu0 %v7307_v39  ;;  %1049 = vmatpush.msra.mxu1 %v7321_v57 }
 0x1c2   : > { %1092 = vmatpush.msrb.mxu2 %v736_v28 }
 0x1c3   : > { %1007 = vmatpush.msra.mxu0 %v7313_v1  ;;  %1050 = vmatpush.msra.mxu1 %v769_v43 }
 0x1c5   : > { %1008 = vmatpush.msra.mxu0 %v7319_v35  ;;  %1051 = vmatpush.msra.mxu1 %v767_v44 }
 0x1c7   : > { %1009 = vmatpush.msra.mxu0 %v737_v8 }
 0x1c9   : > { %1010 = vmatpush.msra.mxu0 %v735_v11 }
 0x1f0   : > { %v664_v53 = vpop.f32.mrf.mxu2  ;;  %v705_v59 = vpop.f32.mrf.mxu3 }
 0x1f1   : > { %v7388_v46 = vadd.f32 %v664_v53, %v7379_v48  ;;  %v7391_v61 = vadd.f32 %v705_v59, %v7381_v25 }
 0x1f3   : > { %815 = vmatmul.f32.vlgmr.msrb.gmra.mxu0 %v7388_v46  ;;  %856 = vmatmul.f32.vlgmr.msrb.gmra.mxu1 %v7391_v61 }
 0x1f4   : > { %897 = vmatmul.f32.vlgmr.msra.gmra.mxu2 %v7388_v46  ;;  %938 = vmatmul.f32.vlgmr.msra.gmra.mxu3 %v7391_v61 }
 0x1f8   : > { %v667_v62 = vpop.f32.mrf.mxu2  ;;  %v708_v24 = vpop.f32.mrf.mxu3 }
 0x1f9   : > { %v7398_v2 = vadd.f32 %v667_v62, %v7379_v48  ;;  %v7401_v30 = vadd.f32 %v708_v24, %v7381_v25 }
 0x1fb   : > { %818 = vmatmul.f32.gmra.mxu0 %v7398_v2  ;;  %859 = vmatmul.f32.gmra.mxu1 %v7401_v30 }
 0x1fc   : > { %900 = vmatmul.f32.gmra.mxu2 %v7398_v2  ;;  %941 = vmatmul.f32.gmra.mxu3 %v7401_v30 }
 0x200   : > { %v670_v34 = vpop.f32.mrf.mxu2  ;;  %v711_v42 = vpop.f32.mrf.mxu3 }
 0x201   : > { %v7408_v4 = vadd.f32 %v670_v34, %v7379_v48  ;;  %v7411_v41 = vadd.f32 %v711_v42, %v7381_v25 }
 0x203   : > { %821 = vmatmul.f32.gmra.mxu0 %v7408_v4  ;;  %862 = vmatmul.f32.gmra.mxu1 %v7411_v41 }
 0x204   : > { %903 = vmatmul.f32.gmra.mxu2 %v7408_v4  ;;  %944 = vmatmul.f32.gmra.mxu3 %v7411_v41 }
 0x208   : > { %v673_v6 = vpop.f32.mrf.mxu2  ;;  %v714_v12 = vpop.f32.mrf.mxu3 }
 0x209   : > { %v7418_v13 = vadd.f32 %v673_v6, %v7379_v48  ;;  %v7421_v17 = vadd.f32 %v714_v12, %v7381_v25 }
 0x20b   : > { %824 = vmatmul.f32.gmra.mxu0 %v7418_v13  ;;  %865 = vmatmul.f32.gmra.mxu1 %v7421_v17 }
 0x20c   : > { %906 = vmatmul.f32.gmra.mxu2 %v7418_v13  ;;  %947 = vmatmul.f32.gmra.mxu3 %v7421_v17 }
 0x210   : > { %v676_v51 = vpop.f32.mrf.mxu2  ;;  %v717_v9 = vpop.f32.mrf.mxu3 }
 0x211   : > { %v7428_v20 = vadd.f32 %v676_v51, %v7379_v48  ;;  %v7431_v22 = vadd.f32 %v717_v9, %v7381_v25 }
 0x213   : > { %827 = vmatmul.f32.gmra.mxu0 %v7428_v20  ;;  %868 = vmatmul.f32.gmra.mxu1 %v7431_v22 }
 0x214   : > { %909 = vmatmul.f32.gmra.mxu2 %v7428_v20  ;;  %950 = vmatmul.f32.gmra.mxu3 %v7431_v22 }
 0x218   : > { %v679_v23 = vpop.f32.mrf.mxu2  ;;  %v720_v26 = vpop.f32.mrf.mxu3 }
 0x219   : > { %v7438_v27 = vadd.f32 %v679_v23, %v7379_v48  ;;  %v7441_v19 = vadd.f32 %v720_v26, %v7381_v25 }
 0x21b   : > { %830 = vmatmul.f32.gmra.mxu0 %v7438_v27  ;;  %871 = vmatmul.f32.gmra.mxu1 %v7441_v19 }
 0x21c   : > { %912 = vmatmul.f32.gmra.mxu2 %v7438_v27  ;;  %953 = vmatmul.f32.gmra.mxu3 %v7441_v19 }
 0x220   : > { %v682_v29 = vpop.f32.mrf.mxu2  ;;  %v723_v37 = vpop.f32.mrf.mxu3 }
 0x221   : > { %v7448_v38 = vadd.f32 %v682_v29, %v7379_v48  ;;  %v7451_v40 = vadd.f32 %v723_v37, %v7381_v25 }
 0x223   : > { %833 = vmatmul.f32.gmra.mxu0 %v7448_v38  ;;  %874 = vmatmul.f32.gmra.mxu1 %v7451_v40 }
 0x224   : > { %915 = vmatmul.f32.gmra.mxu2 %v7448_v38  ;;  %956 = vmatmul.f32.gmra.mxu3 %v7451_v40 }
 0x228   : > { %v685_v36 = vpop.f32.mrf.mxu2  ;;  %v726_v52 = vpop.f32.mrf.mxu3 }
 0x229   : > { %v7458_v54 = vadd.f32 %v685_v36, %v7379_v48  ;;  %v7461_v56 = vadd.f32 %v726_v52, %v7381_v25 }
 0x22b   : > { %836 = vmatmul.f32.gmra.mxu0 %v7458_v54  ;;  %877 = vmatmul.f32.gmra.mxu1 %v7461_v56 }
 0x22c   : > { %918 = vmatmul.f32.gmra.mxu2 %v7458_v54  ;;  %959 = vmatmul.f32.gmra.mxu3 %v7461_v56 }
 0x270   : > { %v816_v33 = vpop.f32.mrf.mxu0  ;;  %v857_v58 = vpop.f32.mrf.mxu1 }
 0x271   : > { %v858_v60 = vadd.f32 %v857_v58, %v816_v33 }
 0x273   : > { %v7468_v31 = vsub.f32 %v7388_v46, %v858_v60 }
 0x275   : > { %v979_v63 = vmul.f32 %v7468_v31, %v7468_v31 }
 0x277   : > { %v898_v0 = vpop.f32.mrf.mxu2  ;;  %v939_v3 = vpop.f32.mrf.mxu3  ;;  %1011 = vmatmul.f32.vlgmr.msra.gmra.mxu0 %v979_v63  ;;  %1093 = vmatmul.f32.vlgmr.msrb.gmra.mxu2 %v979_v63 }
 0x278   : > { %v940_v5 = vadd.f32 %v939_v3, %v898_v0  ;;  %v819_v55 = vpop.f32.mrf.mxu0  ;;  %v860_v7 = vpop.f32.mrf.mxu1 }
 0x279   : > { %v861_v10 = vadd.f32 %v860_v7, %v819_v55 }
 0x27a   : > { %v7473_v14 = vsub.f32 %v7391_v61, %v940_v5 }
 0x27b   : > { %v7476_v15 = vsub.f32 %v7398_v2, %v861_v10 }
 0x27c   : > { %v980_v16 = vmul.f32 %v7473_v14, %v7473_v14 }
 0x27d   : > { %v981_v18 = vmul.f32 %v7476_v15, %v7476_v15 }
 0x27e   : > { %1052 = vmatmul.f32.vlgmr.msra.gmra.mxu1 %v980_v16  ;;  %1134 = vmatmul.f32.vlgmr.msrb.gmra.mxu3 %v980_v16 }
 0x27f   : > { %v901_v21 = vpop.f32.mrf.mxu2  ;;  %v942_v50 = vpop.f32.mrf.mxu3  ;;  %1014 = vmatmul.f32.gmra.mxu0 %v981_v18  ;;  %1096 = vmatmul.f32.gmra.mxu2 %v981_v18 }
 0x280   : > { %v943_v28 = vadd.f32 %v942_v50, %v901_v21  ;;  %v822_v32 = vpop.f32.mrf.mxu0  ;;  %v863_v39 = vpop.f32.mrf.mxu1 }
 0x281   : > { %v864_v45 = vadd.f32 %v863_v39, %v822_v32 }
 0x282   : > { %v7483_v1 = vsub.f32 %v7401_v30, %v943_v28 }
 0x283   : > { %v7486_v49 = vsub.f32 %v7408_v4, %v864_v45 }
 0x284   : > { %v982_v35 = vmul.f32 %v7483_v1, %v7483_v1 }
 0x285   : > { %v983_v57 = vmul.f32 %v7486_v49, %v7486_v49 }
 0x286   : > { %1055 = vmatmul.f32.gmra.mxu1 %v982_v35  ;;  %1137 = vmatmul.f32.gmra.mxu3 %v982_v35  ;;  %v1749_v35 = vld [vmem:[#allocation2 + $0x610] sm:$0xff] }
 0x287   : > { %v904_v8 = vpop.f32.mrf.mxu2  ;;  %v945_v43 = vpop.f32.mrf.mxu3  ;;  %1017 = vmatmul.f32.gmra.mxu0 %v983_v57  ;;  %1099 = vmatmul.f32.gmra.mxu2 %v983_v57  ;;  %v1732_v57 = vld [vmem:[#allocation2 + $0x588] sm:$0xff] }
 0x288   : > { %v946_v11 = vadd.f32 %v945_v43, %v904_v8  ;;  %v825_v44 = vpop.f32.mrf.mxu0  ;;  %v866_v47 = vpop.f32.mrf.mxu1  ;;  %v1748_v8 = vld [vmem:[#allocation2 + $0x608] sm:$0xff]  ;;  %1793 = vmatpush.msrb.mxu1 %v1749_v35 }
 0x289   : > { %v867_v48 = vadd.f32 %v866_v47, %v825_v44  ;;  %v1747_v44 = vld [vmem:[#allocation2 + $0x600] sm:$0xff]  ;;  %v1730_v47 = vld [vmem:[#allocation2 + $0x578] sm:$0xff] }
 0x28a   : > { %v7493_v25 = vsub.f32 %v7411_v41, %v946_v11  ;;  %1794 = vmatpush.msrb.mxu1 %v1748_v8  ;;  %v1731_v11 = vld [vmem:[#allocation2 + $0x580] sm:$0xff]  ;;  %v732_v8 = vld [vmem:[#allocation4 + $0x320] ss:$8 sm:$0x3] }
 0x28b   : > { %v7496_v53 = vsub.f32 %v7418_v13, %v867_v48 }
 0x28c   : > { %v984_v59 = vmul.f32 %v7493_v25, %v7493_v25  ;;  %1795 = vmatpush.msrb.mxu1 %v1747_v44 }
 0x28d   : > { %v985_v46 = vmul.f32 %v7496_v53, %v7496_v53 }
 0x28e   : > { %1058 = vmatmul.f32.gmra.mxu1 %v984_v59  ;;  %1140 = vmatmul.f32.gmra.mxu3 %v984_v59 }
 0x28f   : > { %v907_v61 = vpop.f32.mrf.mxu2  ;;  %v948_v62 = vpop.f32.mrf.mxu3  ;;  %1020 = vmatmul.f32.gmra.mxu0 %v985_v46  ;;  %1102 = vmatmul.f32.gmra.mxu2 %v985_v46 }
 0x290   : > { %v949_v24 = vadd.f32 %v948_v62, %v907_v61  ;;  %v828_v2 = vpop.f32.mrf.mxu0  ;;  %v869_v30 = vpop.f32.mrf.mxu1  ;;  %v1729_v61 = vld [vmem:[#allocation2 + $0x570] sm:$0xff] }
 0x291   : > { %v870_v34 = vadd.f32 %v869_v30, %v828_v2  ;;  %v1745_v2 = vld [vmem:[#allocation2 + $0x5f0] sm:$0xff]  ;;  %v1728_v30 = vld [vmem:[#allocation2 + $0x568] sm:$0xff] }
 0x292   : > { %v7503_v42 = vsub.f32 %v7421_v17, %v949_v24 }
 0x293   : > { %v7506_v4 = vsub.f32 %v7428_v20, %v870_v34  ;;  %v1744_v34 = vld [vmem:[#allocation2 + $0x5e8] sm:$0xff] }
 0x294   : > { %v986_v41 = vmul.f32 %v7503_v42, %v7503_v42 }
 0x295   : > { %v987_v6 = vmul.f32 %v7506_v4, %v7506_v4 }
 0x296   : > { %1061 = vmatmul.f32.gmra.mxu1 %v986_v41  ;;  %1143 = vmatmul.f32.gmra.mxu3 %v986_v41 }
 0x297   : > { %v910_v12 = vpop.f32.mrf.mxu2  ;;  %v951_v13 = vpop.f32.mrf.mxu3  ;;  %1023 = vmatmul.f32.gmra.mxu0 %v987_v6  ;;  %1105 = vmatmul.f32.gmra.mxu2 %v987_v6 }
 0x298   : > { %v952_v51 = vadd.f32 %v951_v13, %v910_v12  ;;  %v831_v9 = vpop.f32.mrf.mxu0  ;;  %v872_v23 = vpop.f32.mrf.mxu1 }
 0x299   : > { %v873_v17 = vadd.f32 %v872_v23, %v831_v9  ;;  %v1727_v23 = vld [vmem:[#allocation2 + $0x560] sm:$0xff] }
 0x29a   : > { %v7513_v26 = vsub.f32 %v7431_v22, %v952_v51 }
 0x29b   : > { %v7516_v20 = vsub.f32 %v7438_v27, %v873_v17 }
 0x29c   : > { %v988_v29 = vmul.f32 %v7513_v26, %v7513_v26 }
 0x29d   : > { %v989_v37 = vmul.f32 %v7516_v20, %v7516_v20 }
 0x29e   : > { %1064 = vmatmul.f32.gmra.mxu1 %v988_v29  ;;  %1146 = vmatmul.f32.gmra.mxu3 %v988_v29 }
 0x29f   : > { %v913_v36 = vpop.f32.mrf.mxu2  ;;  %v954_v52 = vpop.f32.mrf.mxu3  ;;  %1026 = vmatmul.f32.gmra.mxu0 %v989_v37  ;;  %1108 = vmatmul.f32.gmra.mxu2 %v989_v37 }
 0x2a0   : > { %v955_v33 = vadd.f32 %v954_v52, %v913_v36  ;;  %v834_v58 = vpop.f32.mrf.mxu0  ;;  %v875_v60 = vpop.f32.mrf.mxu1  ;;  %v1743_v52 = vld [vmem:[#allocation2 + $0x5e0] sm:$0xff] }
 0x2a1   : > { %v876_v22 = vadd.f32 %v875_v60, %v834_v58  ;;  %v1742_v58 = vld [vmem:[#allocation2 + $0x5d8] sm:$0xff] }
 0x2a2   : > { %v7523_v63 = vsub.f32 %v7441_v19, %v955_v33  ;;  %v1726_v33 = vld [vmem:[#allocation2 + $0x558] sm:$0xff] }
 0x2a3   : > { %v7526_v27 = vsub.f32 %v7448_v38, %v876_v22 }
 0x2a4   : > { %10733 = vst [vmem:[#allocation8_spill] sm:$0xff] %v7523_v63  ;;  %v990_v0 = vmul.f32 %v7523_v63, %v7523_v63 }
 0x2a5   : > { %10734 = vst [vmem:[#allocation9_spill] sm:$0xff] %v7526_v27  ;;  %v991_v3 = vmul.f32 %v7526_v27, %v7526_v27 }
 0x2a6   : > { %1067 = vmatmul.f32.gmra.mxu1 %v990_v0  ;;  %1149 = vmatmul.f32.gmra.mxu3 %v990_v0 }
 0x2a7   : > { %v916_v5 = vpop.f32.mrf.mxu2  ;;  %v957_v55 = vpop.f32.mrf.mxu3  ;;  %1029 = vmatmul.f32.gmra.mxu0 %v991_v3  ;;  %1111 = vmatmul.f32.gmra.mxu2 %v991_v3 }
 0x2a8   : > { %v958_v7 = vadd.f32 %v957_v55, %v916_v5  ;;  %v837_v10 = vpop.f32.mrf.mxu0  ;;  %v878_v16 = vpop.f32.mrf.mxu1 }
 0x2a9   : > { %v879_v19 = vadd.f32 %v878_v16, %v837_v10 }
 0x2aa   : > { %v7533_v18 = vsub.f32 %v7451_v40, %v958_v7 }
 0x2ab   : > { %v7536_v38 = vsub.f32 %v7458_v54, %v879_v19  ;;  %v1733_v54 = vld [vmem:[#allocation2 + $0x590] sm:$0xff] }
 0x2ac   : > { %10735 = vst [vmem:[#allocation10_spill] sm:$0xff] %v7533_v18  ;;  %v992_v21 = vmul.f32 %v7533_v18, %v7533_v18  ;;  %1752 = vmatpush.msrb.mxu0 %v1733_v54 }
 0x2ad   : > { %10736 = vst [vmem:[#allocation11_spill] sm:$0xff] %v7536_v38  ;;  %v993_v50 = vmul.f32 %v7536_v38, %v7536_v38 }
 0x2ae   : > { %1070 = vmatmul.f32.gmra.mxu1 %v992_v21  ;;  %1152 = vmatmul.f32.gmra.mxu3 %v992_v21 }
 0x2af   : > { %v919_v28 = vpop.f32.mrf.mxu2  ;;  %v960_v32 = vpop.f32.mrf.mxu3  ;;  %1032 = vmatmul.f32.gmra.mxu0 %v993_v50  ;;  %1114 = vmatmul.f32.gmra.mxu2 %v993_v50  ;;  %v1725_v50 = vld [vmem:[#allocation2 + $0x550] sm:$0xff] }
 0x2b0   : > { %v961_v39 = vadd.f32 %v960_v32, %v919_v28  ;;  %1753 = vmatpush.msrb.mxu0 %v1732_v57 }
 0x2b2   : > { %v7543_v45 = vsub.f32 %v7461_v56, %v961_v39  ;;  %1754 = vmatpush.msrb.mxu0 %v1731_v11  ;;  %v1746_v56 = vld [vmem:[#allocation2 + $0x5f8] sm:$0xff] }
 0x2b3   : > { %1796 = vmatpush.msrb.mxu1 %v1746_v56  ;;  %v1724_v56 = vld [vmem:[#allocation2 + $0x548] sm:$0xff] }
 0x2b4   : > { %10737 = vst [vmem:[#allocation12_spill] sm:$0xff] %v7543_v45  ;;  %v994_v40 = vmul.f32 %v7543_v45, %v7543_v45  ;;  %1755 = vmatpush.msrb.mxu0 %v1730_v47  ;;  %v1741_v47 = vld [vmem:[#allocation2 + $0x5d0] sm:$0xff] }
 0x2b5   : > { %1797 = vmatpush.msrb.mxu1 %v1745_v2 }
 0x2b6   : > { %1073 = vmatmul.f32.gmra.mxu1 %v994_v40  ;;  %1155 = vmatmul.f32.gmra.mxu3 %v994_v40  ;;  %v730_v40 = vld [vmem:[#allocation4 + $0x310] ss:$8 sm:$0x3] }
 0x2b7   : > { %1756 = vmatpush.msrb.mxu0 %v1729_v61  ;;  %1798 = vmatpush.msrb.mxu1 %v1744_v34 }
 0x2b9   : > { %1757 = vmatpush.msrb.mxu0 %v1728_v30  ;;  %1799 = vmatpush.msrb.mxu1 %v1743_v52 }
 0x2bb   : > { %1758 = vmatpush.msrb.mxu0 %v1727_v23  ;;  %1800 = vmatpush.msrb.mxu1 %v1742_v58  ;;  %v7592_v58 = vperm.slane %v730_v40, 1 }
 0x2bd   : > { %1759 = vmatpush.msrb.mxu0 %v1726_v33  ;;  %1801 = vmatpush.msrb.mxu1 %v1741_v47 }
 0x2bf   : > { %1760 = vmatpush.msrb.mxu0 %v1725_v50  ;;  %v1738_v50 = vld [vmem:[#allocation2 + $0x5b8] sm:$0xff] }
 0x2c1   : > { %1761 = vmatpush.msrb.mxu0 %v1724_v56 }
 0x2f4   : > { %v1012_v43 = vpop.f32.mrf.mxu0 }
 0x2f5   : > { %v1013_v48 = vadd.f32 1e-05, %v1012_v43 }
 0x2fa   : > { %v1094_v59 = vpop.f32.mrf.mxu2 }
 0x2fb   : > { %v1053_v46 = vpop.f32.mrf.mxu1  ;;  %v1095_v41 = vadd.f32 1e-05, %v1094_v59  ;;  %v7569_v59 = vperm.slane %v730_v40, 0  ;;  %v1721_v40 = vld [vmem:[#allocation2 + $0x530] sm:$0xff] }
 0x2fc   : > { %v1054_v62 = vadd.f32 %v1053_v46, %v1013_v48  ;;  %v1015_v24 = vpop.f32.mrf.mxu0  ;;  %v1740_v48 = vld [vmem:[#allocation2 + $0x5c8] sm:$0xff] }
 0x2fd   : > { %v1016_v12 = vadd.f32 1e-05, %v1015_v24  ;;  %1802 = vmatpush.msrb.mxu1 %v1740_v48 }
 0x2fe   : > { %6146 = vrsqrt.f32 %v1054_v62  ;;  %vm1165_vm9 = vweird.f32 %v1054_v62 }
 0x301   : > { %v1135_v6 = vpop.f32.mrf.mxu3 }
 0x302   : > { %v7547_v13 = vadd.f32 %v1135_v6, %v1095_v41  ;;  %v1097_v51 = vpop.f32.mrf.mxu2 }
 0x303   : > { %v1056_v9 = vpop.f32.mrf.mxu1  ;;  %v1098_v22 = vadd.f32 1e-05, %v1097_v51 }
 0x304   : > { %v6147_v17 = vpop.eup %6146  ;;  %6148 = vrsqrt.f32 %v7547_v13  ;;  %v7550_v29 = vadd.f32 %v1056_v9, %v1016_v12  ;;  %v1018_v37 = vpop.f32.mrf.mxu0  ;;  %vm1175_vm12 = vweird.f32 %v7547_v13  ;;  %v7578_v12 = vperm.slane %v732_v8, 0 }
 0x305   : > { %v1160_v36 = vmul.f32 %v6147_v17, %v1054_v62  ;;  %v1019_v55 = vadd.f32 1e-05, %v1018_v37  ;;  %vm1166_vm8 = vweird.f32 %v6147_v17  ;;  %v734_v37 = vld [vmem:[#allocation4 + $0x330] ss:$8 sm:$0x3] }
 0x306   : > { %6150 = vrsqrt.f32 %v7550_v29  ;;  %vm1167_vm10 = vmor %vm1165_vm9, %vm1166_vm8  ;;  %vm1185_vm15 = vweird.f32 %v7550_v29 }
 0x307   : > { %v1161_v60 = vmul.f32 %v6147_v17, %v1160_v36 }
 0x309   : > { %v1162_v0 = vmul.f32 0.5, %v1161_v60  ;;  %v1138_v3 = vpop.f32.mrf.mxu3 }
 0x30a   : > { %v7553_v5 = vpop.eup %6148  ;;  %v7555_v7 = vadd.f32 %v1138_v3, %v1098_v22  ;;  %v1100_v10 = vpop.f32.mrf.mxu2 }
 0x30b   : > { %v1163_v16 = vsub.f32 1.5, %v1162_v0  ;;  %v1170_v19 = vmul.f32 %v7553_v5, %v7547_v13  ;;  %v1059_v21 = vpop.f32.mrf.mxu1  ;;  %v1101_v61 = vadd.f32 1e-05, %v1100_v10  ;;  %vm1176_vm11 = vweird.f32 %v7553_v5 }
 0x30c   : > { %v7559_v28 = vpop.eup %6150  ;;  %6152 = vrsqrt.f32 %v7555_v7  ;;  %v7562_v32 = vadd.f32 %v1059_v21, %v1019_v55  ;;  %v1021_v39 = vpop.f32.mrf.mxu0  ;;  %vm1177_vm13 = vmor %vm1175_vm12, %vm1176_vm11  ;;  %v1722_v55 = vld [vmem:[#allocation2 + $0x538] sm:$0xff]  ;;  %v1739_v21 = vld [vmem:[#allocation2 + $0x5c0] sm:$0xff]  ;;  %vm1195_vm1 = vweird.f32 %v7555_v7 }
 0x30d   : > { %v1164_v54 = vmul.f32 %v6147_v17, %v1163_v16  ;;  %v1171_v35 = vmul.f32 %v7553_v5, %v1170_v19  ;;  %v1180_v57 = vmul.f32 %v7559_v28, %v7550_v29  ;;  %v1022_v34 = vadd.f32 1e-05, %v1021_v39  ;;  %1803 = vmatpush.msrb.mxu1 %v1739_v21  ;;  %v1735_v21 = vld [vmem:[#allocation2 + $0x5a0] sm:$0xff] }
 0x30e   : > { %6154 = vrsqrt.f32 %v7562_v32  ;;  %vm1186_vm14 = vweird.f32 %v7559_v28  ;;  %v7602_v16 = vperm.slane %v734_v37, 0  ;;  %vm1205_vm5 = vweird.f32 %v7562_v32 }
 0x30f   : > { %v1168_v43 = vsel %vm1167_vm10, %v6147_v17, %v1164_v54  ;;  %v1172_v11 = vmul.f32 0.5, %v1171_v35  ;;  %v1181_v44 = vmul.f32 %v7559_v28, %v1180_v57  ;;  %v1723_v17 = vld [vmem:[#allocation2 + $0x540] sm:$0xff]  ;;  %vm7606_vm0 = vmor %vm1185_vm15, %vm1186_vm14  ;;  %1804 = vmatpush.msrb.mxu1 %v1738_v50 }
 0x310   : > { %v1319_v46 = vmul.f32 %v1168_v43, %v7468_v31  ;;  %1762 = vmatpush.msrb.mxu0 %v1723_v17  ;;  %v1737_v17 = vld [vmem:[#allocation2 + $0x5b0] sm:$0xff] }
 0x311   : > { %v1173_v62 = vsub.f32 1.5, %v1172_v11  ;;  %v1182_v24 = vmul.f32 0.5, %v1181_v44  ;;  %v1141_v2 = vpop.f32.mrf.mxu3  ;;  %v1720_v44 = vld [vmem:[#allocation2 + $0x528] sm:$0xff]  ;;  %1805 = vmatpush.msrb.mxu1 %v1737_v17 }
 0x312   : > { %v7573_v30 = vpop.eup %6152  ;;  %v7576_v41 = vadd.f32 %v1141_v2, %v1101_v61  ;;  %v1103_v6 = vpop.f32.mrf.mxu2  ;;  %v1340_v36 = vmul.f32 %v7569_v59, %v1319_v46  ;;  %1763 = vmatpush.msrb.mxu0 %v1722_v55  ;;  %v7631_v2 = vperm.slane %v734_v37, 1 }
 0x313   : > { %v1174_v31 = vmul.f32 %v7553_v5, %v1173_v62  ;;  %v1183_v51 = vsub.f32 1.5, %v1182_v24  ;;  %v1190_v9 = vmul.f32 %v7573_v30, %v7555_v7  ;;  %v1062_v23 = vpop.f32.mrf.mxu1  ;;  %v1104_v29 = vadd.f32 1e-05, %v1103_v6 }
 0x314   : > { %v7584_v52 = vpop.eup %6154  ;;  %6156 = vrsqrt.f32 %v7576_v41  ;;  %v7590_v13 = vadd.f32 %v1062_v23, %v1022_v34  ;;  %v1024_v33 = vpop.f32.mrf.mxu0  ;;  %v7612_v39 = vadd.f32 %v7578_v12, %v1340_v36  ;;  %1764 = vmatpush.msrb.mxu0 %v1721_v40  ;;  %v1718_v36 = vld [vmem:[#allocation2 + $0x518] sm:$0xff]  ;;  %vm1196_vm2 = vweird.f32 %v7573_v30 }
 0x315   : > { %v1178_v60 = vsel %vm1177_vm13, %v7553_v5, %v1174_v31  ;;  %v1184_v22 = vmul.f32 %v7559_v28, %v1183_v51  ;;  %v1191_v0 = vmul.f32 %v7573_v30, %v1190_v9  ;;  %v1200_v3 = vmul.f32 %v7584_v52, %v7562_v32  ;;  %vm7663_vm4 = vmor %vm1195_vm1, %vm1196_vm2 }
 0x316   : > { %v1320_v10 = vmul.f32 %v1178_v60, %v7473_v14  ;;  %6158 = vrsqrt.f32 %v7590_v13  ;;  %v7614_v14 = vperm.slane %v732_v8, 1  ;;  %v1025_v56 = vadd.f32 1e-05, %v1024_v33  ;;  %1765 = vmatpush.msrb.mxu0 %v1720_v44  ;;  %v1736_v60 = vld [vmem:[#allocation2 + $0x5a8] sm:$0xff] }
 0x317   : > { %v1201_v19 = vmul.f32 %v7584_v52, %v1200_v3  ;;  %v1188_v35 = vsel %vm7606_vm0, %v7559_v28, %v1184_v22  ;;  %v1192_v57 = vmul.f32 0.5, %v1191_v0  ;;  %v1382_v46 = vmul.f32 %v7602_v16, %v7612_v39  ;;  %v1719_v28 = vld [vmem:[#allocation2 + $0x520] sm:$0xff]  ;;  %1806 = vmatpush.msrb.mxu1 %v1736_v60 }
 0x318   : > { %v1341_v54 = vmul.f32 %v7592_v58, %v1320_v10  ;;  %v1321_v34 = vmul.f32 %v1188_v35, %v7476_v15  ;;  %1766 = vmatpush.msrb.mxu0 %v1719_v28  ;;  %vm1206_vm3 = vweird.f32 %v7584_v52  ;;  %vm1215_vm8 = vweird.f32 %v7576_v41 }
 0x319   : > { %v1202_v43 = vmul.f32 0.5, %v1201_v19  ;;  %v1144_v11 = vpop.f32.mrf.mxu3  ;;  %v1193_v9 = vsub.f32 1.5, %v1192_v57  ;;  %v5961_v15 = vmul.f32 -1.442695, %v1382_v46  ;;  %1807 = vmatpush.msrb.mxu1 %v1735_v21  ;;  %vm7674_vm6 = vmor %vm1205_vm5, %vm1206_vm3 }
 0x31a   : > { %v7620_v47 = vpop.eup %6156  ;;  %v7622_v48 = vadd.f32 %v1144_v11, %v1104_v29  ;;  %v1106_v8 = vpop.f32.mrf.mxu2  ;;  %v7629_v24 = vadd.f32 %v7614_v14, %v1341_v54  ;;  %1767 = vmatpush.msrb.mxu0 %v1718_v36  ;;  %v1342_v0 = vmul.f32 %v7569_v59, %v1321_v34 }
 0x31b   : > { %v1210_v61 = vmul.f32 %v7620_v47, %v7576_v41  ;;  %v1065_v62 = vpop.f32.mrf.mxu1  ;;  %v1203_v23 = vsub.f32 1.5, %v1202_v43  ;;  %v1107_v3 = vadd.f32 1e-05, %v1106_v8  ;;  %v1194_v55 = vmul.f32 %v7573_v30, %v1193_v9 }
 0x31c   : > { %v7634_v6 = vpop.eup %6158  ;;  %6160 = vrsqrt.f32 %v7622_v48  ;;  %v7637_v31 = vadd.f32 %v1065_v62, %v1025_v56  ;;  %v1027_v51 = vpop.f32.mrf.mxu0  ;;  %v1383_v22 = vmul.f32 %v7631_v2, %v7629_v24  ;;  %v7657_v57 = vadd.f32 %v7578_v12, %v1342_v0 }
 0x31d   : > { %v1211_v33 = vmul.f32 %v7620_v47, %v1210_v61  ;;  %v1220_v37 = vmul.f32 %v7634_v6, %v7590_v13  ;;  %v1204_v10 = vmul.f32 %v7584_v52, %v1203_v23  ;;  %v1028_v5 = vadd.f32 1e-05, %v1027_v51  ;;  %v1734_v61 = vld [vmem:[#allocation2 + $0x598] sm:$0xff] }
 0x31e   : > { %6162 = vrsqrt.f32 %v7637_v31  ;;  %v5962_v56 = vmul.f32 -1.442695, %v1383_v22  ;;  %1808 = vmatpush.msrb.mxu1 %v1734_v61  ;;  %v1198_v28 = vsel %vm7663_vm4, %v7573_v30, %v1194_v55  ;;  %v1384_v17 = vmul.f32 %v7602_v16, %v7657_v57 }
 0x31f   : > { %6164 = vpow2.f32 %v5961_v15  ;;  %v1212_v29 = vmul.f32 0.5, %v1211_v33  ;;  %v1221_v40 = vmul.f32 %v7634_v6, %v1220_v37  ;;  %v1208_v34 = vsel %vm7674_vm6, %v7584_v52, %v1204_v10 }
 0x320   : > { %v5963_v15 = vmul.f32 -1.442695, %v1384_v17  ;;  %vm1216_vm7 = vweird.f32 %v7620_v47  ;;  %v1322_v22 = vmul.f32 %v1198_v28, %v7483_v1  ;;  %vm1245_vm9 = vweird.f32 %v7637_v31 }
 0x321   : > { %v1147_v19 = vpop.f32.mrf.mxu3  ;;  %v1213_v9 = vsub.f32 1.5, %v1212_v29  ;;  %v1222_v23 = vmul.f32 0.5, %v1221_v40  ;;  %vm7721_vm10 = vmor %vm1215_vm8, %vm1216_vm7  ;;  %vm1226_vm6 = vweird.f32 %v7634_v6 }
 0x322   : > { %v7651_v50 = vpop.eup %6160  ;;  %v7654_v54 = vadd.f32 %v1147_v19, %v1107_v3  ;;  %v1109_v35 = vpop.f32.mrf.mxu2  ;;  %v1343_v61 = vmul.f32 %v7592_v58, %v1322_v22 }
 0x323   : > { %v1230_v11 = vmul.f32 %v7651_v50, %v7622_v48  ;;  %v1068_v44 = vpop.f32.mrf.mxu1  ;;  %v1110_v30 = vadd.f32 1e-05, %v1109_v35  ;;  %v1223_v3 = vsub.f32 1.5, %v1222_v23  ;;  %v7705_v19 = vmul.f32 %v7620_v47, %v1213_v9 }
 0x324   : > { %v7670_v8 = vpop.eup %6162  ;;  %6166 = vrsqrt.f32 %v7654_v54  ;;  %v7679_v7 = vadd.f32 %v1068_v44, %v1028_v5  ;;  %v1030_v62 = vpop.f32.mrf.mxu0  ;;  %v1323_v5 = vmul.f32 %v1208_v34, %v7486_v49  ;;  %vm1255_vm13 = vweird.f32 %v7654_v54 }
 0x325   : > { %v1240_v32 = vmul.f32 %v7670_v8, %v7637_v31  ;;  %v6165_v51 = vpop.eup %6164  ;;  %v1231_v36 = vmul.f32 %v7651_v50, %v1230_v11  ;;  %v1031_v55 = vadd.f32 1e-05, %v1030_v62  ;;  %v7726_v41 = vmul.f32 %v7634_v6, %v1223_v3 }
 0x326   : > { %6168 = vrsqrt.f32 %v7679_v7  ;;  %v7694_v37 = vadd.f32 1.0, %v6165_v51  ;;  %vm1246_vm11 = vweird.f32 %v7670_v8  ;;  %v1344_v51 = vmul.f32 %v7569_v59, %v1323_v5 }
 0x327   : > { %v1241_v33 = vmul.f32 %v7670_v8, %v1240_v32  ;;  %6170 = vpow2.f32 %v5962_v56  ;;  %v1232_v21 = vmul.f32 0.5, %v1231_v36  ;;  %vm1265_vm15 = vweird.f32 %v7679_v7  ;;  %vm7778_vm2 = vmor %vm1245_vm9, %vm1246_vm11 }
 0x328   : > { %6172 = vrcp.f32 %v7694_v37  ;;  %vm1467_vm12 = vweird.f32 %v7694_v37  ;;  %v1471_v36 = vand.u32 2147483647, %v7694_v37  ;;  %v1473_v3 = vand.u32 2147483648, %v7694_v37 }
 0x329   : > { %v1242_v52 = vmul.f32 0.5, %v1241_v33  ;;  %v1150_v60 = vpop.f32.mrf.mxu3  ;;  %6174 = vpow2.f32 %v5963_v15  ;;  %v1233_v62 = vsub.f32 1.5, %v1232_v21  ;;  %v7802_v45 = vadd.f32 %v7578_v12, %v1344_v51 }
 0x32a   : > { %v7699_v0 = vpop.eup %6166  ;;  %v7701_v10 = vadd.f32 %v1150_v60, %v1110_v30  ;;  %v1112_v35 = vpop.f32.mrf.mxu2  ;;  %vm7768_vm1 = vcmp.eq.f32.partialorder %v1471_v36, 8.507059e+37  ;;  %vm1236_vm8 = vweird.f32 %v7651_v50 }
 0x32b   : > { %v1250_v29 = vmul.f32 %v7699_v0, %v7654_v54  ;;  %v1071_v40 = vpop.f32.mrf.mxu1  ;;  %v1243_v49 = vsub.f32 1.5, %v1242_v52  ;;  %v1113_v23 = vadd.f32 1e-05, %v1112_v35  ;;  %vm1256_vm14 = vweird.f32 %v7699_v0 }
 0x32c   : > { %v7709_v43 = vpop.eup %6168  ;;  %6176 = vrsqrt.f32 %v7701_v10  ;;  %v7713_v1 = vadd.f32 %v1071_v40, %v1031_v55  ;;  %v1033_v34 = vpop.f32.mrf.mxu0  ;;  %v7756_v40 = vmul.f32 %v7651_v50, %v1233_v62  ;;  %vm1275_vm3 = vweird.f32 %v7701_v10  ;;  %vm7832_vm9 = vmor %vm1255_vm13, %vm1256_vm14 }
 0x32d   : > { %v6171_v11 = vpop.eup %6170  ;;  %v1251_v44 = vmul.f32 %v7699_v0, %v1250_v29  ;;  %v1260_v56 = vmul.f32 %v7709_v43, %v7679_v7  ;;  %v7746_v15 = vmul.f32 %v7670_v8, %v1243_v49  ;;  %v1034_v5 = vadd.f32 1e-05, %v1033_v34 }
 0x32e   : > { %6178 = vrsqrt.f32 %v7713_v1  ;;  %v7731_v32 = vpop.eup %6172  ;;  %v7743_v33 = vadd.f32 1.0, %v6171_v11  ;;  %vm1266_vm0 = vweird.f32 %v7709_v43  ;;  %vm1235_vm14 = vweird.f32 %v7622_v48 }
 0x32f   : > { %v1261_v28 = vmul.f32 %v7709_v43, %v1260_v56  ;;  %v1463_v17 = vmul.f32 %v7731_v32, %v7694_v37  ;;  %v6175_v30 = vpop.eup %6174  ;;  %v1252_v52 = vmul.f32 0.5, %v1251_v44  ;;  %vm1468_vm4 = vweird.f32 %v7731_v32  ;;  %vm7848_vm13 = vmor %vm1265_vm15, %vm1266_vm0 }
 0x330   : > { %6180 = vrcp.f32 %v7743_v33  ;;  %v7772_v62 = vadd.f32 1.0, %v6175_v30  ;;  %vm7812_vm5 = vmor %vm1467_vm12, %vm1468_vm4  ;;  %vm1482_vm7 = vweird.f32 %v7743_v33  ;;  %vm1225_vm12 = vweird.f32 %v7590_v13 }
 0x331   : > { %v1262_v60 = vmul.f32 0.5, %v1261_v28  ;;  %v1153_v22 = vpop.f32.mrf.mxu3  ;;  %v1464_v29 = vsub.f32 1.0, %v1463_v17  ;;  %v1253_v34 = vsub.f32 1.5, %v1252_v52 }
 0x332   : > { %v7749_v55 = vpop.eup %6176  ;;  %v7752_v21 = vadd.f32 %v1153_v22, %v1113_v23  ;;  %v1115_v22 = vpop.f32.mrf.mxu2 }
 0x333   : > { %v1270_v35 = vmul.f32 %v7749_v55, %v7701_v10  ;;  %v1074_v11 = vpop.f32.mrf.mxu1  ;;  %v1263_v23 = vsub.f32 1.5, %v1262_v60  ;;  %v1465_v31 = vmul.f32 %v7731_v32, %v1464_v29  ;;  %v1116_v9 = vadd.f32 1e-05, %v1115_v22 }
 0x334   : > { %v7763_v49 = vpop.eup %6178  ;;  %6182 = vrsqrt.f32 %v7752_v21  ;;  %v7766_v44 = vadd.f32 %v1074_v11, %v1034_v5  ;;  %v1474_v5 = vor.u32 1.1754944e-38, %v1473_v3  ;;  %v7805_v29 = vmul.f32 %v7699_v0, %v1253_v34 }
 0x335   : > { %v1271_v17 = vmul.f32 %v7749_v55, %v1270_v35  ;;  %v1280_v36 = vmul.f32 %v7763_v49, %v7713_v1  ;;  %v7795_v35 = vadd.f32 %v7614_v14, %v1343_v61  ;;  %v1466_v30 = vadd.f32 %v7731_v32, %v1465_v31 }
 0x336   : > { %6184 = vrsqrt.f32 %v7766_v44  ;;  %v7797_v11 = vpop.eup %6180  ;;  %vm1276_vm11 = vweird.f32 %v7749_v55 }
 0x337   : > { %v1272_v52 = vmul.f32 0.5, %v1271_v17  ;;  %v1281_v60 = vmul.f32 %v7763_v49, %v1280_v36  ;;  %6186 = vrcp.f32 %v7772_v62  ;;  %v7808_v17 = vmul.f32 %v7709_v43, %v1263_v23  ;;  %vm7877_vm0 = vmor %vm1275_vm3, %vm1276_vm11 }
 0x338   : > { %v1478_v22 = vmul.f32 %v7797_v11, %v7743_v33  ;;  %v1470_v34 = vsel %vm7812_vm5, %v7731_v32, %v1466_v30  ;;  %v1486_v32 = vand.u32 2147483647, %v7743_v33  ;;  %vm1483_vm15 = vweird.f32 %v7797_v11 }
 0x339   : > { %10750 = vst [vmem:[#allocation13_spill] sm:$0xff] %v7808_v17  ;;  %v1273_v3 = vsub.f32 1.5, %v1272_v52  ;;  %v1156_v36 = vpop.f32.mrf.mxu3  ;;  %v1282_v51 = vmul.f32 0.5, %v1281_v60  ;;  %v1475_v61 = vsel %vm7768_vm1, %v1474_v5, %v1470_v34  ;;  %vm1497_vm1 = vweird.f32 %v7772_v62  ;;  %vm7896_vm4 = vmor %vm1482_vm7, %vm1483_vm15 }
 0x33a   : > { %v7818_v31 = vpop.eup %6182  ;;  %v7824_v23 = vadd.f32 %v1156_v36, %v1116_v9  ;;  %v1488_v9 = vand.u32 2147483648, %v7743_v33  ;;  %v1479_v36 = vsub.f32 1.0, %v1478_v22  ;;  %v1702_v22 = vmul.f32 %v1475_v61, %v7612_v39 }
 0x33b   : > { %v1290_v52 = vmul.f32 %v7818_v31, %v7752_v21  ;;  %v7853_v60 = vmul.f32 %v7749_v55, %v1273_v3  ;;  %v1283_v34 = vsub.f32 1.5, %v1282_v51  ;;  %v1501_v39 = vand.u32 2147483647, %v7772_v62 }
 0x33c   : > { %v7841_v30 = vpop.eup %6184  ;;  %6188 = vrsqrt.f32 %v7824_v23  ;;  %v1480_v18 = vmul.f32 %v7797_v11, %v1479_v36  ;;  %1768 = vmatmul.f32.vlgmr.msrb.gmra.mxu0 %v1702_v22  ;;  %vm7890_vm3 = vcmp.eq.f32.partialorder %v1486_v32, 8.507059e+37  ;;  %v1489_v36 = vor.u32 1.1754944e-38, %v1488_v9 }
 0x33d   : > { %v1291_v3 = vmul.f32 %v7818_v31, %v1290_v52  ;;  %v1300_v56 = vmul.f32 %v7841_v30, %v7766_v44  ;;  %v6187_v5 = vpop.eup %6186  ;;  %v1503_v17 = vand.u32 2147483648, %v7772_v62  ;;  %v1385_v22 = vmul.f32 %v7631_v2, %v7795_v35 }
 0x33e   : > { %v1493_v38 = vmul.f32 %v6187_v5, %v7772_v62  ;;  %v1481_v10 = vadd.f32 %v7797_v11, %v1480_v18  ;;  %v7906_v18 = vmul.f32 %v7763_v49, %v1283_v34  ;;  %v1386_v32 = vmul.f32 %v7602_v16, %v7802_v45 }
 0x33f   : > { %v1301_v52 = vmul.f32 %v7841_v30, %v1300_v56  ;;  %v1292_v56 = vmul.f32 0.5, %v1291_v3  ;;  %vm1498_vm11 = vweird.f32 %v6187_v5  ;;  %vm7923_vm15 = vcmp.eq.f32.partialorder %v1501_v39, 8.507059e+37 }
 0x340   : > { %v1494_v63 = vsub.f32 1.0, %v1493_v38  ;;  %v1485_v33 = vsel %vm7896_vm4, %v7797_v11, %v1481_v10  ;;  %v10763_v38 = vsel %vm7721_vm10, %v7620_v47, %v7705_v19  ;;  %vm1285_vm4 = vweird.f32 %v7713_v1  ;;  %vm7935_vm10 = vmor %vm1225_vm12, %vm1226_vm6 }
 0x341   : > { %v1324_v9 = vmul.f32 %v10763_v38, %v7493_v25  ;;  %v1302_v3 = vmul.f32 0.5, %v1301_v52  ;;  %vm1306_vm5 = vweird.f32 %v7841_v30  ;;  %v1490_v46 = vsel %vm7890_vm3, %v1489_v36, %v1485_v33  ;;  %vm7946_vm3 = vmor %vm1235_vm14, %vm1236_vm8 }
 0x342   : > { %v7903_v51 = vpop.eup %6188  ;;  %v1495_v47 = vmul.f32 %v6187_v5, %v1494_v63  ;;  %v5964_v25 = vmul.f32 -1.442695, %v1385_v22  ;;  %v5965_v19 = vmul.f32 -1.442695, %v1386_v32  ;;  %v1293_v52 = vsub.f32 1.5, %v1292_v56  ;;  %vm1499_vm8 = vmor %vm1497_vm1, %vm1498_vm11 }
 0x343   : > { %v1310_v34 = vmul.f32 %v7903_v51, %v7824_v23  ;;  %vm1295_vm7 = vweird.f32 %v7752_v21  ;;  %v1703_v10 = vmul.f32 %v1490_v46, %v7629_v24  ;;  %v1504_v61 = vor.u32 1.1754944e-38, %v1503_v17  ;;  %v10780_v21 = vld [vmem:[#allocation13_spill] sm:$0xff] }
 0x344   : > { %vm1305_vm6 = vweird.f32 %v7766_v44  ;;  %v1496_v13 = vadd.f32 %v6187_v5, %v1495_v47  ;;  %6190 = vpow2.f32 %v5964_v25  ;;  %v1345_v36 = vmul.f32 %v7592_v58, %v1324_v9 }
 0x345   : > { %v1311_v39 = vmul.f32 %v7903_v51, %v1310_v34  ;;  %v1228_v24 = vsel %vm7935_vm10, %v7634_v6, %v7726_v41  ;;  %v1303_v17 = vsub.f32 1.5, %v1302_v3  ;;  %1809 = vmatmul.f32.vlgmr.msrb.gmra.mxu1 %v1703_v10  ;;  %6192 = vpow2.f32 %v5965_v19  ;;  %vm8039_vm11 = vmor %vm1305_vm6, %vm1306_vm5 }
 0x346   : > { %v1325_v48 = vmul.f32 %v1228_v24, %v7496_v53  ;;  %v1500_v22 = vsel %vm1499_vm8, %v6187_v5, %v1496_v13  ;;  %v7961_v33 = vadd.f32 %v7614_v14, %v1345_v36  ;;  %v1238_v32 = vsel %vm7946_vm3, %v7651_v50, %v7756_v40 }
 0x347   : > { %v1312_v56 = vmul.f32 0.5, %v1311_v39  ;;  %v10770_v6 = vsel %vm7778_vm2, %v7670_v8, %v7746_v15  ;;  %v1505_v53 = vsel %vm7923_vm15, %v1504_v61, %v1500_v22  ;;  %v1326_v38 = vmul.f32 %v1238_v32, %v7503_v42 }
 0x348   : > { %v1327_v41 = vmul.f32 %v10770_v6, %v7506_v4  ;;  %v1346_v5 = vmul.f32 %v7569_v59, %v1325_v48  ;;  %v1704_v9 = vmul.f32 %v1505_v53, %v7657_v57  ;;  %v1387_v50 = vmul.f32 %v7631_v2, %v7961_v33  ;;  %v10786_v6 = vld [vmem:[#allocation9_spill] sm:$0xff] }
 0x349   : > { %v1313_v62 = vsub.f32 1.5, %v1312_v56  ;;  %v10771_v4 = vsel %vm7832_vm9, %v7699_v0, %v7805_v29  ;;  %v7988_v15 = vmul.f32 %v7818_v31, %v1293_v52  ;;  %vm1316_vm2 = vweird.f32 %v7903_v51 }
 0x34a   : > { %v1348_v40 = vmul.f32 %v7569_v59, %v1327_v41  ;;  %v1328_v8 = vmul.f32 %v10771_v4, %v7513_v26  ;;  %v7992_v42 = vadd.f32 %v7578_v12, %v1346_v5  ;;  %v1347_v57 = vmul.f32 %v7592_v58, %v1326_v38  ;;  %v6191_v28 = vpop.eup %6190  ;;  %1771 = vmatmul.f32.gmra.mxu0 %v1704_v9 }
 0x34b   : > { %v7996_v3 = vmul.f32 %v7841_v30, %v1303_v17  ;;  %v5966_v37 = vmul.f32 -1.442695, %v1387_v50  ;;  %v6193_v0 = vpop.eup %6192  ;;  %vm10772_vm9 = vweird.f32 %v7763_v49  ;;  %v8011_v27 = vmul.f32 %v7903_v51, %v1313_v62 }
 0x34c   : > { %v7999_v34 = vadd.f32 %v7578_v12, %v1348_v40  ;;  %v1349_v26 = vmul.f32 %v7592_v58, %v1328_v8  ;;  %vm8006_vm12 = vmor %vm1285_vm4, %vm10772_vm9  ;;  %v8013_v46 = vadd.f32 1.0, %v6191_v28  ;;  %v1388_v47 = vmul.f32 %v7602_v16, %v7992_v42 }
 0x34d   : > { %v8018_v25 = vadd.f32 %v7614_v14, %v1347_v57  ;;  %vm10775_vm14 = vweird.f32 %v7818_v31  ;;  %v8028_v19 = vadd.f32 1.0, %v6193_v0  ;;  %6194 = vpow2.f32 %v5966_v37 }
 0x34e   : > { %vm8024_vm1 = vmor %vm1295_vm7, %vm10775_vm14  ;;  %v1390_v11 = vmul.f32 %v7602_v16, %v7999_v34  ;;  %v8033_v52 = vadd.f32 %v7614_v14, %v1349_v26  ;;  %vm1315_vm7 = vweird.f32 %v7824_v23  ;;  %6196 = vrcp.f32 %v8013_v46 }
 0x34f   : > { %v10781_v10 = vsel %vm7848_vm13, %v7709_v43, %v10780_v21  ;;  %v1288_v44 = vsel %vm8006_vm12, %v7763_v49, %v7906_v18  ;;  %v1298_v63 = vsel %vm8024_vm1, %v7818_v31, %v7988_v15  ;;  %vm8061_vm5 = vmor %vm1315_vm7, %vm1316_vm2  ;;  %6198 = vrcp.f32 %v8028_v19  ;;  %v10784_v43 = vld [vmem:[#allocation8_spill] sm:$0xff] }
 0x350   : > { %v1329_v61 = vmul.f32 %v10781_v10, %v7516_v20  ;;  %v10785_v20 = vsel %vm7877_vm0, %v7749_v55, %v7853_v60  ;;  %v1308_v31 = vsel %vm8039_vm11, %v7841_v30, %v7996_v3  ;;  %v1318_v54 = vsel %vm8061_vm5, %v7903_v51, %v8011_v27 }
 0x351   : > { %v1330_v49 = vmul.f32 %v10785_v20, %v10784_v43  ;;  %v5967_v18 = vmul.f32 -1.442695, %v1388_v47  ;;  %v1389_v13 = vmul.f32 %v7631_v2, %v8018_v25  ;;  %v1516_v7 = vand.u32 2147483647, %v8013_v46  ;;  %v10791_v47 = vld [vmem:[#allocation10_spill] sm:$0xff] }
 0x352   : > { %v1518_v36 = vand.u32 2147483648, %v8013_v46  ;;  %v5969_v55 = vmul.f32 -1.442695, %v1390_v11  ;;  %v1391_v60 = vmul.f32 %v7631_v2, %v8033_v52  ;;  %v1531_v24 = vand.u32 2147483647, %v8028_v19 }
 0x353   : > { %6200 = vpow2.f32 %v5967_v18  ;;  %v5968_v17 = vmul.f32 -1.442695, %v1389_v13  ;;  %v1350_v56 = vmul.f32 %v7569_v59, %v1329_v61  ;;  %v6195_v48 = vpop.eup %6194  ;;  %v1533_v22 = vand.u32 2147483648, %v8028_v19 }
 0x354   : > { %6202 = vpow2.f32 %v5969_v55  ;;  %v1351_v32 = vmul.f32 %v7592_v58, %v1330_v49  ;;  %v1331_v41 = vmul.f32 %v1288_v44, %v10786_v6  ;;  %v6197_v62 = vpop.eup %6196  ;;  %vm1512_vm13 = vweird.f32 %v8013_v46 }
 0x355   : > { %v8092_v53 = vadd.f32 1.0, %v6195_v48  ;;  %6204 = vpow2.f32 %v5968_v17  ;;  %v5970_v5 = vmul.f32 -1.442695, %v1391_v60  ;;  %v6199_v38 = vpop.eup %6198  ;;  %v1508_v9 = vmul.f32 %v6197_v62, %v8013_v46 }
 0x356   : > { %vm8095_vm0 = vcmp.eq.f32.partialorder %v1516_v7, 8.507059e+37  ;;  %v1519_v40 = vor.u32 1.1754944e-38, %v1518_v36  ;;  %vm1527_vm15 = vweird.f32 %v8028_v19  ;;  %v1523_v4 = vmul.f32 %v6199_v38, %v8028_v19 }
 0x357   : > { %vm8101_vm4 = vcmp.eq.f32.partialorder %v1531_v24, 8.507059e+37  ;;  %6206 = vrcp.f32 %v8092_v53  ;;  %v8107_v15 = vadd.f32 %v7578_v12, %v1350_v56  ;;  %v1509_v57 = vsub.f32 1.0, %v1508_v9 }
 0x358   : > { %v1534_v28 = vor.u32 1.1754944e-38, %v1533_v22  ;;  %v8110_v37 = vadd.f32 %v7614_v14, %v1351_v32  ;;  %v1352_v26 = vmul.f32 %v7569_v59, %v1331_v41  ;;  %vm1513_vm10 = vweird.f32 %v6197_v62 }
 0x359   : > { %v6201_v0 = vpop.eup %6200  ;;  %v1524_v29 = vsub.f32 1.0, %v1523_v4  ;;  %6208 = vpow2.f32 %v5970_v5  ;;  %v1332_v1 = vmul.f32 %v1298_v63, %v10791_v47  ;;  %v1510_v21 = vmul.f32 %v6197_v62, %v1509_v57  ;;  %vm1514_vm8 = vmor %vm1512_vm13, %vm1513_vm10 }
 0x35a   : > { %v6203_v11 = vpop.eup %6202  ;;  %v1546_v10 = vand.u32 2147483647, %v8092_v53  ;;  %v1548_v61 = vand.u32 2147483648, %v8092_v53  ;;  %v8116_v44 = vadd.f32 1.0, %v6201_v0  ;;  %vm1528_vm3 = vweird.f32 %v6199_v38 }
 0x35b   : > { %v6205_v43 = vpop.eup %6204  ;;  %v1525_v20 = vmul.f32 %v6199_v38, %v1524_v29  ;;  %v8118_v49 = vadd.f32 1.0, %v6203_v11  ;;  %v1392_v18 = vmul.f32 %v7602_v16, %v8107_v15  ;;  %v1511_v13 = vadd.f32 %v6197_v62, %v1510_v21  ;;  %vm1529_vm2 = vmor %vm1527_vm15, %vm1528_vm3 }
 0x35c   : > { %vm1542_vm6 = vweird.f32 %v8092_v53  ;;  %6210 = vrcp.f32 %v8116_v44  ;;  %v1393_v63 = vmul.f32 %v7631_v2, %v8110_v37  ;;  %v8127_v7 = vadd.f32 %v7578_v12, %v1352_v26 }
 0x35d   : > { %v6207_v36 = vpop.eup %6206  ;;  %v1526_v55 = vadd.f32 %v6199_v38, %v1525_v20  ;;  %v8132_v60 = vadd.f32 1.0, %v6205_v43  ;;  %6212 = vrcp.f32 %v8118_v49  ;;  %v8136_v24 = vmul.f32 %v7592_v58, %v1332_v1 }
 0x35e   : > { %v1515_v17 = vsel %vm1514_vm8, %v6197_v62, %v1511_v13  ;;  %v1538_v56 = vmul.f32 %v6207_v36, %v8092_v53  ;;  %vm8142_vm9 = vcmp.eq.f32.partialorder %v1546_v10, 8.507059e+37  ;;  %v1549_v46 = vor.u32 1.1754944e-38, %v1548_v61 }
 0x35f   : > { %v1561_v22 = vand.u32 2147483647, %v8116_v44  ;;  %v6209_v32 = vpop.eup %6208  ;;  %v1520_v6 = vsel %vm8095_vm0, %v1519_v40, %v1515_v17  ;;  %v1530_v41 = vsel %vm1529_vm2, %v6199_v38, %v1526_v55  ;;  %v1563_v62 = vand.u32 2147483648, %v8116_v44 }
 0x360   : > { %6214 = vrcp.f32 %v8132_v60  ;;  %v1705_v19 = vmul.f32 %v1520_v6, %v7795_v35  ;;  %v1535_v5 = vsel %vm8101_vm4, %v1534_v28, %v1530_v41  ;;  %v1539_v9 = vsub.f32 1.0, %v1538_v56 }
 0x361   : > { %v5971_v4 = vmul.f32 -1.442695, %v1392_v18  ;;  %v1706_v57 = vmul.f32 %v1535_v5, %v7802_v45  ;;  %vm1543_vm12 = vweird.f32 %v6207_v36  ;;  %vm1557_vm14 = vweird.f32 %v8116_v44 }
 0x362   : > { %v5972_v26 = vmul.f32 -1.442695, %v1393_v63  ;;  %v6211_v50 = vpop.eup %6210  ;;  %1812 = vmatmul.f32.gmra.mxu1 %v1705_v19  ;;  %v1540_v38 = vmul.f32 %v6207_v36, %v1539_v9  ;;  %v1576_v40 = vand.u32 2147483647, %v8132_v60  ;;  %v1578_v0 = vand.u32 2147483648, %v8132_v60  ;;  %vm1544_vm0 = vmor %vm1542_vm6, %vm1543_vm12  ;;  %v10800_v9 = vld [vmem:[#allocation11_spill] sm:$0xff] }
 0x363   : > { %v8158_v29 = vadd.f32 1.0, %v6209_v32  ;;  %v6213_v35 = vpop.eup %6212  ;;  %1774 = vmatmul.f32.gmra.mxu0 %v1706_v57  ;;  %v1553_v8 = vmul.f32 %v6211_v50, %v8116_v44  ;;  %vm8161_vm1 = vcmp.eq.f32.partialorder %v1561_v22, 8.507059e+37  ;;  %v1564_v45 = vor.u32 1.1754944e-38, %v1563_v62 }
 0x364   : > { %v1591_v47 = vand.u32 2147483647, %v8118_v49  ;;  %v1541_v1 = vadd.f32 %v6207_v36, %v1540_v38  ;;  %vm1572_vm7 = vweird.f32 %v8132_v60  ;;  %v1583_v11 = vmul.f32 %v6213_v35, %v8118_v49 }
 0x365   : > { %vm1587_vm13 = vweird.f32 %v8118_v49  ;;  %v1554_v10 = vsub.f32 1.0, %v1553_v8  ;;  %vm1558_vm15 = vweird.f32 %v6211_v50  ;;  %v1593_v61 = vand.u32 2147483648, %v8118_v49 }
 0x366   : > { %v6215_v21 = vpop.eup %6214  ;;  %6216 = vrcp.f32 %v8158_v29  ;;  %v1545_v43 = vsel %vm1544_vm0, %v6207_v36, %v1541_v1  ;;  %vm8175_vm4 = vcmp.eq.f32.partialorder %v1576_v40, 8.507059e+37  ;;  %v1579_v13 = vor.u32 1.1754944e-38, %v1578_v0  ;;  %vm1559_vm8 = vmor %vm1557_vm14, %vm1558_vm15  ;;  %v10801_v40 = vld [vmem:[#allocation12_spill] sm:$0xff] }
 0x367   : > { %v1568_v20 = vmul.f32 %v6215_v21, %v8132_v60  ;;  %v1584_v63 = vsub.f32 1.0, %v1583_v11  ;;  %v1550_v55 = vsel %vm8142_vm9, %v1549_v46, %v1545_v43  ;;  %v1555_v53 = vmul.f32 %v6211_v50, %v1554_v10 }
 0x368   : > { %vm1588_vm10 = vweird.f32 %v6213_v35  ;;  %vm8181_vm3 = vcmp.eq.f32.partialorder %v1591_v47, 8.507059e+37  ;;  %v1707_v56 = vmul.f32 %v1550_v55, %v7961_v33  ;;  %6218 = vpow2.f32 %v5971_v4 }
 0x369   : > { %v1569_v36 = vsub.f32 1.0, %v1568_v20  ;;  %v1585_v22 = vmul.f32 %v6213_v35, %v1584_v63  ;;  %v1556_v32 = vadd.f32 %v6211_v50, %v1555_v53  ;;  %vm1573_vm6 = vweird.f32 %v6215_v21  ;;  %vm1589_vm2 = vmor %vm1587_vm13, %vm1588_vm10 }
 0x36a   : > { %v1594_v6 = vor.u32 1.1754944e-38, %v1593_v61  ;;  %6220 = vpow2.f32 %v5972_v26  ;;  %1815 = vmatmul.f32.gmra.mxu1 %v1707_v56  ;;  %v1394_v41 = vmul.f32 %v7602_v16, %v8127_v7  ;;  %v8193_v33 = vadd.f32 %v7614_v14, %v8136_v24  ;;  %vm1574_vm9 = vmor %vm1572_vm7, %vm1573_vm6 }
 0x36b   : > { %v1570_v48 = vmul.f32 %v6215_v21, %v1569_v36  ;;  %v1586_v46 = vadd.f32 %v6213_v35, %v1585_v22  ;;  %v1560_v19 = vsel %vm1559_vm8, %v6211_v50, %v1556_v32  ;;  %v1606_v5 = vand.u32 2147483647, %v8158_v29  ;;  %v1857_v32 = vld [vmem:[#allocation2 + $0x698] sm:$0xff] }
 0x36c   : > { %v6217_v62 = vpop.eup %6216  ;;  %v1608_v44 = vand.u32 2147483648, %v8158_v29  ;;  %v1333_v4 = vmul.f32 %v1308_v31, %v10800_v9  ;;  %v1565_v24 = vsel %vm8161_vm1, %v1564_v45, %v1560_v19  ;;  %v5973_v38 = vmul.f32 -1.442695, %v1394_v41  ;;  %1860 = vmatpush.msra.mxu2 %v1857_v32  ;;  %v1998_v41 = vld [vmem:[#allocation2 + $0x828] sm:$0xff]  ;;  %v1849_v32 = vld [vmem:[#allocation2 + $0x658] sm:$0xff] }
 0x36d   : > { %v1571_v57 = vadd.f32 %v6215_v21, %v1570_v48  ;;  %v1590_v26 = vsel %vm1589_vm2, %v6213_v35, %v1586_v46  ;;  %v1598_v50 = vmul.f32 %v6217_v62, %v8158_v29  ;;  %v1708_v49 = vmul.f32 %v1565_v24, %v7992_v42  ;;  %v1999_v48 = vld [vmem:[#allocation2 + $0x830] sm:$0xff] }
 0x36e   : > { %v1595_v39 = vsel %vm8181_vm3, %v1594_v6, %v1590_v26  ;;  %v1334_v30 = vmul.f32 %v1318_v54, %v10801_v40  ;;  %v6219_v3 = vpop.eup %6218  ;;  %vm1603_vm11 = vweird.f32 %v6217_v62  ;;  %v1395_v42 = vmul.f32 %v7631_v2, %v8193_v33  ;;  %v1856_v6 = vld [vmem:[#allocation2 + $0x690] sm:$0xff]  ;;  %2002 = vmatpush.msra.mxu0 %v1999_v48 }
 0x36f   : > { %v1575_v31 = vsel %vm1574_vm9, %v6215_v21, %v1571_v57  ;;  %v1599_v0 = vsub.f32 1.0, %v1598_v50  ;;  %1777 = vmatmul.f32.gmra.mxu0 %v1708_v49  ;;  %v8225_v8 = vadd.f32 1.0, %v6219_v3  ;;  %6222 = vpow2.f32 %v5973_v38  ;;  %1861 = vmatpush.msra.mxu2 %v1856_v6  ;;  %v1854_v49 = vld [vmem:[#allocation2 + $0x680] sm:$0xff]  ;;  %v1992_v6 = vld [vmem:[#allocation2 + $0x7f8] sm:$0xff] }
 0x370   : > { %v6221_v60 = vpop.eup %6220  ;;  %v1580_v35 = vsel %vm8175_vm4, %v1579_v13, %v1575_v31  ;;  %v1354_v23 = vmul.f32 %v7569_v59, %v1333_v4  ;;  %v5974_v28 = vmul.f32 -1.442695, %v1395_v42  ;;  %vm1602_vm5 = vweird.f32 %v8158_v29  ;;  %2003 = vmatpush.msra.mxu0 %v1998_v41  ;;  %v1916_v31 = vld [vmem:[#allocation2 + $0x720] sm:$0xff] }
 0x371   : > { %v1709_v51 = vmul.f32 %v1580_v35, %v8018_v25  ;;  %v1600_v27 = vmul.f32 %v6217_v62, %v1599_v0  ;;  %v8229_v54 = vadd.f32 1.0, %v6221_v60  ;;  %6224 = vrcp.f32 %v8225_v8  ;;  %vm1604_vm12 = vmor %vm1602_vm5, %vm1603_vm11  ;;  %1919 = vmatpush.msra.mxu3 %v1916_v31 }
 0x372   : > { %v1710_v47 = vmul.f32 %v1595_v39, %v7999_v34  ;;  %v1609_v1 = vor.u32 1.1754944e-38, %v1608_v44  ;;  %vm1607_vm14 = vcmp.eq.f32.partialorder %v1606_v5, 8.507059e+37  ;;  %v8237_v25 = vadd.f32 %v7578_v12, %v1354_v23  ;;  %v1855_v5 = vld [vmem:[#allocation2 + $0x688] sm:$0xff]  ;;  %v1997_v44 = vld [vmem:[#allocation2 + $0x820] sm:$0xff]  ;;  %v1996_v39 = vld [vmem:[#allocation2 + $0x818] sm:$0xff] }
 0x373   : > { %1818 = vmatmul.f32.gmra.mxu1 %v1709_v51  ;;  %v1601_v45 = vadd.f32 %v6217_v62, %v1600_v27  ;;  %6226 = vrcp.f32 %v8229_v54  ;;  %v1355_v11 = vmul.f32 %v7592_v58, %v1334_v30  ;;  %v1623_v53 = vand.u32 2147483648, %v8225_v8  ;;  %1862 = vmatpush.msra.mxu2 %v1855_v5  ;;  %v1915_v23 = vld [vmem:[#allocation2 + $0x718] sm:$0xff]  ;;  %v1909_v5 = vld [vmem:[#allocation2 + $0x6e8] sm:$0xff] }
 0x374   : > { %6228 = vpow2.f32 %v5974_v28  ;;  %v1396_v34 = vmul.f32 %v7602_v16, %v8237_v25  ;;  %v1636_v56 = vand.u32 2147483647, %v8229_v54  ;;  %v1638_v22 = vand.u32 2147483648, %v8229_v54  ;;  %2004 = vmatpush.msra.mxu0 %v1997_v44  ;;  %1920 = vmatpush.msra.mxu3 %v1915_v23  ;;  %v1847_v44 = vld [vmem:[#allocation2 + $0x648] sm:$0xff]  ;;  %v1844_v23 = vld [vmem:[#allocation2 + $0x630] sm:$0xff] }
 0x375   : > { %v1605_v59 = vsel %vm1604_vm12, %v6217_v62, %v1601_v45  ;;  %v6223_v21 = vpop.eup %6222  ;;  %v8246_v43 = vadd.f32 %v7614_v14, %v1355_v11  ;;  %v1621_v14 = vand.u32 2147483647, %v8225_v8  ;;  %vm1617_vm13 = vweird.f32 %v8225_v8  ;;  %1863 = vmatpush.msra.mxu2 %v1854_v49  ;;  %v1995_v45 = vld [vmem:[#allocation2 + $0x810] sm:$0xff] }
 0x376   : > { %v1610_v10 = vsel %vm1607_vm14, %v1609_v1, %v1605_v59  ;;  %v8241_v29 = vadd.f32 1.0, %v6223_v21  ;;  %v5975_v55 = vmul.f32 -1.442695, %v1396_v34  ;;  %vm1632_vm0 = vweird.f32 %v8229_v54  ;;  %2005 = vmatpush.msra.mxu0 %v1996_v39  ;;  %v1852_v1 = vld [vmem:[#allocation2 + $0x670] sm:$0xff]  ;;  %v1994_v21 = vld [vmem:[#allocation2 + $0x808] sm:$0xff]  ;;  %v1842_v34 = vld [vmem:[#allocation2 + $0x620] sm:$0xff] }
 0x377   : > { %v1711_v61 = vmul.f32 %v1610_v10, %v8033_v52  ;;  %v6225_v20 = vpop.eup %6224  ;;  %1780 = vmatmul.f32.gmra.mxu0 %v1710_v47  ;;  %v1397_v16 = vmul.f32 %v7631_v2, %v8246_v43  ;;  %vm1622_vm4 = vcmp.eq.f32.partialorder %v1621_v14, 8.507059e+37  ;;  %v1624_v9 = vor.u32 1.1754944e-38, %v1623_v53  ;;  %v1913_v10 = vld [vmem:[#allocation2 + $0x708] sm:$0xff]  ;;  %v1850_v53 = vld [vmem:[#allocation2 + $0x660] sm:$0xff] }
 0x378   : > { %v1613_v12 = vmul.f32 %v6225_v20, %v8225_v8  ;;  %6230 = vrcp.f32 %v8241_v29  ;;  %vm1618_vm1 = vweird.f32 %v6225_v20  ;;  %vm1637_vm3 = vcmp.eq.f32.partialorder %v1636_v56, 8.507059e+37  ;;  %v1853_v8 = vld [vmem:[#allocation2 + $0x678] sm:$0xff]  ;;  %2006 = vmatpush.msra.mxu0 %v1995_v45 }
 0x379   : > { %v6227_v18 = vpop.eup %6226  ;;  %v5976_v2 = vmul.f32 -1.442695, %v1397_v16  ;;  %vm1619_vm15 = vmor %vm1617_vm13, %vm1618_vm1  ;;  %v1639_v50 = vor.u32 1.1754944e-38, %v1638_v22  ;;  %v1651_v3 = vand.u32 2147483647, %v8241_v29  ;;  %v1653_v35 = vand.u32 2147483648, %v8241_v29  ;;  %1864 = vmatpush.msra.mxu2 %v1853_v8 }
 0x37a   : > { %v6229_v58 = vpop.eup %6228  ;;  %v1628_v13 = vmul.f32 %v6227_v18, %v8229_v54  ;;  %v1614_v52 = vsub.f32 1.0, %v1613_v12  ;;  %vm1633_vm7 = vweird.f32 %v6227_v18  ;;  %vm1647_vm8 = vweird.f32 %v8241_v29  ;;  %v1851_v12 = vld [vmem:[#allocation2 + $0x668] sm:$0xff]  ;;  %v1912_v16 = vld [vmem:[#allocation2 + $0x700] sm:$0xff]  ;;  %2007 = vmatpush.msra.mxu0 %v1994_v21 }
 0x37b   : > { %1821 = vmatmul.f32.gmra.mxu1 %v1711_v61  ;;  %v8251_v63 = vadd.f32 1.0, %v6229_v58  ;;  %vm8268_vm10 = vmor %vm1632_vm0, %vm1633_vm7  ;;  %vm8288_vm2 = vcmp.eq.f32.partialorder %v1651_v3, 8.507059e+37  ;;  %1865 = vmatpush.msra.mxu2 %v1852_v1  ;;  %v1845_v3 = vld [vmem:[#allocation2 + $0x638] sm:$0xff]  ;;  %v1843_v21 = vld [vmem:[#allocation2 + $0x628] sm:$0xff] }
 0x37c   : > { %v1629_v17 = vsub.f32 1.0, %v1628_v13  ;;  %v1615_v36 = vmul.f32 %v6225_v20, %v1614_v52 }
 0x37d   : > { %6232 = vrcp.f32 %v8251_v63  ;;  %vm1662_vm5 = vweird.f32 %v8251_v63  ;;  %1866 = vmatpush.msra.mxu2 %v1851_v12  ;;  %v8328_v12 = vld [vmem:[#allocation2 + $0x618] ss:$0 sm:$0xff] }
 0x37e   : > { %v1630_v46 = vmul.f32 %v6227_v18, %v1629_v17  ;;  %6234 = vpow2.f32 %v5975_v55  ;;  %v8260_v62 = vpop.eup %6230  ;;  %v1616_v19 = vadd.f32 %v6225_v20, %v1615_v36  ;;  %v1993_v55 = vld [vmem:[#allocation2 + $0x800] sm:$0xff]  ;;  %v1911_v36 = vld [vmem:[#allocation2 + $0x6f8] sm:$0xff] }
 0x37f   : > { %v1643_v24 = vmul.f32 %v8260_v62, %v8241_v29  ;;  %6236 = vpow2.f32 %v5976_v2  ;;  %vm1648_vm6 = vweird.f32 %v8260_v62  ;;  %v1668_v29 = vand.u32 2147483648, %v8251_v63  ;;  %2008 = vmatpush.msra.mxu0 %v1993_v55  ;;  %1867 = vmatpush.msra.mxu2 %v1850_v53  ;;  %v1848_v2 = vld [vmem:[#allocation2 + $0x650] sm:$0xff] }
 0x380   : > { %v1631_v4 = vadd.f32 %v6227_v18, %v1630_v46  ;;  %v1620_v57 = vsel %vm1619_vm15, %v6225_v20, %v1616_v19  ;;  %vm8294_vm9 = vmor %vm1647_vm8, %vm1648_vm6  ;;  %v1654_v20 = vor.u32 1.1754944e-38, %v1653_v35  ;;  %v1991_v19 = vld [vmem:[#allocation2 + $0x7f0] sm:$0xff] }
 0x381   : > { %v1625_v38 = vsel %vm1622_vm4, %v1624_v9, %v1620_v57  ;;  %v1644_v30 = vsub.f32 1.0, %v1643_v24  ;;  %v1669_v22 = vor.u32 1.1754944e-38, %v1668_v29  ;;  %1868 = vmatpush.msra.mxu2 %v1849_v32  ;;  %2009 = vmatpush.msra.mxu0 %v1992_v6  ;;  %v1990_v24 = vld [vmem:[#allocation2 + $0x7e8] sm:$0xff]  ;;  %v1908_v57 = vld [vmem:[#allocation2 + $0x6e0] sm:$0xff]  ;;  %v1984_v29 = vld [vmem:[#allocation2 + $0x7b8] sm:$0xff] }
 0x382   : > { %v1635_v40 = vsel %vm8268_vm10, %v6227_v18, %v1631_v4  ;;  %v1712_v42 = vmul.f32 %v1625_v38, %v8107_v15  ;;  %v1914_v15 = vld [vmem:[#allocation2 + $0x710] sm:$0xff]  ;;  %v1666_v18 = vand.u32 2147483647, %v8251_v63  ;;  %v1989_v38 = vld [vmem:[#allocation2 + $0x7e0] sm:$0xff] }
 0x383   : > { %v8275_v0 = vpop.eup %6232  ;;  %v1640_v60 = vsel %vm1637_vm3, %v1639_v50, %v1635_v40  ;;  %v1645_v54 = vmul.f32 %v8260_v62, %v1644_v30  ;;  %1921 = vmatpush.msra.mxu3 %v1914_v15  ;;  %1869 = vmatpush.msra.mxu2 %v1848_v2  ;;  %v1907_v40 = vld [vmem:[#allocation2 + $0x6d8] sm:$0xff] }
 0x384   : > { %v6235_v51 = vpop.eup %6234  ;;  %v1713_v27 = vmul.f32 %v1640_v60, %v8110_v37  ;;  %v1658_v28 = vmul.f32 %v8275_v0, %v8251_v63  ;;  %1783 = vmatmul.f32.gmra.mxu0 %v1712_v42  ;;  %vm1663_vm11 = vweird.f32 %v8275_v0  ;;  %vm1667_vm14 = vcmp.eq.f32.partialorder %v1666_v18, 8.507059e+37  ;;  %v1988_v42 = vld [vmem:[#allocation2 + $0x7d8] sm:$0xff]  ;;  %v1987_v37 = vld [vmem:[#allocation2 + $0x7d0] sm:$0xff]  ;;  %v1901_v18 = vld [vmem:[#allocation2 + $0x6a8] sm:$0xff] }
 0x385   : > { %v8284_v47 = vadd.f32 1.0, %v6235_v51  ;;  %v1646_v59 = vadd.f32 %v8260_v62, %v1645_v54  ;;  %v6237_v61 = vpop.eup %6236  ;;  %1922 = vmatpush.msra.mxu3 %v1913_v10  ;;  %vm1664_vm12 = vmor %vm1662_vm5, %vm1663_vm11  ;;  %2010 = vmatpush.msra.mxu0 %v1991_v19  ;;  %v1986_v10 = vld [vmem:[#allocation2 + $0x7c8] sm:$0xff]  ;;  %v2162_v19 = vld [vmem:[#allocation2 + $0x930] sm:$0xff] }
 0x386   : > { %1824 = vmatmul.f32.gmra.mxu1 %v1713_v27  ;;  %v1659_v11 = vsub.f32 1.0, %v1658_v28  ;;  %v8306_v52 = vadd.f32 1.0, %v6237_v61  ;;  %1870 = vmatpush.msra.mxu2 %v1847_v44  ;;  %v1904_v61 = vld [vmem:[#allocation2 + $0x6c0] sm:$0xff] }
 0x387   : > { %6238 = vrcp.f32 %v8284_v47  ;;  %v1650_v58 = vsel %vm8294_vm9, %v8260_v62, %v1646_v59  ;;  %1923 = vmatpush.msra.mxu3 %v1912_v16  ;;  %v1683_v26 = vand.u32 2147483648, %v8284_v47  ;;  %v1681_v39 = vand.u32 2147483647, %v8284_v47  ;;  %2011 = vmatpush.msra.mxu0 %v1990_v24  ;;  %v1906_v59 = vld [vmem:[#allocation2 + $0x6d0] sm:$0xff]  ;;  %v6450_v16 = vld [vmem:[%s6852_s7] sm:$0xff] }
 0x388   : > { %v1660_v13 = vmul.f32 %v8275_v0, %v1659_v11  ;;  %v1655_v14 = vsel %vm8288_vm2, %v1654_v20, %v1650_v58  ;;  %6240 = vrcp.f32 %v8306_v52  ;;  %vm1677_vm7 = vweird.f32 %v8284_v47  ;;  %v1905_v11 = vld [vmem:[#allocation2 + $0x6c8] sm:$0xff]  ;;  %v1902_v20 = vld [vmem:[#allocation2 + $0x6b0] sm:$0xff] }
 0x389   : > { %v1714_v17 = vmul.f32 %v1655_v14, %v8127_v7  ;;  %v1910_v7 = vld [vmem:[#allocation2 + $0x6f0] sm:$0xff]  ;;  %1924 = vmatpush.msra.mxu3 %v1911_v36  ;;  %v1684_v60 = vor.u32 1.1754944e-38, %v1683_v26  ;;  %v1696_v8 = vand.u32 2147483647, %v8306_v52  ;;  %2012 = vmatpush.msra.mxu0 %v1989_v38  ;;  %vm1682_vm15 = vcmp.eq.f32.partialorder %v1681_v39, 8.507059e+37 }
 0x38a   : > { %v1661_v56 = vadd.f32 %v8275_v0, %v1660_v13  ;;  %vm1692_vm4 = vweird.f32 %v8306_v52  ;;  %v2158_v39 = vld [vmem:[#allocation2 + $0x910] sm:$0xff] }
 0x38b   : > { %1925 = vmatpush.msra.mxu3 %v1910_v7  ;;  %2013 = vmatpush.msra.mxu0 %v1988_v42  ;;  %vm1697_vm3 = vcmp.eq.f32.partialorder %v1696_v8, 8.507059e+37  ;;  %v2153_v8 = vld [vmem:[#allocation2 + $0x8e8] sm:$0xff] }
 0x38c   : > { %v1665_v48 = vsel %vm1664_vm12, %v8275_v0, %v1661_v56  ;;  %1786 = vmatmul.f32.gmra.mxu0 %v1714_v17  ;;  %v1698_v0 = vand.u32 2147483648, %v8306_v52 }
 0x38d   : > { %v6239_v46 = vpop.eup %6238  ;;  %v1670_v63 = vsel %vm1667_vm14, %v1669_v22, %v1665_v48  ;;  %1926 = vmatpush.msra.mxu3 %v1909_v5  ;;  %2014 = vmatpush.msra.mxu0 %v1987_v37  ;;  %v6451_v22 = vld [vmem:[%s6852_s7 + $0x8] sm:$0xff]  ;;  %v2164_v48 = vld [vmem:[#allocation2 + $0x940] sm:$0xff]  ;;  %v2066_v37 = vld [vmem:[#allocation2 + $0x1f8] sm:$0xff] }
 0x38e   : > { %v1715_v41 = vmul.f32 %v1670_v63, %v8193_v33  ;;  %v1673_v62 = vmul.f32 %v6239_v46, %v8284_v47  ;;  %v6241_v9 = vpop.eup %6240  ;;  %v1846_v33 = vld [vmem:[#allocation2 + $0x640] sm:$0xff]  ;;  %vm1678_vm1 = vweird.f32 %v6239_v46  ;;  %v1699_v45 = vor.u32 1.1754944e-38, %v1698_v0  ;;  %v2161_v5 = vld [vmem:[#allocation2 + $0x928] sm:$0xff]  ;;  %2067 = vmatpush.msra.mxu1 %v2066_v37  ;;  %v2293_v37 = vld [vmem:[#allocation2 + $0xa38] sm:$0xff] }
 0x38f   : > { %v1688_v50 = vmul.f32 %v6241_v9, %v8306_v52  ;;  %1927 = vmatpush.msra.mxu3 %v1908_v57  ;;  %1871 = vmatpush.msra.mxu2 %v1846_v33  ;;  %vm1679_vm13 = vmor %vm1677_vm7, %vm1678_vm1  ;;  %vm1693_vm0 = vweird.f32 %v6241_v9  ;;  %v2159_v57 = vld [vmem:[#allocation2 + $0x918] sm:$0xff]  ;;  %v6454_v0 = vld [vmem:[%s6852_s7 + $0x20] sm:$0xff] }
 0x390   : > { %1827 = vmatmul.f32.gmra.mxu1 %v1715_v41  ;;  %v1674_v4 = vsub.f32 1.0, %v1673_v62  ;;  %vm1694_vm10 = vmor %vm1692_vm4, %vm1693_vm0  ;;  %2015 = vmatpush.msra.mxu0 %v1986_v10  ;;  %v6452_v41 = vld [vmem:[%s6852_s7 + $0x10] sm:$0xff] }
 0x391   : > { %v1689_v30 = vsub.f32 1.0, %v1688_v50  ;;  %1928 = vmatpush.msra.mxu3 %v1907_v40  ;;  %1872 = vmatpush.msra.mxu2 %v1845_v3  ;;  %v6453_v50 = vld [vmem:[%s6852_s7 + $0x18] sm:$0xff]  ;;  %v2156_v3 = vld [vmem:[#allocation2 + $0x900] sm:$0xff] }
 0x392   : > { %v1675_v49 = vmul.f32 %v6239_v46, %v1674_v4 }
 0x393   : > { %v1690_v35 = vmul.f32 %v6241_v9, %v1689_v30  ;;  %1873 = vmatpush.msra.mxu2 %v1844_v23  ;;  %1929 = vmatpush.msra.mxu3 %v1906_v59  ;;  %v2157_v30 = vld [vmem:[#allocation2 + $0x908] sm:$0xff]  ;;  %v2152_v23 = vld [vmem:[#allocation2 + $0x8e0] sm:$0xff] }
 0x394   : > { %v1676_v31 = vadd.f32 %v6239_v46, %v1675_v49  ;;  %v2149_v59 = vld [vmem:[#allocation2 + $0x8c8] sm:$0xff] }
 0x395   : > { %v1691_v54 = vadd.f32 %v6241_v9, %v1690_v35  ;;  %1874 = vmatpush.msra.mxu2 %v1843_v21  ;;  %1930 = vmatpush.msra.mxu3 %v1905_v11  ;;  %v2154_v35 = vld [vmem:[#allocation2 + $0x8f0] sm:$0xff] }
 0x396   : > { %v1680_v51 = vsel %vm1679_vm13, %v6239_v46, %v1676_v31  ;;  %v2163_v46 = vld [vmem:[#allocation2 + $0x938] sm:$0xff] }
 0x397   : > { %v1685_v27 = vsel %vm1682_vm15, %v1684_v60, %v1680_v51  ;;  %v1695_v15 = vsel %vm1694_vm10, %v6241_v9, %v1691_v54  ;;  %1931 = vmatpush.msra.mxu3 %v1904_v61  ;;  %1875 = vmatpush.msra.mxu2 %v1842_v34  ;;  %v2160_v9 = vld [vmem:[#allocation2 + $0x920] sm:$0xff]  ;;  %v2155_v60 = vld [vmem:[#allocation2 + $0x8f8] sm:$0xff]  ;;  %v6456_v34 = vld [vmem:[%s6852_s7 + $0x30] sm:$0xff] }
 0x398   : > { %v1716_v28 = vmul.f32 %v1685_v27, %v8237_v25  ;;  %v1700_v47 = vsel %vm1697_vm3, %v1699_v45, %v1695_v15  ;;  %v1903_v25 = vld [vmem:[#allocation2 + $0x6b8] sm:$0xff]  ;;  %v2150_v15 = vld [vmem:[#allocation2 + $0x8d0] sm:$0xff] }
 0x399   : > { %v1717_v1 = vmul.f32 %v1700_v47, %v8246_v43  ;;  %1932 = vmatpush.msra.mxu3 %v1903_v25  ;;  %v1985_v43 = vld [vmem:[#allocation2 + $0x7c0] sm:$0xff]  ;;  %v6455_v47 = vld [vmem:[%s6852_s7 + $0x28] sm:$0xff]  ;;  %v2065_v25 = vld [vmem:[#allocation2 + $0x1f0] sm:$0xff] }
 0x39a   : > { %1789 = vmatmul.f32.gmra.mxu0 %v1716_v28  ;;  %v2151_v28 = vld [vmem:[#allocation2 + $0x8d8] sm:$0xff]  ;;  %2068 = vmatpush.msra.mxu1 %v2065_v25 }
 0x39b   : > { %1830 = vmatmul.f32.gmra.mxu1 %v1717_v1  ;;  %1933 = vmatpush.msra.mxu3 %v1902_v20  ;;  %v2289_v25 = vld [vmem:[#allocation2 + $0xa18] sm:$0xff] }
 0x39c   : > { %2016 = vmatpush.msra.mxu0 %v1985_v43  ;;  %v2064_v43 = vld [vmem:[#allocation2 + $0x1e8] sm:$0xff] }
 0x39d   : > { %1934 = vmatpush.msra.mxu3 %v1901_v18  ;;  %2069 = vmatpush.msra.mxu1 %v2064_v43 }
 0x39e   : > { %2017 = vmatpush.msra.mxu0 %v1984_v29  ;;  %v2063_v29 = vld [vmem:[#allocation2 + $0x1e0] sm:$0xff] }
 0x39f   : > { %2167 = vmatpush.msrb.mxu3 %v2164_v48  ;;  %2070 = vmatpush.msra.mxu1 %v2063_v29  ;;  %v2057_v48 = vld [vmem:[#allocation2 + $0x1b0] sm:$0xff]  ;;  %v2231_v29 = vld [vmem:[#allocation2 + $0x2f8] sm:$0xff] }
 0x3a0   : > { %2232 = vmatpush.msrb.mxu0 %v2231_v29 }
 0x3a1   : > { %2168 = vmatpush.msrb.mxu3 %v2163_v46  ;;  %v1981_v46 = vld [vmem:[#allocation2 + $0xe8] sm:$0xff] }
 0x3a3   : > { %2169 = vmatpush.msrb.mxu3 %v2162_v19  ;;  %v2055_v19 = vld [vmem:[#allocation2 + $0x1a0] sm:$0xff] }
 0x3a5   : > { %2170 = vmatpush.msrb.mxu3 %v2161_v5  ;;  %v2054_v5 = vld [vmem:[#allocation2 + $0x198] sm:$0xff] }
 0x3a7   : > { %2171 = vmatpush.msrb.mxu3 %v2160_v9  ;;  %v1976_v9 = vld [vmem:[#allocation2 + $0xc0] sm:$0xff] }
 0x3a9   : > { %2172 = vmatpush.msrb.mxu3 %v2159_v57  ;;  %v2053_v57 = vld [vmem:[#allocation2 + $0x190] sm:$0xff] }
 0x3ab   : > { %2173 = vmatpush.msrb.mxu3 %v2158_v39  ;;  %v1972_v39 = vld [vmem:[#allocation2 + $0xa0] sm:$0xff] }
 0x3ad   : > { %2174 = vmatpush.msrb.mxu3 %v2157_v30  ;;  %v1970_v30 = vld [vmem:[#allocation2 + $0x90] sm:$0xff] }
 0x3af   : > { %2175 = vmatpush.msrb.mxu3 %v2156_v3  ;;  %v1969_v3 = vld [vmem:[#allocation2 + $0x88] sm:$0xff] }
 0x3b1   : > { %2176 = vmatpush.msrb.mxu3 %v2155_v60  ;;  %v8395_v60 = vld [vmem:[#allocation2 + $0x728] ss:$0 sm:$0xff] }
 0x3b3   : > { %2177 = vmatpush.msrb.mxu3 %v2154_v35 }
 0x3b5   : > { %2178 = vmatpush.msrb.mxu3 %v2153_v8  ;;  %v1968_v8 = vld [vmem:[#allocation2 + $0x80] sm:$0xff] }
 0x3b7   : > { %2179 = vmatpush.msrb.mxu3 %v2152_v23  ;;  %v2295_v23 = vld [vmem:[#allocation2 + $0xa48] sm:$0xff] }
 0x3b9   : > { %v1769_v58 = vpop.f32.mrf.mxu0  ;;  %2180 = vmatpush.msrb.mxu3 %v2151_v28 }
 0x3ba   : > { %v1770_v13 = vadd.f32 %v8328_v12, %v1769_v58  ;;  %v2062_v58 = vld [vmem:[#allocation2 + $0x1d8] sm:$0xff] }
 0x3bb   : > { %2181 = vmatpush.msrb.mxu3 %v2150_v15  ;;  %2071 = vmatpush.msra.mxu1 %v2062_v58 }
 0x3bd   : > { %2182 = vmatpush.msrb.mxu3 %v2149_v59 }
 0x3c2   : > { %v1810_v52 = vpop.f32.mrf.mxu1 }
 0x3c3   : > { %v1811_v55 = vadd.f32 %v1810_v52, %v1770_v13 }
 0x3c5   : > { %v8332_v14 = vadd.f32 %v6450_v16, %v1811_v55  ;;  %v6457_v16 = vld [vmem:[%s6852_s7 + $0x38] sm:$0xff] }
 0x3c7   : > { %1876 = vmatmul.f32.vlgmr.msra.gmra.mxu2 %v8332_v14  ;;  %1935 = vmatmul.f32.vlgmr.msra.gmra.mxu3 %v8332_v14  ;;  %v1772_v53 = vpop.f32.mrf.mxu0 }
 0x3c8   : > { %2018 = vmatmul.f32.vlgmr.msra.gmra.mxu0 %v8332_v14  ;;  %v1773_v17 = vadd.f32 %v8328_v12, %v1772_v53 }
 0x3df   : > { %v1813_v56 = vpop.f32.mrf.mxu1 }
 0x3e0   : > { %v1814_v36 = vadd.f32 %v1813_v56, %v1773_v17  ;;  %v1775_v6 = vpop.f32.mrf.mxu0  ;;  %v2061_v17 = vld [vmem:[#allocation2 + $0x1d0] sm:$0xff]  ;;  %v2060_v56 = vld [vmem:[#allocation2 + $0x1c8] sm:$0xff] }
 0x3e1   : > { %v1776_v7 = vadd.f32 %v8328_v12, %v1775_v6  ;;  %2072 = vmatpush.msra.mxu1 %v2061_v17  ;;  %v1982_v6 = vld [vmem:[#allocation2 + $0xf0] sm:$0xff] }
 0x3e2   : > { %v8339_v32 = vadd.f32 %v6451_v22, %v1814_v36  ;;  %v2059_v36 = vld [vmem:[#allocation2 + $0x1c0] sm:$0xff]  ;;  %v1983_v22 = vld [vmem:[#allocation2 + $0xf8] sm:$0xff] }
 0x3e3   : > { %2073 = vmatpush.msra.mxu1 %v2060_v56  ;;  %2108 = vmatpush.msrb.mxu2 %v1983_v22  ;;  %v2230_v56 = vld [vmem:[#allocation2 + $0x2f0] sm:$0xff] }
 0x3e4   : > { %1879 = vmatmul.f32.gmra.mxu2 %v8339_v32  ;;  %1938 = vmatmul.f32.gmra.mxu3 %v8339_v32 }
 0x3e5   : > { %2021 = vmatmul.f32.gmra.mxu0 %v8339_v32  ;;  %2074 = vmatpush.msra.mxu1 %v2059_v36  ;;  %v2287_v36 = vld [vmem:[#allocation2 + $0xa08] sm:$0xff] }
 0x3e6   : > { %2109 = vmatpush.msrb.mxu2 %v1982_v6  ;;  %2233 = vmatpush.msrb.mxu0 %v2230_v56 }
 0x3e7   : > { %v1816_v63 = vpop.f32.mrf.mxu1 }
 0x3e8   : > { %v1817_v2 = vadd.f32 %v1816_v63, %v1776_v7  ;;  %v2056_v7 = vld [vmem:[#allocation2 + $0x1a8] sm:$0xff]  ;;  %v1980_v63 = vld [vmem:[#allocation2 + $0xe0] sm:$0xff]  ;;  %2110 = vmatpush.msrb.mxu2 %v1981_v46 }
 0x3e9   : > { %v2229_v46 = vld [vmem:[#allocation2 + $0x2e8] sm:$0xff] }
 0x3ea   : > { %v8346_v62 = vadd.f32 %v6452_v41, %v1817_v2  ;;  %2111 = vmatpush.msrb.mxu2 %v1980_v63  ;;  %v1979_v2 = vld [vmem:[#allocation2 + $0xd8] sm:$0xff]  ;;  %v1978_v41 = vld [vmem:[#allocation2 + $0xd0] sm:$0xff]  ;;  %v2228_v63 = vld [vmem:[#allocation2 + $0x2e0] sm:$0xff]  ;;  %2234 = vmatpush.msrb.mxu0 %v2229_v46 }
 0x3ec   : > { %v1778_v44 = vpop.f32.mrf.mxu0  ;;  %1882 = vmatmul.f32.gmra.mxu2 %v8346_v62  ;;  %1941 = vmatmul.f32.gmra.mxu3 %v8346_v62 }
 0x3ed   : > { %2024 = vmatmul.f32.gmra.mxu0 %v8346_v62  ;;  %v1779_v4 = vadd.f32 %v8328_v12, %v1778_v44  ;;  %2112 = vmatpush.msrb.mxu2 %v1979_v2  ;;  %v1977_v44 = vld [vmem:[#allocation2 + $0xc8] sm:$0xff]  ;;  %v2286_v2 = vld [vmem:[#allocation2 + $0xa00] sm:$0xff] }
 0x3ee   : > { %2235 = vmatpush.msrb.mxu0 %v2228_v63 }
 0x3ef   : > { %2113 = vmatpush.msrb.mxu2 %v1978_v41 }
 0x3f0   : > { %v1819_v24 = vpop.f32.mrf.mxu1 }
 0x3f1   : > { %v1820_v26 = vadd.f32 %v1819_v24, %v1779_v4  ;;  %2114 = vmatpush.msrb.mxu2 %v1977_v44  ;;  %v1975_v4 = vld [vmem:[#allocation2 + $0xb8] sm:$0xff]  ;;  %v1974_v24 = vld [vmem:[#allocation2 + $0xb0] sm:$0xff] }
 0x3f3   : > { %v8353_v33 = vadd.f32 %v6453_v50, %v1820_v26  ;;  %2115 = vmatpush.msrb.mxu2 %v1976_v9  ;;  %v1973_v26 = vld [vmem:[#allocation2 + $0xa8] sm:$0xff] }
 0x3f4   : > { %v1781_v49 = vpop.f32.mrf.mxu0  ;;  %v2052_v50 = vld [vmem:[#allocation2 + $0x188] sm:$0xff] }
 0x3f5   : > { %10808 = vst [vmem:[#allocation13_spill] sm:$0xff] %v8353_v33  ;;  %1885 = vmatmul.f32.gmra.mxu2 %v8353_v33  ;;  %1944 = vmatmul.f32.gmra.mxu3 %v8353_v33  ;;  %v1782_v38 = vadd.f32 %v8328_v12, %v1781_v49  ;;  %v2051_v49 = vld [vmem:[#allocation2 + $0x180] sm:$0xff] }
 0x3f6   : > { %2027 = vmatmul.f32.gmra.mxu0 %v8353_v33  ;;  %2116 = vmatpush.msrb.mxu2 %v1975_v4 }
 0x3f8   : > { %v1822_v40 = vpop.f32.mrf.mxu1  ;;  %2117 = vmatpush.msrb.mxu2 %v1974_v24  ;;  %v2226_v24 = vld [vmem:[#allocation2 + $0x2d0] sm:$0xff] }
 0x3f9   : > { %v1823_v31 = vadd.f32 %v1822_v40, %v1782_v38  ;;  %v2296_v38 = vld [vmem:[#allocation2 + $0xa50] sm:$0xff]  ;;  %v1971_v40 = vld [vmem:[#allocation2 + $0x98] sm:$0xff] }
 0x3fa   : > { %2118 = vmatpush.msrb.mxu2 %v1973_v26 }
 0x3fb   : > { %v8360_v42 = vadd.f32 %v6454_v0, %v1823_v31  ;;  %v8391_v31 = vld [vmem:[#allocation2 + $0x838] ss:$0 sm:$0xff]  ;;  %v8393_v0 = vld [vmem:[#allocation2 + $0x6a0] ss:$0 sm:$0xff] }
 0x3fc   : > { %2119 = vmatpush.msrb.mxu2 %v1972_v39 }
 0x3fd   : > { %10809 = vst [vmem:[#allocation8_spill] sm:$0xff] %v8360_v42  ;;  %1888 = vmatmul.f32.gmra.mxu2 %v8360_v42  ;;  %1947 = vmatmul.f32.gmra.mxu3 %v8360_v42 }
 0x3fe   : > { %2030 = vmatmul.f32.gmra.mxu0 %v8360_v42  ;;  %2120 = vmatpush.msrb.mxu2 %v1971_v40 }
 0x400   : > { %2121 = vmatpush.msrb.mxu2 %v1970_v30  ;;  %v2225_v30 = vld [vmem:[#allocation2 + $0x2c8] sm:$0xff] }
 0x401   : > { %v1784_v51 = vpop.f32.mrf.mxu0 }
 0x402   : > { %v1785_v27 = vadd.f32 %v8328_v12, %v1784_v51  ;;  %2122 = vmatpush.msrb.mxu2 %v1969_v3  ;;  %v2224_v3 = vld [vmem:[#allocation2 + $0x2c0] sm:$0xff] }
 0x403   : > { %v1825_v54 = vpop.f32.mrf.mxu1 }
 0x404   : > { %v1826_v45 = vadd.f32 %v1825_v54, %v1785_v27  ;;  %v2294_v54 = vld [vmem:[#allocation2 + $0xa40] sm:$0xff]  ;;  %2123 = vmatpush.msrb.mxu2 %v1968_v8 }
 0x406   : > { %v8367_v1 = vadd.f32 %v6455_v47, %v1826_v45 }
 0x408   : > { %10810 = vst [vmem:[#allocation9_spill] sm:$0xff] %v8367_v1  ;;  %1891 = vmatmul.f32.gmra.mxu2 %v8367_v1  ;;  %1950 = vmatmul.f32.gmra.mxu3 %v8367_v1 }
 0x409   : > { %v1787_v11 = vpop.f32.mrf.mxu0  ;;  %2033 = vmatmul.f32.gmra.mxu0 %v8367_v1 }
 0x40a   : > { %v1788_v21 = vadd.f32 %v8328_v12, %v1787_v11  ;;  %v2292_v11 = vld [vmem:[#allocation2 + $0xa30] sm:$0xff] }
 0x40d   : > { %v1828_v10 = vpop.f32.mrf.mxu1 }
 0x40e   : > { %v1829_v61 = vadd.f32 %v1828_v10, %v1788_v21  ;;  %v2291_v21 = vld [vmem:[#allocation2 + $0xa28] sm:$0xff]  ;;  %v2290_v10 = vld [vmem:[#allocation2 + $0xa20] sm:$0xff] }
 0x410   : > { %v8374_v20 = vadd.f32 %v6456_v34, %v1829_v61 }
 0x412   : > { %10811 = vst [vmem:[#allocation10_spill] sm:$0xff] %v8374_v20  ;;  %1894 = vmatmul.f32.gmra.mxu2 %v8374_v20  ;;  %1953 = vmatmul.f32.gmra.mxu3 %v8374_v20 }
 0x413   : > { %2036 = vmatmul.f32.gmra.mxu0 %v8374_v20 }
 0x417   : > { %v1790_v18 = vpop.f32.mrf.mxu0 }
 0x418   : > { %v1791_v13 = vadd.f32 %v8328_v12, %v1790_v18  ;;  %v1831_v52 = vpop.f32.mrf.mxu1  ;;  %v2058_v12 = vld [vmem:[#allocation2 + $0x1b8] sm:$0xff]  ;;  %v2288_v18 = vld [vmem:[#allocation2 + $0xa10] sm:$0xff] }
 0x419   : > { %2075 = vmatpush.msra.mxu1 %v2058_v12 }
 0x41a   : > { %v1832_v55 = vadd.f32 %v1831_v52, %v1791_v13 }
 0x41b   : > { %2076 = vmatpush.msra.mxu1 %v2057_v48 }
 0x41c   : > { %v8381_v53 = vadd.f32 %v6457_v16, %v1832_v55 }
 0x41d   : > { %2077 = vmatpush.msra.mxu1 %v2056_v7 }
 0x41e   : > { %10812 = vst [vmem:[#allocation11_spill] sm:$0xff] %v8381_v53  ;;  %1897 = vmatmul.f32.gmra.mxu2 %v8381_v53  ;;  %1956 = vmatmul.f32.gmra.mxu3 %v8381_v53 }
 0x41f   : > { %2039 = vmatmul.f32.gmra.mxu0 %v8381_v53  ;;  %2078 = vmatpush.msra.mxu1 %v2055_v19 }
 0x421   : > { %2079 = vmatpush.msra.mxu1 %v2054_v5  ;;  %v2227_v5 = vld [vmem:[#allocation2 + $0x2d8] sm:$0xff] }
 0x422   : > { %2236 = vmatpush.msrb.mxu0 %v2227_v5 }
 0x423   : > { %2080 = vmatpush.msra.mxu1 %v2053_v57  ;;  %v2285_v57 = vld [vmem:[#allocation2 + $0x9f8] sm:$0xff] }
 0x424   : > { %2237 = vmatpush.msrb.mxu0 %v2226_v24 }
 0x425   : > { %2081 = vmatpush.msra.mxu1 %v2052_v50 }
 0x426   : > { %2183 = vmatmul.f32.vlgmr.msrb.gmra.mxu3 %v8332_v14  ;;  %2238 = vmatpush.msrb.mxu0 %v2225_v30  ;;  %v2564_v30 = vld [vmem:[#allocation2 + $0x7a0] sm:$0xff] }
 0x427   : > { %2082 = vmatpush.msra.mxu1 %v2051_v49 }
 0x428   : > { %2239 = vmatpush.msrb.mxu0 %v2224_v3 }
 0x429   : > { %2299 = vmatpush.msrb.mxu1 %v2296_v38 }
 0x42b   : > { %2300 = vmatpush.msrb.mxu1 %v2295_v23 }
 0x42d   : > { %2301 = vmatpush.msrb.mxu1 %v2294_v54 }
 0x42e   : > { %2186 = vmatmul.f32.gmra.mxu3 %v8339_v32 }
 0x42f   : > { %2302 = vmatpush.msrb.mxu1 %v2293_v37  ;;  %v2283_v37 = vld [vmem:[#allocation2 + $0x9e8] sm:$0xff] }
 0x431   : > { %2303 = vmatpush.msrb.mxu1 %v2292_v11  ;;  %v2221_v11 = vld [vmem:[#allocation2 + $0x2a8] sm:$0xff] }
 0x433   : > { %2304 = vmatpush.msrb.mxu1 %v2291_v21  ;;  %v2220_v21 = vld [vmem:[#allocation2 + $0x2a0] sm:$0xff] }
 0x435   : > { %2305 = vmatpush.msrb.mxu1 %v2290_v10  ;;  %v2282_v10 = vld [vmem:[#allocation2 + $0x9e0] sm:$0xff] }
 0x436   : > { %2189 = vmatmul.f32.gmra.mxu3 %v8346_v62 }
 0x437   : > { %2306 = vmatpush.msrb.mxu1 %v2289_v25  ;;  %v2219_v25 = vld [vmem:[#allocation2 + $0x298] sm:$0xff] }
 0x439   : > { %2307 = vmatpush.msrb.mxu1 %v2288_v18  ;;  %v2218_v18 = vld [vmem:[#allocation2 + $0x290] sm:$0xff] }
 0x43b   : > { %2308 = vmatpush.msrb.mxu1 %v2287_v36  ;;  %v2216_v36 = vld [vmem:[#allocation2 + $0x280] sm:$0xff] }
 0x43d   : > { %2309 = vmatpush.msrb.mxu1 %v2286_v2 }
 0x43e   : > { %2192 = vmatmul.f32.gmra.mxu3 %v8353_v33 }
 0x43f   : > { %2310 = vmatpush.msrb.mxu1 %v2285_v57 }
 0x445   : > { %v2019_v35 = vpop.f32.mrf.mxu0 }
 0x446   : > { %2195 = vmatmul.f32.gmra.mxu3 %v8360_v42  ;;  %v2020_v28 = vadd.f32 %v8391_v31, %v2019_v35  ;;  %v2284_v35 = vld [vmem:[#allocation2 + $0x9f0] sm:$0xff] }
 0x447   : > { %2311 = vmatpush.msrb.mxu1 %v2284_v35  ;;  %v2563_v35 = vld [vmem:[#allocation2 + $0x798] sm:$0xff] }
 0x449   : > { %2312 = vmatpush.msrb.mxu1 %v2283_v37  ;;  %v2557_v37 = vld [vmem:[#allocation2 + $0x768] sm:$0xff] }
 0x44a   : > { %v1877_v51 = vpop.f32.mrf.mxu2  ;;  %v1936_v27 = vpop.f32.mrf.mxu3 }
 0x44b   : > { %v8399_v45 = vadd.f32 %v8393_v0, %v1877_v51  ;;  %v1937_v15 = vadd.f32 %v8395_v60, %v1936_v27  ;;  %v2223_v51 = vld [vmem:[#allocation2 + $0x2b8] sm:$0xff]  ;;  %2313 = vmatpush.msrb.mxu1 %v2282_v10  ;;  %v2556_v10 = vld [vmem:[#allocation2 + $0x760] sm:$0xff] }
 0x44c   : > { %2240 = vmatpush.msrb.mxu0 %v2223_v51 }
 0x44d   : > { %v2043_v47 = vmul.f32 %v2020_v28, %v8399_v45  ;;  %v1960_v59 = vmul.f32 %v1937_v15, %v8399_v45 }
 0x44e   : > { %2198 = vmatmul.f32.gmra.mxu3 %v8367_v1 }
 0x44f   : > { %2083 = vmatmul.f32.vlgmr.msra.gmra.mxu1 %v2043_v47  ;;  %2124 = vmatmul.f32.vlgmr.msrb.gmra.mxu2 %v1960_v59  ;;  %v2222_v59 = vld [vmem:[#allocation2 + $0x2b0] sm:$0xff] }
 0x450   : > { %2241 = vmatpush.msrb.mxu0 %v2222_v59  ;;  %v2558_v59 = vld [vmem:[#allocation2 + $0x770] sm:$0xff] }
 0x452   : > { %2242 = vmatpush.msrb.mxu0 %v2221_v11 }
 0x454   : > { %2243 = vmatpush.msrb.mxu0 %v2220_v21 }
 0x456   : > { %2201 = vmatmul.f32.gmra.mxu3 %v8374_v20  ;;  %2244 = vmatpush.msrb.mxu0 %v2219_v25  ;;  %v2555_v25 = vld [vmem:[#allocation2 + $0x758] sm:$0xff] }
 0x458   : > { %2245 = vmatpush.msrb.mxu0 %v2218_v18 }
 0x45e   : > { %2204 = vmatmul.f32.gmra.mxu3 %v8381_v53 }
 0x462   : > { %v2022_v61 = vpop.f32.mrf.mxu0 }
 0x463   : > { %v2023_v58 = vadd.f32 %v8391_v31, %v2022_v61 }
 0x467   : > { %v1880_v34 = vpop.f32.mrf.mxu2  ;;  %v1939_v43 = vpop.f32.mrf.mxu3 }
 0x468   : > { %v8409_v13 = vadd.f32 %v8393_v0, %v1880_v34  ;;  %v1940_v52 = vadd.f32 %v8395_v60, %v1939_v43 }
 0x46a   : > { %v1961_v55 = vmul.f32 %v1940_v52, %v8409_v13  ;;  %v2025_v16 = vpop.f32.mrf.mxu0  ;;  %v2044_v17 = vmul.f32 %v2023_v58, %v8409_v13 }
 0x46b   : > { %v2026_v6 = vadd.f32 %v8391_v31, %v2025_v16  ;;  %v2217_v16 = vld [vmem:[#allocation2 + $0x288] sm:$0xff] }
 0x46c   : > { %2086 = vmatmul.f32.gmra.mxu1 %v2044_v17  ;;  %2127 = vmatmul.f32.gmra.mxu2 %v1961_v55  ;;  %v2281_v55 = vld [vmem:[#allocation2 + $0x9d8] sm:$0xff] }
 0x46d   : > { %2314 = vmatpush.msrb.mxu1 %v2281_v55  ;;  %2246 = vmatpush.msrb.mxu0 %v2217_v16  ;;  %v2551_v16 = vld [vmem:[#allocation2 + $0x738] sm:$0xff] }
 0x46f   : > { %v1883_v12 = vpop.f32.mrf.mxu2  ;;  %v1942_v22 = vpop.f32.mrf.mxu3  ;;  %2247 = vmatpush.msrb.mxu0 %v2216_v36  ;;  %v2362_v36 = vld [vmem:[#allocation2 + $0x3f0] sm:$0xff] }
 0x470   : > { %v8416_v48 = vadd.f32 %v8393_v0, %v1883_v12  ;;  %v1943_v7 = vadd.f32 %v8395_v60, %v1942_v22 }
 0x472   : > { %v1962_v41 = vmul.f32 %v1943_v7, %v8416_v48  ;;  %v2045_v19 = vmul.f32 %v2026_v6, %v8416_v48 }
 0x473   : > { %v2028_v44 = vpop.f32.mrf.mxu0 }
 0x474   : > { %2089 = vmatmul.f32.gmra.mxu1 %v2045_v19  ;;  %2130 = vmatmul.f32.gmra.mxu2 %v1962_v41  ;;  %v2029_v26 = vadd.f32 %v8391_v31, %v2028_v44 }
 0x478   : > { %v1886_v9 = vpop.f32.mrf.mxu2  ;;  %v1945_v4 = vpop.f32.mrf.mxu3 }
 0x479   : > { %v8423_v50 = vadd.f32 %v8393_v0, %v1886_v9  ;;  %v1946_v49 = vadd.f32 %v8395_v60, %v1945_v4 }
 0x47b   : > { %v1963_v39 = vmul.f32 %v1946_v49, %v8423_v50  ;;  %v2046_v38 = vmul.f32 %v2029_v26, %v8423_v50  ;;  %v2031_v40 = vpop.f32.mrf.mxu0  ;;  %v8456_v49 = vld [vmem:[#allocation2 + $0x948] ss:$0 sm:$0xff] }
 0x47c   : > { %v2032_v27 = vadd.f32 %v8391_v31, %v2031_v40 }
 0x47d   : > { %2092 = vmatmul.f32.gmra.mxu1 %v2046_v38  ;;  %2133 = vmatmul.f32.gmra.mxu2 %v1963_v39 }
 0x480   : > { %v1889_v8 = vpop.f32.mrf.mxu2  ;;  %v1948_v23 = vpop.f32.mrf.mxu3 }
 0x481   : > { %v8430_v54 = vadd.f32 %v8393_v0, %v1889_v8  ;;  %v1949_v28 = vadd.f32 %v8395_v60, %v1948_v23  ;;  %v2562_v8 = vld [vmem:[#allocation2 + $0x790] sm:$0xff]  ;;  %v2561_v23 = vld [vmem:[#allocation2 + $0x788] sm:$0xff] }
 0x483   : > { %v1964_v15 = vmul.f32 %v1949_v28, %v8430_v54  ;;  %v2047_v47 = vmul.f32 %v2032_v27, %v8430_v54  ;;  %v2560_v28 = vld [vmem:[#allocation2 + $0x780] sm:$0xff] }
 0x485   : > { %2095 = vmatmul.f32.gmra.mxu1 %v2047_v47  ;;  %2136 = vmatmul.f32.gmra.mxu2 %v1964_v15  ;;  %v2559_v47 = vld [vmem:[#allocation2 + $0x778] sm:$0xff] }
 0x486   : > { %v2034_v61 = vpop.f32.mrf.mxu0 }
 0x487   : > { %v2035_v29 = vadd.f32 %v8391_v31, %v2034_v61 }
 0x48b   : > { %v1892_v34 = vpop.f32.mrf.mxu2  ;;  %v1951_v43 = vpop.f32.mrf.mxu3 }
 0x48c   : > { %v8437_v58 = vadd.f32 %v8393_v0, %v1892_v34  ;;  %v1952_v52 = vadd.f32 %v8395_v60, %v1951_v43  ;;  %v2554_v34 = vld [vmem:[#allocation2 + $0x750] sm:$0xff]  ;;  %v2553_v43 = vld [vmem:[#allocation2 + $0x748] sm:$0xff] }
 0x48e   : > { %v1965_v17 = vmul.f32 %v1952_v52, %v8437_v58  ;;  %v2048_v56 = vmul.f32 %v2035_v29, %v8437_v58  ;;  %v2552_v52 = vld [vmem:[#allocation2 + $0x740] sm:$0xff] }
 0x490   : > { %2098 = vmatmul.f32.gmra.mxu1 %v2048_v56  ;;  %2139 = vmatmul.f32.gmra.mxu2 %v1965_v17  ;;  %v2037_v12 = vpop.f32.mrf.mxu0  ;;  %v2550_v17 = vld [vmem:[#allocation2 + $0x730] sm:$0xff]  ;;  %v2363_v56 = vld [vmem:[#allocation2 + $0x3f8] sm:$0xff] }
 0x491   : > { %v2038_v7 = vadd.f32 %v8391_v31, %v2037_v12  ;;  %2364 = vmatpush.msra.mxu2 %v2363_v56 }
 0x493   : > { %2365 = vmatpush.msra.mxu2 %v2362_v36  ;;  %v8506_v36 = vld [vmem:[#allocation2 + $0xa58] ss:$0 sm:$0xff] }
 0x495   : > { %v1895_v22 = vpop.f32.mrf.mxu2  ;;  %v1954_v6 = vpop.f32.mrf.mxu3 }
 0x496   : > { %v8444_v46 = vadd.f32 %v8393_v0, %v1895_v22  ;;  %v1955_v63 = vadd.f32 %v8395_v60, %v1954_v6 }
 0x498   : > { %v1966_v2 = vmul.f32 %v1955_v63, %v8444_v46  ;;  %v2049_v41 = vmul.f32 %v2038_v7, %v8444_v46  ;;  %v2361_v7 = vld [vmem:[#allocation2 + $0x3e8] sm:$0xff]  ;;  %v2360_v63 = vld [vmem:[#allocation2 + $0x3e0] sm:$0xff] }
 0x499   : > { %2366 = vmatpush.msra.mxu2 %v2361_v7  ;;  %v2689_v7 = vld [vmem:[#allocation2 + $0x8b8] sm:$0xff] }
 0x49a   : > { %2101 = vmatmul.f32.gmra.mxu1 %v2049_v41  ;;  %2142 = vmatmul.f32.gmra.mxu2 %v1966_v2 }
 0x49b   : > { %2367 = vmatpush.msra.mxu2 %v2360_v63 }
 0x49c   : > { %v2040_v19 = vpop.f32.mrf.mxu0 }
 0x49d   : > { %v2041_v9 = vadd.f32 %v8391_v31, %v2040_v19  ;;  %v2565_v31 = vld [vmem:[#allocation2 + $0x7a8] sm:$0xff] }
 0x49e   : > { %2568 = vmatpush.msra.mxu0 %v2565_v31  ;;  %v2821_v31 = vld [vmem:[#allocation2 + $0x9c8] sm:$0xff] }
 0x4a0   : > { %2569 = vmatpush.msra.mxu0 %v2564_v30  ;;  %v2354_v30 = vld [vmem:[#allocation2 + $0x3b0] sm:$0xff] }
 0x4a1   : > { %v1898_v5 = vpop.f32.mrf.mxu2  ;;  %v1957_v44 = vpop.f32.mrf.mxu3 }
 0x4a2   : > { %v8451_v4 = vadd.f32 %v8393_v0, %v1898_v5  ;;  %v1958_v24 = vadd.f32 %v8395_v60, %v1957_v44  ;;  %2570 = vmatpush.msra.mxu0 %v2563_v35  ;;  %v2359_v5 = vld [vmem:[#allocation2 + $0x3d8] sm:$0xff]  ;;  %v2358_v44 = vld [vmem:[#allocation2 + $0x3d0] sm:$0xff] }
 0x4a3   : > { %2368 = vmatpush.msra.mxu2 %v2359_v5  ;;  %v2818_v35 = vld [vmem:[#allocation2 + $0x9b0] sm:$0xff]  ;;  %v2687_v5 = vld [vmem:[#allocation2 + $0x8a8] sm:$0xff] }
 0x4a4   : > { %v1967_v57 = vmul.f32 %v1958_v24, %v8451_v4  ;;  %v2050_v26 = vmul.f32 %v2041_v9, %v8451_v4  ;;  %2571 = vmatpush.msra.mxu0 %v2562_v8  ;;  %v2817_v8 = vld [vmem:[#allocation2 + $0x9a8] sm:$0xff] }
 0x4a5   : > { %2369 = vmatpush.msra.mxu2 %v2358_v44  ;;  %v2686_v44 = vld [vmem:[#allocation2 + $0x8a0] sm:$0xff] }
 0x4a6   : > { %2104 = vmatmul.f32.gmra.mxu1 %v2050_v26  ;;  %2145 = vmatmul.f32.gmra.mxu2 %v1967_v57 }
 0x4a7   : > { %2572 = vmatpush.msra.mxu0 %v2561_v23  ;;  %v2353_v23 = vld [vmem:[#allocation2 + $0x3a8] sm:$0xff] }
 0x4a9   : > { %v2184_v39 = vpop.f32.mrf.mxu3  ;;  %2573 = vmatpush.msra.mxu0 %v2560_v28  ;;  %v2815_v28 = vld [vmem:[#allocation2 + $0x998] sm:$0xff] }
 0x4aa   : > { %v2185_v38 = vadd.f32 %v8456_v49, %v2184_v39  ;;  %v2357_v39 = vld [vmem:[#allocation2 + $0x3c8] sm:$0xff] }
 0x4ab   : > { %2574 = vmatpush.msra.mxu0 %v2559_v47  ;;  %2370 = vmatpush.msra.mxu2 %v2357_v39 }
 0x4ac   : > { %v2208_v40 = vmul.f32 %v2185_v38, %v8399_v45  ;;  %v2356_v38 = vld [vmem:[#allocation2 + $0x3c0] sm:$0xff] }
 0x4ad   : > { %2575 = vmatpush.msra.mxu0 %v2558_v59  ;;  %2371 = vmatpush.msra.mxu2 %v2356_v38  ;;  %v2813_v59 = vld [vmem:[#allocation2 + $0x988] sm:$0xff] }
 0x4ae   : > { %2248 = vmatmul.f32.vlgmr.msrb.gmra.mxu0 %v2208_v40  ;;  %2315 = vmatmul.f32.vlgmr.msrb.gmra.mxu1 %v8332_v14  ;;  %v2683_v38 = vld [vmem:[#allocation2 + $0x888] sm:$0xff] }
 0x4af   : > { %2576 = vmatpush.msra.mxu0 %v2557_v37  ;;  %v2351_v37 = vld [vmem:[#allocation2 + $0x398] sm:$0xff] }
 0x4b1   : > { %v2187_v0 = vpop.f32.mrf.mxu3  ;;  %2577 = vmatpush.msra.mxu0 %v2556_v10  ;;  %v2350_v10 = vld [vmem:[#allocation2 + $0x390] sm:$0xff] }
 0x4b2   : > { %v2188_v60 = vadd.f32 %v8456_v49, %v2187_v0  ;;  %v2355_v0 = vld [vmem:[#allocation2 + $0x3b8] sm:$0xff] }
 0x4b3   : > { %2578 = vmatpush.msra.mxu0 %v2555_v25  ;;  %2372 = vmatpush.msra.mxu2 %v2355_v0 }
 0x4b4   : > { %v2209_v3 = vmul.f32 %v2188_v60, %v8409_v13  ;;  %v2820_v60 = vld [vmem:[#allocation2 + $0x9c0] sm:$0xff] }
 0x4b5   : > { %2579 = vmatpush.msra.mxu0 %v2554_v34  ;;  %2373 = vmatpush.msra.mxu2 %v2354_v30  ;;  %v2809_v34 = vld [vmem:[#allocation2 + $0x968] sm:$0xff]  ;;  %v2680_v30 = vld [vmem:[#allocation2 + $0x870] sm:$0xff] }
 0x4b6   : > { %2251 = vmatmul.f32.gmra.mxu0 %v2209_v3  ;;  %2318 = vmatmul.f32.gmra.mxu1 %v8339_v32 }
 0x4b7   : > { %2580 = vmatpush.msra.mxu0 %v2553_v43  ;;  %2374 = vmatpush.msra.mxu2 %v2353_v23  ;;  %v2349_v43 = vld [vmem:[#allocation2 + $0x388] sm:$0xff] }
 0x4b9   : > { %v2190_v51 = vpop.f32.mrf.mxu3  ;;  %2581 = vmatpush.msra.mxu0 %v2552_v52  ;;  %v2348_v52 = vld [vmem:[#allocation2 + $0x380] sm:$0xff] }
 0x4ba   : > { %v2191_v27 = vadd.f32 %v8456_v49, %v2190_v51  ;;  %v2816_v51 = vld [vmem:[#allocation2 + $0x9a0] sm:$0xff] }
 0x4bb   : > { %2582 = vmatpush.msra.mxu0 %v2551_v16 }
 0x4bc   : > { %v2210_v15 = vmul.f32 %v2191_v27, %v8416_v48  ;;  %v2352_v27 = vld [vmem:[#allocation2 + $0x3a0] sm:$0xff] }
 0x4bd   : > { %2583 = vmatpush.msra.mxu0 %v2550_v17  ;;  %2375 = vmatpush.msra.mxu2 %v2352_v27  ;;  %v2676_v27 = vld [vmem:[#allocation2 + $0x850] sm:$0xff] }
 0x4be   : > { %2254 = vmatmul.f32.gmra.mxu0 %v2210_v15  ;;  %2321 = vmatmul.f32.gmra.mxu1 %v8346_v62  ;;  %v2814_v15 = vld [vmem:[#allocation2 + $0x990] sm:$0xff] }
 0x4bf   : > { %2824 = vmatpush.msrb.mxu0 %v2821_v31  ;;  %2376 = vmatpush.msra.mxu2 %v2351_v37  ;;  %v2681_v31 = vld [vmem:[#allocation2 + $0x878] sm:$0xff] }
 0x4c1   : > { %v2193_v11 = vpop.f32.mrf.mxu3  ;;  %2825 = vmatpush.msrb.mxu0 %v2820_v60  ;;  %2377 = vmatpush.msra.mxu2 %v2350_v10 }
 0x4c2   : > { %v2194_v21 = vadd.f32 %v8456_v49, %v2193_v11  ;;  %v2812_v11 = vld [vmem:[#allocation2 + $0x980] sm:$0xff] }
 0x4c3   : > { %2378 = vmatpush.msra.mxu2 %v2349_v43 }
 0x4c4   : > { %v2211_v61 = vmul.f32 %v2194_v21, %v8423_v50  ;;  %v2811_v21 = vld [vmem:[#allocation2 + $0x978] sm:$0xff] }
 0x4c5   : > { %2379 = vmatpush.msra.mxu2 %v2348_v52  ;;  %v2951_v52 = vld [vmem:[#allocation2 + $0xac8] sm:$0xff] }
 0x4c6   : > { %2257 = vmatmul.f32.gmra.mxu0 %v2211_v61  ;;  %2324 = vmatmul.f32.gmra.mxu1 %v8353_v33  ;;  %v2810_v61 = vld [vmem:[#allocation2 + $0x970] sm:$0xff] }
 0x4c7   : > { %2692 = vmatpush.msrb.mxu2 %v2689_v7  ;;  %v2945_v7 = vld [vmem:[#allocation2 + $0xa98] sm:$0xff] }
 0x4c9   : > { %v2196_v18 = vpop.f32.mrf.mxu3 }
 0x4ca   : > { %v2197_v29 = vadd.f32 %v8456_v49, %v2196_v18  ;;  %v2808_v18 = vld [vmem:[#allocation2 + $0x960] sm:$0xff] }
 0x4cc   : > { %v2212_v55 = vmul.f32 %v2197_v29, %v8430_v54  ;;  %v8479_v9 = vpop.f32.mrf.mxu1  ;;  %v2807_v29 = vld [vmem:[#allocation2 + $0x958] sm:$0xff] }
 0x4ce   : > { %2260 = vmatmul.f32.gmra.mxu0 %v2212_v55  ;;  %2327 = vmatmul.f32.gmra.mxu1 %v8360_v42  ;;  %v2806_v55 = vld [vmem:[#allocation2 + $0x950] sm:$0xff] }
 0x4d1   : > { %v2199_v12 = vpop.f32.mrf.mxu3 }
 0x4d2   : > { %v2200_v22 = vadd.f32 %v8456_v49, %v2199_v12  ;;  %v8530_v43 = vpop.f32.mrf.mxu2 }
 0x4d4   : > { %v2213_v6 = vmul.f32 %v2200_v22, %v8437_v58 }
 0x4d6   : > { %2263 = vmatmul.f32.gmra.mxu0 %v2213_v6  ;;  %2330 = vmatmul.f32.gmra.mxu1 %v8367_v1 }
 0x4d9   : > { %v2202_v2 = vpop.f32.mrf.mxu3 }
 0x4da   : > { %v2203_v41 = vadd.f32 %v8456_v49, %v2202_v2 }
 0x4dc   : > { %v2214_v19 = vmul.f32 %v2203_v41, %v8444_v46  ;;  %v2688_v41 = vld [vmem:[#allocation2 + $0x8b0] sm:$0xff] }
 0x4dd   : > { %2693 = vmatpush.msrb.mxu2 %v2688_v41  ;;  %v2943_v41 = vld [vmem:[#allocation2 + $0xa88] sm:$0xff] }
 0x4de   : > { %2266 = vmatmul.f32.gmra.mxu0 %v2214_v19  ;;  %2333 = vmatmul.f32.gmra.mxu1 %v8374_v20 }
 0x4df   : > { %2694 = vmatpush.msrb.mxu2 %v2687_v5  ;;  %v2941_v5 = vld [vmem:[#allocation2 + $0xa78] sm:$0xff] }
 0x4e1   : > { %v2205_v24 = vpop.f32.mrf.mxu3  ;;  %2695 = vmatpush.msrb.mxu2 %v2686_v44  ;;  %v2940_v44 = vld [vmem:[#allocation2 + $0xa70] sm:$0xff] }
 0x4e2   : > { %v2206_v57 = vadd.f32 %v8456_v49, %v2205_v24  ;;  %v2819_v49 = vld [vmem:[#allocation2 + $0x9b8] sm:$0xff] }
 0x4e3   : > { %2826 = vmatpush.msrb.mxu0 %v2819_v49  ;;  %v2685_v24 = vld [vmem:[#allocation2 + $0x898] sm:$0xff] }
 0x4e4   : > { %v2215_v26 = vmul.f32 %v2206_v57, %v8451_v4  ;;  %2696 = vmatpush.msrb.mxu2 %v2685_v24  ;;  %v2939_v24 = vld [vmem:[#allocation2 + $0xa68] sm:$0xff] }
 0x4e5   : > { %2827 = vmatpush.msrb.mxu0 %v2818_v35  ;;  %v2679_v35 = vld [vmem:[#allocation2 + $0x868] sm:$0xff] }
 0x4e6   : > { %2269 = vmatmul.f32.gmra.mxu0 %v2215_v26  ;;  %2336 = vmatmul.f32.gmra.mxu1 %v8381_v53  ;;  %v2684_v26 = vld [vmem:[#allocation2 + $0x890] sm:$0xff] }
 0x4e7   : > { %2828 = vmatpush.msrb.mxu0 %v2817_v8  ;;  %2697 = vmatpush.msrb.mxu2 %v2684_v26  ;;  %v2677_v8 = vld [vmem:[#allocation2 + $0x858] sm:$0xff] }
 0x4e8   : > { %v8547_v26 = vld [vmem:[#allocation2 + $0x78] sm:$0xff] }
 0x4e9   : > { %v8484_v40 = vpop.f32.mrf.mxu1  ;;  %2829 = vmatpush.msrb.mxu0 %v2816_v51  ;;  %2698 = vmatpush.msrb.mxu2 %v2683_v38  ;;  %v8553_v38 = vld [vmem:[#allocation2 + $0x68] sm:$0xff] }
 0x4eb   : > { %2830 = vmatpush.msrb.mxu0 %v2815_v28 }
 0x4ed   : > { %2831 = vmatpush.msrb.mxu0 %v2814_v15  ;;  %v2675_v15 = vld [vmem:[#allocation2 + $0x848] sm:$0xff] }
 0x4ee   : > { %2584 = vmatmul.f32.vlgmr.msra.gmra.mxu0 %v8332_v14 }
 0x4ef   : > { %2832 = vmatpush.msrb.mxu0 %v2813_v59 }
 0x4f1   : > { %v8487_v3 = vpop.f32.mrf.mxu1  ;;  %2833 = vmatpush.msrb.mxu0 %v2812_v11 }
 0x4f3   : > { %2834 = vmatpush.msrb.mxu0 %v2811_v21 }
 0x4f5   : > { %2835 = vmatpush.msrb.mxu0 %v2810_v61 }
 0x4f6   : > { %2587 = vmatmul.f32.gmra.mxu0 %v8339_v32 }
 0x4f7   : > { %2836 = vmatpush.msrb.mxu0 %v2809_v34 }
 0x4f9   : > { %2837 = vmatpush.msrb.mxu0 %v2808_v18 }
 0x4fa   : > { %v8490_v47 = vpop.f32.mrf.mxu1 }
 0x4fb   : > { %2838 = vmatpush.msrb.mxu0 %v2807_v29  ;;  %v2953_v29 = vld [vmem:[#allocation2 + $0xad8] sm:$0xff] }
 0x4fd   : > { %2839 = vmatpush.msrb.mxu0 %v2806_v55  ;;  %v2950_v55 = vld [vmem:[#allocation2 + $0xac0] sm:$0xff] }
 0x4fe   : > { %2590 = vmatmul.f32.gmra.mxu0 %v8346_v62 }
 0x502   : > { %v8493_v25 = vpop.f32.mrf.mxu1 }
 0x506   : > { %2593 = vmatmul.f32.gmra.mxu0 %v8353_v33 }
 0x50d   : > { %v8497_v16 = vpop.f32.mrf.mxu1 }
 0x50e   : > { %2596 = vmatmul.f32.gmra.mxu0 %v8360_v42 }
 0x516   : > { %2599 = vmatmul.f32.gmra.mxu0 %v8367_v1 }
 0x517   : > { %v8500_v17 = vpop.f32.mrf.mxu1 }
 0x51e   : > { %2602 = vmatmul.f32.gmra.mxu0 %v8374_v20 }
 0x523   : > { %v8503_v56 = vpop.f32.mrf.mxu1 }
 0x526   : > { %2605 = vmatmul.f32.gmra.mxu0 %v8381_v53 }
 0x52b   : > { %v2316_v12 = vpop.f32.mrf.mxu1 }
 0x52c   : > { %v2317_v22 = vadd.f32 %v8506_v36, %v2316_v12 }
 0x52e   : > { %v2340_v6 = vmul.f32 %v2317_v22, %v8399_v45  ;;  %2840 = vmatmul.f32.vlgmr.msrb.gmra.mxu0 %v8332_v14  ;;  %v2947_v22 = vld [vmem:[#allocation2 + $0xaa8] sm:$0xff] }
 0x530   : > { %2380 = vmatmul.f32.vlgmr.msra.gmra.mxu2 %v2340_v6  ;;  %v2946_v6 = vld [vmem:[#allocation2 + $0xaa0] sm:$0xff] }
 0x533   : > { %v2319_v63 = vpop.f32.mrf.mxu1 }
 0x534   : > { %v2320_v2 = vadd.f32 %v8506_v36, %v2319_v63 }
 0x536   : > { %v2341_v19 = vmul.f32 %v2320_v2, %v8409_v13  ;;  %2843 = vmatmul.f32.gmra.mxu0 %v8339_v32  ;;  %v2682_v13 = vld [vmem:[#allocation2 + $0x880] sm:$0xff]  ;;  %v2944_v2 = vld [vmem:[#allocation2 + $0xa90] sm:$0xff] }
 0x537   : > { %2699 = vmatpush.msrb.mxu2 %v2682_v13 }
 0x538   : > { %2383 = vmatmul.f32.gmra.mxu2 %v2341_v19  ;;  %v2942_v19 = vld [vmem:[#allocation2 + $0xa80] sm:$0xff] }
 0x539   : > { %2700 = vmatpush.msrb.mxu2 %v2681_v31  ;;  %v8559_v31 = vld [vmem:[#allocation2 + $0x60] sm:$0xff] }
 0x53b   : > { %v2322_v45 = vpop.f32.mrf.mxu1  ;;  %2701 = vmatpush.msrb.mxu2 %v2680_v30  ;;  %v8568_v30 = vld [vmem:[#allocation2 + $0x48] sm:$0xff] }
 0x53c   : > { %v2323_v57 = vadd.f32 %v8506_v36, %v2322_v45 }
 0x53d   : > { %2702 = vmatpush.msrb.mxu2 %v2679_v35  ;;  %v2249_v35 = vpop.f32.mrf.mxu0 }
 0x53e   : > { %v2342_v39 = vmul.f32 %v2323_v57, %v8416_v48  ;;  %2846 = vmatmul.f32.gmra.mxu0 %v8346_v62  ;;  %v2678_v48 = vld [vmem:[#allocation2 + $0x860] sm:$0xff] }
 0x53f   : > { %2703 = vmatpush.msrb.mxu2 %v2678_v48  ;;  %v2938_v57 = vld [vmem:[#allocation2 + $0xa60] sm:$0xff] }
 0x540   : > { %2386 = vmatmul.f32.gmra.mxu2 %v2342_v39  ;;  %v8550_v39 = vld [vmem:[#allocation2 + $0x70] sm:$0xff]  ;;  %v8574_v48 = vld [vmem:[#allocation2 + $0x40] sm:$0xff] }
 0x541   : > { %2704 = vmatpush.msrb.mxu2 %v2677_v8  ;;  %v8577_v8 = vld [vmem:[#allocation2 + $0x38] sm:$0xff] }
 0x543   : > { %v2325_v0 = vpop.f32.mrf.mxu1  ;;  %2705 = vmatpush.msrb.mxu2 %v2676_v27  ;;  %v8587_v27 = vld [vmem:[#allocation2 + $0x20] sm:$0xff] }
 0x544   : > { %v2326_v60 = vadd.f32 %v8506_v36, %v2325_v0  ;;  %v8562_v0 = vld [vmem:[#allocation2 + $0x58] sm:$0xff] }
 0x545   : > { %2706 = vmatpush.msrb.mxu2 %v2675_v15  ;;  %v2252_v15 = vpop.f32.mrf.mxu0 }
 0x546   : > { %v2343_v49 = vmul.f32 %v2326_v60, %v8423_v50  ;;  %2849 = vmatmul.f32.gmra.mxu0 %v8353_v33  ;;  %v2674_v50 = vld [vmem:[#allocation2 + $0x840] sm:$0xff]  ;;  %v8565_v60 = vld [vmem:[#allocation2 + $0x50] sm:$0xff] }
 0x547   : > { %2707 = vmatpush.msrb.mxu2 %v2674_v50  ;;  %v8592_v50 = vld [vmem:[#allocation2 + $0x18] sm:$0xff] }
 0x548   : > { %2389 = vmatmul.f32.gmra.mxu2 %v2343_v49 }
 0x549   : > { %2956 = vmatpush.msra.mxu2 %v2953_v29 }
 0x54b   : > { %v2328_v23 = vpop.f32.mrf.mxu1 }
 0x54c   : > { %v2329_v51 = vadd.f32 %v8506_v36, %v2328_v23  ;;  %v8580_v23 = vld [vmem:[#allocation2 + $0x30] sm:$0xff] }
 0x54d   : > { %v2255_v29 = vpop.f32.mrf.mxu0 }
 0x54e   : > { %v2344_v28 = vmul.f32 %v2329_v51, %v8430_v54  ;;  %2852 = vmatmul.f32.gmra.mxu0 %v8360_v42  ;;  %v8583_v51 = vld [vmem:[#allocation2 + $0x28] sm:$0xff] }
 0x550   : > { %2392 = vmatmul.f32.gmra.mxu2 %v2344_v28 }
 0x553   : > { %v2331_v59 = vpop.f32.mrf.mxu1 }
 0x554   : > { %v2332_v37 = vadd.f32 %v8506_v36, %v2331_v59  ;;  %v8595_v59 = vld [vmem:[#allocation2 + $0x10] sm:$0xff] }
 0x556   : > { %v2345_v11 = vmul.f32 %v2332_v37, %v8437_v58  ;;  %2855 = vmatmul.f32.gmra.mxu0 %v8367_v1  ;;  %v8534_v58 = vpop.f32.mrf.mxu2  ;;  %v8598_v37 = vld [vmem:[#allocation2 + $0x8] sm:$0xff] }
 0x558   : > { %2395 = vmatmul.f32.gmra.mxu2 %v2345_v11  ;;  %v2126_v11 = vadd.f32 %v8530_v43, %v8479_v9  ;;  %v2129_v9 = vadd.f32 %v8534_v58, %v8484_v40  ;;  %v6477_v43 = vld [vmem:[#allocation4 + $0x1c0] sm:$0xff] }
 0x559   : > { %v6481_v58 = vld [vmem:[#allocation4 + $0x180] sm:$0xff] }
 0x55b   : > { %v2334_v21 = vpop.f32.mrf.mxu1 }
 0x55c   : > { %v2335_v10 = vadd.f32 %v8506_v36, %v2334_v21  ;;  %v8604_v21 = vld [vmem:[#allocation2] sm:$0xff] }
 0x55e   : > { %v2346_v54 = vmul.f32 %v2335_v10, %v8444_v46  ;;  %2858 = vmatmul.f32.gmra.mxu0 %v8374_v20  ;;  %v2952_v46 = vld [vmem:[#allocation2 + $0xad0] sm:$0xff]  ;;  %v8538_v12 = vpop.f32.mrf.mxu2  ;;  %v2273_v10 = vadd.f32 %v2249_v35, %v2126_v11  ;;  %v6486_v11 = vld [vmem:[#allocation4 + $0x130] sm:$0xff] }
 0x55f   : > { %2957 = vmatpush.msra.mxu2 %v2952_v46  ;;  %v6476_v46 = vld [vmem:[#allocation4 + $0x1d0] sm:$0xff]  ;;  %v2132_v40 = vadd.f32 %v8538_v12, %v8487_v3  ;;  %v6485_v12 = vld [vmem:[#allocation4 + $0x140] sm:$0xff] }
 0x560   : > { %2398 = vmatmul.f32.gmra.mxu2 %v2346_v54  ;;  %v6474_v54 = vld [vmem:[#allocation4 + $0x1f0] sm:$0xff] }
 0x561   : > { %2958 = vmatpush.msra.mxu2 %v2951_v52  ;;  %v2274_v52 = vadd.f32 %v2252_v15, %v2129_v9 }
 0x563   : > { %v2337_v61 = vpop.f32.mrf.mxu1  ;;  %2959 = vmatpush.msra.mxu2 %v2950_v55 }
 0x564   : > { %v2338_v34 = vadd.f32 %v8506_v36, %v2337_v61  ;;  %v2949_v36 = vld [vmem:[#allocation2 + $0xab8] sm:$0xff] }
 0x565   : > { %2960 = vmatpush.msra.mxu2 %v2949_v36  ;;  %v6478_v36 = vld [vmem:[#allocation4 + $0x1b0] sm:$0xff] }
 0x566   : > { %v2347_v18 = vmul.f32 %v2338_v34, %v8451_v4  ;;  %2861 = vmatmul.f32.gmra.mxu0 %v8381_v53  ;;  %v2948_v4 = vld [vmem:[#allocation2 + $0xab0] sm:$0xff]  ;;  %v8541_v63 = vpop.f32.mrf.mxu2 }
 0x567   : > { %2961 = vmatpush.msra.mxu2 %v2948_v4 }
 0x568   : > { %2401 = vmatmul.f32.gmra.mxu2 %v2347_v18  ;;  %v6475_v18 = vld [vmem:[#allocation4 + $0x1e0] sm:$0xff] }
 0x569   : > { %2962 = vmatpush.msra.mxu2 %v2947_v22  ;;  %v6479_v22 = vld [vmem:[#allocation4 + $0x1a0] sm:$0xff] }
 0x56b   : > { %2963 = vmatpush.msra.mxu2 %v2946_v6  ;;  %v2258_v6 = vpop.f32.mrf.mxu0 }
 0x56d   : > { %2964 = vmatpush.msra.mxu2 %v2945_v7  ;;  %v6480_v7 = vld [vmem:[#allocation4 + $0x190] sm:$0xff] }
 0x56e   : > { %v8544_v45 = vpop.f32.mrf.mxu2 }
 0x56f   : > { %2965 = vmatpush.msra.mxu2 %v2944_v2  ;;  %v2275_v2 = vadd.f32 %v2255_v29, %v2132_v40 }
 0x570   : > { %2708 = vmatmul.f32.vlgmr.msrb.gmra.mxu2 %v8332_v14 }
 0x571   : > { %2966 = vmatpush.msra.mxu2 %v2943_v41 }
 0x573   : > { %2967 = vmatpush.msra.mxu2 %v2942_v19  ;;  %v6482_v19 = vld [vmem:[#allocation4 + $0x170] sm:$0xff]  ;;  %v2261_v3 = vpop.f32.mrf.mxu0 }
 0x575   : > { %2968 = vmatpush.msra.mxu2 %v2941_v5 }
 0x576   : > { %v8556_v13 = vpop.f32.mrf.mxu2 }
 0x577   : > { %2969 = vmatpush.msra.mxu2 %v2940_v44  ;;  %v6483_v44 = vld [vmem:[#allocation4 + $0x160] sm:$0xff] }
 0x578   : > { %2711 = vmatmul.f32.gmra.mxu2 %v8339_v32 }
 0x579   : > { %2970 = vmatpush.msra.mxu2 %v2939_v24  ;;  %v6484_v24 = vld [vmem:[#allocation4 + $0x150] sm:$0xff] }
 0x57b   : > { %2971 = vmatpush.msra.mxu2 %v2938_v57  ;;  %v2135_v57 = vadd.f32 %v8541_v63, %v8490_v47  ;;  %v2138_v47 = vadd.f32 %v8544_v45, %v8493_v25  ;;  %v6489_v63 = vld [vmem:[#allocation4 + $0x100] sm:$0xff]  ;;  %v2264_v29 = vpop.f32.mrf.mxu0 }
 0x57d   : > { %3207 = vmatpush.msrb.mxu2 %v8547_v26  ;;  %v2276_v35 = vadd.f32 %v2258_v6, %v2135_v57  ;;  %v2465_v6 = vld [vmem:[#allocation2 + $0x4e0] sm:$0xff]  ;;  %v2462_v57 = vld [vmem:[#allocation2 + $0x4c8] sm:$0xff] }
 0x57e   : > { %v8572_v49 = vpop.f32.mrf.mxu2 }
 0x57f   : > { %3208 = vmatpush.msrb.mxu2 %v8550_v39  ;;  %v2144_v40 = vadd.f32 %v8572_v49, %v8500_v17 }
 0x580   : > { %2714 = vmatmul.f32.gmra.mxu2 %v8346_v62 }
 0x581   : > { %3209 = vmatpush.msrb.mxu2 %v8553_v38 }
 0x583   : > { %3210 = vmatpush.msrb.mxu2 %v8559_v31 }
 0x585   : > { %3211 = vmatpush.msrb.mxu2 %v8562_v0 }
 0x586   : > { %v8590_v28 = vpop.f32.mrf.mxu2 }
 0x587   : > { %3212 = vmatpush.msrb.mxu2 %v8565_v60 }
 0x588   : > { %2717 = vmatmul.f32.gmra.mxu2 %v8353_v33 }
 0x589   : > { %3213 = vmatpush.msrb.mxu2 %v8568_v30 }
 0x58b   : > { %3214 = vmatpush.msrb.mxu2 %v8574_v48 }
 0x58d   : > { %3215 = vmatpush.msrb.mxu2 %v8577_v8 }
 0x58f   : > { %3216 = vmatpush.msrb.mxu2 %v8580_v23 }
 0x590   : > { %2720 = vmatmul.f32.gmra.mxu2 %v8360_v42 }
 0x591   : > { %3217 = vmatpush.msrb.mxu2 %v8583_v51 }
 0x593   : > { %3218 = vmatpush.msrb.mxu2 %v8587_v27 }
 0x595   : > { %3219 = vmatpush.msrb.mxu2 %v8592_v50 }
 0x597   : > { %3220 = vmatpush.msrb.mxu2 %v8595_v59 }
 0x598   : > { %2723 = vmatmul.f32.gmra.mxu2 %v8367_v1 }
 0x599   : > { %3221 = vmatpush.msrb.mxu2 %v8598_v37 }
 0x59b   : > { %3222 = vmatpush.msrb.mxu2 %v8604_v21 }
 0x5a0   : > { %2726 = vmatmul.f32.gmra.mxu2 %v8374_v20 }
 0x5a8   : > { %2729 = vmatmul.f32.gmra.mxu2 %v8381_v53 }
 0x5b0   : > { %2972 = vmatmul.f32.vlgmr.msra.gmra.mxu2 %v8332_v14 }
 0x5b1   : > { %3691 = vmatpush.msra.mxu2 %v6474_v54  ;;  %v6487_v54 = vld [vmem:[#allocation4 + $0x120] sm:$0xff] }
 0x5b3   : > { %v2381_v61 = vpop.f32.mrf.mxu2  ;;  %3692 = vmatpush.msra.mxu2 %v6475_v18  ;;  %v2277_v18 = vadd.f32 %v2261_v3, %v2138_v47  ;;  %v2461_v3 = vld [vmem:[#allocation2 + $0x4c0] sm:$0xff] }
 0x5b4   : > { %v8607_v34 = vadd.f32 %v2381_v61, %v2273_v10  ;;  %v6488_v61 = vld [vmem:[#allocation4 + $0x110] sm:$0xff] }
 0x5b5   : > { %3693 = vmatpush.msra.mxu2 %v6476_v46 }
 0x5b6   : > { %2413 = vmax.xlane.f32.xlu0 %v8607_v34 }
 0x5b7   : > { %3694 = vmatpush.msra.mxu2 %v6477_v43  ;;  %v2468_v43 = vld [vmem:[#allocation2 + $0x4f8] sm:$0xff] }
 0x5b8   : > { %2975 = vmatmul.f32.gmra.mxu2 %v8339_v32  ;;  %2469 = vmatpush.msra.mxu3 %v2468_v43 }
 0x5b9   : > { %3695 = vmatpush.msra.mxu2 %v6478_v36 }
 0x5bb   : > { %v2384_v55 = vpop.f32.mrf.mxu2  ;;  %3696 = vmatpush.msra.mxu2 %v6479_v22  ;;  %v2466_v22 = vld [vmem:[#allocation2 + $0x4e8] sm:$0xff] }
 0x5bc   : > { %v8613_v4 = vadd.f32 %v2384_v55, %v2274_v52  ;;  %v2467_v52 = vld [vmem:[#allocation2 + $0x4f0] sm:$0xff]  ;;  %v2141_v55 = vadd.f32 %v8556_v13, %v8497_v16 }
 0x5bd   : > { %3697 = vmatpush.msra.mxu2 %v6480_v7  ;;  %2470 = vmatpush.msra.mxu3 %v2467_v52  ;;  %v2267_v7 = vpop.f32.mrf.mxu0 }
 0x5be   : > { %2415 = vmax.xlane.f32.xlu0 %v8613_v4  ;;  %v2278_v25 = vadd.f32 %v2264_v29, %v2141_v55 }
 0x5bf   : > { %3698 = vmatpush.msra.mxu2 %v6481_v58  ;;  %2471 = vmatpush.msra.mxu3 %v2466_v22  ;;  %v2279_v58 = vadd.f32 %v2267_v7, %v2144_v40 }
 0x5c0   : > { %2978 = vmatmul.f32.gmra.mxu2 %v8346_v62 }
 0x5c1   : > { %3699 = vmatpush.msra.mxu2 %v6482_v19  ;;  %2472 = vmatpush.msra.mxu3 %v2465_v6 }
 0x5c3   : > { %v2387_v41 = vpop.f32.mrf.mxu2  ;;  %3700 = vmatpush.msra.mxu2 %v6483_v44  ;;  %v2147_v44 = vadd.f32 %v8590_v28, %v8503_v56  ;;  %v2456_v56 = vld [vmem:[#allocation2 + $0x498] sm:$0xff]  ;;  %v2455_v28 = vld [vmem:[#allocation2 + $0x490] sm:$0xff] }
 0x5c4   : > { %v8619_v5 = vadd.f32 %v2387_v41, %v2275_v2  ;;  %v2464_v2 = vld [vmem:[#allocation2 + $0x4d8] sm:$0xff]  ;;  %v2463_v41 = vld [vmem:[#allocation2 + $0x4d0] sm:$0xff] }
 0x5c5   : > { %3701 = vmatpush.msra.mxu2 %v6484_v24  ;;  %2473 = vmatpush.msra.mxu3 %v2464_v2  ;;  %v2270_v19 = vpop.f32.mrf.mxu0  ;;  %v2748_v2 = vld [vmem:[#allocation2 + $0x278] sm:$0xff] }
 0x5c6   : > { %2417 = vmax.xlane.f32.xlu1 %v8619_v5  ;;  %v2280_v24 = vadd.f32 %v2270_v19, %v2147_v44  ;;  %v2747_v19 = vld [vmem:[#allocation2 + $0x270] sm:$0xff]  ;;  %v2746_v44 = vld [vmem:[#allocation2 + $0x268] sm:$0xff] }
 0x5c7   : > { %3702 = vmatpush.msra.mxu2 %v6485_v12  ;;  %2474 = vmatpush.msra.mxu3 %v2463_v41  ;;  %v2460_v12 = vld [vmem:[#allocation2 + $0x4b8] sm:$0xff] }
 0x5c8   : > { %2981 = vmatmul.f32.gmra.mxu2 %v8353_v33  ;;  %v2624_v41 = vld [vmem:[#allocation2 + $0x178] sm:$0xff] }
 0x5c9   : > { %3703 = vmatpush.msra.mxu2 %v6486_v11  ;;  %2475 = vmatpush.msra.mxu3 %v2462_v57  ;;  %v2457_v11 = vld [vmem:[#allocation2 + $0x4a0] sm:$0xff] }
 0x5ca   : > { %2625 = vmatpush.msra.mxu1 %v2624_v41  ;;  %v2745_v57 = vld [vmem:[#allocation2 + $0x260] sm:$0xff] }
 0x5cb   : > { %v2390_v15 = vpop.f32.mrf.mxu2  ;;  %3704 = vmatpush.msra.mxu2 %v6487_v54  ;;  %2476 = vmatpush.msra.mxu3 %v2461_v3  ;;  %v2454_v54 = vld [vmem:[#allocation2 + $0x488] sm:$0xff]  ;;  %v2621_v3 = vld [vmem:[#allocation2 + $0x160] sm:$0xff] }
 0x5cc   : > { %v8625_v10 = vadd.f32 %v2390_v15, %v2276_v35  ;;  %v2459_v35 = vld [vmem:[#allocation2 + $0x4b0] sm:$0xff]  ;;  %v2458_v15 = vld [vmem:[#allocation2 + $0x4a8] sm:$0xff]  ;;  %v2613_v41 = vld [vmem:[#allocation2 + $0x120] sm:$0xff] }
 0x5cd   : > { %3705 = vmatpush.msra.mxu2 %v6488_v61  ;;  %2477 = vmatpush.msra.mxu3 %v2460_v12  ;;  %v2453_v61 = vld [vmem:[#allocation2 + $0x480] sm:$0xff]  ;;  %v2744_v12 = vld [vmem:[#allocation2 + $0x258] sm:$0xff] }
 0x5ce   : > { %2419 = vmax.xlane.f32.xlu1 %v8625_v10 }
 0x5cf   : > { %3706 = vmatpush.msra.mxu2 %v6489_v63  ;;  %2478 = vmatpush.msra.mxu3 %v2459_v35  ;;  %v2620_v35 = vld [vmem:[#allocation2 + $0x158] sm:$0xff] }
 0x5d0   : > { %2984 = vmatmul.f32.gmra.mxu2 %v8360_v42 }
 0x5d1   : > { %2479 = vmatpush.msra.mxu3 %v2458_v15 }
 0x5d3   : > { %v2393_v46 = vpop.f32.mrf.mxu2  ;;  %2480 = vmatpush.msra.mxu3 %v2457_v11 }
 0x5d4   : > { %v8631_v9 = vadd.f32 %v2393_v46, %v2277_v18 }
 0x5d5   : > { %2481 = vmatpush.msra.mxu3 %v2456_v56  ;;  %v2743_v56 = vld [vmem:[#allocation2 + $0x250] sm:$0xff] }
 0x5d6   : > { %2421 = vmax.xlane.f32.xlu2 %v8631_v9 }
 0x5d7   : > { %2482 = vmatpush.msra.mxu3 %v2455_v28  ;;  %v2619_v28 = vld [vmem:[#allocation2 + $0x150] sm:$0xff] }
 0x5d8   : > { %2987 = vmatmul.f32.gmra.mxu2 %v8367_v1 }
 0x5d9   : > { %2483 = vmatpush.msra.mxu3 %v2454_v54  ;;  %v2742_v54 = vld [vmem:[#allocation2 + $0x248] sm:$0xff] }
 0x5db   : > { %v2396_v45 = vpop.f32.mrf.mxu2  ;;  %2484 = vmatpush.msra.mxu3 %v2453_v61  ;;  %v2618_v61 = vld [vmem:[#allocation2 + $0x148] sm:$0xff] }
 0x5dc   : > { %v8637_v36 = vadd.f32 %v2396_v45, %v2278_v25 }
 0x5dd   : > { %2749 = vmatpush.msrb.mxu3 %v2748_v2 }
 0x5de   : > { %2423 = vmax.xlane.f32.xlu2 %v8637_v36 }
 0x5df   : > { %2750 = vmatpush.msrb.mxu3 %v2747_v19  ;;  %v2736_v19 = vld [vmem:[#allocation2 + $0x218] sm:$0xff] }
 0x5e0   : > { %2990 = vmatmul.f32.gmra.mxu2 %v8374_v20 }
 0x5e1   : > { %2751 = vmatpush.msrb.mxu3 %v2746_v44  ;;  %v2611_v44 = vld [vmem:[#allocation2 + $0x110] sm:$0xff] }
 0x5e3   : > { %v2399_v16 = vpop.f32.mrf.mxu2  ;;  %2752 = vmatpush.msrb.mxu3 %v2745_v57  ;;  %v2733_v57 = vld [vmem:[#allocation2 + $0x200] sm:$0xff] }
 0x5e4   : > { %v8643_v13 = vadd.f32 %v2399_v16, %v2279_v58 }
 0x5e5   : > { %2753 = vmatpush.msrb.mxu3 %v2744_v12  ;;  %v2880_v12 = vld [vmem:[#allocation2 + $0x378] sm:$0xff] }
 0x5e6   : > { %2425 = vmax.xlane.f32.xlu0 %v8643_v13 }
 0x5e7   : > { %2754 = vmatpush.msrb.mxu3 %v2743_v56  ;;  %v2879_v56 = vld [vmem:[#allocation2 + $0x370] sm:$0xff] }
 0x5e8   : > { %2993 = vmatmul.f32.gmra.mxu2 %v8381_v53 }
 0x5e9   : > { %2755 = vmatpush.msrb.mxu3 %v2742_v54  ;;  %v2878_v54 = vld [vmem:[#allocation2 + $0x368] sm:$0xff] }
 0x5eb   : > { %v2402_v17 = vpop.f32.mrf.mxu2 }
 0x5ec   : > { %v8649_v49 = vadd.f32 %v2402_v17, %v2280_v24  ;;  %v2622_v24 = vld [vmem:[#allocation2 + $0x168] sm:$0xff] }
 0x5ee   : > { %2427 = vmax.xlane.f32.xlu1 %v8649_v49 }
 0x629   : > { %v2414_v47 = vpop.xlane.xlu0 %2413 }
 0x62a   : > { %v2429_v63 = vsub.f32 %v8607_v34, %v2414_v47  ;;  %v2741_v47 = vld [vmem:[#allocation2 + $0x240] sm:$0xff] }
 0x62b   : > { %2756 = vmatpush.msrb.mxu3 %v2741_v47 }
 0x62c   : > { %v2437_v18 = vmul.f32 1.442695, %v2429_v63  ;;  %v2617_v63 = vld [vmem:[#allocation2 + $0x140] sm:$0xff] }
 0x62e   : > { %6242 = vpow2.f32 %v2437_v18 }
 0x631   : > { %v2416_v29 = vpop.xlane.xlu0 %2415 }
 0x632   : > { %v2430_v46 = vsub.f32 %v8613_v4, %v2416_v29  ;;  %v2740_v29 = vld [vmem:[#allocation2 + $0x238] sm:$0xff] }
 0x633   : > { %2757 = vmatpush.msrb.mxu3 %v2740_v29 }
 0x634   : > { %v8654_v43 = vpop.eup %6242  ;;  %v2439_v52 = vmul.f32 1.442695, %v2430_v46  ;;  %v2616_v46 = vld [vmem:[#allocation2 + $0x138] sm:$0xff] }
 0x635   : > { %2485 = vmatmul.f32.vlgmr.msra.gmra.mxu3 %v8654_v43 }
 0x636   : > { %6244 = vpow2.f32 %v2439_v52 }
 0x639   : > { %v2418_v55 = vpop.xlane.xlu1 %2417 }
 0x63a   : > { %v2431_v25 = vsub.f32 %v8619_v5, %v2418_v55 }
 0x63c   : > { %v8658_v45 = vpop.eup %6244  ;;  %v2441_v22 = vmul.f32 1.442695, %v2431_v25  ;;  %v2739_v25 = vld [vmem:[#allocation2 + $0x230] sm:$0xff] }
 0x63d   : > { %2488 = vmatmul.f32.gmra.mxu3 %v8658_v45 }
 0x63e   : > { %6246 = vpow2.f32 %v2441_v22  ;;  %v2615_v22 = vld [vmem:[#allocation2 + $0x130] sm:$0xff]  ;;  %2758 = vmatpush.msrb.mxu3 %v2739_v25  ;;  %v2876_v25 = vld [vmem:[#allocation2 + $0x358] sm:$0xff] }
 0x641   : > { %v2420_v34 = vpop.xlane.xlu1 %2419 }
 0x642   : > { %v2432_v6 = vsub.f32 %v8625_v10, %v2420_v34  ;;  %v2623_v10 = vld [vmem:[#allocation2 + $0x170] sm:$0xff]  ;;  %v2738_v34 = vld [vmem:[#allocation2 + $0x228] sm:$0xff] }
 0x643   : > { %2626 = vmatpush.msra.mxu1 %v2623_v10  ;;  %2759 = vmatpush.msrb.mxu3 %v2738_v34  ;;  %v2612_v10 = vld [vmem:[#allocation2 + $0x118] sm:$0xff] }
 0x644   : > { %v8662_v7 = vpop.eup %6246  ;;  %v2443_v4 = vmul.f32 1.442695, %v2432_v6  ;;  %v2614_v6 = vld [vmem:[#allocation2 + $0x128] sm:$0xff] }
 0x645   : > { %2491 = vmatmul.f32.gmra.mxu3 %v8662_v7  ;;  %2627 = vmatpush.msra.mxu1 %v2622_v24  ;;  %v2734_v24 = vld [vmem:[#allocation2 + $0x208] sm:$0xff] }
 0x646   : > { %6248 = vpow2.f32 %v2443_v4  ;;  %v2737_v4 = vld [vmem:[#allocation2 + $0x220] sm:$0xff] }
 0x647   : > { %2628 = vmatpush.msra.mxu1 %v2621_v3  ;;  %2760 = vmatpush.msrb.mxu3 %v2737_v4  ;;  %v2609_v3 = vld [vmem:[#allocation2 + $0x100] sm:$0xff] }
 0x649   : > { %v2422_v40 = vpop.xlane.xlu2 %2421  ;;  %2629 = vmatpush.msra.mxu1 %v2620_v35  ;;  %2761 = vmatpush.msrb.mxu3 %v2736_v19  ;;  %v3011_v35 = vld [vmem:[#allocation2 + $0x470] sm:$0xff]  ;;  %v3006_v19 = vld [vmem:[#allocation2 + $0x448] sm:$0xff] }
 0x64a   : > { %v2433_v58 = vsub.f32 %v8631_v9, %v2422_v40 }
 0x64b   : > { %2630 = vmatpush.msra.mxu1 %v2619_v28  ;;  %v3010_v28 = vld [vmem:[#allocation2 + $0x468] sm:$0xff] }
 0x64c   : > { %v8666_v16 = vpop.eup %6248  ;;  %v2445_v5 = vmul.f32 1.442695, %v2433_v58 }
 0x64d   : > { %2494 = vmatmul.f32.gmra.mxu3 %v8666_v16  ;;  %2631 = vmatpush.msra.mxu1 %v2618_v61  ;;  %v3009_v61 = vld [vmem:[#allocation2 + $0x460] sm:$0xff] }
 0x64e   : > { %6250 = vpow2.f32 %v2445_v5 }
 0x64f   : > { %2632 = vmatpush.msra.mxu1 %v2617_v63 }
 0x651   : > { %v2424_v17 = vpop.xlane.xlu2 %2423  ;;  %2633 = vmatpush.msra.mxu1 %v2616_v46  ;;  %v2877_v46 = vld [vmem:[#allocation2 + $0x360] sm:$0xff] }
 0x652   : > { %v2434_v9 = vsub.f32 %v8637_v36, %v2424_v17  ;;  %v2610_v17 = vld [vmem:[#allocation2 + $0x108] sm:$0xff] }
 0x653   : > { %2634 = vmatpush.msra.mxu1 %v2615_v22  ;;  %v3007_v22 = vld [vmem:[#allocation2 + $0x450] sm:$0xff] }
 0x654   : > { %v8670_v15 = vpop.eup %6250  ;;  %v2447_v11 = vmul.f32 1.442695, %v2434_v9  ;;  %v3012_v9 = vld [vmem:[#allocation2 + $0x478] sm:$0xff] }
 0x655   : > { %2497 = vmatmul.f32.gmra.mxu3 %v8670_v15  ;;  %2635 = vmatpush.msra.mxu1 %v2614_v6 }
 0x656   : > { %6252 = vpow2.f32 %v2447_v11 }
 0x657   : > { %2636 = vmatpush.msra.mxu1 %v2613_v41  ;;  %v2875_v41 = vld [vmem:[#allocation2 + $0x350] sm:$0xff] }
 0x659   : > { %v2426_v36 = vpop.xlane.xlu0 %2425  ;;  %2637 = vmatpush.msra.mxu1 %v2612_v10  ;;  %v2874_v10 = vld [vmem:[#allocation2 + $0x348] sm:$0xff] }
 0x65a   : > { %v2435_v18 = vsub.f32 %v8643_v13, %v2426_v36 }
 0x65b   : > { %2638 = vmatpush.msra.mxu1 %v2611_v44 }
 0x65c   : > { %v8674_v52 = vpop.eup %6252  ;;  %v2449_v55 = vmul.f32 1.442695, %v2435_v18 }
 0x65d   : > { %2500 = vmatmul.f32.gmra.mxu3 %v8674_v52  ;;  %2639 = vmatpush.msra.mxu1 %v2610_v17 }
 0x65e   : > { %6254 = vpow2.f32 %v2449_v55  ;;  %v3008_v55 = vld [vmem:[#allocation2 + $0x458] sm:$0xff] }
 0x65f   : > { %2640 = vmatpush.msra.mxu1 %v2609_v3 }
 0x661   : > { %v2428_v13 = vpop.xlane.xlu1 %2427  ;;  %2881 = vmatpush.msrb.mxu1 %v2880_v12  ;;  %v3004_v12 = vld [vmem:[#allocation2 + $0x438] sm:$0xff] }
 0x662   : > { %v2436_v40 = vsub.f32 %v8649_v49, %v2428_v13  ;;  %v2735_v49 = vld [vmem:[#allocation2 + $0x210] sm:$0xff] }
 0x663   : > { %2762 = vmatpush.msrb.mxu3 %v2735_v49  ;;  %2882 = vmatpush.msrb.mxu1 %v2879_v56  ;;  %v3005_v49 = vld [vmem:[#allocation2 + $0x440] sm:$0xff] }
 0x664   : > { %v8678_v58 = vpop.eup %6254  ;;  %v2451_v5 = vmul.f32 1.442695, %v2436_v40 }
 0x665   : > { %2503 = vmatmul.f32.gmra.mxu3 %v8678_v58  ;;  %2883 = vmatpush.msrb.mxu1 %v2878_v54 }
 0x666   : > { %6256 = vpow2.f32 %v2451_v5  ;;  %2763 = vmatpush.msrb.mxu3 %v2734_v24 }
 0x667   : > { %2884 = vmatpush.msrb.mxu1 %v2877_v46  ;;  %v2869_v46 = vld [vmem:[#allocation2 + $0x320] sm:$0xff] }
 0x668   : > { %2764 = vmatpush.msrb.mxu3 %v2733_v57 }
 0x669   : > { %2885 = vmatpush.msrb.mxu1 %v2876_v25 }
 0x66a   : > { %3013 = vmatpush.msra.mxu3 %v3012_v9  ;;  %v2873_v9 = vld [vmem:[#allocation2 + $0x340] sm:$0xff] }
 0x66b   : > { %2886 = vmatpush.msrb.mxu1 %v2875_v41 }
 0x66c   : > { %v8681_v2 = vpop.eup %6256  ;;  %3014 = vmatpush.msra.mxu3 %v3011_v35  ;;  %v2872_v35 = vld [vmem:[#allocation2 + $0x338] sm:$0xff] }
 0x66d   : > { %2506 = vmatmul.f32.gmra.mxu3 %v8681_v2  ;;  %2887 = vmatpush.msrb.mxu1 %v2874_v10  ;;  %v2997_v10 = vld [vmem:[#allocation2 + $0x400] sm:$0xff] }
 0x66e   : > { %3015 = vmatpush.msra.mxu3 %v3010_v28 }
 0x66f   : > { %2888 = vmatpush.msrb.mxu1 %v2873_v9 }
 0x670   : > { %3016 = vmatpush.msra.mxu3 %v3009_v61 }
 0x671   : > { %2889 = vmatpush.msrb.mxu1 %v2872_v35 }
 0x672   : > { %3017 = vmatpush.msra.mxu3 %v3008_v55  ;;  %v3000_v55 = vld [vmem:[#allocation2 + $0x418] sm:$0xff] }
 0x674   : > { %3018 = vmatpush.msra.mxu3 %v3007_v22 }
 0x676   : > { %3019 = vmatpush.msra.mxu3 %v3006_v19  ;;  %v2866_v19 = vld [vmem:[#allocation2 + $0x308] sm:$0xff] }
 0x678   : > { %3020 = vmatpush.msra.mxu3 %v3005_v49 }
 0x67a   : > { %3021 = vmatpush.msra.mxu3 %v3004_v12 }
 0x6b8   : > { %v2486_v11 = vpop.f32.mrf.mxu3 }
 0x6b9   : > { %6258 = vrcp.f32 %v2486_v11 }
 0x6bf   : > { %v6259_v36 = vpop.eup %6258 }
 0x6c0   : > { %v2518_v47 = vmul.f32 %v6259_v36, %v2486_v11  ;;  %v2489_v63 = vpop.f32.mrf.mxu3  ;;  %v3003_v11 = vld [vmem:[#allocation2 + $0x430] sm:$0xff] }
 0x6c1   : > { %6260 = vrcp.f32 %v2489_v63  ;;  %3022 = vmatpush.msra.mxu3 %v3003_v11 }
 0x6c2   : > { %v2526_v18 = vsub.f32 2.0, %v2518_v47  ;;  %v2871_v47 = vld [vmem:[#allocation2 + $0x330] sm:$0xff] }
 0x6c3   : > { %2890 = vmatpush.msrb.mxu1 %v2871_v47 }
 0x6c4   : > { %v2534_v29 = vmul.f32 %v6259_v36, %v2526_v18  ;;  %v2870_v18 = vld [vmem:[#allocation2 + $0x328] sm:$0xff] }
 0x6c5   : > { %2891 = vmatpush.msrb.mxu1 %v2870_v18  ;;  %v3084_v18 = vld [vmem:[#allocation2 + $0xb58] sm:$0xff] }
 0x6c6   : > { %v8685_v34 = vmul.f32 %v8654_v43, %v2534_v29  ;;  %v3001_v29 = vld [vmem:[#allocation2 + $0x420] sm:$0xff] }
 0x6c7   : > { %v6261_v6 = vpop.eup %6260  ;;  %2892 = vmatpush.msrb.mxu1 %v2869_v46 }
 0x6c8   : > { %v2519_v13 = vmul.f32 %v6261_v6, %v2489_v63  ;;  %v2492_v4 = vpop.f32.mrf.mxu3  ;;  %2641 = vmatmul.f32.vlgmr.msra.gmra.mxu1 %v8685_v34  ;;  %2765 = vmatmul.f32.vlgmr.msrb.gmra.mxu3 %v8685_v34  ;;  %v3002_v63 = vld [vmem:[#allocation2 + $0x428] sm:$0xff] }
 0x6c9   : > { %6262 = vrcp.f32 %v2492_v4  ;;  %3023 = vmatpush.msra.mxu3 %v3002_v63 }
 0x6ca   : > { %v2527_v40 = vsub.f32 2.0, %v2519_v13  ;;  %v2868_v13 = vld [vmem:[#allocation2 + $0x318] sm:$0xff] }
 0x6cb   : > { %3024 = vmatpush.msra.mxu3 %v3001_v29  ;;  %2893 = vmatpush.msrb.mxu1 %v2868_v13  ;;  %v3083_v29 = vld [vmem:[#allocation2 + $0xb50] sm:$0xff]  ;;  %v3080_v13 = vld [vmem:[#allocation2 + $0xb38] sm:$0xff] }
 0x6cc   : > { %v2535_v5 = vmul.f32 %v6261_v6, %v2527_v40 }
 0x6cd   : > { %3025 = vmatpush.msra.mxu3 %v3000_v55  ;;  %v3082_v55 = vld [vmem:[#allocation2 + $0xb48] sm:$0xff] }
 0x6ce   : > { %v8690_v43 = vmul.f32 %v8658_v45, %v2535_v5  ;;  %v2867_v5 = vld [vmem:[#allocation2 + $0x310] sm:$0xff] }
 0x6cf   : > { %v6263_v44 = vpop.eup %6262  ;;  %2894 = vmatpush.msrb.mxu1 %v2867_v5 }
 0x6d0   : > { %v2520_v24 = vmul.f32 %v6263_v44, %v2492_v4  ;;  %v2495_v17 = vpop.f32.mrf.mxu3  ;;  %2644 = vmatmul.f32.gmra.mxu1 %v8690_v43  ;;  %2768 = vmatmul.f32.gmra.mxu3 %v8690_v43  ;;  %v2999_v4 = vld [vmem:[#allocation2 + $0x410] sm:$0xff] }
 0x6d1   : > { %6264 = vrcp.f32 %v2495_v17  ;;  %3026 = vmatpush.msra.mxu3 %v2999_v4  ;;  %2895 = vmatpush.msrb.mxu1 %v2866_v19  ;;  %v3079_v4 = vld [vmem:[#allocation2 + $0xb30] sm:$0xff]  ;;  %v3078_v19 = vld [vmem:[#allocation2 + $0xb28] sm:$0xff] }
 0x6d2   : > { %v2528_v57 = vsub.f32 2.0, %v2520_v24 }
 0x6d4   : > { %v2536_v3 = vmul.f32 %v6263_v44, %v2528_v57  ;;  %v2865_v44 = vld [vmem:[#allocation2 + $0x300] sm:$0xff] }
 0x6d5   : > { %2896 = vmatpush.msrb.mxu1 %v2865_v44 }
 0x6d6   : > { %v8695_v45 = vmul.f32 %v8662_v7, %v2536_v3 }
 0x6d7   : > { %v6265_v56 = vpop.eup %6264  ;;  %3150 = vmatpush.msra.mxu1 %v8547_v26 }
 0x6d8   : > { %v2521_v28 = vmul.f32 %v6265_v56, %v2495_v17  ;;  %v2498_v54 = vpop.f32.mrf.mxu3  ;;  %2647 = vmatmul.f32.gmra.mxu1 %v8695_v45  ;;  %2771 = vmatmul.f32.gmra.mxu3 %v8695_v45 }
 0x6d9   : > { %6266 = vrcp.f32 %v2498_v54  ;;  %3151 = vmatpush.msra.mxu1 %v8550_v39 }
 0x6da   : > { %v2529_v61 = vsub.f32 2.0, %v2521_v28  ;;  %v8792_v28 = vld [vmem:[#allocation4 + $0x10] sm:$0xff] }
 0x6db   : > { %3152 = vmatpush.msra.mxu1 %v8553_v38  ;;  %10821 = vst [vmem:[#allocation21_spill] sm:$0xff] %v8792_v28 }
 0x6dc   : > { %v2537_v36 = vmul.f32 %v6265_v56, %v2529_v61  ;;  %v8799_v61 = vld [vmem:[#allocation4] sm:$0xff] }
 0x6dd   : > { %3153 = vmatpush.msra.mxu1 %v8559_v31  ;;  %10822 = vst [vmem:[#allocation22_spill] sm:$0xff] %v8799_v61 }
 0x6de   : > { %v8700_v7 = vmul.f32 %v8666_v16, %v2537_v36  ;;  %v2998_v16 = vld [vmem:[#allocation2 + $0x408] sm:$0xff]  ;;  %v3085_v36 = vld [vmem:[#allocation2 + $0xb60] sm:$0xff] }
 0x6df   : > { %v6267_v25 = vpop.eup %6266  ;;  %3027 = vmatpush.msra.mxu3 %v2998_v16  ;;  %3154 = vmatpush.msra.mxu1 %v8562_v0 }
 0x6e0   : > { %v2522_v22 = vmul.f32 %v6267_v25, %v2498_v54  ;;  %v2501_v6 = vpop.f32.mrf.mxu3  ;;  %2650 = vmatmul.f32.gmra.mxu1 %v8700_v7  ;;  %2774 = vmatmul.f32.gmra.mxu3 %v8700_v7  ;;  %v8797_v54 = vpop.f32.mrf.mxu2 }
 0x6e1   : > { %6268 = vrcp.f32 %v2501_v6  ;;  %3028 = vmatpush.msra.mxu3 %v2997_v10  ;;  %3155 = vmatpush.msra.mxu1 %v8565_v60  ;;  %v3077_v10 = vld [vmem:[#allocation2 + $0xb20] sm:$0xff] }
 0x6e2   : > { %v2530_v40 = vsub.f32 2.0, %v2522_v22  ;;  %3088 = vmatpush.msra.mxu0 %v3085_v36 }
 0x6e3   : > { %3156 = vmatpush.msra.mxu1 %v8568_v30  ;;  %v8742_v30 = vld [vmem:[#allocation4 + $0xf0] sm:$0xff] }
 0x6e4   : > { %v2538_v41 = vmul.f32 %v6267_v25, %v2530_v40  ;;  %3089 = vmatpush.msra.mxu0 %v3084_v18  ;;  %v3081_v25 = vld [vmem:[#allocation2 + $0xb40] sm:$0xff]  ;;  %v3070_v18 = vld [vmem:[#allocation2 + $0xae8] sm:$0xff] }
 0x6e5   : > { %3157 = vmatpush.msra.mxu1 %v8574_v48  ;;  %v8745_v48 = vld [vmem:[#allocation4 + $0xe0] sm:$0xff] }
 0x6e6   : > { %v8705_v49 = vmul.f32 %v8670_v15, %v2538_v41  ;;  %3090 = vmatpush.msra.mxu0 %v3083_v29 }
 0x6e7   : > { %v6269_v24 = vpop.eup %6268  ;;  %3158 = vmatpush.msra.mxu1 %v8577_v8  ;;  %v8748_v8 = vld [vmem:[#allocation4 + $0xd0] sm:$0xff] }
 0x6e8   : > { %v2523_v17 = vmul.f32 %v6269_v24, %v2501_v6  ;;  %v2504_v57 = vpop.f32.mrf.mxu3  ;;  %2653 = vmatmul.f32.gmra.mxu1 %v8705_v49  ;;  %2777 = vmatmul.f32.gmra.mxu3 %v8705_v49  ;;  %v8806_v63 = vpop.f32.mrf.mxu2 }
 0x6e9   : > { %6270 = vrcp.f32 %v2504_v57  ;;  %3159 = vmatpush.msra.mxu1 %v8580_v23  ;;  %v8753_v23 = vld [vmem:[#allocation4 + $0xc0] sm:$0xff]  ;;  %3091 = vmatpush.msra.mxu0 %v3082_v55 }
 0x6ea   : > { %v2531_v3 = vsub.f32 2.0, %v2523_v17  ;;  %v3076_v17 = vld [vmem:[#allocation2 + $0xb18] sm:$0xff] }
 0x6eb   : > { %3160 = vmatpush.msra.mxu1 %v8583_v51  ;;  %v8756_v51 = vld [vmem:[#allocation4 + $0xb0] sm:$0xff]  ;;  %3092 = vmatpush.msra.mxu0 %v3081_v25 }
 0x6ec   : > { %v2539_v9 = vmul.f32 %v6269_v24, %v2531_v3 }
 0x6ed   : > { %3161 = vmatpush.msra.mxu1 %v8587_v27  ;;  %v8759_v27 = vld [vmem:[#allocation4 + $0xa0] sm:$0xff]  ;;  %3093 = vmatpush.msra.mxu0 %v3080_v13 }
 0x6ee   : > { %v8712_v15 = vmul.f32 %v8674_v52, %v2539_v9 }
 0x6ef   : > { %v6271_v12 = vpop.eup %6270  ;;  %3162 = vmatpush.msra.mxu1 %v8592_v50  ;;  %v8762_v50 = vld [vmem:[#allocation4 + $0x90] sm:$0xff]  ;;  %3094 = vmatpush.msra.mxu0 %v3079_v4 }
 0x6f0   : > { %v2524_v35 = vmul.f32 %v6271_v12, %v2504_v57  ;;  %v2507_v11 = vpop.f32.mrf.mxu3  ;;  %2656 = vmatmul.f32.gmra.mxu1 %v8712_v15  ;;  %2780 = vmatmul.f32.gmra.mxu3 %v8712_v15  ;;  %10813 = vst [vmem:[#allocation12_spill] sm:$0xff] %v8762_v50  ;;  %v8812_v46 = vpop.f32.mrf.mxu2  ;;  %v3075_v57 = vld [vmem:[#allocation2 + $0xb10] sm:$0xff] }
 0x6f1   : > { %6272 = vrcp.f32 %v2507_v11  ;;  %3163 = vmatpush.msra.mxu1 %v8595_v59  ;;  %v8767_v59 = vld [vmem:[#allocation4 + $0x80] sm:$0xff]  ;;  %3095 = vmatpush.msra.mxu0 %v3078_v19 }
 0x6f2   : > { %v2532_v56 = vsub.f32 2.0, %v2524_v35  ;;  %10814 = vst [vmem:[#allocation14_spill] sm:$0xff] %v8767_v59  ;;  %v3074_v35 = vld [vmem:[#allocation2 + $0xb08] sm:$0xff] }
 0x6f3   : > { %3164 = vmatpush.msra.mxu1 %v8598_v37  ;;  %v8770_v37 = vld [vmem:[#allocation4 + $0x70] sm:$0xff]  ;;  %3096 = vmatpush.msra.mxu0 %v3077_v10 }
 0x6f4   : > { %v2540_v26 = vmul.f32 %v6271_v12, %v2532_v56  ;;  %10815 = vst [vmem:[#allocation15_spill] sm:$0xff] %v8770_v37 }
 0x6f5   : > { %3165 = vmatpush.msra.mxu1 %v8604_v21  ;;  %v8773_v21 = vld [vmem:[#allocation4 + $0x60] sm:$0xff]  ;;  %3097 = vmatpush.msra.mxu0 %v3076_v17 }
 0x6f6   : > { %v8721_v39 = vmul.f32 %v8678_v58, %v2540_v26  ;;  %10816 = vst [vmem:[#allocation16_spill] sm:$0xff] %v8773_v21  ;;  %v8776_v58 = vld [vmem:[#allocation4 + $0x50] sm:$0xff] }
 0x6f7   : > { %v6273_v38 = vpop.eup %6272  ;;  %10817 = vst [vmem:[#allocation17_spill] sm:$0xff] %v8776_v58  ;;  %3098 = vmatpush.msra.mxu0 %v3075_v57  ;;  %v8860_v57 = vld [vmem:[#allocation2 + $0x8c0] ss:$0 sm:$0xff] }
 0x6f8   : > { %v2525_v52 = vmul.f32 %v6273_v38, %v2507_v11  ;;  %2659 = vmatmul.f32.gmra.mxu1 %v8721_v39  ;;  %2783 = vmatmul.f32.gmra.mxu3 %v8721_v39  ;;  %v8818_v40 = vpop.f32.mrf.mxu2  ;;  %v3073_v11 = vld [vmem:[#allocation2 + $0xb00] sm:$0xff] }
 0x6f9   : > { %3099 = vmatpush.msra.mxu0 %v3074_v35  ;;  %v8862_v35 = vld [vmem:[#allocation2 + $0x7b0] ss:$0 sm:$0xff] }
 0x6fa   : > { %v2533_v31 = vsub.f32 2.0, %v2525_v52  ;;  %v3072_v52 = vld [vmem:[#allocation2 + $0xaf8] sm:$0xff] }
 0x6fb   : > { %3100 = vmatpush.msra.mxu0 %v3073_v11  ;;  %v8864_v11 = vld [vmem:[#allocation2 + $0x9d0] ss:$0 sm:$0xff] }
 0x6fc   : > { %v2541_v0 = vmul.f32 %v6273_v38, %v2533_v31  ;;  %v3071_v31 = vld [vmem:[#allocation2 + $0xaf0] sm:$0xff] }
 0x6fd   : > { %3101 = vmatpush.msra.mxu0 %v3072_v52 }
 0x6fe   : > { %v8730_v60 = vmul.f32 %v8681_v2, %v2541_v0  ;;  %v8781_v2 = vld [vmem:[#allocation4 + $0x40] sm:$0xff] }
 0x6ff   : > { %10818 = vst [vmem:[#allocation18_spill] sm:$0xff] %v8781_v2  ;;  %3102 = vmatpush.msra.mxu0 %v3071_v31 }
 0x700   : > { %2662 = vmatmul.f32.gmra.mxu1 %v8730_v60  ;;  %2786 = vmatmul.f32.gmra.mxu3 %v8730_v60 }
 0x701   : > { %3103 = vmatpush.msra.mxu0 %v3070_v18  ;;  %v2710_v18 = vadd.f32 %v8860_v57, %v8797_v54 }
 0x708   : > { %2897 = vmatmul.f32.vlgmr.msrb.gmra.mxu1 %v8685_v34  ;;  %3029 = vmatmul.f32.vlgmr.msra.gmra.mxu3 %v8685_v34  ;;  %v8784_v34 = vld [vmem:[#allocation4 + $0x30] sm:$0xff] }
 0x709   : > { %3650 = vmatpush.msrb.mxu1 %v8742_v30  ;;  %10819 = vst [vmem:[#allocation19_spill] sm:$0xff] %v8784_v34 }
 0x70b   : > { %3651 = vmatpush.msrb.mxu1 %v8745_v48 }
 0x70d   : > { %3652 = vmatpush.msrb.mxu1 %v8748_v8 }
 0x70f   : > { %3653 = vmatpush.msrb.mxu1 %v8753_v23 }
 0x710   : > { %2900 = vmatmul.f32.gmra.mxu1 %v8690_v43  ;;  %3032 = vmatmul.f32.gmra.mxu3 %v8690_v43  ;;  %v8787_v43 = vpop.f32.mrf.mxu0 }
 0x711   : > { %3654 = vmatpush.msrb.mxu1 %v8756_v51  ;;  %v2586_v20 = vadd.f32 %v8862_v35, %v8787_v43 }
 0x713   : > { %3655 = vmatpush.msrb.mxu1 %v8759_v27 }
 0x715   : > { %3656 = vmatpush.msrb.mxu1 %v8762_v50 }
 0x717   : > { %3657 = vmatpush.msrb.mxu1 %v8767_v59 }
 0x718   : > { %2903 = vmatmul.f32.gmra.mxu1 %v8695_v45  ;;  %3035 = vmatmul.f32.gmra.mxu3 %v8695_v45  ;;  %v8789_v45 = vld [vmem:[#allocation4 + $0x20] sm:$0xff]  ;;  %v8802_v47 = vpop.f32.mrf.mxu0 }
 0x719   : > { %3658 = vmatpush.msrb.mxu1 %v8770_v37  ;;  %10820 = vst [vmem:[#allocation20_spill] sm:$0xff] %v8789_v45  ;;  %v2589_v43 = vadd.f32 %v8862_v35, %v8802_v47 }
 0x71b   : > { %3659 = vmatpush.msrb.mxu1 %v8773_v21  ;;  %v2713_v21 = vadd.f32 %v8860_v57, %v8806_v63 }
 0x71d   : > { %3660 = vmatpush.msrb.mxu1 %v8776_v58 }
 0x71f   : > { %3661 = vmatpush.msrb.mxu1 %v8781_v2 }
 0x720   : > { %2906 = vmatmul.f32.gmra.mxu1 %v8700_v7  ;;  %3038 = vmatmul.f32.gmra.mxu3 %v8700_v7  ;;  %v8810_v7 = vpop.f32.mrf.mxu0 }
 0x721   : > { %3662 = vmatpush.msrb.mxu1 %v8784_v34  ;;  %v2592_v47 = vadd.f32 %v8862_v35, %v8810_v7 }
 0x723   : > { %3663 = vmatpush.msrb.mxu1 %v8789_v45 }
 0x725   : > { %3664 = vmatpush.msrb.mxu1 %v8792_v28 }
 0x727   : > { %3665 = vmatpush.msrb.mxu1 %v8799_v61  ;;  %v8873_v61 = vld [vmem:[#allocation2 + $0xae0] ss:$0 sm:$0xff] }
 0x728   : > { %2909 = vmatmul.f32.gmra.mxu1 %v8705_v49  ;;  %3041 = vmatmul.f32.gmra.mxu3 %v8705_v49  ;;  %v8816_v22 = vpop.f32.mrf.mxu0  ;;  %v8824_v49 = vpop.f32.mrf.mxu2 }
 0x730   : > { %2912 = vmatmul.f32.gmra.mxu1 %v8712_v15  ;;  %3044 = vmatmul.f32.gmra.mxu3 %v8712_v15  ;;  %v8820_v16 = vpop.f32.mrf.mxu0  ;;  %v8830_v9 = vpop.f32.mrf.mxu2 }
 0x738   : > { %2915 = vmatmul.f32.gmra.mxu1 %v8721_v39  ;;  %3047 = vmatmul.f32.gmra.mxu3 %v8721_v39  ;;  %v8828_v3 = vpop.f32.mrf.mxu0  ;;  %v8840_v39 = vpop.f32.mrf.mxu2 }
 0x740   : > { %2918 = vmatmul.f32.gmra.mxu1 %v8730_v60  ;;  %3050 = vmatmul.f32.gmra.mxu3 %v8730_v60  ;;  %v8836_v56 = vpop.f32.mrf.mxu0  ;;  %v8850_v29 = vpop.f32.mrf.mxu2 }
 0x745   : > { %v2642_v6 = vpop.f32.mrf.mxu1 }
 0x746   : > { %v2666_v42 = vmul.f32 %v2642_v6, %v2586_v20 }
 0x748   : > { %v8844_v0 = vpop.f32.mrf.mxu0  ;;  %v2973_v4 = vpop.f32.mrf.mxu2 }
 0x749   : > { %v2974_v2 = vadd.f32 %v8873_v61, %v2973_v4 }
 0x74b   : > { %v2766_v5 = vpop.f32.mrf.mxu3 }
 0x74c   : > { %v2790_v28 = vmul.f32 %v2766_v5, %v2710_v18  ;;  %v2719_v18 = vadd.f32 %v8860_v57, %v8818_v40 }
 0x74d   : > { %v8822_v41 = vpop.f32.mrf.mxu1 }
 0x74e   : > { %v2798_v58 = vadd.f32 %v2790_v28, %v2666_v42 }
 0x750   : > { %v2841_v25 = vpop.f32.mrf.mxu0  ;;  %v2976_v52 = vpop.f32.mrf.mxu2 }
 0x751   : > { %v2842_v1 = vadd.f32 %v8864_v11, %v2841_v25  ;;  %v2977_v42 = vadd.f32 %v8873_v61, %v2976_v52 }
 0x753   : > { %v2769_v44 = vpop.f32.mrf.mxu3 }
 0x754   : > { %v2791_v5 = vmul.f32 %v2769_v44, %v2713_v21 }
 0x755   : > { %v8826_v24 = vpop.f32.mrf.mxu1 }
 0x756   : > { %v2668_v44 = vmul.f32 %v8826_v24, %v2592_v47 }
 0x758   : > { %v2844_v17 = vpop.f32.mrf.mxu0  ;;  %v2979_v59 = vpop.f32.mrf.mxu2 }
 0x759   : > { %v2845_v25 = vadd.f32 %v8864_v11, %v2844_v17  ;;  %v2980_v17 = vadd.f32 %v8873_v61, %v2979_v59 }
 0x75b   : > { %v8832_v15 = vpop.f32.mrf.mxu3 }
 0x75d   : > { %v8834_v12 = vpop.f32.mrf.mxu1 }
 0x760   : > { %v2847_v34 = vpop.f32.mrf.mxu0 }
 0x763   : > { %v8838_v26 = vpop.f32.mrf.mxu3 }
 0x764   : > { %v2793_v24 = vmul.f32 %v8838_v26, %v2719_v18 }
 0x765   : > { %v8842_v38 = vpop.f32.mrf.mxu1 }
 0x768   : > { %v2850_v6 = vpop.f32.mrf.mxu0 }
 0x76b   : > { %v8846_v60 = vpop.f32.mrf.mxu3 }
 0x76d   : > { %v8848_v36 = vpop.f32.mrf.mxu1 }
 0x770   : > { %v2853_v7 = vpop.f32.mrf.mxu0 }
 0x771   : > { %v2854_v26 = vadd.f32 %v8864_v11, %v2853_v7 }
 0x773   : > { %v8852_v55 = vpop.f32.mrf.mxu3 }
 0x775   : > { %v8854_v13 = vpop.f32.mrf.mxu1 }
 0x77b   : > { %v8856_v19 = vpop.f32.mrf.mxu3 }
 0x77d   : > { %v8858_v10 = vpop.f32.mrf.mxu1 }
 0x783   : > { %v8866_v31 = vpop.f32.mrf.mxu3 }
 0x785   : > { %v2898_v53 = vpop.f32.mrf.mxu1 }
 0x786   : > { %v2922_v45 = vmul.f32 %v2898_v53, %v2842_v1  ;;  %v2667_v1 = vmul.f32 %v8822_v41, %v2589_v43  ;;  %v2982_v41 = vpop.f32.mrf.mxu2 }
 0x788   : > { %v2930_v54 = vadd.f32 %v2922_v45, %v2798_v58  ;;  %v2799_v28 = vadd.f32 %v2791_v5, %v2667_v1 }
 0x78b   : > { %v3030_v33 = vpop.f32.mrf.mxu3 }
 0x78c   : > { %v3054_v37 = vmul.f32 %v3030_v33, %v2974_v2  ;;  %v2716_v33 = vadd.f32 %v8860_v57, %v8812_v46 }
 0x78d   : > { %v2901_v50 = vpop.f32.mrf.mxu1 }
 0x78e   : > { %v3062_v20 = vadd.f32 %v3054_v37, %v2930_v54  ;;  %v2923_v53 = vmul.f32 %v2901_v50, %v2845_v25  ;;  %v2848_v37 = vadd.f32 %v8864_v11, %v2847_v34  ;;  %v2792_v21 = vmul.f32 %v8832_v15, %v2716_v33  ;;  %v2985_v1 = vpop.f32.mrf.mxu2 }
 0x78f   : > { %v2595_v34 = vadd.f32 %v8862_v35, %v8816_v22  ;;  %v2851_v15 = vadd.f32 %v8864_v11, %v2850_v6  ;;  %v2598_v6 = vadd.f32 %v8862_v35, %v8820_v16 }
 0x790   : > { %3104 = vmatmul.f32.vlgmr.msra.gmra.mxu0 %v3062_v20  ;;  %v2931_v58 = vadd.f32 %v2923_v53, %v2799_v28  ;;  %v2800_v52 = vadd.f32 %v2792_v21, %v2668_v44  ;;  %v2983_v53 = vadd.f32 %v8873_v61, %v2982_v41  ;;  %v2722_v28 = vadd.f32 %v8860_v57, %v8824_v49 }
 0x791   : > { %v2669_v20 = vmul.f32 %v8834_v12, %v2595_v34  ;;  %v2725_v41 = vadd.f32 %v8860_v57, %v8830_v9 }
 0x792   : > { %v2794_v12 = vmul.f32 %v8846_v60, %v2722_v28  ;;  %v2601_v60 = vadd.f32 %v8862_v35, %v8828_v3  ;;  %v2731_v28 = vadd.f32 %v8860_v57, %v8850_v29 }
 0x793   : > { %v3033_v63 = vpop.f32.mrf.mxu3  ;;  %v2801_v40 = vadd.f32 %v2793_v24, %v2669_v20 }
 0x794   : > { %v3055_v2 = vmul.f32 %v3033_v63, %v2977_v42 }
 0x795   : > { %v2904_v45 = vpop.f32.mrf.mxu1 }
 0x796   : > { %v3063_v50 = vadd.f32 %v3055_v2, %v2931_v58  ;;  %v2924_v4 = vmul.f32 %v2904_v45, %v2848_v37  ;;  %v2856_v2 = vpop.f32.mrf.mxu0  ;;  %v2670_v45 = vmul.f32 %v8842_v38, %v2598_v6  ;;  %v2986_v37 = vadd.f32 %v8873_v61, %v2985_v1  ;;  %v2988_v49 = vpop.f32.mrf.mxu2 }
 0x797   : > { %v2795_v38 = vmul.f32 %v8852_v55, %v2725_v41  ;;  %v2604_v55 = vadd.f32 %v8862_v35, %v8836_v56 }
 0x798   : > { %3107 = vmatmul.f32.gmra.mxu0 %v3063_v50  ;;  %v2932_v54 = vadd.f32 %v2924_v4, %v2800_v52  ;;  %v2802_v21 = vadd.f32 %v2794_v12, %v2670_v45 }
 0x79b   : > { %v3036_v46 = vpop.f32.mrf.mxu3 }
 0x79c   : > { %v3056_v43 = vmul.f32 %v3036_v46, %v2980_v17  ;;  %v2857_v17 = vadd.f32 %v8864_v11, %v2856_v2  ;;  %v2671_v46 = vmul.f32 %v8848_v36, %v2601_v60  ;;  %v10827_v60 = vld [vmem:[#allocation16_spill] sm:$0xff] }
 0x79d   : > { %v2907_v25 = vpop.f32.mrf.mxu1 }
 0x79e   : > { %v3064_v5 = vadd.f32 %v3056_v43, %v2932_v54  ;;  %v2925_v59 = vmul.f32 %v2907_v25, %v2851_v15  ;;  %v2859_v54 = vpop.f32.mrf.mxu0  ;;  %v2989_v43 = vadd.f32 %v8873_v61, %v2988_v49  ;;  %v2803_v7 = vadd.f32 %v2795_v38, %v2671_v46  ;;  %v2991_v3 = vpop.f32.mrf.mxu2  ;;  %v10829_v38 = vld [vmem:[#allocation17_spill] sm:$0xff]  ;;  %v10832_v46 = vld [vmem:[#allocation19_spill] sm:$0xff] }
 0x79f   : > { %v2728_v25 = vadd.f32 %v8860_v57, %v8840_v39 }
 0x7a0   : > { %3110 = vmatmul.f32.gmra.mxu0 %v3064_v5  ;;  %v2933_v63 = vadd.f32 %v2925_v59, %v2801_v40  ;;  %v2860_v5 = vadd.f32 %v8864_v11, %v2859_v54  ;;  %v2672_v59 = vmul.f32 %v8854_v13, %v2604_v55  ;;  %v2797_v13 = vmul.f32 %v8866_v31, %v2731_v28  ;;  %v10833_v54 = vld [vmem:[#allocation20_spill] sm:$0xff] }
 0x7a1   : > { %v2796_v36 = vmul.f32 %v8856_v19, %v2728_v25 }
 0x7a3   : > { %v3039_v42 = vpop.f32.mrf.mxu3  ;;  %v2804_v40 = vadd.f32 %v2796_v36, %v2672_v59  ;;  %v10840_v59 = vld [vmem:[#allocation10_spill] sm:$0xff] }
 0x7a4   : > { %v3057_v33 = vmul.f32 %v3039_v42, %v2983_v53  ;;  %v2992_v53 = vadd.f32 %v8873_v61, %v2991_v3 }
 0x7a5   : > { %v2910_v22 = vpop.f32.mrf.mxu1 }
 0x7a6   : > { %v3065_v58 = vadd.f32 %v3057_v33, %v2933_v63  ;;  %v2926_v47 = vmul.f32 %v2910_v22, %v2854_v26  ;;  %v2862_v39 = vpop.f32.mrf.mxu0  ;;  %v2607_v22 = vadd.f32 %v8862_v35, %v8844_v0  ;;  %v2994_v26 = vpop.f32.mrf.mxu2 }
 0x7a7   : > { %v2863_v19 = vadd.f32 %v8864_v11, %v2862_v39  ;;  %v2995_v2 = vadd.f32 %v8873_v61, %v2994_v26  ;;  %v6082_v11 = vld [vmem:[#allocation2 + $0xb70] ss:$0 sm:$0xff] }
 0x7a8   : > { %3113 = vmatmul.f32.gmra.mxu0 %v3065_v58  ;;  %v2934_v44 = vadd.f32 %v2926_v47, %v2802_v21  ;;  %v2673_v12 = vmul.f32 %v8858_v10, %v2607_v22  ;;  %v6081_v21 = vld [vmem:[#allocation2 + $0xb68] ss:$0 sm:$0xff] }
 0x7aa   : > { %v2805_v45 = vadd.f32 %v2797_v13, %v2673_v12  ;;  %v6508_v12 = vld [vmem:[#allocation4 + $0x1d0] sm:$0xff] }
 0x7ab   : > { %v3042_v50 = vpop.f32.mrf.mxu3 }
 0x7ac   : > { %v3058_v16 = vmul.f32 %v3042_v50, %v2986_v37 }
 0x7ad   : > { %v2913_v4 = vpop.f32.mrf.mxu1 }
 0x7ae   : > { %v3066_v52 = vadd.f32 %v3058_v16, %v2934_v44  ;;  %v2927_v18 = vmul.f32 %v2913_v4, %v2857_v17  ;;  %v10823_v16 = vld [vmem:[#allocation12_spill] sm:$0xff] }
 0x7b0   : > { %3116 = vmatmul.f32.gmra.mxu0 %v3066_v52  ;;  %v2935_v34 = vadd.f32 %v2927_v18, %v2803_v7 }
 0x7b3   : > { %v3045_v9 = vpop.f32.mrf.mxu3 }
 0x7b4   : > { %v3059_v15 = vmul.f32 %v3045_v9, %v2989_v43  ;;  %v10834_v43 = vld [vmem:[#allocation8_spill] sm:$0xff]  ;;  %v10835_v9 = vld [vmem:[#allocation21_spill] sm:$0xff] }
 0x7b5   : > { %v2916_v24 = vpop.f32.mrf.mxu1 }
 0x7b6   : > { %v3067_v20 = vadd.f32 %v3059_v15, %v2935_v34  ;;  %v2928_v1 = vmul.f32 %v2916_v24, %v2860_v5  ;;  %v10837_v34 = vld [vmem:[#allocation22_spill] sm:$0xff]  ;;  %v10838_v24 = vld [vmem:[#allocation9_spill] sm:$0xff] }
 0x7b8   : > { %3119 = vmatmul.f32.gmra.mxu0 %v3067_v20  ;;  %v2936_v63 = vadd.f32 %v2928_v1, %v2804_v40 }
 0x7bb   : > { %v3048_v42 = vpop.f32.mrf.mxu3 }
 0x7bc   : > { %v3060_v33 = vmul.f32 %v3048_v42, %v2992_v53  ;;  %v10842_v42 = vld [vmem:[#allocation11_spill] sm:$0xff] }
 0x7bd   : > { %v2919_v56 = vpop.f32.mrf.mxu1 }
 0x7be   : > { %v3068_v6 = vadd.f32 %v3060_v33, %v2936_v63  ;;  %v2929_v58 = vmul.f32 %v2919_v56, %v2863_v19  ;;  %v6506_v19 = vld [vmem:[#allocation4 + $0x1f0] sm:$0xff] }
 0x7c0   : > { %3122 = vmatmul.f32.gmra.mxu0 %v3068_v6  ;;  %v2937_v57 = vadd.f32 %v2929_v58, %v2805_v45  ;;  %v6507_v6 = vld [vmem:[#allocation4 + $0x1e0] sm:$0xff]  ;;  %v6510_v45 = vld [vmem:[#allocation4 + $0x1b0] sm:$0xff] }
 0x7c3   : > { %v3051_v29 = vpop.f32.mrf.mxu3 }
 0x7c4   : > { %v3061_v47 = vmul.f32 %v3051_v29, %v2995_v2  ;;  %v6509_v2 = vld [vmem:[#allocation4 + $0x1c0] sm:$0xff] }
 0x7c6   : > { %v3069_v37 = vadd.f32 %v3061_v47, %v2937_v57  ;;  %v6511_v57 = vld [vmem:[#allocation4 + $0x1a0] sm:$0xff] }
 0x7c8   : > { %3125 = vmatmul.f32.gmra.mxu0 %v3069_v37  ;;  %v6512_v37 = vld [vmem:[#allocation4 + $0x190] sm:$0xff] }
 0x80d   : > { %v3105_v0 = vpop.f32.mrf.mxu0 }
 0x80e   : > { %v3106_v35 = vadd.f32 %v6081_v21, %v3105_v0  ;;  %v6513_v0 = vld [vmem:[#allocation4 + $0x180] sm:$0xff] }
 0x810   : > { %v3129_v31 = vadd.f32 %v3106_v35, %v8332_v14  ;;  %v6514_v35 = vld [vmem:[#allocation4 + $0x170] sm:$0xff] }
 0x812   : > { %v8932_v49 = vmul.f32 %v6082_v11, %v3129_v31  ;;  %v6515_v31 = vld [vmem:[#allocation4 + $0x160] sm:$0xff] }
 0x814   : > { %3166 = vmatmul.f32.vlgmr.msra.gmra.mxu1 %v8932_v49 }
 0x815   : > { %v3108_v10 = vpop.f32.mrf.mxu0  ;;  %3846 = vmatpush.msra.mxu1 %v8742_v30 }
 0x816   : > { %v3109_v61 = vadd.f32 %v6081_v21, %v3108_v10 }
 0x817   : > { %3847 = vmatpush.msra.mxu1 %v8745_v48 }
 0x818   : > { %v3130_v50 = vadd.f32 %v3109_v61, %v8339_v32  ;;  %v10825_v32 = vld [vmem:[#allocation14_spill] sm:$0xff] }
 0x819   : > { %3848 = vmatpush.msra.mxu1 %v8748_v8  ;;  %v6516_v61 = vld [vmem:[#allocation4 + $0x150] sm:$0xff] }
 0x81a   : > { %v8939_v41 = vmul.f32 %v6082_v11, %v3130_v50 }
 0x81b   : > { %3849 = vmatpush.msra.mxu1 %v8753_v23  ;;  %v10826_v23 = vld [vmem:[#allocation15_spill] sm:$0xff] }
 0x81c   : > { %3169 = vmatmul.f32.gmra.mxu1 %v8939_v41 }
 0x81d   : > { %v3111_v14 = vpop.f32.mrf.mxu0  ;;  %3850 = vmatpush.msra.mxu1 %v8756_v51  ;;  %v10828_v51 = vld [vmem:[#allocation13_spill] sm:$0xff] }
 0x81e   : > { %v3112_v44 = vadd.f32 %v6081_v21, %v3111_v14  ;;  %v6517_v14 = vld [vmem:[#allocation4 + $0x140] sm:$0xff] }
 0x81f   : > { %3851 = vmatpush.msra.mxu1 %v8759_v27 }
 0x820   : > { %v3131_v30 = vadd.f32 %v3112_v44, %v8346_v62  ;;  %v10831_v62 = vld [vmem:[#allocation18_spill] sm:$0xff] }
 0x821   : > { %3852 = vmatpush.msra.mxu1 %v10823_v16  ;;  %v3553_v44 = vld [vmem:[#allocation4 + $0x430] sm:$0xff]  ;;  %v3551_v16 = vld [vmem:[#allocation4 + $0x420] sm:$0xff] }
 0x822   : > { %v8947_v48 = vmul.f32 %v6082_v11, %v3131_v30  ;;  %v3554_v30 = vld [vmem:[#allocation4 + $0x438] sm:$0xff]  ;;  %3562 = vmatpush.msrb.mxu3 %v3553_v44  ;;  %v9021_v44 = vld [vmem:[#allocation2 + $0xb78] ss:$0 sm:$0xff] }
 0x823   : > { %3853 = vmatpush.msra.mxu1 %v10825_v32  ;;  %3603 = vmatpush.msrb.mxu0 %v3554_v30  ;;  %v3552_v32 = vld [vmem:[#allocation4 + $0x428] sm:$0xff] }
 0x824   : > { %10824 = vst [vmem:[#allocation12_spill] sm:$0xff] %v8947_v48  ;;  %3172 = vmatmul.f32.gmra.mxu1 %v8947_v48  ;;  %3563 = vmatpush.msrb.mxu3 %v3551_v16 }
 0x825   : > { %v3114_v8 = vpop.f32.mrf.mxu0  ;;  %3854 = vmatpush.msra.mxu1 %v10826_v23  ;;  %3604 = vmatpush.msrb.mxu0 %v3552_v32  ;;  %v3531_v32 = vld [vmem:[#allocation4 + $0x380] sm:$0xff] }
 0x826   : > { %v3115_v4 = vadd.f32 %v6081_v21, %v3114_v8  ;;  %v6518_v8 = vld [vmem:[#allocation4 + $0x130] sm:$0xff] }
 0x827   : > { %3855 = vmatpush.msra.mxu1 %v10827_v60  ;;  %v6519_v60 = vld [vmem:[#allocation4 + $0x120] sm:$0xff] }
 0x828   : > { %v3132_v17 = vadd.f32 %v3115_v4, %v10828_v51 }
 0x829   : > { %3856 = vmatpush.msra.mxu1 %v10829_v38  ;;  %v6521_v38 = vld [vmem:[#allocation4 + $0x100] sm:$0xff] }
 0x82a   : > { %v8955_v27 = vmul.f32 %v6082_v11, %v3132_v17  ;;  %v6520_v17 = vld [vmem:[#allocation4 + $0x110] sm:$0xff] }
 0x82b   : > { %3857 = vmatpush.msra.mxu1 %v10831_v62 }
 0x82c   : > { %10830 = vst [vmem:[#allocation14_spill] sm:$0xff] %v8955_v27  ;;  %3175 = vmatmul.f32.gmra.mxu1 %v8955_v27 }
 0x82d   : > { %v3117_v52 = vpop.f32.mrf.mxu0  ;;  %3858 = vmatpush.msra.mxu1 %v10832_v46 }
 0x82e   : > { %v3118_v18 = vadd.f32 %v6081_v21, %v3117_v52 }
 0x82f   : > { %3859 = vmatpush.msra.mxu1 %v10833_v54 }
 0x830   : > { %v3133_v7 = vadd.f32 %v3118_v18, %v10834_v43 }
 0x831   : > { %3860 = vmatpush.msra.mxu1 %v10835_v9 }
 0x832   : > { %v8963_v25 = vmul.f32 %v6082_v11, %v3133_v7 }
 0x833   : > { %3861 = vmatpush.msra.mxu1 %v10837_v34 }
 0x834   : > { %10836 = vst [vmem:[#allocation15_spill] sm:$0xff] %v8963_v25  ;;  %3178 = vmatmul.f32.gmra.mxu1 %v8963_v25 }
 0x835   : > { %v3120_v15 = vpop.f32.mrf.mxu0 }
 0x836   : > { %v3121_v3 = vadd.f32 %v6081_v21, %v3120_v15  ;;  %v3549_v15 = vld [vmem:[#allocation4 + $0x410] sm:$0xff] }
 0x837   : > { %3564 = vmatpush.msrb.mxu3 %v3549_v15 }
 0x838   : > { %v3134_v55 = vadd.f32 %v3121_v3, %v10838_v24  ;;  %v3550_v3 = vld [vmem:[#allocation4 + $0x418] sm:$0xff]  ;;  %v3547_v24 = vld [vmem:[#allocation4 + $0x400] sm:$0xff] }
 0x839   : > { %3605 = vmatpush.msrb.mxu0 %v3550_v3  ;;  %3565 = vmatpush.msrb.mxu3 %v3547_v24 }
 0x83a   : > { %v8968_v5 = vmul.f32 %v6082_v11, %v3134_v55  ;;  %v3548_v55 = vld [vmem:[#allocation4 + $0x408] sm:$0xff] }
 0x83b   : > { %3606 = vmatpush.msrb.mxu0 %v3548_v55 }
 0x83c   : > { %10839 = vst [vmem:[#allocation16_spill] sm:$0xff] %v8968_v5  ;;  %3181 = vmatmul.f32.gmra.mxu1 %v8968_v5 }
 0x83d   : > { %v3123_v36 = vpop.f32.mrf.mxu0 }
 0x83e   : > { %v3124_v20 = vadd.f32 %v6081_v21, %v3123_v36  ;;  %v3545_v36 = vld [vmem:[#allocation4 + $0x3f0] sm:$0xff] }
 0x83f   : > { %3566 = vmatpush.msrb.mxu3 %v3545_v36  ;;  %v3525_v36 = vld [vmem:[#allocation4 + $0x350] sm:$0xff] }
 0x840   : > { %v3135_v1 = vadd.f32 %v3124_v20, %v10840_v59  ;;  %v3546_v20 = vld [vmem:[#allocation4 + $0x3f8] sm:$0xff]  ;;  %v3543_v59 = vld [vmem:[#allocation4 + $0x3e0] sm:$0xff] }
 0x841   : > { %3607 = vmatpush.msrb.mxu0 %v3546_v20  ;;  %3567 = vmatpush.msrb.mxu3 %v3543_v59  ;;  %v3526_v20 = vld [vmem:[#allocation4 + $0x358] sm:$0xff] }
 0x842   : > { %v8972_v53 = vmul.f32 %v6082_v11, %v3135_v1  ;;  %v3544_v1 = vld [vmem:[#allocation4 + $0x3e8] sm:$0xff] }
 0x843   : > { %3608 = vmatpush.msrb.mxu0 %v3544_v1 }
 0x844   : > { %10841 = vst [vmem:[#allocation13_spill] sm:$0xff] %v8972_v53  ;;  %3184 = vmatmul.f32.gmra.mxu1 %v8972_v53 }
 0x845   : > { %v3126_v40 = vpop.f32.mrf.mxu0 }
 0x846   : > { %v3127_v39 = vadd.f32 %v6081_v21, %v3126_v40 }
 0x848   : > { %v3136_v28 = vadd.f32 %v3127_v39, %v10842_v42  ;;  %v3541_v42 = vld [vmem:[#allocation4 + $0x3d0] sm:$0xff] }
 0x849   : > { %3568 = vmatpush.msrb.mxu3 %v3541_v42  ;;  %v3524_v42 = vld [vmem:[#allocation4 + $0x348] sm:$0xff] }
 0x84a   : > { %v8976_v63 = vmul.f32 %v6082_v11, %v3136_v28  ;;  %v3542_v28 = vld [vmem:[#allocation4 + $0x3d8] sm:$0xff] }
 0x84b   : > { %3609 = vmatpush.msrb.mxu0 %v3542_v28 }
 0x84c   : > { %10843 = vst [vmem:[#allocation17_spill] sm:$0xff] %v8976_v63  ;;  %3187 = vmatmul.f32.gmra.mxu1 %v8976_v63 }
 0x891   : > { %v3167_v33 = vpop.f32.mrf.mxu1 }
 0x892   : > { %v8980_v56 = vsub.f32 %v8932_v49, %v3167_v33  ;;  %v3539_v33 = vld [vmem:[#allocation4 + $0x3c0] sm:$0xff] }
 0x893   : > { %3569 = vmatpush.msrb.mxu3 %v3539_v33 }
 0x894   : > { %v3199_v22 = vmul.f32 %v8980_v56, %v8980_v56 }
 0x896   : > { %3223 = vmatmul.f32.vlgmr.msrb.gmra.mxu2 %v3199_v22  ;;  %v3540_v22 = vld [vmem:[#allocation4 + $0x3c8] sm:$0xff] }
 0x897   : > { %3887 = vmatpush.msrb.mxu2 %v6506_v19  ;;  %3610 = vmatpush.msrb.mxu0 %v3540_v22 }
 0x899   : > { %v3170_v13 = vpop.f32.mrf.mxu1  ;;  %3888 = vmatpush.msrb.mxu2 %v6507_v6 }
 0x89a   : > { %v8985_v26 = vsub.f32 %v8939_v41, %v3170_v13 }
 0x89b   : > { %3889 = vmatpush.msrb.mxu2 %v6508_v12 }
 0x89c   : > { %v3200_v58 = vmul.f32 %v8985_v26, %v8985_v26 }
 0x89d   : > { %3890 = vmatpush.msrb.mxu2 %v6509_v2  ;;  %v3537_v2 = vld [vmem:[#allocation4 + $0x3b0] sm:$0xff] }
 0x89e   : > { %3226 = vmatmul.f32.gmra.mxu2 %v3200_v58  ;;  %3570 = vmatpush.msrb.mxu3 %v3537_v2  ;;  %v9047_v2 = vld [vmem:[#allocation4 + $0xe8] sm:$0xff] }
 0x89f   : > { %3891 = vmatpush.msrb.mxu2 %v6510_v45  ;;  %v3538_v45 = vld [vmem:[#allocation4 + $0x3b8] sm:$0xff] }
 0x8a0   : > { %3611 = vmatpush.msrb.mxu0 %v3538_v45 }
 0x8a1   : > { %v3173_v29 = vpop.f32.mrf.mxu1  ;;  %3892 = vmatpush.msrb.mxu2 %v6511_v57  ;;  %v3536_v57 = vld [vmem:[#allocation4 + $0x3a8] sm:$0xff] }
 0x8a2   : > { %v8990_v47 = vsub.f32 %v8947_v48, %v3173_v29  ;;  %v3535_v29 = vld [vmem:[#allocation4 + $0x3a0] sm:$0xff]  ;;  %3612 = vmatpush.msrb.mxu0 %v3536_v57 }
 0x8a3   : > { %3893 = vmatpush.msrb.mxu2 %v6512_v37  ;;  %3571 = vmatpush.msrb.mxu3 %v3535_v29 }
 0x8a4   : > { %v3201_v21 = vmul.f32 %v8990_v47, %v8990_v47 }
 0x8a5   : > { %3894 = vmatpush.msrb.mxu2 %v6513_v0 }
 0x8a6   : > { %3229 = vmatmul.f32.gmra.mxu2 %v3201_v21 }
 0x8a7   : > { %3895 = vmatpush.msrb.mxu2 %v6514_v35 }
 0x8a9   : > { %v3176_v11 = vpop.f32.mrf.mxu1  ;;  %3896 = vmatpush.msrb.mxu2 %v6515_v31 }
 0x8aa   : > { %v8995_v10 = vsub.f32 %v8955_v27, %v3176_v11 }
 0x8ab   : > { %3897 = vmatpush.msrb.mxu2 %v6516_v61 }
 0x8ac   : > { %v3202_v50 = vmul.f32 %v8995_v10, %v8995_v10 }
 0x8ad   : > { %3898 = vmatpush.msrb.mxu2 %v6517_v14  ;;  %v3534_v14 = vld [vmem:[#allocation4 + $0x398] sm:$0xff] }
 0x8ae   : > { %3232 = vmatmul.f32.gmra.mxu2 %v3202_v50  ;;  %v3533_v50 = vld [vmem:[#allocation4 + $0x390] sm:$0xff]  ;;  %3613 = vmatpush.msrb.mxu0 %v3534_v14  ;;  %v9073_v14 = vld [vmem:[#allocation4 + $0x1c8] sm:$0xff] }
 0x8af   : > { %3899 = vmatpush.msrb.mxu2 %v6518_v8  ;;  %3572 = vmatpush.msrb.mxu3 %v3533_v50  ;;  %v3532_v8 = vld [vmem:[#allocation4 + $0x388] sm:$0xff] }
 0x8b0   : > { %3614 = vmatpush.msrb.mxu0 %v3532_v8 }
 0x8b1   : > { %v3179_v23 = vpop.f32.mrf.mxu1  ;;  %3900 = vmatpush.msrb.mxu2 %v6519_v60  ;;  %3573 = vmatpush.msrb.mxu3 %v3531_v32  ;;  %v9025_v60 = vld [vmem:[#allocation2 + $0xb80] ss:$0 sm:$0xff] }
 0x8b2   : > { %v9000_v4 = vsub.f32 %v8963_v25, %v3179_v23  ;;  %v9212_v25 = vld [vmem:[#allocation4 + $0x118] sm:$0xff] }
 0x8b3   : > { %3901 = vmatpush.msrb.mxu2 %v6520_v17  ;;  %v3529_v17 = vld [vmem:[#allocation4 + $0x370] sm:$0xff] }
 0x8b4   : > { %v3203_v51 = vmul.f32 %v9000_v4, %v9000_v4  ;;  %3574 = vmatpush.msrb.mxu3 %v3529_v17  ;;  %v9082_v17 = vld [vmem:[#allocation4 + $0x1b8] sm:$0xff] }
 0x8b5   : > { %3902 = vmatpush.msrb.mxu2 %v6521_v38  ;;  %v3530_v38 = vld [vmem:[#allocation4 + $0x378] sm:$0xff] }
 0x8b6   : > { %3235 = vmatmul.f32.gmra.mxu2 %v3203_v51  ;;  %3615 = vmatpush.msrb.mxu0 %v3530_v38 }
 0x8b9   : > { %v3182_v62 = vpop.f32.mrf.mxu1 }
 0x8ba   : > { %v9005_v52 = vsub.f32 %v8968_v5, %v3182_v62 }
 0x8bc   : > { %v3204_v46 = vmul.f32 %v9005_v52, %v9005_v52 }
 0x8be   : > { %3238 = vmatmul.f32.gmra.mxu2 %v3204_v46  ;;  %v9028_v46 = vld [vmem:[#allocation2 + $0xb88] ss:$0 sm:$0xff] }
 0x8c1   : > { %v3185_v18 = vpop.f32.mrf.mxu1 }
 0x8c2   : > { %v9010_v54 = vsub.f32 %v8972_v53, %v3185_v18 }
 0x8c4   : > { %v3205_v43 = vmul.f32 %v9010_v54, %v9010_v54 }
 0x8c6   : > { %3241 = vmatmul.f32.gmra.mxu2 %v3205_v43 }
 0x8c9   : > { %v3188_v7 = vpop.f32.mrf.mxu1 }
 0x8ca   : > { %v9015_v9 = vsub.f32 %v8976_v63, %v3188_v7  ;;  %v3527_v7 = vld [vmem:[#allocation4 + $0x360] sm:$0xff] }
 0x8cb   : > { %3575 = vmatpush.msrb.mxu3 %v3527_v7 }
 0x8cc   : > { %v3206_v34 = vmul.f32 %v9015_v9, %v9015_v9 }
 0x8cd   : > { %3576 = vmatpush.msrb.mxu3 %v3525_v36  ;;  %v9103_v36 = vld [vmem:[#allocation4 + $0x98] sm:$0xff] }
 0x8ce   : > { %3244 = vmatmul.f32.gmra.mxu2 %v3206_v34  ;;  %v3528_v34 = vld [vmem:[#allocation4 + $0x368] sm:$0xff] }
 0x8cf   : > { %3616 = vmatpush.msrb.mxu0 %v3528_v34 }
 0x8d1   : > { %3617 = vmatpush.msrb.mxu0 %v3526_v20  ;;  %v9106_v20 = vld [vmem:[#allocation4 + $0x198] sm:$0xff] }
 0x8d3   : > { %3618 = vmatpush.msrb.mxu0 %v3524_v42 }
 0x919   : > { %v3224_v40 = vpop.f32.mrf.mxu2 }
 0x91a   : > { %v3225_v39 = vadd.f32 1e-05, %v3224_v40 }
 0x91c   : > { %6274 = vrsqrt.f32 %v3225_v39  ;;  %vm3254_vm8 = vweird.f32 %v3225_v39 }
 0x921   : > { %v3227_v19 = vpop.f32.mrf.mxu2 }
 0x922   : > { %v6275_v13 = vpop.eup %6274  ;;  %v3228_v6 = vadd.f32 1e-05, %v3227_v19  ;;  %v9040_v19 = vld [vmem:[#allocation4 + $0xf8] sm:$0xff] }
 0x923   : > { %v3249_v12 = vmul.f32 %v6275_v13, %v3225_v39  ;;  %vm3255_vm6 = vweird.f32 %v6275_v13  ;;  %v3523_v39 = vld [vmem:[#allocation4 + $0x340] sm:$0xff] }
 0x924   : > { %6276 = vrsqrt.f32 %v3228_v6  ;;  %vm3256_vm2 = vmor %vm3254_vm8, %vm3255_vm6  ;;  %vm3264_vm11 = vweird.f32 %v3228_v6  ;;  %3577 = vmatpush.msrb.mxu3 %v3523_v39  ;;  %v9117_v39 = vld [vmem:[#allocation4 + $0x188] sm:$0xff] }
 0x925   : > { %v3250_v58 = vmul.f32 %v6275_v13, %v3249_v12 }
 0x926   : > { %3732 = vmatpush.msra.mxu3 %v9040_v19 }
 0x927   : > { %v3251_v37 = vmul.f32 0.5, %v3250_v58 }
 0x928   : > { %3733 = vmatpush.msra.mxu3 %v9047_v2 }
 0x929   : > { %v3252_v21 = vsub.f32 1.5, %v3251_v37  ;;  %v3230_v0 = vpop.f32.mrf.mxu2 }
 0x92a   : > { %v6277_v35 = vpop.eup %6276  ;;  %v9019_v11 = vadd.f32 1e-05, %v3230_v0  ;;  %v9060_v0 = vld [vmem:[#allocation4 + $0xd8] sm:$0xff] }
 0x92b   : > { %v3253_v31 = vmul.f32 %v6275_v13, %v3252_v21  ;;  %v3259_v61 = vmul.f32 %v6277_v35, %v3228_v6  ;;  %vm3265_vm9 = vweird.f32 %v6277_v35  ;;  %3734 = vmatpush.msra.mxu3 %v9060_v0 }
 0x92c   : > { %6278 = vrsqrt.f32 %v9019_v11  ;;  %vm3266_vm5 = vmor %vm3264_vm11, %vm3265_vm9  ;;  %vm3274_vm14 = vweird.f32 %v9019_v11 }
 0x92d   : > { %v3257_v30 = vsel %vm3256_vm2, %v6275_v13, %v3253_v31  ;;  %v3260_v16 = vmul.f32 %v6277_v35, %v3259_v61  ;;  %v9043_v13 = vld [vmem:[#allocation4 + $0x1f8] sm:$0xff] }
 0x92e   : > { %v3328_v23 = vmul.f32 %v3257_v30, %v8980_v56  ;;  %3773 = vmatpush.msra.mxu0 %v9043_v13 }
 0x92f   : > { %v3261_v51 = vmul.f32 0.5, %v3260_v16 }
 0x930   : > { %v3337_v62 = vmul.f32 %v9021_v44, %v3328_v23 }
 0x931   : > { %v3262_v18 = vsub.f32 1.5, %v3261_v51  ;;  %v3233_v43 = vpop.f32.mrf.mxu2  ;;  %v9079_v51 = vld [vmem:[#allocation4 + $0xb8] sm:$0xff] }
 0x932   : > { %v6279_v15 = vpop.eup %6278  ;;  %v9030_v56 = vadd.f32 1e-05, %v3233_v43  ;;  %v9033_v3 = vadd.f32 %v9025_v60, %v3337_v62  ;;  %v9090_v43 = vld [vmem:[#allocation4 + $0x1a8] sm:$0xff] }
 0x933   : > { %v3263_v24 = vmul.f32 %v6277_v35, %v3262_v18  ;;  %v3269_v55 = vmul.f32 %v6279_v15, %v9019_v11  ;;  %vm3275_vm12 = vweird.f32 %v6279_v15  ;;  %v9070_v11 = vld [vmem:[#allocation4 + $0xc8] sm:$0xff] }
 0x934   : > { %6280 = vrsqrt.f32 %v9030_v56  ;;  %v3355_v59 = vmul.f32 %v9028_v46, %v9033_v3  ;;  %vm3276_vm1 = vmor %vm3274_vm14, %vm3275_vm12  ;;  %3735 = vmatpush.msra.mxu3 %v9070_v11  ;;  %vm3284_vm13 = vweird.f32 %v9030_v56 }
 0x935   : > { %v3267_v1 = vsel %vm3266_vm5, %v6277_v35, %v3263_v24  ;;  %v3270_v40 = vmul.f32 %v6279_v15, %v3269_v55  ;;  %v9063_v35 = vld [vmem:[#allocation4 + $0x1d8] sm:$0xff] }
 0x936   : > { %v5977_v28 = vmul.f32 -1.442695, %v3355_v59  ;;  %v3329_v33 = vmul.f32 %v3267_v1, %v8985_v26  ;;  %v9050_v26 = vld [vmem:[#allocation4 + $0x1e8] sm:$0xff]  ;;  %3736 = vmatpush.msra.mxu3 %v9079_v51 }
 0x937   : > { %v3271_v22 = vmul.f32 0.5, %v3270_v40  ;;  %3774 = vmatpush.msra.mxu0 %v9050_v26  ;;  %v9114_v40 = vld [vmem:[#allocation4 + $0x88] sm:$0xff] }
 0x938   : > { %6282 = vpow2.f32 %v5977_v28  ;;  %v3338_v6 = vmul.f32 %v9021_v44, %v3329_v33 }
 0x939   : > { %v3272_v12 = vsub.f32 1.5, %v3271_v22  ;;  %v3236_v58 = vpop.f32.mrf.mxu2  ;;  %3775 = vmatpush.msra.mxu0 %v9063_v35 }
 0x93a   : > { %v6281_v45 = vpop.eup %6280  ;;  %v9053_v29 = vadd.f32 1e-05, %v3236_v58  ;;  %v9056_v57 = vadd.f32 %v9025_v60, %v3338_v6  ;;  %v9125_v58 = vld [vmem:[#allocation4 + $0x78] sm:$0xff] }
 0x93b   : > { %v3273_v37 = vmul.f32 %v6279_v15, %v3272_v12  ;;  %v3279_v21 = vmul.f32 %v6281_v45, %v9030_v56  ;;  %3776 = vmatpush.msra.mxu0 %v9073_v14  ;;  %vm3285_vm7 = vweird.f32 %v6281_v45 }
 0x93c   : > { %6284 = vrsqrt.f32 %v9053_v29  ;;  %v3356_v31 = vmul.f32 %v9028_v46, %v9056_v57  ;;  %vm3286_vm0 = vmor %vm3284_vm13, %vm3285_vm7  ;;  %vm3294_vm4 = vweird.f32 %v9053_v29 }
 0x93d   : > { %v3277_v61 = vsel %vm3276_vm1, %v6279_v15, %v3273_v37  ;;  %v3280_v50 = vmul.f32 %v6281_v45, %v3279_v21  ;;  %3777 = vmatpush.msra.mxu0 %v9082_v17 }
 0x93e   : > { %v6283_v30 = vpop.eup %6282  ;;  %v5978_v16 = vmul.f32 -1.442695, %v3356_v31  ;;  %v3330_v32 = vmul.f32 %v3277_v61, %v8990_v47  ;;  %v9087_v47 = vld [vmem:[#allocation4 + $0xa8] sm:$0xff] }
 0x93f   : > { %v3281_v8 = vmul.f32 0.5, %v3280_v50  ;;  %v9077_v23 = vadd.f32 1.0, %v6283_v30  ;;  %3737 = vmatpush.msra.mxu3 %v9087_v47  ;;  %3778 = vmatpush.msra.mxu0 %v9090_v43  ;;  %v9136_v61 = vld [vmem:[#allocation4 + $0x68] sm:$0xff] }
 0x940   : > { %6286 = vpow2.f32 %v5978_v16  ;;  %v3339_v38 = vmul.f32 %v9021_v44, %v3330_v32  ;;  %v9139_v50 = vld [vmem:[#allocation4 + $0x168] sm:$0xff] }
 0x941   : > { %v3282_v62 = vsub.f32 1.5, %v3281_v8  ;;  %v3239_v18 = vpop.f32.mrf.mxu2  ;;  %6288 = vrcp.f32 %v9077_v23  ;;  %3738 = vmatpush.msra.mxu3 %v9103_v36  ;;  %3779 = vmatpush.msra.mxu0 %v9106_v20  ;;  %vm3400_vm6 = vweird.f32 %v9077_v23 }
 0x942   : > { %v9093_v7 = vpop.eup %6284  ;;  %v9095_v34 = vadd.f32 1e-05, %v3239_v18  ;;  %v9098_v15 = vadd.f32 %v9025_v60, %v3339_v38  ;;  %v3404_v18 = vand.u32 2147483647, %v9077_v23 }
 0x943   : > { %v3283_v24 = vmul.f32 %v6281_v45, %v3282_v62  ;;  %v3289_v55 = vmul.f32 %v9093_v7, %v9053_v29  ;;  %3739 = vmatpush.msra.mxu3 %v9114_v40  ;;  %3780 = vmatpush.msra.mxu0 %v9117_v39  ;;  %vm3295_vm15 = vweird.f32 %v9093_v7  ;;  %v9158_v29 = vld [vmem:[#allocation4 + $0x158] sm:$0xff] }
 0x944   : > { %6290 = vrsqrt.f32 %v9095_v34  ;;  %v3357_v59 = vmul.f32 %v9028_v46, %v9098_v15  ;;  %vm3296_vm10 = vmor %vm3294_vm4, %vm3295_vm15  ;;  %vm3405_vm2 = vcmp.eq.f32.partialorder %v3404_v18, 8.507059e+37  ;;  %vm3304_vm9 = vweird.f32 %v9095_v34 }
 0x945   : > { %v3287_v1 = vsel %vm3286_vm0, %v6281_v45, %v3283_v24  ;;  %v3290_v56 = vmul.f32 %v9093_v7, %v3289_v55  ;;  %3740 = vmatpush.msra.mxu3 %v9125_v58  ;;  %v9128_v45 = vld [vmem:[#allocation4 + $0x178] sm:$0xff]  ;;  %v3406_v24 = vand.u32 2147483648, %v9077_v23 }
 0x946   : > { %v6287_v42 = vpop.eup %6286  ;;  %v5979_v28 = vmul.f32 -1.442695, %v3357_v59  ;;  %v3331_v33 = vmul.f32 %v3287_v1, %v8995_v10  ;;  %3781 = vmatpush.msra.mxu0 %v9128_v45  ;;  %v9155_v55 = vld [vmem:[#allocation4 + $0x58] sm:$0xff] }
 0x947   : > { %v9121_v22 = vpop.eup %6288  ;;  %v3291_v6 = vmul.f32 0.5, %v3290_v56  ;;  %v9123_v12 = vadd.f32 1.0, %v6287_v42  ;;  %3741 = vmatpush.msra.mxu3 %v9136_v61 }
 0x948   : > { %v3396_v37 = vmul.f32 %v9121_v22, %v9077_v23  ;;  %6292 = vpow2.f32 %v5979_v28  ;;  %v3340_v21 = vmul.f32 %v9021_v44, %v3331_v33  ;;  %3782 = vmatpush.msra.mxu0 %v9139_v50  ;;  %vm3401_vm3 = vweird.f32 %v9121_v22  ;;  %v9170_v28 = vld [vmem:[#allocation4 + $0x48] sm:$0xff] }
 0x949   : > { %v3292_v10 = vsub.f32 1.5, %v3291_v6  ;;  %v3242_v31 = vpop.f32.mrf.mxu2  ;;  %6294 = vrcp.f32 %v9123_v12  ;;  %3742 = vmatpush.msra.mxu3 %v9155_v55  ;;  %v9173_v33 = vld [vmem:[#allocation4 + $0x148] sm:$0xff]  ;;  %vm3402_vm8 = vmor %vm3400_vm6, %vm3401_vm3  ;;  %v3419_v53 = vand.u32 2147483647, %v9123_v12  ;;  %v3421_v5 = vand.u32 2147483648, %v9123_v12 }
 0x94a   : > { %v9142_v30 = vpop.eup %6290  ;;  %v9145_v16 = vadd.f32 1e-05, %v3242_v31  ;;  %v3397_v32 = vsub.f32 1.0, %v3396_v37  ;;  %v9148_v8 = vadd.f32 %v9025_v60, %v3340_v21  ;;  %3783 = vmatpush.msra.mxu0 %v9158_v29  ;;  %v3407_v31 = vor.u32 1.1754944e-38, %v3406_v24 }
 0x94b   : > { %v3293_v38 = vmul.f32 %v9093_v7, %v3292_v10  ;;  %v3299_v62 = vmul.f32 %v9142_v30, %v9095_v34  ;;  %3743 = vmatpush.msra.mxu3 %v9170_v28  ;;  %vm3305_vm11 = vweird.f32 %v9142_v30  ;;  %v9233_v34 = vld [vmem:[#allocation4 + $0x108] sm:$0xff]  ;;  %vm3415_vm14 = vweird.f32 %v9123_v12 }
 0x94c   : > { %6296 = vrsqrt.f32 %v9145_v16  ;;  %v3398_v59 = vmul.f32 %v9121_v22, %v3397_v32  ;;  %v3358_v42 = vmul.f32 %v9028_v46, %v9148_v8  ;;  %3784 = vmatpush.msra.mxu0 %v9173_v33  ;;  %vm9222_vm5 = vmor %vm3304_vm9, %vm3305_vm11  ;;  %vm3420_vm7 = vcmp.eq.f32.partialorder %v3419_v53, 8.507059e+37 }
 0x94d   : > { %v3297_v1 = vsel %vm3296_vm10, %v9093_v7, %v3293_v38  ;;  %v3300_v56 = vmul.f32 %v9142_v30, %v3299_v62  ;;  %v9183_v38 = vld [vmem:[#allocation4 + $0x38] sm:$0xff]  ;;  %vm3314_vm13 = vweird.f32 %v9145_v16 }
 0x94e   : > { %v6293_v6 = vpop.eup %6292  ;;  %v3399_v37 = vadd.f32 %v9121_v22, %v3398_v59  ;;  %v3332_v7 = vmul.f32 %v3297_v1, %v9000_v4  ;;  %3744 = vmatpush.msra.mxu3 %v9183_v38  ;;  %v9186_v62 = vld [vmem:[#allocation4 + $0x138] sm:$0xff]  ;;  %v5980_v1 = vmul.f32 -1.442695, %v3358_v42 }
 0x94f   : > { %v9179_v21 = vpop.eup %6294  ;;  %v3301_v10 = vmul.f32 0.5, %v3300_v56  ;;  %v9181_v32 = vadd.f32 1.0, %v6293_v6  ;;  %3785 = vmatpush.msra.mxu0 %v9186_v62  ;;  %v9195_v56 = vld [vmem:[#allocation4 + $0x28] sm:$0xff] }
 0x950   : > { %v3403_v4 = vsel %vm3402_vm8, %v9121_v22, %v3399_v37  ;;  %v3411_v23 = vmul.f32 %v9179_v21, %v9123_v12  ;;  %3745 = vmatpush.msra.mxu3 %v9195_v56  ;;  %v9198_v6 = vld [vmem:[#allocation4 + $0x128] sm:$0xff]  ;;  %vm3416_vm12 = vweird.f32 %v9179_v21 }
 0x951   : > { %v3302_v18 = vsub.f32 1.5, %v3301_v10  ;;  %v3245_v24 = vpop.f32.mrf.mxu2  ;;  %v3408_v59 = vsel %vm3405_vm2, %v3407_v31, %v3403_v4  ;;  %6298 = vrcp.f32 %v9181_v32  ;;  %3786 = vmatpush.msra.mxu0 %v9198_v6  ;;  %v3341_v31 = vmul.f32 %v9021_v44, %v3332_v7  ;;  %vm3417_vm1 = vmor %vm3415_vm14, %vm3416_vm12 }
 0x952   : > { %v9201_v63 = vpop.eup %6296  ;;  %v9203_v22 = vadd.f32 1e-05, %v3245_v24  ;;  %v3515_v37 = vmul.f32 %v3408_v59, %v9033_v3  ;;  %v3412_v10 = vsub.f32 1.0, %v3411_v23  ;;  %v9215_v24 = vld [vmem:[#allocation4 + $0x18] sm:$0xff]  ;;  %v9236_v59 = vld [vmem:[#allocation4 + $0x8] sm:$0xff]  ;;  %vm3430_vm10 = vweird.f32 %v9181_v32 }
 0x953   : > { %v3303_v4 = vmul.f32 %v9142_v30, %v3302_v18  ;;  %v3309_v42 = vmul.f32 %v9201_v63, %v9145_v16  ;;  %3787 = vmatpush.msra.mxu0 %v9212_v25  ;;  %3746 = vmatpush.msra.mxu3 %v9215_v24  ;;  %vm3315_vm0 = vweird.f32 %v9201_v63 }
 0x954   : > { %6300 = vrsqrt.f32 %v9203_v22  ;;  %3578 = vmatmul.f32.vlgmr.msrb.gmra.mxu3 %v3515_v37  ;;  %3619 = vmatmul.f32.vlgmr.msrb.gmra.mxu0 %v3515_v37  ;;  %v3413_v7 = vmul.f32 %v9179_v21, %v3412_v10  ;;  %v9242_v10 = vadd.f32 %v9025_v60, %v3341_v31  ;;  %vm9275_vm15 = vmor %vm3314_vm13, %vm3315_vm0  ;;  %vm3324_vm2 = vweird.f32 %v9203_v22 }
 0x955   : > { %v3307_v23 = vsel %vm9222_vm5, %v9142_v30, %v3303_v4  ;;  %v3310_v18 = vmul.f32 %v9201_v63, %v3309_v42  ;;  %6302 = vpow2.f32 %v5980_v1  ;;  %3788 = vmatpush.msra.mxu0 %v9233_v34  ;;  %3747 = vmatpush.msra.mxu3 %v9236_v59  ;;  %v3422_v42 = vor.u32 1.1754944e-38, %v3421_v5 }
 0x956   : > { %v3414_v37 = vadd.f32 %v9179_v21, %v3413_v7  ;;  %v3333_v30 = vmul.f32 %v3307_v23, %v9005_v52  ;;  %v3359_v52 = vmul.f32 %v9028_v46, %v9242_v10  ;;  %v3434_v7 = vand.u32 2147483647, %v9181_v32 }
 0x957   : > { %3928 = vmatpush.msrb.mxu3 %v9040_v19  ;;  %3969 = vmatpush.msrb.mxu0 %v9043_v13  ;;  %v6299_v1 = vpop.eup %6298  ;;  %v3311_v4 = vmul.f32 0.5, %v3310_v18 }
 0x958   : > { %v3418_v12 = vsel %vm3417_vm1, %v9179_v21, %v3414_v37  ;;  %v3426_v31 = vmul.f32 %v6299_v1, %v9181_v32  ;;  %v3342_v53 = vmul.f32 %v9021_v44, %v3333_v30  ;;  %v5981_v23 = vmul.f32 -1.442695, %v3359_v52 }
 0x959   : > { %3929 = vmatpush.msrb.mxu3 %v9047_v2  ;;  %3970 = vmatpush.msrb.mxu0 %v9050_v26  ;;  %v3312_v19 = vsub.f32 1.5, %v3311_v4  ;;  %v3423_v13 = vsel %vm3420_vm7, %v3422_v42, %v3418_v12  ;;  %v3436_v37 = vand.u32 2147483648, %v9181_v32  ;;  %vm3431_vm4 = vweird.f32 %v6299_v1 }
 0x95a   : > { %v9258_v5 = vpop.eup %6300  ;;  %v3516_v3 = vmul.f32 %v3423_v13, %v9056_v57  ;;  %v3427_v21 = vsub.f32 1.0, %v3426_v31  ;;  %v9269_v30 = vadd.f32 %v9025_v60, %v3342_v53  ;;  %6304 = vpow2.f32 %v5981_v23  ;;  %vm3432_vm3 = vmor %vm3430_vm10, %vm3431_vm4 }
 0x95b   : > { %3930 = vmatpush.msrb.mxu3 %v9060_v0  ;;  %3971 = vmatpush.msrb.mxu0 %v9063_v35  ;;  %v6303_v2 = vpop.eup %6302  ;;  %v3313_v26 = vmul.f32 %v9201_v63, %v3312_v19  ;;  %v3319_v18 = vmul.f32 %v9258_v5, %v9203_v22  ;;  %v3437_v52 = vor.u32 1.1754944e-38, %v3436_v37  ;;  %vm3435_vm6 = vcmp.eq.f32.partialorder %v3434_v7, 8.507059e+37 }
 0x95c   : > { %3581 = vmatmul.f32.gmra.mxu3 %v3516_v3  ;;  %3622 = vmatmul.f32.gmra.mxu0 %v3516_v3  ;;  %v3428_v0 = vmul.f32 %v6299_v1, %v3427_v21  ;;  %v9279_v35 = vadd.f32 1.0, %v6303_v2  ;;  %v3360_v16 = vmul.f32 %v9028_v46, %v9269_v30  ;;  %vm3325_vm8 = vweird.f32 %v9258_v5 }
 0x95d   : > { %v3317_v4 = vsel %vm9275_vm15, %v9201_v63, %v3313_v26  ;;  %v3320_v42 = vmul.f32 %v9258_v5, %v3319_v18  ;;  %3931 = vmatpush.msrb.mxu3 %v9070_v11  ;;  %3972 = vmatpush.msrb.mxu0 %v9073_v14  ;;  %vm3326_vm9 = vmor %vm3324_vm2, %vm3325_vm8 }
 0x95e   : > { %v3429_v12 = vadd.f32 %v6299_v1, %v3428_v0  ;;  %6306 = vrcp.f32 %v9279_v35  ;;  %v5982_v19 = vmul.f32 -1.442695, %v3360_v16  ;;  %v3334_v63 = vmul.f32 %v3317_v4, %v9010_v54 }
 0x95f   : > { %v3321_v31 = vmul.f32 0.5, %v3320_v42  ;;  %3932 = vmatpush.msrb.mxu3 %v9079_v51  ;;  %3973 = vmatpush.msrb.mxu0 %v9082_v17  ;;  %vm3445_vm5 = vweird.f32 %v9279_v35 }
 0x960   : > { %v3433_v13 = vsel %vm3432_vm3, %v6299_v1, %v3429_v12  ;;  %6308 = vpow2.f32 %v5982_v19  ;;  %v6305_v32 = vpop.eup %6304  ;;  %v3343_v54 = vmul.f32 %v9021_v44, %v3334_v63 }
 0x961   : > { %v3322_v11 = vsub.f32 1.5, %v3321_v31  ;;  %v3438_v14 = vsel %vm3435_vm6, %v3437_v52, %v3433_v13  ;;  %3933 = vmatpush.msrb.mxu3 %v9087_v47  ;;  %3974 = vmatpush.msrb.mxu0 %v9090_v43  ;;  %v9301_v17 = vadd.f32 1.0, %v6305_v32 }
 0x962   : > { %v3517_v53 = vmul.f32 %v3438_v14, %v9098_v15  ;;  %v9306_v47 = vadd.f32 %v9025_v60, %v3343_v54 }
 0x963   : > { %v3323_v51 = vmul.f32 %v9258_v5, %v3322_v11  ;;  %3934 = vmatpush.msrb.mxu3 %v9103_v36  ;;  %3975 = vmatpush.msrb.mxu0 %v9106_v20  ;;  %6310 = vrcp.f32 %v9301_v17  ;;  %vm3460_vm7 = vweird.f32 %v9301_v17 }
 0x964   : > { %v6307_v1 = vpop.eup %6306  ;;  %3584 = vmatmul.f32.gmra.mxu3 %v3517_v53  ;;  %3625 = vmatmul.f32.gmra.mxu0 %v3517_v53  ;;  %v3361_v36 = vmul.f32 %v9028_v46, %v9306_v47 }
 0x965   : > { %v3327_v43 = vsel %vm3326_vm9, %v9258_v5, %v3323_v51  ;;  %v3441_v15 = vmul.f32 %v6307_v1, %v9279_v35  ;;  %3935 = vmatpush.msrb.mxu3 %v9114_v40  ;;  %3976 = vmatpush.msrb.mxu0 %v9117_v39  ;;  %v3451_v5 = vand.u32 2147483648, %v9279_v35  ;;  %vm3446_vm11 = vweird.f32 %v6307_v1 }
 0x966   : > { %v6309_v20 = vpop.eup %6308  ;;  %v3335_v3 = vmul.f32 %v3327_v43, %v9015_v9  ;;  %v5983_v7 = vmul.f32 -1.442695, %v3361_v36  ;;  %v3449_v40 = vand.u32 2147483647, %v9279_v35  ;;  %vm3447_vm12 = vmor %vm3445_vm5, %vm3446_vm11 }
 0x967   : > { %v3442_v22 = vsub.f32 1.0, %v3441_v15  ;;  %3936 = vmatpush.msrb.mxu3 %v9125_v58  ;;  %3977 = vmatpush.msrb.mxu0 %v9128_v45  ;;  %v9319_v21 = vadd.f32 1.0, %v6309_v20 }
 0x968   : > { %v3344_v39 = vmul.f32 %v9021_v44, %v3335_v3  ;;  %v3452_v44 = vor.u32 1.1754944e-38, %v3451_v5  ;;  %vm3450_vm14 = vcmp.eq.f32.partialorder %v3449_v40, 8.507059e+37 }
 0x969   : > { %v3443_v23 = vmul.f32 %v6307_v1, %v3442_v22  ;;  %3937 = vmatpush.msrb.mxu3 %v9136_v61  ;;  %3978 = vmatpush.msrb.mxu0 %v9139_v50  ;;  %6312 = vrcp.f32 %v9319_v21  ;;  %v6311_v9 = vpop.eup %6310  ;;  %v3481_v4 = vand.u32 2147483648, %v9319_v21  ;;  %v3479_v12 = vand.u32 2147483647, %v9319_v21 }
 0x96a   : > { %6314 = vpow2.f32 %v5983_v7  ;;  %v9328_v45 = vadd.f32 %v9025_v60, %v3344_v39  ;;  %v3456_v61 = vmul.f32 %v6311_v9, %v9301_v17  ;;  %vm3461_vm1 = vweird.f32 %v6311_v9 }
 0x96b   : > { %v3444_v58 = vadd.f32 %v6307_v1, %v3443_v23  ;;  %3938 = vmatpush.msrb.mxu3 %v9155_v55  ;;  %3979 = vmatpush.msrb.mxu0 %v9158_v29  ;;  %v3466_v55 = vand.u32 2147483648, %v9301_v17  ;;  %vm3462_vm13 = vmor %vm3460_vm7, %vm3461_vm1  ;;  %vm3475_vm4 = vweird.f32 %v9319_v21  ;;  %v3482_v52 = vor.u32 1.1754944e-38, %v3481_v4  ;;  %v3556_v23 = vld [vmem:[#allocation4 + $0x440] ss:$8 sm:$0x3] }
 0x96c   : > { %v3362_v50 = vmul.f32 %v9028_v46, %v9328_v45  ;;  %v3457_v60 = vsub.f32 1.0, %v3456_v61  ;;  %v3464_v46 = vand.u32 2147483647, %v9301_v17  ;;  %vm3480_vm3 = vcmp.eq.f32.partialorder %v3479_v12, 8.507059e+37 }
 0x96d   : > { %v3448_v2 = vsel %vm3447_vm12, %v6307_v1, %v3444_v58  ;;  %3939 = vmatpush.msrb.mxu3 %v9170_v28  ;;  %3980 = vmatpush.msrb.mxu0 %v9173_v33  ;;  %v3559_v40 = vperm.slane %v3556_v23, 1 }
 0x96e   : > { %v3453_v26 = vsel %vm3450_vm14, %v3452_v44, %v3448_v2  ;;  %v5984_v29 = vmul.f32 -1.442695, %v3362_v50  ;;  %v3458_v57 = vmul.f32 %v6311_v9, %v3457_v60  ;;  %vm3465_vm0 = vcmp.eq.f32.partialorder %v3464_v46, 8.507059e+37 }
 0x96f   : > { %v3518_v18 = vmul.f32 %v3453_v26, %v9148_v8  ;;  %3940 = vmatpush.msrb.mxu3 %v9183_v38  ;;  %3981 = vmatpush.msrb.mxu0 %v9186_v62  ;;  %v6313_v37 = vpop.eup %6312  ;;  %v3467_v38 = vor.u32 1.1754944e-38, %v3466_v55 }
 0x970   : > { %v6315_v0 = vpop.eup %6314  ;;  %v3471_v28 = vmul.f32 %v6313_v37, %v9319_v21  ;;  %6316 = vpow2.f32 %v5984_v29  ;;  %v3459_v33 = vadd.f32 %v6311_v9, %v3458_v57  ;;  %vm3476_vm15 = vweird.f32 %v6313_v37 }
 0x971   : > { %3587 = vmatmul.f32.gmra.mxu3 %v3518_v18  ;;  %3628 = vmatmul.f32.gmra.mxu0 %v3518_v18  ;;  %v3393_v8 = vadd.f32 1.0, %v6315_v0  ;;  %vm3477_vm10 = vmor %vm3475_vm4, %vm3476_vm15 }
 0x972   : > { %3941 = vmatpush.msrb.mxu3 %v9195_v56  ;;  %3982 = vmatpush.msrb.mxu0 %v9198_v6  ;;  %v3472_v62 = vsub.f32 1.0, %v3471_v28  ;;  %v3463_v35 = vsel %vm3462_vm13, %v6311_v9, %v3459_v33  ;;  %v3558_v9 = vperm.slane %v3556_v23, 0 }
 0x973   : > { %6318 = vrcp.f32 %v3393_v8  ;;  %v3468_v42 = vsel %vm3465_vm0, %v3467_v38, %v3463_v35  ;;  %v3496_v11 = vand.u32 2147483648, %v3393_v8  ;;  %v3494_v14 = vand.u32 2147483647, %v3393_v8 }
 0x974   : > { %3942 = vmatpush.msrb.mxu3 %v9215_v24  ;;  %3983 = vmatpush.msrb.mxu0 %v9212_v25  ;;  %v3473_v16 = vmul.f32 %v6313_v37, %v3472_v62  ;;  %v3519_v56 = vmul.f32 %v3468_v42, %v9242_v10  ;;  %vm3490_vm8 = vweird.f32 %v3393_v8 }
 0x975   : > { %v3497_v51 = vor.u32 1.1754944e-38, %v3496_v11  ;;  %vm3495_vm9 = vcmp.eq.f32.partialorder %v3494_v14, 8.507059e+37 }
 0x976   : > { %3943 = vmatpush.msrb.mxu3 %v9236_v59  ;;  %3984 = vmatpush.msrb.mxu0 %v9233_v34  ;;  %v6317_v6 = vpop.eup %6316  ;;  %v3474_v31 = vadd.f32 %v6313_v37, %v3473_v16 }
 0x977   : > { %v3394_v24 = vadd.f32 1.0, %v6317_v6 }
 0x978   : > { %v3478_v25 = vsel %vm3477_vm10, %v6313_v37, %v3474_v31 }
 0x979   : > { %3590 = vmatmul.f32.gmra.mxu3 %v3519_v56  ;;  %3631 = vmatmul.f32.gmra.mxu0 %v3519_v56  ;;  %v6319_v19 = vpop.eup %6318  ;;  %v3483_v63 = vsel %vm3480_vm3, %v3482_v52, %v3478_v25  ;;  %6320 = vrcp.f32 %v3394_v24  ;;  %v3511_v15 = vand.u32 2147483648, %v3394_v24  ;;  %v3509_v20 = vand.u32 2147483647, %v3394_v24 }
 0x97a   : > { %v3486_v13 = vmul.f32 %v6319_v19, %v3393_v8  ;;  %v3520_v10 = vmul.f32 %v3483_v63, %v9269_v30  ;;  %vm3491_vm6 = vweird.f32 %v6319_v19  ;;  %vm3505_vm5 = vweird.f32 %v3394_v24 }
 0x97b   : > { %vm3492_vm2 = vmor %vm3490_vm8, %vm3491_vm6  ;;  %v3512_v3 = vor.u32 1.1754944e-38, %v3511_v15  ;;  %vm3510_vm14 = vcmp.eq.f32.partialorder %v3509_v20, 8.507059e+37 }
 0x97c   : > { %v3487_v59 = vsub.f32 1.0, %v3486_v13 }
 0x97e   : > { %v3488_v34 = vmul.f32 %v6319_v19, %v3487_v59 }
 0x97f   : > { %v6321_v32 = vpop.eup %6320 }
 0x980   : > { %v3489_v53 = vadd.f32 %v6319_v19, %v3488_v34  ;;  %v3501_v54 = vmul.f32 %v6321_v32, %v3394_v24  ;;  %vm3506_vm11 = vweird.f32 %v6321_v32 }
 0x981   : > { %3593 = vmatmul.f32.gmra.mxu3 %v3520_v10  ;;  %3634 = vmatmul.f32.gmra.mxu0 %v3520_v10  ;;  %vm3507_vm12 = vmor %vm3505_vm5, %vm3506_vm11 }
 0x982   : > { %v3493_v17 = vsel %vm3492_vm2, %v6319_v19, %v3489_v53  ;;  %v3502_v1 = vsub.f32 1.0, %v3501_v54 }
 0x983   : > { %v3498_v43 = vsel %vm3495_vm9, %v3497_v51, %v3493_v17 }
 0x984   : > { %v3521_v30 = vmul.f32 %v3498_v43, %v9306_v47  ;;  %v3503_v36 = vmul.f32 %v6321_v32, %v3502_v1 }
 0x986   : > { %v3504_v22 = vadd.f32 %v6321_v32, %v3503_v36 }
 0x988   : > { %v3508_v5 = vsel %vm3507_vm12, %v6321_v32, %v3504_v22 }
 0x989   : > { %3596 = vmatmul.f32.gmra.mxu3 %v3521_v30  ;;  %3637 = vmatmul.f32.gmra.mxu0 %v3521_v30  ;;  %v3513_v21 = vsel %vm3510_vm14, %v3512_v3, %v3508_v5 }
 0x98a   : > { %v3522_v7 = vmul.f32 %v3513_v21, %v9328_v45 }
 0x991   : > { %3599 = vmatmul.f32.gmra.mxu3 %v3522_v7  ;;  %3640 = vmatmul.f32.gmra.mxu0 %v3522_v7 }
 0x9d1   : > { %v3620_v39 = vpop.f32.mrf.mxu0 }
 0x9d2   : > { %v9357_v47 = vadd.f32 %v3620_v39, %v3559_v40 }
 0x9d4   : > { %3707 = vmatmul.f32.vlgmr.msra.gmra.mxu2 %v9357_v47  ;;  %3789 = vmatmul.f32.vlgmr.msra.gmra.mxu0 %v9357_v47 }
 0x9d7   : > { %v3579_v58 = vpop.f32.mrf.mxu3 }
 0x9d8   : > { %v9361_v44 = vadd.f32 %v3579_v58, %v3558_v9 }
 0x9d9   : > { %v3623_v61 = vpop.f32.mrf.mxu0 }
 0x9da   : > { %v9363_v2 = vadd.f32 %v3623_v61, %v3559_v40  ;;  %3666 = vmatmul.f32.vlgmr.msrb.gmra.mxu1 %v9361_v44  ;;  %3748 = vmatmul.f32.vlgmr.msra.gmra.mxu3 %v9361_v44 }
 0x9dc   : > { %3710 = vmatmul.f32.gmra.mxu2 %v9363_v2  ;;  %3792 = vmatmul.f32.gmra.mxu0 %v9363_v2 }
 0x9df   : > { %v3582_v45 = vpop.f32.mrf.mxu3 }
 0x9e0   : > { %v9369_v50 = vadd.f32 %v3582_v45, %v3558_v9 }
 0x9e1   : > { %v3626_v26 = vpop.f32.mrf.mxu0 }
 0x9e2   : > { %v9371_v60 = vadd.f32 %v3626_v26, %v3559_v40  ;;  %3669 = vmatmul.f32.gmra.mxu1 %v9369_v50  ;;  %3751 = vmatmul.f32.gmra.mxu3 %v9369_v50 }
 0x9e4   : > { %3713 = vmatmul.f32.gmra.mxu2 %v9371_v60  ;;  %3795 = vmatmul.f32.gmra.mxu0 %v9371_v60 }
 0x9e7   : > { %v3585_v18 = vpop.f32.mrf.mxu3 }
 0x9e8   : > { %v9377_v55 = vadd.f32 %v3585_v18, %v3558_v9 }
 0x9ea   : > { %3672 = vmatmul.f32.gmra.mxu1 %v9377_v55  ;;  %3754 = vmatmul.f32.gmra.mxu3 %v9377_v55 }
 0x9ee   : > { %v3629_v29 = vpop.f32.mrf.mxu0 }
 0x9ef   : > { %v9381_v37 = vadd.f32 %v3629_v29, %v3559_v40 }
 0x9f1   : > { %3716 = vmatmul.f32.gmra.mxu2 %v9381_v37  ;;  %3798 = vmatmul.f32.gmra.mxu0 %v9381_v37 }
 0x9f4   : > { %v3588_v57 = vpop.f32.mrf.mxu3 }
 0x9f5   : > { %v9385_v46 = vadd.f32 %v3588_v57, %v3558_v9 }
 0x9f6   : > { %v3632_v0 = vpop.f32.mrf.mxu0 }
 0x9f7   : > { %v9387_v28 = vadd.f32 %v3632_v0, %v3559_v40  ;;  %3675 = vmatmul.f32.gmra.mxu1 %v9385_v46  ;;  %3757 = vmatmul.f32.gmra.mxu3 %v9385_v46 }
 0x9f9   : > { %3719 = vmatmul.f32.gmra.mxu2 %v9387_v28  ;;  %3801 = vmatmul.f32.gmra.mxu0 %v9387_v28 }
 0x9fc   : > { %v3591_v33 = vpop.f32.mrf.mxu3 }
 0x9fd   : > { %v9393_v8 = vadd.f32 %v3591_v33, %v3558_v9 }
 0x9fe   : > { %v3635_v38 = vpop.f32.mrf.mxu0 }
 0x9ff   : > { %v9395_v62 = vadd.f32 %v3635_v38, %v3559_v40  ;;  %3678 = vmatmul.f32.gmra.mxu1 %v9393_v8  ;;  %3760 = vmatmul.f32.gmra.mxu3 %v9393_v8 }
 0xa01   : > { %3722 = vmatmul.f32.gmra.mxu2 %v9395_v62  ;;  %3804 = vmatmul.f32.gmra.mxu0 %v9395_v62 }
 0xa04   : > { %v3594_v35 = vpop.f32.mrf.mxu3 }
 0xa05   : > { %v9401_v4 = vadd.f32 %v3594_v35, %v3558_v9 }
 0xa06   : > { %v3638_v42 = vpop.f32.mrf.mxu0 }
 0xa07   : > { %v9403_v16 = vadd.f32 %v3638_v42, %v3559_v40  ;;  %3681 = vmatmul.f32.gmra.mxu1 %v9401_v4  ;;  %3763 = vmatmul.f32.gmra.mxu3 %v9401_v4 }
 0xa09   : > { %3725 = vmatmul.f32.gmra.mxu2 %v9403_v16  ;;  %3807 = vmatmul.f32.gmra.mxu0 %v9403_v16 }
 0xa0c   : > { %v3597_v12 = vpop.f32.mrf.mxu3 }
 0xa0d   : > { %v9409_v56 = vadd.f32 %v3597_v12, %v3558_v9 }
 0xa0e   : > { %v3641_v6 = vpop.f32.mrf.mxu0 }
 0xa0f   : > { %v9411_v31 = vadd.f32 %v3641_v6, %v3559_v40  ;;  %3684 = vmatmul.f32.gmra.mxu1 %v9409_v56  ;;  %3766 = vmatmul.f32.gmra.mxu3 %v9409_v56 }
 0xa11   : > { %3728 = vmatmul.f32.gmra.mxu2 %v9411_v31  ;;  %3810 = vmatmul.f32.gmra.mxu0 %v9411_v31 }
 0xa14   : > { %v3600_v52 = vpop.f32.mrf.mxu3 }
 0xa15   : > { %v9417_v24 = vadd.f32 %v3600_v52, %v3558_v9 }
 0xa17   : > { %3687 = vmatmul.f32.gmra.mxu1 %v9417_v24  ;;  %3769 = vmatmul.f32.gmra.mxu3 %v9417_v24 }
 0xa51   : > { %v3790_v25 = vpop.f32.mrf.mxu0 }
 0xa57   : > { %v3667_v19 = vpop.f32.mrf.mxu1  ;;  %v3708_v63 = vpop.f32.mrf.mxu2 }
 0xa58   : > { %v3709_v13 = vadd.f32 %v3708_v63, %v3667_v19 }
 0xa59   : > { %v3793_v11 = vpop.f32.mrf.mxu0 }
 0xa5a   : > { %v9422_v10 = vsub.f32 %v9361_v44, %v3709_v13 }
 0xa5c   : > { %v3830_v59 = vmul.f32 %v9422_v10, %v9422_v10 }
 0xa5d   : > { %v3749_v34 = vpop.f32.mrf.mxu3 }
 0xa5e   : > { %v3791_v14 = vadd.f32 %v3790_v25, %v3749_v34  ;;  %3862 = vmatmul.f32.vlgmr.msra.gmra.mxu1 %v3830_v59  ;;  %3944 = vmatmul.f32.vlgmr.msrb.gmra.mxu3 %v3830_v59 }
 0xa5f   : > { %v3670_v32 = vpop.f32.mrf.mxu1  ;;  %v3711_v53 = vpop.f32.mrf.mxu2 }
 0xa60   : > { %v9427_v54 = vsub.f32 %v9357_v47, %v3791_v14  ;;  %v3712_v51 = vadd.f32 %v3711_v53, %v3670_v32 }
 0xa61   : > { %v3796_v30 = vpop.f32.mrf.mxu0 }
 0xa62   : > { %v3831_v17 = vmul.f32 %v9427_v54, %v9427_v54  ;;  %v9432_v1 = vsub.f32 %v9369_v50, %v3712_v51 }
 0xa64   : > { %3903 = vmatmul.f32.vlgmr.msrb.gmra.mxu2 %v3831_v17  ;;  %3985 = vmatmul.f32.vlgmr.msrb.gmra.mxu0 %v3831_v17  ;;  %v3832_v43 = vmul.f32 %v9432_v1, %v9432_v1 }
 0xa65   : > { %v3752_v15 = vpop.f32.mrf.mxu3 }
 0xa66   : > { %v3794_v36 = vadd.f32 %v3793_v11, %v3752_v15  ;;  %3865 = vmatmul.f32.gmra.mxu1 %v3832_v43  ;;  %3947 = vmatmul.f32.gmra.mxu3 %v3832_v43 }
 0xa67   : > { %v3673_v20 = vpop.f32.mrf.mxu1  ;;  %v3714_v22 = vpop.f32.mrf.mxu2 }
 0xa68   : > { %v9437_v3 = vsub.f32 %v9363_v2, %v3794_v36  ;;  %v3715_v5 = vadd.f32 %v3714_v22, %v3673_v20 }
 0xa6a   : > { %v9440_v21 = vsub.f32 %v9377_v55, %v3715_v5  ;;  %v3833_v7 = vmul.f32 %v9437_v3, %v9437_v3 }
 0xa6c   : > { %3906 = vmatmul.f32.gmra.mxu2 %v3833_v7  ;;  %3988 = vmatmul.f32.gmra.mxu0 %v3833_v7  ;;  %v3834_v23 = vmul.f32 %v9440_v21, %v9440_v21 }
 0xa6d   : > { %v3755_v40 = vpop.f32.mrf.mxu3 }
 0xa6e   : > { %v3797_v39 = vadd.f32 %v3796_v30, %v3755_v40  ;;  %3868 = vmatmul.f32.gmra.mxu1 %v3834_v23  ;;  %3950 = vmatmul.f32.gmra.mxu3 %v3834_v23  ;;  %v3799_v9 = vpop.f32.mrf.mxu0  ;;  %v4600_v40 = vld [vmem:[#allocation2 + $0xc88] sm:$0xff] }
 0xa6f   : > { %4644 = vmatpush.msra.mxu2 %v4600_v40 }
 0xa70   : > { %v9447_v47 = vsub.f32 %v9371_v60, %v3797_v39  ;;  %v4584_v39 = vld [vmem:[#allocation2 + $0xc08] sm:$0xff] }
 0xa71   : > { %4603 = vmatpush.msrb.mxu1 %v4584_v39  ;;  %v4578_v39 = vld [vmem:[#allocation2 + $0xbd8] sm:$0xff] }
 0xa72   : > { %v3835_v58 = vmul.f32 %v9447_v47, %v9447_v47 }
 0xa74   : > { %v3676_v44 = vpop.f32.mrf.mxu1  ;;  %v3717_v61 = vpop.f32.mrf.mxu2  ;;  %3909 = vmatmul.f32.gmra.mxu2 %v3835_v58  ;;  %3991 = vmatmul.f32.gmra.mxu0 %v3835_v58  ;;  %v4583_v58 = vld [vmem:[#allocation2 + $0xc00] sm:$0xff] }
 0xa75   : > { %v3718_v2 = vadd.f32 %v3717_v61, %v3676_v44  ;;  %v4598_v61 = vld [vmem:[#allocation2 + $0xc78] sm:$0xff]  ;;  %4604 = vmatpush.msrb.mxu1 %v4583_v58 }
 0xa76   : > { %v3802_v18 = vpop.f32.mrf.mxu0 }
 0xa77   : > { %v9452_v45 = vsub.f32 %v9385_v46, %v3718_v2  ;;  %v4582_v2 = vld [vmem:[#allocation2 + $0xbf8] sm:$0xff] }
 0xa78   : > { %4605 = vmatpush.msrb.mxu1 %v4582_v2  ;;  %v4577_v2 = vld [vmem:[#allocation2 + $0xbd0] sm:$0xff] }
 0xa79   : > { %v3836_v50 = vmul.f32 %v9452_v45, %v9452_v45 }
 0xa7a   : > { %v3758_v26 = vpop.f32.mrf.mxu3 }
 0xa7b   : > { %v3800_v55 = vadd.f32 %v3799_v9, %v3758_v26  ;;  %3871 = vmatmul.f32.gmra.mxu1 %v3836_v50  ;;  %3953 = vmatmul.f32.gmra.mxu3 %v3836_v50  ;;  %v4599_v9 = vld [vmem:[#allocation2 + $0xc80] sm:$0xff]  ;;  %v4597_v50 = vld [vmem:[#allocation2 + $0xc70] sm:$0xff]  ;;  %v4596_v26 = vld [vmem:[#allocation2 + $0xc68] sm:$0xff] }
 0xa7c   : > { %v3679_v60 = vpop.f32.mrf.mxu1  ;;  %v3720_v29 = vpop.f32.mrf.mxu2  ;;  %4645 = vmatpush.msra.mxu2 %v4599_v9  ;;  %v4592_v9 = vld [vmem:[#allocation2 + $0xc48] sm:$0xff] }
 0xa7d   : > { %v9457_v57 = vsub.f32 %v9381_v37, %v3800_v55  ;;  %v3721_v0 = vadd.f32 %v3720_v29, %v3679_v60 }
 0xa7e   : > { %4646 = vmatpush.msra.mxu2 %v4598_v61 }
 0xa7f   : > { %v9460_v33 = vsub.f32 %v9393_v8, %v3721_v0  ;;  %v3837_v46 = vmul.f32 %v9457_v57, %v9457_v57  ;;  %v3805_v8 = vpop.f32.mrf.mxu0 }
 0xa80   : > { %4647 = vmatpush.msra.mxu2 %v4597_v50  ;;  %v3647_v50 = vld [vmem:[#allocation4 + $0x460] ss:$8 sm:$0x3] }
 0xa81   : > { %3912 = vmatmul.f32.gmra.mxu2 %v3837_v46  ;;  %3994 = vmatmul.f32.gmra.mxu0 %v3837_v46  ;;  %v3838_v38 = vmul.f32 %v9460_v33, %v9460_v33 }
 0xa82   : > { %v3761_v35 = vpop.f32.mrf.mxu3  ;;  %4648 = vmatpush.msra.mxu2 %v4596_v26 }
 0xa83   : > { %v3803_v42 = vadd.f32 %v3802_v18, %v3761_v35  ;;  %3874 = vmatmul.f32.gmra.mxu1 %v3838_v38  ;;  %3956 = vmatmul.f32.gmra.mxu3 %v3838_v38  ;;  %v4580_v35 = vld [vmem:[#allocation2 + $0xbe8] sm:$0xff] }
 0xa84   : > { %v3682_v12 = vpop.f32.mrf.mxu1  ;;  %v3723_v6 = vpop.f32.mrf.mxu2 }
 0xa85   : > { %v9467_v37 = vsub.f32 %v9387_v28, %v3803_v42  ;;  %v3724_v52 = vadd.f32 %v3723_v6, %v3682_v12  ;;  %v4595_v42 = vld [vmem:[#allocation2 + $0xc60] sm:$0xff] }
 0xa86   : > { %v4579_v12 = vld [vmem:[#allocation2 + $0xbe0] sm:$0xff]  ;;  %4649 = vmatpush.msra.mxu2 %v4595_v42 }
 0xa87   : > { %v9470_v25 = vsub.f32 %v9401_v4, %v3724_v52  ;;  %v3839_v19 = vmul.f32 %v9467_v37, %v9467_v37  ;;  %v3808_v53 = vpop.f32.mrf.mxu0  ;;  %v4594_v52 = vld [vmem:[#allocation2 + $0xc58] sm:$0xff] }
 0xa88   : > { %4650 = vmatpush.msra.mxu2 %v4594_v52  ;;  %v4576_v52 = vld [vmem:[#allocation2 + $0xbc8] sm:$0xff] }
 0xa89   : > { %3915 = vmatmul.f32.gmra.mxu2 %v3839_v19  ;;  %3997 = vmatmul.f32.gmra.mxu0 %v3839_v19  ;;  %v3840_v63 = vmul.f32 %v9470_v25, %v9470_v25 }
 0xa8a   : > { %v3764_v13 = vpop.f32.mrf.mxu3 }
 0xa8b   : > { %v3806_v59 = vadd.f32 %v3805_v8, %v3764_v13  ;;  %3877 = vmatmul.f32.gmra.mxu1 %v3840_v63  ;;  %3959 = vmatmul.f32.gmra.mxu3 %v3840_v63 }
 0xa8c   : > { %v3685_v11 = vpop.f32.mrf.mxu1  ;;  %v3726_v28 = vpop.f32.mrf.mxu2 }
 0xa8d   : > { %v9477_v34 = vsub.f32 %v9395_v62, %v3806_v59  ;;  %v3727_v14 = vadd.f32 %v3726_v28, %v3685_v11 }
 0xa8f   : > { %v9480_v4 = vsub.f32 %v9409_v56, %v3727_v14  ;;  %v3841_v32 = vmul.f32 %v9477_v34, %v9477_v34  ;;  %v3811_v5 = vpop.f32.mrf.mxu0 }
 0xa91   : > { %3918 = vmatmul.f32.gmra.mxu2 %v3841_v32  ;;  %4000 = vmatmul.f32.gmra.mxu0 %v3841_v32  ;;  %v3842_v51 = vmul.f32 %v9480_v4, %v9480_v4 }
 0xa92   : > { %v3767_v17 = vpop.f32.mrf.mxu3 }
 0xa93   : > { %v3809_v43 = vadd.f32 %v3808_v53, %v3767_v17  ;;  %3880 = vmatmul.f32.gmra.mxu1 %v3842_v51  ;;  %3962 = vmatmul.f32.gmra.mxu3 %v3842_v51 }
 0xa94   : > { %v3688_v15 = vpop.f32.mrf.mxu1  ;;  %v3729_v62 = vpop.f32.mrf.mxu2 }
 0xa95   : > { %v9487_v30 = vsub.f32 %v9403_v16, %v3809_v43  ;;  %v3730_v56 = vadd.f32 %v3729_v62, %v3688_v15 }
 0xa97   : > { %v9490_v36 = vsub.f32 %v9417_v24, %v3730_v56  ;;  %v3843_v20 = vmul.f32 %v9487_v30, %v9487_v30 }
 0xa99   : > { %3921 = vmatmul.f32.gmra.mxu2 %v3843_v20  ;;  %4003 = vmatmul.f32.gmra.mxu0 %v3843_v20  ;;  %v3844_v22 = vmul.f32 %v9490_v36, %v9490_v36  ;;  %v4593_v20 = vld [vmem:[#allocation2 + $0xc50] sm:$0xff] }
 0xa9a   : > { %v3770_v7 = vpop.f32.mrf.mxu3  ;;  %4651 = vmatpush.msra.mxu2 %v4593_v20  ;;  %v4574_v20 = vld [vmem:[#allocation2 + $0xbb8] sm:$0xff] }
 0xa9b   : > { %v3812_v23 = vadd.f32 %v3811_v5, %v3770_v7  ;;  %3883 = vmatmul.f32.gmra.mxu1 %v3844_v22  ;;  %3965 = vmatmul.f32.gmra.mxu3 %v3844_v22  ;;  %v3645_v22 = vld [vmem:[#allocation4 + $0x450] ss:$8 sm:$0x3] }
 0xa9c   : > { %4652 = vmatpush.msra.mxu2 %v4592_v9 }
 0xa9d   : > { %v9497_v16 = vsub.f32 %v9411_v31, %v3812_v23  ;;  %v4581_v31 = vld [vmem:[#allocation2 + $0xbf0] sm:$0xff] }
 0xa9e   : > { %4606 = vmatpush.msrb.mxu1 %v4581_v31  ;;  %v9522_v31 = vperm.slane %v3645_v22, 1 }
 0xa9f   : > { %v3845_v24 = vmul.f32 %v9497_v16, %v9497_v16 }
 0xaa0   : > { %4607 = vmatpush.msrb.mxu1 %v4580_v35 }
 0xaa1   : > { %3924 = vmatmul.f32.gmra.mxu2 %v3845_v24  ;;  %4006 = vmatmul.f32.gmra.mxu0 %v3845_v24 }
 0xaa2   : > { %4608 = vmatpush.msrb.mxu1 %v4579_v12 }
 0xaa4   : > { %4609 = vmatpush.msrb.mxu1 %v4578_v39 }
 0xaa6   : > { %4610 = vmatpush.msrb.mxu1 %v4577_v2 }
 0xaa8   : > { %4611 = vmatpush.msrb.mxu1 %v4576_v52 }
 0xadb   : > { %v3863_v44 = vpop.f32.mrf.mxu1 }
 0xadc   : > { %v3864_v46 = vadd.f32 1e-05, %v3863_v44 }
 0xae1   : > { %v3945_v18 = vpop.f32.mrf.mxu3  ;;  %v3986_v55 = vpop.f32.mrf.mxu0 }
 0xae2   : > { %v3946_v60 = vadd.f32 1e-05, %v3945_v18  ;;  %v4591_v18 = vld [vmem:[#allocation2 + $0xc40] sm:$0xff] }
 0xae3   : > { %v3866_v0 = vpop.f32.mrf.mxu1  ;;  %4653 = vmatpush.msra.mxu2 %v4591_v18 }
 0xae4   : > { %v3987_v29 = vadd.f32 %v3986_v55, %v3946_v60  ;;  %v3867_v28 = vadd.f32 1e-05, %v3866_v0 }
 0xae6   : > { %6322 = vrsqrt.f32 %v3987_v29  ;;  %vm4026_vm7 = vweird.f32 %v3987_v29 }
 0xae7   : > { %v3904_v38 = vpop.f32.mrf.mxu2 }
 0xae8   : > { %v9501_v6 = vadd.f32 %v3904_v38, %v3864_v46  ;;  %v3649_v46 = vld [vmem:[#allocation4 + $0x470] ss:$8 sm:$0x3] }
 0xae9   : > { %v3948_v8 = vpop.f32.mrf.mxu3  ;;  %v3989_v19 = vpop.f32.mrf.mxu0 }
 0xaea   : > { %6324 = vrsqrt.f32 %v9501_v6  ;;  %v3949_v63 = vadd.f32 1e-05, %v3948_v8  ;;  %v4590_v8 = vld [vmem:[#allocation2 + $0xc38] sm:$0xff]  ;;  %vm4016_vm15 = vweird.f32 %v9501_v6 }
 0xaeb   : > { %v3869_v14 = vpop.f32.mrf.mxu1  ;;  %4654 = vmatpush.msra.mxu2 %v4590_v8 }
 0xaec   : > { %v6323_v13 = vpop.eup %6322  ;;  %v9504_v59 = vadd.f32 %v3989_v19, %v3949_v63  ;;  %v3870_v26 = vadd.f32 1e-05, %v3869_v14  ;;  %v9534_v19 = vperm.slane %v3647_v50, 1  ;;  %v4575_v14 = vld [vmem:[#allocation2 + $0xbc0] sm:$0xff] }
 0xaed   : > { %v4021_v11 = vmul.f32 %v6323_v13, %v3987_v29  ;;  %vm4027_vm1 = vweird.f32 %v6323_v13  ;;  %4612 = vmatpush.msrb.mxu1 %v4575_v14 }
 0xaee   : > { %6326 = vrsqrt.f32 %v9504_v59  ;;  %vm4028_vm13 = vmor %vm4026_vm7, %vm4027_vm1  ;;  %vm4046_vm3 = vweird.f32 %v9504_v59 }
 0xaef   : > { %v4022_v32 = vmul.f32 %v6323_v13, %v4021_v11  ;;  %v3907_v53 = vpop.f32.mrf.mxu2  ;;  %4613 = vmatpush.msrb.mxu1 %v4574_v20  ;;  %v4570_v20 = vld [vmem:[#allocation2 + $0xb98] sm:$0xff] }
 0xaf0   : > { %v9507_v51 = vpop.eup %6324  ;;  %v9509_v17 = vadd.f32 %v3907_v53, %v3867_v28  ;;  %v9543_v28 = vperm.slane %v3645_v22, 0  ;;  %v9546_v53 = vperm.slane %v3649_v46, 1  ;;  %v4588_v22 = vld [vmem:[#allocation2 + $0xc28] sm:$0xff] }
 0xaf1   : > { %v4023_v43 = vmul.f32 0.5, %v4022_v32  ;;  %v4011_v15 = vmul.f32 %v9507_v51, %v9501_v6  ;;  %v3951_v62 = vpop.f32.mrf.mxu3  ;;  %v3992_v23 = vpop.f32.mrf.mxu0  ;;  %vm4017_vm0 = vweird.f32 %v9507_v51  ;;  %v4589_v32 = vld [vmem:[#allocation2 + $0xc30] sm:$0xff] }
 0xaf2   : > { %6328 = vrsqrt.f32 %v9509_v17  ;;  %v3952_v56 = vadd.f32 1e-05, %v3951_v62  ;;  %vm4018_vm4 = vmor %vm4016_vm15, %vm4017_vm0  ;;  %4655 = vmatpush.msra.mxu2 %v4589_v32  ;;  %vm4036_vm2 = vweird.f32 %v9509_v17  ;;  %v4585_v32 = vld [vmem:[#allocation2 + $0xc10] sm:$0xff] }
 0xaf3   : > { %v4024_v5 = vsub.f32 1.5, %v4023_v43  ;;  %v4012_v7 = vmul.f32 %v9507_v51, %v4011_v15 }
 0xaf4   : > { %v9515_v24 = vpop.eup %6326  ;;  %v9517_v40 = vadd.f32 %v3992_v23, %v3952_v56  ;;  %4656 = vmatpush.msra.mxu2 %v4588_v22 }
 0xaf5   : > { %v4025_v58 = vmul.f32 %v6323_v13, %v4024_v5  ;;  %v4013_v44 = vmul.f32 0.5, %v4012_v7  ;;  %v4041_v61 = vmul.f32 %v9515_v24, %v9504_v59  ;;  %vm4047_vm10 = vweird.f32 %v9515_v24  ;;  %v4587_v59 = vld [vmem:[#allocation2 + $0xc20] sm:$0xff] }
 0xaf6   : > { %6330 = vrsqrt.f32 %v9517_v40  ;;  %v9557_v7 = vperm.slane %v3647_v50, 0  ;;  %vm9566_vm6 = vmor %vm4046_vm3, %vm4047_vm10  ;;  %v9573_v50 = vperm.slane %v3649_v46, 0  ;;  %4657 = vmatpush.msra.mxu2 %v4587_v59  ;;  %vm4066_vm5 = vweird.f32 %v9517_v40 }
 0xaf7   : > { %v4029_v55 = vsel %vm4028_vm13, %v6323_v13, %v4025_v58  ;;  %v4014_v60 = vsub.f32 1.5, %v4013_v44  ;;  %v4042_v29 = vmul.f32 %v9515_v24, %v4041_v61  ;;  %v3910_v0 = vpop.f32.mrf.mxu2  ;;  %v4573_v61 = vld [vmem:[#allocation2 + $0xbb0] sm:$0xff] }
 0xaf8   : > { %v9527_v38 = vpop.eup %6328  ;;  %v4171_v35 = vmul.f32 %v4029_v55, %v9427_v54  ;;  %v9530_v42 = vpop.f32.mrf.mxu1  ;;  %v9532_v12 = vadd.f32 %v3910_v0, %v3870_v26  ;;  %4614 = vmatpush.msrb.mxu1 %v4573_v61  ;;  %v4572_v0 = vld [vmem:[#allocation2 + $0xba8] sm:$0xff] }
 0xaf9   : > { %v4015_v63 = vmul.f32 %v9507_v51, %v4014_v60  ;;  %v4043_v13 = vmul.f32 0.5, %v4042_v29  ;;  %v4031_v11 = vmul.f32 %v9527_v38, %v9509_v17  ;;  %vm4037_vm8 = vweird.f32 %v9527_v38 }
 0xafa   : > { %v4192_v54 = vmul.f32 %v9522_v31, %v4171_v35  ;;  %6332 = vrsqrt.f32 %v9532_v12  ;;  %v4586_v35 = vld [vmem:[#allocation2 + $0xc18] sm:$0xff]  ;;  %4615 = vmatpush.msrb.mxu1 %v4572_v0  ;;  %vm9591_vm9 = vmor %vm4036_vm2, %vm4037_vm8  ;;  %vm4056_vm1 = vweird.f32 %v9532_v12 }
 0xafb   : > { %v4019_v6 = vsel %vm4018_vm4, %v9507_v51, %v4015_v63  ;;  %v4044_v43 = vsub.f32 1.5, %v4043_v13  ;;  %v4032_v15 = vmul.f32 %v9527_v38, %v4031_v11  ;;  %4658 = vmatpush.msra.mxu2 %v4586_v35 }
 0xafc   : > { %v9551_v62 = vpop.eup %6330  ;;  %v4170_v56 = vmul.f32 %v4019_v6, %v9422_v10  ;;  %v9555_v5 = vadd.f32 %v9534_v19, %v4192_v54 }
 0xafd   : > { %v4045_v51 = vmul.f32 %v9515_v24, %v4044_v43  ;;  %v4033_v23 = vmul.f32 0.5, %v4032_v15  ;;  %v4061_v39 = vmul.f32 %v9551_v62, %v9517_v40  ;;  %v3873_v43 = vadd.f32 1e-05, %v9530_v42  ;;  %4659 = vmatpush.msra.mxu2 %v4585_v32  ;;  %v4569_v42 = vld [vmem:[#allocation2 + $0xb90] sm:$0xff] }
 0xafe   : > { %v4191_v9 = vmul.f32 %v9543_v28, %v4170_v56  ;;  %v3954_v58 = vpop.f32.mrf.mxu3  ;;  %v3995_v44 = vpop.f32.mrf.mxu0  ;;  %v4234_v2 = vmul.f32 %v9546_v53, %v9555_v5  ;;  %vm4067_vm11 = vweird.f32 %v9551_v62 }
 0xaff   : > { %v4049_v26 = vsel %vm9566_vm6, %v9515_v24, %v4045_v51  ;;  %v4034_v18 = vsub.f32 1.5, %v4033_v23  ;;  %v4062_v55 = vmul.f32 %v9551_v62, %v4061_v39  ;;  %v3955_v60 = vadd.f32 1e-05, %v3954_v58  ;;  %v6554_v23 = vld [vmem:[#allocation2 + $0x1f8] sm:$0xff]  ;;  %v6555_v58 = vld [vmem:[#allocation2 + $0x1f0] sm:$0xff]  ;;  %vm9622_vm12 = vmor %vm4066_vm5, %vm4067_vm11 }
 0xb00   : > { %v9579_v29 = vpop.eup %6332  ;;  %v5986_v52 = vmul.f32 -1.442695, %v4234_v2  ;;  %v9582_v8 = vadd.f32 %v9557_v7, %v4191_v9  ;;  %v4173_v46 = vmul.f32 %v4049_v26, %v9437_v3  ;;  %v3875_v11 = vpop.f32.mrf.mxu1  ;;  %v4571_v3 = vld [vmem:[#allocation2 + $0xba0] sm:$0xff]  ;;  %4886 = vmatpush.msrb.mxu2 %v6554_v23 }
 0xb01   : > { %v4035_v63 = vmul.f32 %v9527_v38, %v4034_v18  ;;  %v4063_v24 = vmul.f32 0.5, %v4062_v55  ;;  %v4051_v13 = vmul.f32 %v9579_v29, %v9532_v12  ;;  %v9595_v14 = vadd.f32 %v3995_v44, %v3955_v60  ;;  %4616 = vmatpush.msrb.mxu1 %v4571_v3  ;;  %v6556_v18 = vld [vmem:[#allocation2 + $0x1e8] sm:$0xff] }
 0xb02   : > { %6334 = vpow2.f32 %v5986_v52  ;;  %v4233_v17 = vmul.f32 %v9573_v50, %v9582_v8  ;;  %v4194_v51 = vmul.f32 %v9522_v31, %v4173_v46  ;;  %4887 = vmatpush.msrb.mxu2 %v6555_v58  ;;  %v3876_v46 = vadd.f32 1e-05, %v3875_v11 }
 0xb03   : > { %v4039_v6 = vsel %vm9591_vm9, %v9527_v38, %v4035_v63  ;;  %v4064_v15 = vsub.f32 1.5, %v4063_v24  ;;  %6336 = vrsqrt.f32 %v9595_v14  ;;  %v4052_v39 = vmul.f32 %v9579_v29, %v4051_v13  ;;  %4617 = vmatpush.msrb.mxu1 %v4570_v20  ;;  %v6559_v20 = vld [vmem:[#allocation2 + $0x1d0] sm:$0xff] }
 0xb04   : > { %v3913_v56 = vpop.f32.mrf.mxu2  ;;  %v5985_v22 = vmul.f32 -1.442695, %v4233_v17  ;;  %v4172_v44 = vmul.f32 %v4039_v6, %v9432_v1  ;;  %v9613_v26 = vadd.f32 %v9534_v19, %v4194_v51  ;;  %4888 = vmatpush.msrb.mxu2 %v6556_v18  ;;  %v6557_v1 = vld [vmem:[#allocation2 + $0x1e0] sm:$0xff]  ;;  %v6558_v17 = vld [vmem:[#allocation2 + $0x1d8] sm:$0xff]  ;;  %vm4057_vm14 = vweird.f32 %v9579_v29 }
 0xb05   : > { %v9606_v9 = vadd.f32 %v3913_v56, %v3873_v43  ;;  %4618 = vmatpush.msrb.mxu1 %v4569_v42  ;;  %v4065_v59 = vmul.f32 %v9551_v62, %v4064_v15  ;;  %v4053_v55 = vmul.f32 0.5, %v4052_v39  ;;  %v6560_v42 = vld [vmem:[#allocation2 + $0x1c8] sm:$0xff]  ;;  %vm9672_vm7 = vmor %vm4056_vm1, %vm4057_vm14  ;;  %vm4086_vm13 = vweird.f32 %v9595_v14 }
 0xb06   : > { %v3957_v38 = vpop.f32.mrf.mxu3  ;;  %v3998_v10 = vpop.f32.mrf.mxu0  ;;  %6338 = vpow2.f32 %v5985_v22  ;;  %4889 = vmatpush.msrb.mxu2 %v6557_v1  ;;  %v4193_v24 = vmul.f32 %v9543_v28, %v4172_v44  ;;  %v4236_v32 = vmul.f32 %v9546_v53, %v9613_v26 }
 0xb07   : > { %6340 = vrsqrt.f32 %v9606_v9  ;;  %v3958_v2 = vadd.f32 1e-05, %v3957_v38  ;;  %v4069_v54 = vsel %vm9622_vm12, %v9551_v62, %v4065_v59  ;;  %v4054_v6 = vsub.f32 1.5, %v4053_v55  ;;  %v6561_v59 = vld [vmem:[#allocation2 + $0x1c0] sm:$0xff] }
 0xb08   : > { %v6335_v61 = vpop.eup %6334  ;;  %v3878_v63 = vpop.f32.mrf.mxu1  ;;  %4890 = vmatpush.msrb.mxu2 %v6558_v17  ;;  %v9644_v51 = vadd.f32 %v9557_v7, %v4193_v24  ;;  %v4175_v23 = vmul.f32 %v4069_v54, %v9447_v47  ;;  %vm4076_vm8 = vweird.f32 %v9606_v9 }
 0xb09   : > { %v9615_v60 = vadd.f32 1.0, %v6335_v61  ;;  %v9617_v0 = vpop.eup %6336  ;;  %v9620_v35 = vadd.f32 %v3998_v10, %v3958_v2  ;;  %v5988_v10 = vmul.f32 -1.442695, %v4236_v32  ;;  %v9654_v44 = vmul.f32 %v9579_v29, %v4054_v6 }
 0xb0a   : > { %v4081_v40 = vmul.f32 %v9617_v0, %v9595_v14  ;;  %4891 = vmatpush.msrb.mxu2 %v6559_v20  ;;  %v3879_v18 = vadd.f32 1e-05, %v3878_v63  ;;  %v9667_v55 = vmul.f32 %v9573_v50, %v9644_v51  ;;  %v9670_v1 = vmul.f32 %v9522_v31, %v4175_v23  ;;  %v6562_v63 = vld [vmem:[#allocation2 + $0x1b8] sm:$0xff] }
 0xb0b   : > { %6342 = vrcp.f32 %v9615_v60  ;;  %v4337_v17 = vand.u32 2147483647, %v9615_v60  ;;  %v4339_v6 = vand.u32 2147483648, %v9615_v60  ;;  %vm4087_vm15 = vweird.f32 %v9617_v0 }
 0xb0c   : > { %v6339_v13 = vpop.eup %6338  ;;  %v3916_v3 = vpop.f32.mrf.mxu2  ;;  %6344 = vrsqrt.f32 %v9620_v35  ;;  %v4082_v39 = vmul.f32 %v9617_v0, %v4081_v40  ;;  %4892 = vmatpush.msrb.mxu2 %v6560_v42  ;;  %vm4333_vm4 = vweird.f32 %v9615_v60  ;;  %vm9746_vm5 = vmor %vm4086_vm13, %vm4087_vm15 }
 0xb0d   : > { %v9635_v11 = vpop.eup %6340  ;;  %v9638_v43 = vadd.f32 %v3916_v3, %v3876_v46  ;;  %v9640_v15 = vadd.f32 1.0, %v6339_v13  ;;  %vm4338_vm6 = vcmp.eq.f32.partialorder %v4337_v17, 8.507059e+37 }
 0xb0e   : > { %v3960_v56 = vpop.f32.mrf.mxu3  ;;  %v4001_v62 = vpop.f32.mrf.mxu0  ;;  %v4071_v38 = vmul.f32 %v9635_v11, %v9606_v9  ;;  %4893 = vmatpush.msrb.mxu2 %v6561_v59  ;;  %v4083_v12 = vmul.f32 0.5, %v4082_v39  ;;  %vm4077_vm10 = vweird.f32 %v9635_v11 }
 0xb0f   : > { %6346 = vrsqrt.f32 %v9638_v43  ;;  %v3961_v22 = vadd.f32 1e-05, %v3960_v56  ;;  %vm4318_vm2 = vweird.f32 %v9640_v15  ;;  %vm9780_vm13 = vmor %vm4076_vm8, %vm4077_vm10  ;;  %vm4096_vm15 = vweird.f32 %v9638_v43 }
 0xb10   : > { %6348 = vrcp.f32 %v9640_v15  ;;  %v4072_v46 = vmul.f32 %v9635_v11, %v4071_v38  ;;  %4894 = vmatpush.msrb.mxu2 %v6562_v63  ;;  %v3881_v3 = vpop.f32.mrf.mxu1  ;;  %v6563_v38 = vld [vmem:[#allocation2 + $0x1b0] sm:$0xff]  ;;  %v4084_v42 = vsub.f32 1.5, %v4083_v12  ;;  %v4322_v12 = vand.u32 2147483647, %v9640_v15 }
 0xb11   : > { %v9651_v58 = vpop.eup %6342  ;;  %v9657_v61 = vadd.f32 %v4001_v62, %v3961_v22 }
 0xb12   : > { %v4329_v47 = vmul.f32 %v9651_v58, %v9615_v60  ;;  %v9662_v2 = vpop.eup %6344  ;;  %vm4334_vm0 = vweird.f32 %v9651_v58  ;;  %4895 = vmatpush.msrb.mxu2 %v6563_v38  ;;  %v4340_v60 = vor.u32 1.1754944e-38, %v4339_v6  ;;  %v3882_v6 = vadd.f32 1e-05, %v3881_v3 }
 0xb13   : > { %6350 = vrsqrt.f32 %v9657_v61  ;;  %v4101_v62 = vmul.f32 %v9662_v2, %v9620_v35  ;;  %vm9709_vm3 = vmor %vm4333_vm4, %vm4334_vm0  ;;  %v9725_v40 = vmul.f32 %v9617_v0, %v4084_v42  ;;  %vm9732_vm9 = vcmp.eq.f32.partialorder %v4322_v12, 8.507059e+37 }
 0xb14   : > { %v3919_v24 = vpop.f32.mrf.mxu2  ;;  %v4330_v13 = vsub.f32 1.0, %v4329_v47  ;;  %6352 = vpow2.f32 %v5988_v10  ;;  %v4073_v47 = vmul.f32 0.5, %v4072_v46  ;;  %v4324_v3 = vand.u32 2147483648, %v9640_v15 }
 0xb15   : > { %v9677_v54 = vpop.eup %6346  ;;  %v9683_v32 = vadd.f32 %v3919_v24, %v3879_v18  ;;  %v6564_v24 = vld [vmem:[#allocation2 + $0x1a8] sm:$0xff]  ;;  %vm4107_vm12 = vweird.f32 %v9662_v2  ;;  %vm4106_vm0 = vweird.f32 %v9620_v35  ;;  %vm4126_vm10 = vweird.f32 %v9657_v61 }
 0xb16   : > { %v9687_v56 = vpop.eup %6348  ;;  %v4091_v20 = vmul.f32 %v9677_v54, %v9638_v43  ;;  %v3963_v22 = vpop.f32.mrf.mxu3  ;;  %v4331_v39 = vmul.f32 %v9651_v58, %v4330_v13  ;;  %4896 = vmatpush.msrb.mxu2 %v6564_v24  ;;  %vm4097_vm14 = vweird.f32 %v9677_v54 }
 0xb17   : > { %v4004_v23 = vpop.f32.mrf.mxu0  ;;  %6354 = vrsqrt.f32 %v9683_v32  ;;  %v3964_v10 = vadd.f32 1e-05, %v3963_v22  ;;  %v4314_v18 = vmul.f32 %v9687_v56, %v9640_v15  ;;  %vm4319_vm11 = vweird.f32 %v9687_v56 }
 0xb18   : > { %v4332_v59 = vadd.f32 %v9651_v58, %v4331_v39  ;;  %v4102_v39 = vmul.f32 %v9662_v2, %v4101_v62  ;;  %v4092_v38 = vmul.f32 %v9677_v54, %v4091_v20  ;;  %v4074_v62 = vsub.f32 1.5, %v4073_v47  ;;  %vm4320_vm1 = vmor %vm4318_vm2, %vm4319_vm11 }
 0xb19   : > { %v9703_v13 = vpop.eup %6350  ;;  %v9705_v63 = vadd.f32 %v4004_v23, %v3964_v10  ;;  %v6565_v10 = vld [vmem:[#allocation2 + $0x1a0] sm:$0xff]  ;;  %v4315_v22 = vsub.f32 1.0, %v4314_v18 }
 0xb1a   : > { %v6353_v46 = vpop.eup %6352  ;;  %v4336_v23 = vsel %vm9709_vm3, %v9651_v58, %v4332_v59  ;;  %4897 = vmatpush.msrb.mxu2 %v6565_v10  ;;  %v4121_v17 = vmul.f32 %v9703_v13, %v9657_v61  ;;  %v6566_v58 = vld [vmem:[#allocation2 + $0x198] sm:$0xff]  ;;  %v4103_v42 = vmul.f32 0.5, %v4102_v39  ;;  %v4093_v47 = vmul.f32 0.5, %v4092_v38 }
 0xb1b   : > { %6356 = vrsqrt.f32 %v9705_v63  ;;  %v4341_v24 = vsel %vm4338_vm6, %v4340_v60, %v4336_v23  ;;  %v9737_v60 = vadd.f32 1.0, %v6353_v46  ;;  %v4316_v38 = vmul.f32 %v9687_v56, %v4315_v22  ;;  %v6567_v23 = vld [vmem:[#allocation2 + $0x190] sm:$0xff] }
 0xb1c   : > { %v3922_v20 = vpop.f32.mrf.mxu2  ;;  %v4554_v27 = vmul.f32 %v4341_v24, %v9555_v5  ;;  %4898 = vmatpush.msrb.mxu2 %v6566_v58  ;;  %v4122_v46 = vmul.f32 %v9703_v13, %v4121_v17  ;;  %v9758_v14 = vmul.f32 %v9635_v11, %v4074_v62  ;;  %v3884_v24 = vpop.f32.mrf.mxu1  ;;  %v4104_v62 = vsub.f32 1.5, %v4103_v42 }
 0xb1d   : > { %v9728_v59 = vpop.eup %6354  ;;  %v9730_v10 = vadd.f32 %v3922_v20, %v3882_v6  ;;  %v4317_v58 = vadd.f32 %v9687_v56, %v4316_v38  ;;  %v4094_v12 = vsub.f32 1.5, %v4093_v47  ;;  %v3885_v42 = vadd.f32 1e-05, %v3884_v24 }
 0xb1e   : > { %v4111_v5 = vmul.f32 %v9728_v59, %v9683_v32  ;;  %v3966_v18 = vpop.f32.mrf.mxu3  ;;  %4660 = vmatmul.f32.vlgmr.msra.gmra.mxu2 %v4554_v27  ;;  %v4089_v27 = vsel %vm9746_vm5, %v9617_v0, %v9725_v40  ;;  %v5987_v0 = vmul.f32 -1.442695, %v9667_v55  ;;  %v6568_v40 = vld [vmem:[#allocation2 + $0x188] sm:$0xff]  ;;  %vm4127_vm4 = vweird.f32 %v9703_v13 }
 0xb1f   : > { %6358 = vrsqrt.f32 %v9730_v10  ;;  %v3967_v39 = vadd.f32 1e-05, %v3966_v18  ;;  %4899 = vmatpush.msrb.mxu2 %v6567_v23  ;;  %v4007_v20 = vpop.f32.mrf.mxu0  ;;  %v4325_v18 = vor.u32 1.1754944e-38, %v4324_v3  ;;  %v4123_v3 = vmul.f32 0.5, %v4122_v46  ;;  %vm9881_vm5 = vmor %vm4126_vm10, %vm4127_vm4 }
 0xb20   : > { %v4112_v6 = vmul.f32 %v9728_v59, %v4111_v5  ;;  %6360 = vrcp.f32 %v9737_v60  ;;  %v4321_v47 = vsel %vm4320_vm1, %v9687_v56, %v4317_v58  ;;  %vm4117_vm3 = vweird.f32 %v9728_v59 }
 0xb21   : > { %v9762_v17 = vpop.eup %6356  ;;  %v9765_v22 = vadd.f32 %v4007_v20, %v3967_v39  ;;  %4900 = vmatpush.msrb.mxu2 %v6568_v40  ;;  %v6569_v39 = vld [vmem:[#allocation2 + $0x180] sm:$0xff]  ;;  %v4326_v46 = vsel %vm9732_vm9, %v4325_v18, %v4321_v47  ;;  %v9802_v40 = vmul.f32 %v9662_v2, %v4104_v62  ;;  %v4124_v18 = vsub.f32 1.5, %v4123_v3  ;;  %vm9857_vm9 = vmor %vm4096_vm15, %vm4097_vm14 }
 0xb22   : > { %v4141_v5 = vmul.f32 %v9762_v17, %v9705_v63  ;;  %v4113_v9 = vmul.f32 0.5, %v4112_v6  ;;  %v4553_v20 = vmul.f32 %v4326_v46, %v9582_v8  ;;  %v9805_v6 = vmul.f32 %v9677_v54, %v4094_v12 }
 0xb23   : > { %6362 = vrsqrt.f32 %v9765_v22  ;;  %4901 = vmatpush.msrb.mxu2 %v6569_v39  ;;  %vm4116_vm6 = vweird.f32 %v9683_v32  ;;  %vm4363_vm8 = vweird.f32 %v9737_v60  ;;  %v9821_v3 = vadd.f32 %v9534_v19, %v9670_v1 }
 0xb24   : > { %v4142_v38 = vmul.f32 %v9762_v17, %v4141_v5  ;;  %v3925_v23 = vpop.f32.mrf.mxu2  ;;  %6364 = vpow2.f32 %v5987_v0  ;;  %4619 = vmatmul.f32.vlgmr.msrb.gmra.mxu1 %v4553_v20  ;;  %v4114_v0 = vsub.f32 1.5, %v4113_v9  ;;  %v4369_v5 = vand.u32 2147483648, %v9737_v60  ;;  %vm9897_vm14 = vmor %vm4116_vm6, %vm4117_vm3 }
 0xb25   : > { %v9795_v24 = vpop.eup %6358  ;;  %v9798_v56 = vadd.f32 %v3925_v23, %v3885_v42  ;;  %v10864_v39 = vsel %vm9672_vm7, %v9579_v29, %v9654_v44  ;;  %v4177_v9 = vmul.f32 %v4089_v27, %v9457_v57  ;;  %v4367_v20 = vand.u32 2147483647, %v9737_v60  ;;  %vm9841_vm7 = vmor %vm4106_vm0, %vm4107_vm12 }
 0xb26   : > { %v6361_v58 = vpop.eup %6360  ;;  %v4131_v48 = vmul.f32 %v9795_v24, %v9730_v10  ;;  %v4143_v62 = vmul.f32 0.5, %v4142_v38  ;;  %v4174_v23 = vmul.f32 %v10864_v39, %v9440_v21  ;;  %v4238_v1 = vmul.f32 %v9546_v53, %v9821_v3 }
 0xb27   : > { %6366 = vrsqrt.f32 %v9798_v56  ;;  %v4359_v8 = vmul.f32 %v6361_v58, %v9737_v60  ;;  %vm4364_vm2 = vweird.f32 %v6361_v58  ;;  %v4198_v15 = vmul.f32 %v9522_v31, %v4177_v9 }
 0xb28   : > { %v4132_v12 = vmul.f32 %v9795_v24, %v4131_v48  ;;  %v4195_v52 = vmul.f32 %v9543_v28, %v4174_v23  ;;  %v4125_v57 = vmul.f32 %v9703_v13, %v4124_v18  ;;  %v9847_v29 = vmul.f32 %v9728_v59, %v4114_v0  ;;  %vm4365_vm11 = vmor %vm4363_vm8, %vm4364_vm2 }
 0xb29   : > { %v9817_v42 = vpop.eup %6362  ;;  %v4360_v47 = vsub.f32 1.0, %v4359_v8  ;;  %v4144_v44 = vsub.f32 1.5, %v4143_v62  ;;  %v4370_v23 = vor.u32 1.1754944e-38, %v4369_v5  ;;  %v5990_v18 = vmul.f32 -1.442695, %v4238_v1 }
 0xb2a   : > { %v4133_v38 = vmul.f32 0.5, %v4132_v12  ;;  %v4161_v46 = vmul.f32 %v9817_v42, %v9765_v22  ;;  %v6365_v48 = vpop.eup %6364  ;;  %v9868_v9 = vadd.f32 %v9557_v7, %v4195_v52  ;;  %v9871_v43 = vadd.f32 %v9534_v19, %v4198_v15 }
 0xb2b   : > { %v4361_v8 = vmul.f32 %v6361_v58, %v4360_v47  ;;  %v9849_v27 = vadd.f32 1.0, %v6365_v48  ;;  %v4109_v5 = vsel %vm9841_vm7, %v9662_v2, %v9802_v40  ;;  %vm4368_vm12 = vcmp.eq.f32.partialorder %v4367_v20, 8.507059e+37 }
 0xb2c   : > { %v4134_v47 = vsub.f32 1.5, %v4133_v38  ;;  %v4162_v0 = vmul.f32 %v9817_v42, %v4161_v46  ;;  %v4099_v15 = vsel %vm9857_vm9, %v9677_v54, %v9805_v6  ;;  %v4129_v2 = vsel %vm9881_vm5, %v9703_v13, %v4125_v57 }
 0xb2d   : > { %v9851_v12 = vpop.eup %6366  ;;  %v4362_v39 = vadd.f32 %v6361_v58, %v4361_v8  ;;  %6368 = vrcp.f32 %v9849_v27  ;;  %v4119_v54 = vsel %vm9897_vm14, %v9728_v59, %v9847_v29  ;;  %v9907_v6 = vmul.f32 %v9762_v17, %v4144_v44 }
 0xb2e   : > { %v4151_v62 = vmul.f32 %v9851_v12, %v9798_v56  ;;  %vm4147_vm1 = vweird.f32 %v9762_v17  ;;  %6370 = vpow2.f32 %v5990_v18  ;;  %v9912_v32 = vmul.f32 %v9795_v24, %v4134_v47 }
 0xb2f   : > { %v4366_v60 = vsel %vm4365_vm11, %v6361_v58, %v4362_v39  ;;  %v4163_v46 = vmul.f32 0.5, %v4162_v0  ;;  %v4237_v20 = vmul.f32 %v9573_v50, %v9868_v9  ;;  %v4240_v48 = vmul.f32 %v9546_v53, %v9871_v43 }
 0xb30   : > { %v4152_v58 = vmul.f32 %v9851_v12, %v4151_v62  ;;  %v4371_v40 = vsel %vm4368_vm12, %v4370_v23, %v4366_v60  ;;  %vm4146_vm0 = vweird.f32 %v9705_v63  ;;  %vm4137_vm15 = vweird.f32 %v9795_v24 }
 0xb31   : > { %v4556_v13 = vmul.f32 %v4371_v40, %v9613_v26  ;;  %v4352_v59 = vand.u32 2147483647, %v9849_v27  ;;  %v10873_v26 = vsel %vm9780_vm13, %v9635_v11, %v9758_v14  ;;  %v4179_v1 = vmul.f32 %v4109_v5, %v9467_v37  ;;  %vm9974_vm7 = vmor %vm4146_vm0, %vm4147_vm1 }
 0xb32   : > { %v4176_v8 = vmul.f32 %v10873_v26, %v9452_v45  ;;  %v4178_v52 = vmul.f32 %v4099_v15, %v9460_v33  ;;  %vm4167_vm4 = vweird.f32 %v9817_v42  ;;  %v4153_v21 = vmul.f32 0.5, %v4152_v58 }
 0xb33   : > { %4663 = vmatmul.f32.gmra.mxu2 %v4556_v13  ;;  %vm4348_vm10 = vweird.f32 %v9849_v27  ;;  %v5989_v57 = vmul.f32 -1.442695, %v4237_v20  ;;  %v5992_v29 = vmul.f32 -1.442695, %v4240_v48  ;;  %v6369_v44 = vpop.eup %6368  ;;  %vm4136_vm3 = vweird.f32 %v9730_v10 }
 0xb34   : > { %vm4157_vm6 = vweird.f32 %v9851_v12  ;;  %v4197_v55 = vmul.f32 %v9543_v28, %v4176_v8  ;;  %v4200_v45 = vmul.f32 %v9522_v31, %v4179_v1  ;;  %v4199_v37 = vmul.f32 %v9543_v28, %v4178_v52  ;;  %v6371_v47 = vpop.eup %6370  ;;  %vm9991_vm11 = vmor %vm4136_vm3, %vm4137_vm15 }
 0xb35   : > { %v4181_v33 = vmul.f32 %v4129_v2, %v9477_v34  ;;  %v4164_v11 = vsub.f32 1.5, %v4163_v46  ;;  %vm4166_vm13 = vweird.f32 %v9765_v22  ;;  %v4344_v14 = vmul.f32 %v6369_v44, %v9849_v27 }
 0xb36   : > { %v4354_v35 = vand.u32 2147483648, %v9849_v27  ;;  %6372 = vpow2.f32 %v5989_v57  ;;  %v9941_v39 = vadd.f32 %v9557_v7, %v4197_v55  ;;  %v9944_v23 = vadd.f32 %v9534_v19, %v4200_v45  ;;  %vm10003_vm5 = vmor %vm4166_vm13, %vm4167_vm4 }
 0xb37   : > { %6374 = vpow2.f32 %v5992_v29  ;;  %v9947_v18 = vadd.f32 %v9557_v7, %v4199_v37  ;;  %v4154_v34 = vsub.f32 1.5, %v4153_v21  ;;  %v4345_v0 = vsub.f32 1.0, %v4344_v14 }
 0xb38   : > { %v9949_v62 = vadd.f32 1.0, %v6371_v47  ;;  %v4202_v5 = vmul.f32 %v9522_v31, %v4181_v33  ;;  %v4239_v38 = vmul.f32 %v9573_v50, %v9941_v39  ;;  %v4242_v60 = vmul.f32 %v9546_v53, %v9944_v23 }
 0xb39   : > { %v4241_v15 = vmul.f32 %v9573_v50, %v9947_v18  ;;  %v4180_v2 = vmul.f32 %v4119_v54, %v9470_v25  ;;  %v4346_v61 = vmul.f32 %v6369_v44, %v4345_v0  ;;  %vm4349_vm8 = vweird.f32 %v6369_v44 }
 0xb3a   : > { %vm9959_vm2 = vcmp.eq.f32.partialorder %v4352_v59, 8.507059e+37  ;;  %6376 = vrcp.f32 %v9949_v62  ;;  %v9965_v40 = vmul.f32 %v9817_v42, %v4164_v11  ;;  %v5991_v13 = vmul.f32 -1.442695, %v4239_v38  ;;  %vm4350_vm9 = vmor %vm4348_vm10, %vm4349_vm8 }
 0xb3b   : > { %v5994_v46 = vmul.f32 -1.442695, %v4242_v60  ;;  %v9968_v20 = vadd.f32 %v9534_v19, %v4202_v5  ;;  %v9979_v54 = vmul.f32 %v9851_v12, %v4154_v34  ;;  %v4347_v59 = vadd.f32 %v6369_v44, %v4346_v61 }
 0xb3c   : > { %v6373_v48 = vpop.eup %6372  ;;  %v4355_v26 = vor.u32 1.1754944e-38, %v4354_v35  ;;  %v4201_v8 = vmul.f32 %v9543_v28, %v4180_v2  ;;  %v4397_v52 = vand.u32 2147483647, %v9949_v62  ;;  %6378 = vpow2.f32 %v5991_v13 }
 0xb3d   : > { %v6375_v1 = vpop.eup %6374  ;;  %v9985_v21 = vadd.f32 1.0, %v6373_v48  ;;  %v5993_v63 = vmul.f32 -1.442695, %v4241_v15  ;;  %v4351_v29 = vsel %vm4350_vm9, %v6369_v44, %v4347_v59  ;;  %6380 = vpow2.f32 %v5994_v46 }
 0xb3e   : > { %v9995_v55 = vadd.f32 1.0, %v6375_v1  ;;  %v4244_v27 = vmul.f32 %v9546_v53, %v9968_v20  ;;  %vm4156_vm12 = vweird.f32 %v9798_v56  ;;  %v4356_v10 = vsel %vm9959_vm2, %v4355_v26, %v4351_v29 }
 0xb3f   : > { %v4399_v44 = vand.u32 2147483648, %v9949_v62  ;;  %6382 = vrcp.f32 %v9985_v21  ;;  %v4149_v33 = vsel %vm9974_vm7, %v9762_v17, %v9907_v6  ;;  %vm10018_vm14 = vmor %vm4156_vm12, %vm4157_vm6  ;;  %v4555_v56 = vmul.f32 %v4356_v10, %v9644_v51 }
 0xb40   : > { %v6377_v37 = vpop.eup %6376  ;;  %6384 = vrcp.f32 %v9995_v55  ;;  %v10025_v11 = vadd.f32 %v9557_v7, %v4201_v8  ;;  %v4139_v14 = vsel %vm9991_vm11, %v9795_v24, %v9912_v32  ;;  %v4169_v17 = vsel %vm10003_vm5, %v9817_v42, %v9965_v40 }
 0xb41   : > { %v4159_v51 = vsel %vm10018_vm14, %v9851_v12, %v9979_v54  ;;  %v4389_v6 = vmul.f32 %v6377_v37, %v9949_v62  ;;  %4622 = vmatmul.f32.gmra.mxu1 %v4555_v56  ;;  %vm4393_vm1 = vweird.f32 %v9949_v62  ;;  %vm10041_vm0 = vcmp.eq.f32.partialorder %v4397_v52, 8.507059e+37 }
 0xb42   : > { %6386 = vpow2.f32 %v5993_v63  ;;  %v5996_v24 = vmul.f32 -1.442695, %v4244_v27  ;;  %v6379_v32 = vpop.eup %6378  ;;  %v4400_v34 = vor.u32 1.1754944e-38, %v4399_v44  ;;  %v4382_v0 = vand.u32 2147483647, %v9985_v21 }
 0xb43   : > { %v4390_v47 = vsub.f32 1.0, %v4389_v6  ;;  %v4384_v5 = vand.u32 2147483648, %v9985_v21  ;;  %v6381_v38 = vpop.eup %6380  ;;  %vm4394_vm15 = vweird.f32 %v6377_v37  ;;  %v4427_v60 = vand.u32 2147483647, %v9995_v55 }
 0xb44   : > { %v10048_v15 = vadd.f32 1.0, %v6379_v32  ;;  %v4243_v2 = vmul.f32 %v9573_v50, %v10025_v11  ;;  %v4429_v13 = vand.u32 2147483648, %v9995_v55  ;;  %v10053_v46 = vadd.f32 1.0, %v6381_v38  ;;  %vm4395_vm6 = vmor %vm4393_vm1, %vm4394_vm15 }
 0xb45   : > { %v6383_v61 = vpop.eup %6382  ;;  %v4391_v58 = vmul.f32 %v6377_v37, %v4390_v47  ;;  %6388 = vpow2.f32 %v5996_v24  ;;  %vm4378_vm4 = vweird.f32 %v9985_v21  ;;  %vm4423_vm10 = vweird.f32 %v9995_v55 }
 0xb46   : > { %v6385_v48 = vpop.eup %6384  ;;  %v4374_v25 = vmul.f32 %v6383_v61, %v9985_v21  ;;  %6390 = vrcp.f32 %v10048_v15  ;;  %vm10059_vm3 = vcmp.eq.f32.partialorder %v4382_v0, 8.507059e+37  ;;  %v4385_v8 = vor.u32 1.1754944e-38, %v4384_v5 }
 0xb47   : > { %v4392_v59 = vadd.f32 %v6377_v37, %v4391_v58  ;;  %v4419_v1 = vmul.f32 %v6385_v48, %v9995_v55  ;;  %6392 = vrcp.f32 %v10053_v46  ;;  %v5995_v57 = vmul.f32 -1.442695, %v4243_v2 }
 0xb48   : > { %v6387_v52 = vpop.eup %6386  ;;  %v4375_v63 = vsub.f32 1.0, %v4374_v25  ;;  %v4183_v29 = vmul.f32 %v4149_v33, %v9487_v30  ;;  %vm10069_vm13 = vcmp.eq.f32.partialorder %v4427_v60, 8.507059e+37  ;;  %v4430_v56 = vor.u32 1.1754944e-38, %v4429_v13 }
 0xb49   : > { %v4396_v27 = vsel %vm4395_vm6, %v6377_v37, %v4392_v59  ;;  %v4420_v10 = vsub.f32 1.0, %v4419_v1  ;;  %vm4379_vm8 = vweird.f32 %v6383_v61  ;;  %v10076_v62 = vmul.f32 %v4139_v14, %v9480_v4 }
 0xb4a   : > { %v4401_v6 = vsel %vm10041_vm0, %v4400_v34, %v4396_v27  ;;  %v4376_v24 = vmul.f32 %v6383_v61, %v4375_v63  ;;  %vm4424_vm2 = vweird.f32 %v6385_v48  ;;  %v10079_v30 = vadd.f32 1.0, %v6387_v52  ;;  %vm4380_vm9 = vmor %vm4378_vm4, %vm4379_vm8 }
 0xb4b   : > { %v6389_v32 = vpop.eup %6388  ;;  %v4558_v47 = vmul.f32 %v4401_v6, %v9821_v3  ;;  %v4421_v0 = vmul.f32 %v6385_v48, %v4420_v10  ;;  %vm4408_vm7 = vweird.f32 %v10048_v15  ;;  %6394 = vpow2.f32 %v5995_v57  ;;  %vm4425_vm11 = vmor %vm4423_vm10, %vm4424_vm2 }
 0xb4c   : > { %v6391_v37 = vpop.eup %6390  ;;  %v4377_v33 = vadd.f32 %v6383_v61, %v4376_v24  ;;  %v4204_v35 = vmul.f32 %v9522_v31, %v4183_v29  ;;  %v4412_v3 = vand.u32 2147483647, %v10048_v15  ;;  %6396 = vrcp.f32 %v10079_v30 }
 0xb4d   : > { %4666 = vmatmul.f32.gmra.mxu2 %v4558_v47  ;;  %v4422_v4 = vadd.f32 %v6385_v48, %v4421_v0  ;;  %v4404_v14 = vmul.f32 %v6391_v37, %v10048_v15  ;;  %v6393_v34 = vpop.eup %6392  ;;  %v4414_v38 = vand.u32 2147483648, %v10048_v15  ;;  %vm4453_vm12 = vweird.f32 %v10053_v46 }
 0xb4e   : > { %v4381_v5 = vsel %vm4380_vm9, %v6383_v61, %v4377_v33  ;;  %v10093_v60 = vadd.f32 1.0, %v6389_v32  ;;  %v4449_v13 = vmul.f32 %v6393_v34, %v10053_v46  ;;  %v4457_v55 = vand.u32 2147483647, %v10053_v46  ;;  %v4767_v33 = vld [vmem:[#allocation2 + $0xd98] sm:$0xff] }
 0xb4f   : > { %v4386_v21 = vsel %vm10059_vm3, %v4385_v8, %v4381_v5  ;;  %v4426_v2 = vsel %vm4425_vm11, %v6385_v48, %v4422_v4  ;;  %v4405_v58 = vsub.f32 1.0, %v4404_v14  ;;  %v4459_v59 = vand.u32 2147483648, %v10053_v46  ;;  %4770 = vmatpush.msra.mxu0 %v4767_v33  ;;  %v4758_v33 = vld [vmem:[#allocation2 + $0xd50] sm:$0xff] }
 0xb50   : > { %v4557_v25 = vmul.f32 %v4386_v21, %v9868_v9  ;;  %v4431_v61 = vsel %vm10069_vm13, %v4430_v56, %v4426_v2  ;;  %vm4409_vm1 = vweird.f32 %v6391_v37  ;;  %v4450_v63 = vsub.f32 1.0, %v4449_v13 }
 0xb51   : > { %v4560_v1 = vmul.f32 %v4431_v61, %v9871_v43  ;;  %v4406_v52 = vmul.f32 %v6391_v37, %v4405_v58  ;;  %v6395_v26 = vpop.eup %6394  ;;  %vm10104_vm0 = vcmp.eq.f32.partialorder %v4412_v3, 8.507059e+37  ;;  %vm4454_vm15 = vweird.f32 %v6393_v34  ;;  %vm4410_vm4 = vmor %vm4408_vm7, %vm4409_vm1 }
 0xb52   : > { %4625 = vmatmul.f32.gmra.mxu1 %v4557_v25  ;;  %v4442_v9 = vand.u32 2147483647, %v10079_v30  ;;  %6398 = vrcp.f32 %v10093_v60  ;;  %v6397_v8 = vpop.eup %6396  ;;  %v4451_v29 = vmul.f32 %v6393_v34, %v4450_v63  ;;  %v10110_v27 = vadd.f32 1.0, %v6395_v26  ;;  %vm4455_vm3 = vmor %vm4453_vm12, %vm4454_vm15 }
 0xb53   : > { %v4407_v57 = vadd.f32 %v6391_v37, %v4406_v52  ;;  %v10113_v43 = vadd.f32 %v9534_v19, %v4204_v35  ;;  %v4415_v10 = vor.u32 1.1754944e-38, %v4414_v38  ;;  %vm10117_vm10 = vcmp.eq.f32.partialorder %v4457_v55, 8.507059e+37 }
 0xb54   : > { %v4434_v56 = vmul.f32 %v6397_v8, %v10079_v30  ;;  %v4444_v6 = vand.u32 2147483648, %v10079_v30  ;;  %v4452_v32 = vadd.f32 %v6393_v34, %v4451_v29  ;;  %v4460_v47 = vor.u32 1.1754944e-38, %v4459_v59 }
 0xb55   : > { %4669 = vmatmul.f32.gmra.mxu2 %v4560_v1  ;;  %v4411_v24 = vsel %vm4410_vm4, %v6391_v37, %v4407_v57  ;;  %6400 = vrcp.f32 %v10110_v27  ;;  %vm4438_vm6 = vweird.f32 %v10079_v30  ;;  %vm10130_vm13 = vcmp.eq.f32.partialorder %v4442_v9, 8.507059e+37 }
 0xb56   : > { %v4416_v0 = vsel %vm10104_vm0, %v4415_v10, %v4411_v24  ;;  %v4435_v15 = vsub.f32 1.0, %v4434_v56  ;;  %v4456_v35 = vsel %vm4455_vm3, %v6393_v34, %v4452_v32  ;;  %v4246_v4 = vmul.f32 %v9546_v53, %v10113_v43  ;;  %v4707_v56 = vld [vmem:[#allocation2 + $0xd08] sm:$0xff] }
 0xb57   : > { %v4559_v37 = vmul.f32 %v4416_v0, %v9941_v39  ;;  %v4203_v14 = vmul.f32 %v9543_v28, %v10076_v62  ;;  %v4461_v46 = vsel %vm10117_vm10, %v4460_v47, %v4456_v35  ;;  %vm4439_vm8 = vweird.f32 %v6397_v8  ;;  %v4705_v0 = vld [vmem:[#allocation2 + $0xcf8] sm:$0xff]  ;;  %v4704_v35 = vld [vmem:[#allocation2 + $0xcf0] sm:$0xff] }
 0xb58   : > { %v6399_v3 = vpop.eup %6398  ;;  %v4436_v5 = vmul.f32 %v6397_v8, %v4435_v15  ;;  %v4445_v38 = vor.u32 1.1754944e-38, %v4444_v6  ;;  %v4562_v21 = vmul.f32 %v4461_v46, %v9944_v23  ;;  %v4489_v39 = vand.u32 2147483648, %v10093_v60  ;;  %vm4440_vm2 = vmor %vm4438_vm6, %vm4439_vm8  ;;  %v4832_v15 = vld [vmem:[#allocation2 + $0xe98] sm:$0xff]  ;;  %v4765_v46 = vld [vmem:[#allocation2 + $0xd88] sm:$0xff] }
 0xb59   : > { %v4479_v2 = vmul.f32 %v6399_v3, %v10093_v60  ;;  %v5998_v34 = vmul.f32 -1.442695, %v4246_v4  ;;  %v10145_v13 = vadd.f32 %v9557_v7, %v4203_v14  ;;  %v4185_v62 = vmul.f32 %v4169_v17, %v9497_v16  ;;  %v4831_v4 = vld [vmem:[#allocation2 + $0xe90] sm:$0xff] }
 0xb5a   : > { %4628 = vmatmul.f32.gmra.mxu1 %v4559_v37  ;;  %v4437_v58 = vadd.f32 %v6397_v8, %v4436_v5  ;;  %v4184_v23 = vmul.f32 %v4159_v51, %v9490_v36  ;;  %vm4483_vm7 = vweird.f32 %v10093_v60  ;;  %v4487_v45 = vand.u32 2147483647, %v10093_v60  ;;  %v4766_v14 = vld [vmem:[#allocation2 + $0xd90] sm:$0xff] }
 0xb5b   : > { %v6401_v25 = vpop.eup %6400  ;;  %v4480_v61 = vsub.f32 1.0, %v4479_v2  ;;  %6402 = vpow2.f32 %v5998_v34  ;;  %vm4484_vm5 = vweird.f32 %v6399_v3  ;;  %v4245_v42 = vmul.f32 %v9573_v50, %v10145_v13  ;;  %v4830_v2 = vld [vmem:[#allocation2 + $0xe88] sm:$0xff]  ;;  %4771 = vmatpush.msra.mxu0 %v4766_v14  ;;  %v4824_v14 = vld [vmem:[#allocation2 + $0xe58] sm:$0xff] }
 0xb5c   : > { %v4441_v55 = vsel %vm4440_vm2, %v6397_v8, %v4437_v58  ;;  %v4464_v16 = vmul.f32 %v6401_v25, %v10110_v27  ;;  %v4206_v40 = vmul.f32 %v9522_v31, %v4185_v62  ;;  %v4205_v54 = vmul.f32 %v9543_v28, %v4184_v23  ;;  %vm4485_vm14 = vmor %vm4483_vm7, %vm4484_vm5  ;;  %v4764_v58 = vld [vmem:[#allocation2 + $0xd80] sm:$0xff] }
 0xb5d   : > { %4672 = vmatmul.f32.gmra.mxu2 %v4562_v21  ;;  %v4446_v36 = vsel %vm10130_vm13, %v4445_v38, %v4441_v55  ;;  %v4481_v12 = vmul.f32 %v6399_v3, %v4480_v61  ;;  %v4490_v17 = vor.u32 1.1754944e-38, %v4489_v39  ;;  %v5997_v30 = vmul.f32 -1.442695, %v4245_v42  ;;  %v4703_v21 = vld [vmem:[#allocation2 + $0xce8] sm:$0xff]  ;;  %v4702_v23 = vld [vmem:[#allocation2 + $0xce0] sm:$0xff]  ;;  %4772 = vmatpush.msra.mxu0 %v4765_v46 }
 0xb5e   : > { %v4561_v22 = vmul.f32 %v4446_v36, %v9947_v18  ;;  %v4465_v51 = vsub.f32 1.0, %v4464_v16  ;;  %v4474_v1 = vand.u32 2147483648, %v10110_v27  ;;  %v10173_v52 = vadd.f32 %v9534_v19, %v4206_v40  ;;  %v4763_v16 = vld [vmem:[#allocation2 + $0xd78] sm:$0xff]  ;;  %v4757_v46 = vld [vmem:[#allocation2 + $0xd48] sm:$0xff] }
 0xb5f   : > { %v4482_v59 = vadd.f32 %v6399_v3, %v4481_v12  ;;  %v10176_v63 = vadd.f32 %v9557_v7, %v4205_v54  ;;  %vm4469_vm9 = vweird.f32 %v6401_v25  ;;  %v4472_v28 = vand.u32 2147483647, %v10110_v27  ;;  %v4701_v36 = vld [vmem:[#allocation2 + $0xcd8] sm:$0xff]  ;;  %4773 = vmatpush.msra.mxu0 %v4764_v58  ;;  %v4762_v54 = vld [vmem:[#allocation2 + $0xd70] sm:$0xff]  ;;  %v4756_v58 = vld [vmem:[#allocation2 + $0xd40] sm:$0xff] }
 0xb60   : > { %v4466_v31 = vmul.f32 %v6401_v25, %v4465_v51  ;;  %6404 = vpow2.f32 %v5997_v30  ;;  %vm4488_vm11 = vcmp.eq.f32.partialorder %v4487_v45, 8.507059e+37  ;;  %v4248_v48 = vmul.f32 %v9546_v53, %v10173_v52  ;;  %v4708_v53 = vld [vmem:[#allocation2 + $0xd10] sm:$0xff]  ;;  %v4828_v12 = vld [vmem:[#allocation2 + $0xe78] sm:$0xff] }
 0xb61   : > { %v6403_v18 = vpop.eup %6402  ;;  %v4486_v26 = vsel %vm4485_vm14, %v6399_v3, %v4482_v59  ;;  %v4247_v19 = vmul.f32 %v9573_v50, %v10176_v63  ;;  %vm4468_vm12 = vweird.f32 %v10110_v27  ;;  %v4475_v57 = vor.u32 1.1754944e-38, %v4474_v1  ;;  %v4834_v50 = vld [vmem:[#allocation2 + $0xea8] sm:$0xff]  ;;  %4711 = vmatpush.msra.mxu3 %v4708_v53  ;;  %v4833_v27 = vld [vmem:[#allocation2 + $0xea0] sm:$0xff]  ;;  %v4700_v51 = vld [vmem:[#allocation2 + $0xcd0] sm:$0xff]  ;;  %4774 = vmatpush.msra.mxu0 %v4763_v16 }
 0xb62   : > { %4631 = vmatmul.f32.gmra.mxu1 %v4561_v22  ;;  %v4491_v7 = vsel %vm4488_vm11, %v4490_v17, %v4486_v26  ;;  %v4467_v9 = vadd.f32 %v6401_v25, %v4466_v31  ;;  %v10187_v60 = vadd.f32 1.0, %v6403_v18  ;;  %vm4470_vm1 = vmor %vm4468_vm12, %vm4469_vm9  ;;  %v6000_v29 = vmul.f32 -1.442695, %v4248_v48  ;;  %v4827_v30 = vld [vmem:[#allocation2 + $0xe70] sm:$0xff]  ;;  %v4755_v16 = vld [vmem:[#allocation2 + $0xd38] sm:$0xff] }
 0xb63   : > { %v4564_v8 = vmul.f32 %v4491_v7, %v9968_v20  ;;  %v5999_v10 = vmul.f32 -1.442695, %v4247_v19  ;;  %vm4473_vm0 = vcmp.eq.f32.partialorder %v4472_v28, 8.507059e+37  ;;  %4837 = vmatpush.msra.mxu1 %v4834_v50  ;;  %v4706_v20 = vld [vmem:[#allocation2 + $0xd00] sm:$0xff]  ;;  %4712 = vmatpush.msra.mxu3 %v4707_v56  ;;  %v4761_v28 = vld [vmem:[#allocation2 + $0xd68] sm:$0xff]  ;;  %v4759_v50 = vld [vmem:[#allocation2 + $0xd58] sm:$0xff] }
 0xb64   : > { %v4471_v44 = vsel %vm4470_vm1, %v6401_v25, %v4467_v9  ;;  %6406 = vrcp.f32 %v10187_v60  ;;  %v4519_v62 = vand.u32 2147483648, %v10187_v60  ;;  %v4829_v25 = vld [vmem:[#allocation2 + $0xe80] sm:$0xff]  ;;  %v4517_v55 = vand.u32 2147483647, %v10187_v60  ;;  %v4699_v19 = vld [vmem:[#allocation2 + $0xcc8] sm:$0xff]  ;;  %4775 = vmatpush.msra.mxu0 %v4762_v54  ;;  %v4819_v54 = vld [vmem:[#allocation2 + $0xe30] sm:$0xff] }
 0xb65   : > { %4675 = vmatmul.f32.gmra.mxu2 %v4564_v8  ;;  %v4476_v6 = vsel %vm4473_vm0, %v4475_v57, %v4471_v44  ;;  %6408 = vpow2.f32 %v6000_v29  ;;  %4838 = vmatpush.msra.mxu1 %v4833_v27  ;;  %vm4513_vm4 = vweird.f32 %v10187_v60  ;;  %v4826_v8 = vld [vmem:[#allocation2 + $0xe68] sm:$0xff]  ;;  %v4760_v57 = vld [vmem:[#allocation2 + $0xd60] sm:$0xff] }
 0xb66   : > { %v6405_v24 = vpop.eup %6404  ;;  %v4563_v32 = vmul.f32 %v4476_v6, %v10025_v11  ;;  %6410 = vpow2.f32 %v5999_v10  ;;  %4713 = vmatpush.msra.mxu3 %v4706_v20  ;;  %v4520_v22 = vor.u32 1.1754944e-38, %v4519_v62  ;;  %vm4518_vm3 = vcmp.eq.f32.partialorder %v4517_v55, 8.507059e+37  ;;  %v4698_v44 = vld [vmem:[#allocation2 + $0xcc0] sm:$0xff]  ;;  %4776 = vmatpush.msra.mxu0 %v4761_v28  ;;  %v4697_v20 = vld [vmem:[#allocation2 + $0xcb8] sm:$0xff] }
 0xb67   : > { %v10192_v47 = vadd.f32 1.0, %v6405_v24  ;;  %4839 = vmatpush.msra.mxu1 %v4832_v15  ;;  %v4825_v56 = vld [vmem:[#allocation2 + $0xe60] sm:$0xff]  ;;  %v6577_v28 = vld [vmem:[#allocation2 + $0xd8] sm:$0xff] }
 0xb68   : > { %4714 = vmatpush.msra.mxu3 %v4705_v0  ;;  %4777 = vmatpush.msra.mxu0 %v4760_v57  ;;  %v6586_v57 = vld [vmem:[#allocation2 + $0x2c0] sm:$0xff] }
 0xb69   : > { %6412 = vrcp.f32 %v10192_v47  ;;  %4840 = vmatpush.msra.mxu1 %v4831_v4  ;;  %v4502_v1 = vand.u32 2147483647, %v10192_v47  ;;  %v4504_v31 = vand.u32 2147483648, %v10192_v47  ;;  %vm4498_vm13 = vweird.f32 %v10192_v47 }
 0xb6a   : > { %v6407_v37 = vpop.eup %6406  ;;  %4634 = vmatmul.f32.gmra.mxu1 %v4563_v32  ;;  %4715 = vmatpush.msra.mxu3 %v4704_v35 }
 0xb6b   : > { %v6409_v11 = vpop.eup %6408  ;;  %v4509_v3 = vmul.f32 %v6407_v37, %v10187_v60  ;;  %vm4514_vm15 = vweird.f32 %v6407_v37  ;;  %4841 = vmatpush.msra.mxu1 %v4830_v2  ;;  %vm4503_vm2 = vcmp.eq.f32.partialorder %v4502_v1, 8.507059e+37  ;;  %4778 = vmatpush.msra.mxu0 %v4759_v50  ;;  %v4695_v2 = vld [vmem:[#allocation2 + $0xca8] sm:$0xff]  ;;  %v6575_v1 = vld [vmem:[#allocation2 + $0xe0] sm:$0xff] }
 0xb6c   : > { %v6411_v5 = vpop.eup %6410  ;;  %v10196_v38 = vadd.f32 1.0, %v6409_v11  ;;  %4716 = vmatpush.msra.mxu3 %v4703_v21  ;;  %vm4515_vm10 = vmor %vm4513_vm4, %vm4514_vm15  ;;  %v4696_v11 = vld [vmem:[#allocation2 + $0xcb0] sm:$0xff]  ;;  %v6592_v50 = vld [vmem:[#allocation2 + $0x2a8] sm:$0xff] }
 0xb6d   : > { %v4510_v39 = vsub.f32 1.0, %v4509_v3  ;;  %v10198_v34 = vadd.f32 1.0, %v6411_v5  ;;  %4842 = vmatpush.msra.mxu1 %v4829_v25  ;;  %v4823_v21 = vld [vmem:[#allocation2 + $0xe50] sm:$0xff]  ;;  %4779 = vmatpush.msra.mxu0 %v4758_v33  ;;  %v4822_v25 = vld [vmem:[#allocation2 + $0xe48] sm:$0xff] }
 0xb6e   : > { %6414 = vrcp.f32 %v10196_v38  ;;  %4717 = vmatpush.msra.mxu3 %v4702_v23  ;;  %v4547_v27 = vand.u32 2147483647, %v10196_v38  ;;  %v4549_v24 = vand.u32 2147483648, %v10196_v38  ;;  %vm4543_vm14 = vweird.f32 %v10196_v38  ;;  %v6597_v33 = vld [vmem:[#allocation2 + $0x88] sm:$0xff] }
 0xb6f   : > { %v10202_v61 = vpop.eup %6412  ;;  %v4511_v45 = vmul.f32 %v6407_v37, %v4510_v39  ;;  %6416 = vrcp.f32 %v10198_v34  ;;  %4843 = vmatpush.msra.mxu1 %v4828_v12  ;;  %v4534_v15 = vand.u32 2147483648, %v10198_v34  ;;  %v4532_v4 = vand.u32 2147483647, %v10198_v34  ;;  %4780 = vmatpush.msra.mxu0 %v4757_v46  ;;  %v4693_v12 = vld [vmem:[#allocation2 + $0xc98] sm:$0xff]  ;;  %v6603_v46 = vld [vmem:[#allocation2 + $0x3f0] sm:$0xff] }
 0xb70   : > { %v4494_v42 = vmul.f32 %v10202_v61, %v10192_v47  ;;  %4718 = vmatpush.msra.mxu3 %v4701_v36  ;;  %vm4499_vm6 = vweird.f32 %v10202_v61  ;;  %vm4528_vm11 = vweird.f32 %v10198_v34  ;;  %vm4548_vm12 = vcmp.eq.f32.partialorder %v4547_v27, 8.507059e+37  ;;  %v4754_v36 = vld [vmem:[#allocation2 + $0xd30] sm:$0xff] }
 0xb71   : > { %v4512_v40 = vadd.f32 %v6407_v37, %v4511_v45  ;;  %4844 = vmatpush.msra.mxu1 %v4827_v30  ;;  %vm4500_vm8 = vmor %vm4498_vm13, %vm4499_vm6  ;;  %vm4533_vm0 = vcmp.eq.f32.partialorder %v4532_v4, 8.507059e+37  ;;  %v4694_v45 = vld [vmem:[#allocation2 + $0xca0] sm:$0xff]  ;;  %4781 = vmatpush.msra.mxu0 %v4756_v58  ;;  %v6573_v30 = vld [vmem:[#allocation2 + $0xe8] sm:$0xff] }
 0xb72   : > { %v4495_v17 = vsub.f32 1.0, %v4494_v42  ;;  %4719 = vmatpush.msra.mxu3 %v4700_v51  ;;  %v4821_v42 = vld [vmem:[#allocation2 + $0xe40] sm:$0xff]  ;;  %v6572_v51 = vld [vmem:[#allocation2 + $0x2f8] sm:$0xff]  ;;  %v6611_v58 = vld [vmem:[#allocation2 + $0x3b0] sm:$0xff] }
 0xb73   : > { %v4516_v59 = vsel %vm4515_vm10, %v6407_v37, %v4512_v40  ;;  %4845 = vmatpush.msra.mxu1 %v4826_v8  ;;  %4782 = vmatpush.msra.mxu0 %v4755_v16  ;;  %v4753_v40 = vld [vmem:[#allocation2 + $0xd28] sm:$0xff]  ;;  %v6585_v8 = vld [vmem:[#allocation2 + $0xb8] sm:$0xff]  ;;  %v6599_v4 = vld [vmem:[#allocation2 + $0x80] sm:$0xff] }
 0xb74   : > { %v10212_v18 = vpop.eup %6414  ;;  %v4521_v26 = vsel %vm4518_vm3, %v4520_v22, %v4516_v59  ;;  %v4496_v48 = vmul.f32 %v10202_v61, %v4495_v17  ;;  %4720 = vmatpush.msra.mxu3 %v4699_v19  ;;  %v4752_v22 = vld [vmem:[#allocation2 + $0xd20] sm:$0xff]  ;;  %v6570_v17 = vld [vmem:[#allocation2 + $0xf8] sm:$0xff]  ;;  %v6574_v59 = vld [vmem:[#allocation2 + $0x2f0] sm:$0xff] }
 0xb75   : > { %v10216_v7 = vpop.eup %6416  ;;  %v4566_v9 = vmul.f32 %v4521_v26, %v10113_v43  ;;  %v4539_v60 = vmul.f32 %v10212_v18, %v10196_v38  ;;  %v4505_v43 = vor.u32 1.1754944e-38, %v4504_v31  ;;  %vm4544_vm7 = vweird.f32 %v10212_v18  ;;  %4846 = vmatpush.msra.mxu1 %v4825_v56  ;;  %4783 = vmatpush.msra.mxu0 %v4754_v36  ;;  %v6576_v31 = vld [vmem:[#allocation2 + $0x2e8] sm:$0xff]  ;;  %v6579_v26 = vld [vmem:[#allocation2 + $0xd0] sm:$0xff]  ;;  %v6591_v56 = vld [vmem:[#allocation2 + $0xa0] sm:$0xff] }
 0xb76   : > { %v4497_v29 = vadd.f32 %v10202_v61, %v4496_v48  ;;  %v4524_v10 = vmul.f32 %v10216_v7, %v10198_v34  ;;  %4721 = vmatpush.msra.mxu3 %v4698_v44  ;;  %vm4529_vm5 = vweird.f32 %v10216_v7  ;;  %vm4545_vm9 = vmor %vm4543_vm14, %vm4544_vm7  ;;  %v4535_v38 = vor.u32 1.1754944e-38, %v4534_v15  ;;  %v6580_v48 = vld [vmem:[#allocation2 + $0x2d8] sm:$0xff]  ;;  %v6581_v19 = vld [vmem:[#allocation2 + $0xc8] sm:$0xff] }
 0xb77   : > { %4678 = vmatmul.f32.gmra.mxu2 %v4566_v9  ;;  %v4540_v53 = vsub.f32 1.0, %v4539_v60  ;;  %vm4530_vm1 = vmor %vm4528_vm11, %vm4529_vm5  ;;  %4847 = vmatpush.msra.mxu1 %v4824_v14  ;;  %v6583_v9 = vld [vmem:[#allocation2 + $0xc0] sm:$0xff]  ;;  %v6584_v60 = vld [vmem:[#allocation2 + $0x2c8] sm:$0xff] }
 0xb78   : > { %v4501_v6 = vsel %vm4500_vm8, %v10202_v61, %v4497_v29  ;;  %v4525_v32 = vsub.f32 1.0, %v4524_v10  ;;  %4722 = vmatpush.msra.mxu3 %v4697_v20  ;;  %4784 = vmatpush.msra.mxu0 %v4753_v40  ;;  %v6587_v29 = vld [vmem:[#allocation2 + $0xb0] sm:$0xff]  ;;  %v6588_v10 = vld [vmem:[#allocation2 + $0x2b8] sm:$0xff]  ;;  %v6589_v44 = vld [vmem:[#allocation2 + $0xa8] sm:$0xff] }
 0xb79   : > { %v4506_v47 = vsel %vm4503_vm2, %v4505_v43, %v4501_v6  ;;  %v4541_v0 = vmul.f32 %v10212_v18, %v4540_v53  ;;  %4848 = vmatpush.msra.mxu1 %v4823_v21  ;;  %v6590_v43 = vld [vmem:[#allocation2 + $0x2b0] sm:$0xff]  ;;  %v6593_v6 = vld [vmem:[#allocation2 + $0x98] sm:$0xff]  ;;  %v6600_v14 = vld [vmem:[#allocation2 + $0x288] sm:$0xff] }
 0xb7a   : > { %v4565_v37 = vmul.f32 %v4506_v47, %v10145_v13  ;;  %v4526_v35 = vmul.f32 %v10216_v7, %v4525_v32  ;;  %v4550_v13 = vor.u32 1.1754944e-38, %v4549_v24  ;;  %4723 = vmatpush.msra.mxu3 %v4696_v11  ;;  %4785 = vmatpush.msra.mxu0 %v4752_v22  ;;  %v10249_v53 = vld [vmem:[#allocation2 + $0xc90] ss:$0 sm:$0xff]  ;;  %v6594_v32 = vld [vmem:[#allocation2 + $0x2a0] sm:$0xff]  ;;  %v6601_v11 = vld [vmem:[#allocation2 + $0x3f8] sm:$0xff] }
 0xb7b   : > { %v4542_v3 = vadd.f32 %v10212_v18, %v4541_v0  ;;  %4849 = vmatpush.msra.mxu1 %v4822_v25  ;;  %v6595_v47 = vld [vmem:[#allocation2 + $0x90] sm:$0xff]  ;;  %v6596_v0 = vld [vmem:[#allocation2 + $0x298] sm:$0xff]  ;;  %v6617_v40 = vld [vmem:[#allocation2 + $0x380] sm:$0xff] }
 0xb7c   : > { %4637 = vmatmul.f32.gmra.mxu1 %v4565_v37  ;;  %v4527_v5 = vadd.f32 %v10216_v7, %v4526_v35  ;;  %4724 = vmatpush.msra.mxu3 %v4695_v2  ;;  %v6598_v37 = vld [vmem:[#allocation2 + $0x290] sm:$0xff]  ;;  %v6608_v2 = vld [vmem:[#allocation2 + $0x3c8] sm:$0xff]  ;;  %v6614_v16 = vld [vmem:[#allocation2 + $0x398] sm:$0xff] }
 0xb7d   : > { %v4546_v39 = vsel %vm4545_vm9, %v10212_v18, %v4542_v3  ;;  %4850 = vmatpush.msra.mxu1 %v4821_v42  ;;  %v6578_v18 = vld [vmem:[#allocation2 + $0x2e0] sm:$0xff]  ;;  %v6607_v21 = vld [vmem:[#allocation2 + $0x3d0] sm:$0xff]  ;;  %v4983_v36 = vld [vmem:[#allocation2 + $0xfb8] sm:$0xff] }
 0xb7e   : > { %v4551_v62 = vsel %vm4548_vm12, %v4550_v13, %v4546_v39  ;;  %v4531_v23 = vsel %vm4530_vm1, %v10216_v7, %v4527_v5  ;;  %4725 = vmatpush.msra.mxu3 %v4694_v45  ;;  %v6582_v7 = vld [vmem:[#allocation2 + $0x2d0] sm:$0xff]  ;;  %v6602_v3 = vld [vmem:[#allocation2 + $0x280] sm:$0xff]  ;;  %v6604_v13 = vld [vmem:[#allocation2 + $0x3e8] sm:$0xff]  ;;  %4986 = vmatpush.msrb.mxu0 %v4983_v36 }
 0xb7f   : > { %v4568_v34 = vmul.f32 %v4551_v62, %v10173_v52  ;;  %v4536_v61 = vsel %vm4533_vm0, %v4535_v38, %v4531_v23  ;;  %v4820_v52 = vld [vmem:[#allocation2 + $0xe38] sm:$0xff]  ;;  %v6609_v39 = vld [vmem:[#allocation2 + $0x3c0] sm:$0xff]  ;;  %v6615_v42 = vld [vmem:[#allocation2 + $0x390] sm:$0xff] }
 0xb80   : > { %v4567_v55 = vmul.f32 %v4536_v61, %v10176_v63  ;;  %4726 = vmatpush.msra.mxu3 %v4693_v12  ;;  %4851 = vmatpush.msra.mxu1 %v4820_v52  ;;  %v6571_v63 = vld [vmem:[#allocation2 + $0xf0] sm:$0xff]  ;;  %v6606_v5 = vld [vmem:[#allocation2 + $0x3d8] sm:$0xff]  ;;  %v6613_v45 = vld [vmem:[#allocation2 + $0x3a0] sm:$0xff] }
 0xb81   : > { %4681 = vmatmul.f32.gmra.mxu2 %v4568_v34  ;;  %v6610_v38 = vld [vmem:[#allocation2 + $0x3b8] sm:$0xff]  ;;  %v6612_v34 = vld [vmem:[#allocation2 + $0x3a8] sm:$0xff]  ;;  %v4982_v52 = vld [vmem:[#allocation2 + $0xfb0] sm:$0xff] }
 0xb82   : > { %4927 = vmatpush.msrb.mxu3 %v6570_v17  ;;  %4852 = vmatpush.msra.mxu1 %v4819_v54  ;;  %v6616_v12 = vld [vmem:[#allocation2 + $0x388] sm:$0xff]  ;;  %v6627_v36 = vld [vmem:[#allocation2 + $0x4b0] sm:$0xff] }
 0xb83   : > { %v4981_v54 = vld [vmem:[#allocation2 + $0xfa8] sm:$0xff]  ;;  %4987 = vmatpush.msrb.mxu0 %v4982_v52 }
 0xb84   : > { %4640 = vmatmul.f32.gmra.mxu1 %v4567_v55  ;;  %4928 = vmatpush.msrb.mxu3 %v6571_v63  ;;  %v6628_v52 = vld [vmem:[#allocation2 + $0x4a8] sm:$0xff] }
 0xb85   : > { %5035 = vmatpush.msrb.mxu1 %v6572_v51  ;;  %4988 = vmatpush.msrb.mxu0 %v4981_v54  ;;  %v6629_v54 = vld [vmem:[#allocation2 + $0x4a0] sm:$0xff] }
 0xb86   : > { %4929 = vmatpush.msrb.mxu3 %v6573_v30  ;;  %v10896_v30 = vld [vmem:[#allocation12_spill] sm:$0xff] }
 0xb87   : > { %5036 = vmatpush.msrb.mxu1 %v6574_v59 }
 0xb88   : > { %4930 = vmatpush.msrb.mxu3 %v6575_v1 }
 0xb89   : > { %5037 = vmatpush.msrb.mxu1 %v6576_v31 }
 0xb8a   : > { %4931 = vmatpush.msrb.mxu3 %v6577_v28 }
 0xb8b   : > { %5038 = vmatpush.msrb.mxu1 %v6578_v18  ;;  %v4979_v18 = vld [vmem:[#allocation2 + $0xf98] sm:$0xff] }
 0xb8c   : > { %4932 = vmatpush.msrb.mxu3 %v6579_v26 }
 0xb8d   : > { %5039 = vmatpush.msrb.mxu1 %v6580_v48  ;;  %v4978_v48 = vld [vmem:[#allocation2 + $0xf90] sm:$0xff] }
 0xb8e   : > { %4933 = vmatpush.msrb.mxu3 %v6581_v19  ;;  %v10897_v19 = vld [vmem:[#allocation14_spill] sm:$0xff] }
 0xb8f   : > { %5040 = vmatpush.msrb.mxu1 %v6582_v7 }
 0xb90   : > { %4934 = vmatpush.msrb.mxu3 %v6583_v9  ;;  %v4977_v9 = vld [vmem:[#allocation2 + $0xf88] sm:$0xff] }
 0xb91   : > { %5041 = vmatpush.msrb.mxu1 %v6584_v60  ;;  %v4976_v60 = vld [vmem:[#allocation2 + $0xf80] sm:$0xff] }
 0xb92   : > { %4935 = vmatpush.msrb.mxu3 %v6585_v8 }
 0xb93   : > { %5042 = vmatpush.msrb.mxu1 %v6586_v57 }
 0xb94   : > { %4936 = vmatpush.msrb.mxu3 %v6587_v29 }
 0xb95   : > { %5043 = vmatpush.msrb.mxu1 %v6588_v10  ;;  %v4975_v10 = vld [vmem:[#allocation2 + $0xf78] sm:$0xff] }
 0xb96   : > { %4937 = vmatpush.msrb.mxu3 %v6589_v44 }
 0xb97   : > { %5044 = vmatpush.msrb.mxu1 %v6590_v43  ;;  %v4974_v43 = vld [vmem:[#allocation2 + $0xf70] sm:$0xff] }
 0xb98   : > { %4938 = vmatpush.msrb.mxu3 %v6591_v56  ;;  %v10898_v56 = vld [vmem:[#allocation15_spill] sm:$0xff] }
 0xb99   : > { %5045 = vmatpush.msrb.mxu1 %v6592_v50 }
 0xb9a   : > { %4939 = vmatpush.msrb.mxu3 %v6593_v6  ;;  %v4973_v6 = vld [vmem:[#allocation2 + $0xf68] sm:$0xff] }
 0xb9b   : > { %5046 = vmatpush.msrb.mxu1 %v6594_v32 }
 0xb9c   : > { %4940 = vmatpush.msrb.mxu3 %v6595_v47 }
 0xb9d   : > { %5047 = vmatpush.msrb.mxu1 %v6596_v0  ;;  %v4971_v0 = vld [vmem:[#allocation2 + $0xf58] sm:$0xff] }
 0xb9e   : > { %4941 = vmatpush.msrb.mxu3 %v6597_v33  ;;  %v10899_v33 = vld [vmem:[#allocation16_spill] sm:$0xff] }
 0xb9f   : > { %5048 = vmatpush.msrb.mxu1 %v6598_v37 }
 0xba0   : > { %4942 = vmatpush.msrb.mxu3 %v6599_v4  ;;  %v4969_v4 = vld [vmem:[#allocation2 + $0xf48] sm:$0xff] }
 0xba1   : > { %v4620_v27 = vpop.f32.mrf.mxu1  ;;  %v4661_v24 = vpop.f32.mrf.mxu2  ;;  %5049 = vmatpush.msrb.mxu1 %v6600_v14  ;;  %v4968_v14 = vld [vmem:[#allocation2 + $0xf40] sm:$0xff] }
 0xba2   : > { %v4621_v20 = vadd.f32 %v10249_v53, %v4620_v27 }
 0xba3   : > { %5050 = vmatpush.msrb.mxu1 %v6602_v3  ;;  %v6619_v3 = vld [vmem:[#allocation2 + $0x4f0] sm:$0xff] }
 0xba4   : > { %v4662_v15 = vadd.f32 %v4661_v24, %v4621_v20  ;;  %v4972_v24 = vld [vmem:[#allocation2 + $0xf60] sm:$0xff] }
 0xba6   : > { %v10253_v35 = vadd.f32 %v4662_v15, %v8932_v49  ;;  %v6605_v49 = vld [vmem:[#allocation2 + $0x3e0] sm:$0xff]  ;;  %v4970_v15 = vld [vmem:[#allocation2 + $0xf50] sm:$0xff] }
 0xba8   : > { %4727 = vmatmul.f32.vlgmr.msra.gmra.mxu3 %v10253_v35  ;;  %4786 = vmatmul.f32.vlgmr.msra.gmra.mxu0 %v10253_v35 }
 0xba9   : > { %4853 = vmatmul.f32.vlgmr.msra.gmra.mxu1 %v10253_v35  ;;  %5151 = vmatpush.msra.mxu3 %v6601_v11  ;;  %v6618_v11 = vld [vmem:[#allocation2 + $0x4f8] sm:$0xff] }
 0xbab   : > { %5152 = vmatpush.msra.mxu3 %v6603_v46  ;;  %v6620_v46 = vld [vmem:[#allocation2 + $0x4e8] sm:$0xff] }
 0xbad   : > { %5153 = vmatpush.msra.mxu3 %v6604_v13  ;;  %v6621_v13 = vld [vmem:[#allocation2 + $0x4e0] sm:$0xff] }
 0xbaf   : > { %5154 = vmatpush.msra.mxu3 %v6605_v49 }
 0xbb1   : > { %5155 = vmatpush.msra.mxu3 %v6606_v5 }
 0xbb3   : > { %5156 = vmatpush.msra.mxu3 %v6607_v21 }
 0xbb5   : > { %5157 = vmatpush.msra.mxu3 %v6608_v2  ;;  %v6622_v2 = vld [vmem:[#allocation2 + $0x4d8] sm:$0xff] }
 0xbb6   : > { %v4664_v23 = vpop.f32.mrf.mxu2 }
 0xbb7   : > { %5158 = vmatpush.msra.mxu3 %v6609_v39 }
 0xbb9   : > { %5159 = vmatpush.msra.mxu3 %v6610_v38  ;;  %v6623_v38 = vld [vmem:[#allocation2 + $0x4d0] sm:$0xff] }
 0xbbb   : > { %5160 = vmatpush.msra.mxu3 %v6611_v58  ;;  %v10900_v58 = vld [vmem:[#allocation13_spill] sm:$0xff] }
 0xbbd   : > { %5161 = vmatpush.msra.mxu3 %v6612_v34  ;;  %v6625_v34 = vld [vmem:[#allocation2 + $0x4c0] sm:$0xff] }
 0xbbe   : > { %v4623_v62 = vpop.f32.mrf.mxu1 }
 0xbbf   : > { %v4624_v25 = vadd.f32 %v10249_v53, %v4623_v62  ;;  %5162 = vmatpush.msra.mxu3 %v6613_v45  ;;  %v6626_v45 = vld [vmem:[#allocation2 + $0x4b8] sm:$0xff] }
 0xbc1   : > { %v4665_v61 = vadd.f32 %v4664_v23, %v4624_v25  ;;  %5163 = vmatpush.msra.mxu3 %v6614_v16  ;;  %v6624_v23 = vld [vmem:[#allocation2 + $0x4c8] sm:$0xff] }
 0xbc3   : > { %v10260_v55 = vadd.f32 %v4665_v61, %v8939_v41  ;;  %5164 = vmatpush.msra.mxu3 %v6615_v42  ;;  %v4980_v41 = vld [vmem:[#allocation2 + $0xfa0] sm:$0xff] }
 0xbc4   : > { %4989 = vmatpush.msrb.mxu0 %v4980_v41  ;;  %v6631_v41 = vld [vmem:[#allocation2 + $0x490] sm:$0xff] }
 0xbc5   : > { %4730 = vmatmul.f32.gmra.mxu3 %v10260_v55  ;;  %4789 = vmatmul.f32.gmra.mxu0 %v10260_v55 }
 0xbc6   : > { %4856 = vmatmul.f32.gmra.mxu1 %v10260_v55  ;;  %5165 = vmatpush.msra.mxu3 %v6616_v12  ;;  %v10901_v12 = vld [vmem:[#allocation17_spill] sm:$0xff] }
 0xbc7   : > { %4990 = vmatpush.msrb.mxu0 %v4979_v18  ;;  %v6640_v18 = vld [vmem:[#allocation2 + $0x248] sm:$0xff] }
 0xbc8   : > { %5166 = vmatpush.msra.mxu3 %v6617_v40 }
 0xbc9   : > { %4991 = vmatpush.msrb.mxu0 %v4978_v48  ;;  %v6642_v48 = vld [vmem:[#allocation2 + $0x238] sm:$0xff] }
 0xbcb   : > { %4992 = vmatpush.msrb.mxu0 %v4977_v9  ;;  %v6644_v9 = vld [vmem:[#allocation2 + $0x228] sm:$0xff] }
 0xbcd   : > { %4993 = vmatpush.msrb.mxu0 %v4976_v60  ;;  %v5099_v60 = vld [vmem:[#allocation2 + $0x10c8] sm:$0xff] }
 0xbce   : > { %5102 = vmatpush.msra.mxu2 %v5099_v60 }
 0xbcf   : > { %v4626_v22 = vpop.f32.mrf.mxu1  ;;  %4994 = vmatpush.msrb.mxu0 %v4975_v10  ;;  %v10313_v10 = vld [vmem:[#allocation2 + $0xeb0] ss:$0 sm:$0xff] }
 0xbd0   : > { %v4627_v17 = vadd.f32 %v10249_v53, %v4626_v22  ;;  %v4667_v63 = vpop.f32.mrf.mxu2  ;;  %v6632_v22 = vld [vmem:[#allocation2 + $0x488] sm:$0xff] }
 0xbd1   : > { %4995 = vmatpush.msrb.mxu0 %v4974_v43 }
 0xbd2   : > { %v4668_v51 = vadd.f32 %v4667_v63, %v4627_v17  ;;  %v6633_v17 = vld [vmem:[#allocation2 + $0x480] sm:$0xff]  ;;  %v6634_v63 = vld [vmem:[#allocation2 + $0x278] sm:$0xff] }
 0xbd3   : > { %4996 = vmatpush.msrb.mxu0 %v4973_v6  ;;  %v6646_v6 = vld [vmem:[#allocation2 + $0x218] sm:$0xff] }
 0xbd4   : > { %v10267_v59 = vadd.f32 %v4668_v51, %v10896_v30  ;;  %v6635_v51 = vld [vmem:[#allocation2 + $0x270] sm:$0xff]  ;;  %v6636_v30 = vld [vmem:[#allocation2 + $0x268] sm:$0xff] }
 0xbd5   : > { %4997 = vmatpush.msrb.mxu0 %v4972_v24  ;;  %v6647_v24 = vld [vmem:[#allocation2 + $0x210] sm:$0xff] }
 0xbd6   : > { %4733 = vmatmul.f32.gmra.mxu3 %v10267_v59  ;;  %4792 = vmatmul.f32.gmra.mxu0 %v10267_v59 }
 0xbd7   : > { %4859 = vmatmul.f32.gmra.mxu1 %v10267_v59  ;;  %v4629_v1 = vpop.f32.mrf.mxu1  ;;  %4998 = vmatpush.msrb.mxu0 %v4971_v0  ;;  %v6648_v0 = vld [vmem:[#allocation2 + $0x208] sm:$0xff] }
 0xbd8   : > { %v4630_v31 = vadd.f32 %v10249_v53, %v4629_v1  ;;  %v4670_v28 = vpop.f32.mrf.mxu2  ;;  %v6637_v1 = vld [vmem:[#allocation2 + $0x260] sm:$0xff] }
 0xbd9   : > { %4999 = vmatpush.msrb.mxu0 %v4970_v15 }
 0xbda   : > { %v4671_v26 = vadd.f32 %v4670_v28, %v4630_v31  ;;  %v6638_v31 = vld [vmem:[#allocation2 + $0x258] sm:$0xff]  ;;  %v6639_v28 = vld [vmem:[#allocation2 + $0x250] sm:$0xff] }
 0xbdb   : > { %5000 = vmatpush.msrb.mxu0 %v4969_v4  ;;  %v6649_v4 = vld [vmem:[#allocation2 + $0x200] sm:$0xff] }
 0xbdc   : > { %v10274_v7 = vadd.f32 %v4671_v26, %v10897_v19  ;;  %v6641_v26 = vld [vmem:[#allocation2 + $0x240] sm:$0xff]  ;;  %v6643_v19 = vld [vmem:[#allocation2 + $0x230] sm:$0xff] }
 0xbdd   : > { %5001 = vmatpush.msrb.mxu0 %v4968_v14  ;;  %v5097_v14 = vld [vmem:[#allocation2 + $0x10b8] sm:$0xff] }
 0xbde   : > { %4736 = vmatmul.f32.gmra.mxu3 %v10274_v7  ;;  %4795 = vmatmul.f32.gmra.mxu0 %v10274_v7 }
 0xbdf   : > { %4862 = vmatmul.f32.gmra.mxu1 %v10274_v7  ;;  %v4632_v8 = vpop.f32.mrf.mxu1  ;;  %5240 = vmatpush.msra.mxu0 %v6618_v11  ;;  %v5096_v11 = vld [vmem:[#allocation2 + $0x10b0] sm:$0xff] }
 0xbe0   : > { %v4633_v57 = vadd.f32 %v10249_v53, %v4632_v8  ;;  %v4673_v29 = vpop.f32.mrf.mxu2  ;;  %v5098_v8 = vld [vmem:[#allocation2 + $0x10c0] sm:$0xff] }
 0xbe1   : > { %5241 = vmatpush.msra.mxu0 %v6619_v3  ;;  %5103 = vmatpush.msra.mxu2 %v5098_v8  ;;  %v5095_v3 = vld [vmem:[#allocation2 + $0x10a8] sm:$0xff] }
 0xbe2   : > { %v4674_v44 = vadd.f32 %v4673_v29, %v4633_v57  ;;  %v6645_v57 = vld [vmem:[#allocation2 + $0x220] sm:$0xff] }
 0xbe3   : > { %5242 = vmatpush.msra.mxu0 %v6620_v46  ;;  %v10311_v29 = vld [vmem:[#allocation2 + $0xda0] ss:$0 sm:$0xff]  ;;  %5104 = vmatpush.msra.mxu2 %v5097_v14 }
 0xbe4   : > { %v10281_v50 = vadd.f32 %v4674_v44, %v10898_v56  ;;  %v10315_v44 = vld [vmem:[#allocation2 + $0xd18] ss:$0 sm:$0xff]  ;;  %v5094_v46 = vld [vmem:[#allocation2 + $0x10a0] sm:$0xff] }
 0xbe5   : > { %5243 = vmatpush.msra.mxu0 %v6621_v13  ;;  %5105 = vmatpush.msra.mxu2 %v5096_v11  ;;  %v5093_v13 = vld [vmem:[#allocation2 + $0x1098] sm:$0xff] }
 0xbe6   : > { %4739 = vmatmul.f32.gmra.mxu3 %v10281_v50  ;;  %4798 = vmatmul.f32.gmra.mxu0 %v10281_v50 }
 0xbe7   : > { %4865 = vmatmul.f32.gmra.mxu1 %v10281_v50  ;;  %v4635_v27 = vpop.f32.mrf.mxu1  ;;  %5244 = vmatpush.msra.mxu0 %v6622_v2 }
 0xbe8   : > { %v4636_v32 = vadd.f32 %v10249_v53, %v4635_v27  ;;  %v4676_v20 = vpop.f32.mrf.mxu2  ;;  %5106 = vmatpush.msra.mxu2 %v5095_v3  ;;  %v6650_v3 = vld [vmem:[#allocation2 + $0x178] sm:$0xff] }
 0xbe9   : > { %5245 = vmatpush.msra.mxu0 %v6623_v38 }
 0xbea   : > { %v4677_v47 = vadd.f32 %v4676_v20, %v4636_v32  ;;  %5107 = vmatpush.msra.mxu2 %v5094_v46  ;;  %v6651_v46 = vld [vmem:[#allocation2 + $0x170] sm:$0xff] }
 0xbeb   : > { %5246 = vmatpush.msra.mxu0 %v6624_v23 }
 0xbec   : > { %v10288_v37 = vadd.f32 %v4677_v47, %v10899_v33  ;;  %5108 = vmatpush.msra.mxu2 %v5093_v13  ;;  %v6652_v13 = vld [vmem:[#allocation2 + $0x168] sm:$0xff] }
 0xbed   : > { %5247 = vmatpush.msra.mxu0 %v6625_v34  ;;  %v5091_v34 = vld [vmem:[#allocation2 + $0x1088] sm:$0xff] }
 0xbee   : > { %4742 = vmatmul.f32.gmra.mxu3 %v10288_v37  ;;  %4801 = vmatmul.f32.gmra.mxu0 %v10288_v37 }
 0xbef   : > { %4868 = vmatmul.f32.gmra.mxu1 %v10288_v37  ;;  %5248 = vmatpush.msra.mxu0 %v6626_v45 }
 0xbf1   : > { %5249 = vmatpush.msra.mxu0 %v6627_v36 }
 0xbf3   : > { %5250 = vmatpush.msra.mxu0 %v6628_v52 }
 0xbf5   : > { %5251 = vmatpush.msra.mxu0 %v6629_v54 }
 0xbf9   : > { %v4638_v49 = vpop.f32.mrf.mxu1 }
 0xbfa   : > { %v4639_v5 = vadd.f32 %v10249_v53, %v4638_v49  ;;  %v4679_v21 = vpop.f32.mrf.mxu2 }
 0xbfc   : > { %v4680_v39 = vadd.f32 %v4679_v21, %v4639_v5 }
 0xbfe   : > { %v10295_v62 = vadd.f32 %v4680_v39, %v10900_v58  ;;  %v5092_v58 = vld [vmem:[#allocation2 + $0x1090] sm:$0xff] }
 0xbff   : > { %5109 = vmatpush.msra.mxu2 %v5092_v58  ;;  %v6656_v58 = vld [vmem:[#allocation2 + $0x148] sm:$0xff] }
 0xc00   : > { %4745 = vmatmul.f32.gmra.mxu3 %v10295_v62  ;;  %4804 = vmatmul.f32.gmra.mxu0 %v10295_v62 }
 0xc01   : > { %4871 = vmatmul.f32.gmra.mxu1 %v10295_v62  ;;  %v4641_v25 = vpop.f32.mrf.mxu1  ;;  %5110 = vmatpush.msra.mxu2 %v5091_v34 }
 0xc02   : > { %v4642_v61 = vadd.f32 %v10249_v53, %v4641_v25  ;;  %v6630_v53 = vld [vmem:[#allocation2 + $0x498] sm:$0xff] }
 0xc03   : > { %5252 = vmatpush.msra.mxu0 %v6630_v53 }
 0xc04   : > { %v4682_v16 = vpop.f32.mrf.mxu2 }
 0xc05   : > { %v4683_v42 = vadd.f32 %v4682_v16, %v4642_v61  ;;  %5253 = vmatpush.msra.mxu0 %v6631_v41  ;;  %v5090_v61 = vld [vmem:[#allocation2 + $0x1080] sm:$0xff] }
 0xc06   : > { %5111 = vmatpush.msra.mxu2 %v5090_v61 }
 0xc07   : > { %v10302_v40 = vadd.f32 %v4683_v42, %v10901_v12  ;;  %5254 = vmatpush.msra.mxu0 %v6632_v22 }
 0xc09   : > { %4748 = vmatmul.f32.gmra.mxu3 %v10302_v40  ;;  %4807 = vmatmul.f32.gmra.mxu0 %v10302_v40 }
 0xc0a   : > { %4874 = vmatmul.f32.gmra.mxu1 %v10302_v40  ;;  %5255 = vmatpush.msra.mxu0 %v6633_v17  ;;  %v5089_v17 = vld [vmem:[#allocation2 + $0x1078] sm:$0xff] }
 0xc0b   : > { %5112 = vmatpush.msra.mxu2 %v5089_v17  ;;  %v6661_v17 = vld [vmem:[#allocation2 + $0x120] sm:$0xff] }
 0xc11   : > { %5002 = vmatmul.f32.vlgmr.msrb.gmra.mxu0 %v10253_v35 }
 0xc12   : > { %5488 = vmatpush.msrb.mxu0 %v6634_v63 }
 0xc14   : > { %5489 = vmatpush.msrb.mxu0 %v6635_v51 }
 0xc16   : > { %5490 = vmatpush.msrb.mxu0 %v6636_v30 }
 0xc18   : > { %5491 = vmatpush.msrb.mxu0 %v6637_v1 }
 0xc19   : > { %5005 = vmatmul.f32.gmra.mxu0 %v10260_v55 }
 0xc1a   : > { %5492 = vmatpush.msrb.mxu0 %v6638_v31 }
 0xc1c   : > { %5493 = vmatpush.msrb.mxu0 %v6639_v28 }
 0xc1e   : > { %5494 = vmatpush.msrb.mxu0 %v6640_v18  ;;  %v5088_v18 = vld [vmem:[#allocation2 + $0x1070] sm:$0xff] }
 0xc1f   : > { %5113 = vmatpush.msra.mxu2 %v5088_v18 }
 0xc20   : > { %5495 = vmatpush.msrb.mxu0 %v6641_v26 }
 0xc21   : > { %5008 = vmatmul.f32.gmra.mxu0 %v10267_v59 }
 0xc22   : > { %5496 = vmatpush.msrb.mxu0 %v6642_v48 }
 0xc24   : > { %5497 = vmatpush.msrb.mxu0 %v6643_v19  ;;  %v5087_v19 = vld [vmem:[#allocation2 + $0x1068] sm:$0xff] }
 0xc25   : > { %v4787_v43 = vpop.f32.mrf.mxu0  ;;  %5114 = vmatpush.msra.mxu2 %v5087_v19 }
 0xc26   : > { %5498 = vmatpush.msrb.mxu0 %v6644_v9  ;;  %v4854_v56 = vpop.f32.mrf.mxu1  ;;  %v4788_v32 = vadd.f32 %v10311_v29, %v4787_v43 }
 0xc27   : > { %v4855_v20 = vadd.f32 %v10313_v10, %v4854_v56 }
 0xc28   : > { %5499 = vmatpush.msrb.mxu0 %v6645_v57 }
 0xc29   : > { %5011 = vmatmul.f32.gmra.mxu0 %v10274_v7 }
 0xc2a   : > { %5500 = vmatpush.msrb.mxu0 %v6646_v6  ;;  %v5086_v6 = vld [vmem:[#allocation2 + $0x1060] sm:$0xff] }
 0xc2b   : > { %v4728_v27 = vpop.f32.mrf.mxu3  ;;  %5115 = vmatpush.msra.mxu2 %v5086_v6  ;;  %v5334_v6 = vld [vmem:[#allocation2 + $0xe10] sm:$0xff] }
 0xc2c   : > { %5501 = vmatpush.msrb.mxu0 %v6647_v24  ;;  %v10320_v47 = vadd.f32 %v10315_v44, %v4728_v27 }
 0xc2e   : > { %5502 = vmatpush.msrb.mxu0 %v6648_v0  ;;  %v4811_v15 = vmul.f32 %v4788_v32, %v10320_v47  ;;  %v4878_v33 = vmul.f32 %v4855_v20, %v10320_v47  ;;  %v5085_v20 = vld [vmem:[#allocation2 + $0x1058] sm:$0xff] }
 0xc2f   : > { %5116 = vmatpush.msra.mxu2 %v5085_v20  ;;  %v5332_v20 = vld [vmem:[#allocation2 + $0xe00] sm:$0xff] }
 0xc30   : > { %5503 = vmatpush.msrb.mxu0 %v6649_v4  ;;  %4902 = vmatmul.f32.vlgmr.msrb.gmra.mxu2 %v4878_v33  ;;  %v5084_v4 = vld [vmem:[#allocation2 + $0x1050] sm:$0xff] }
 0xc31   : > { %5014 = vmatmul.f32.gmra.mxu0 %v10281_v50  ;;  %4943 = vmatmul.f32.vlgmr.msrb.gmra.mxu3 %v4811_v15 }
 0xc32   : > { %5117 = vmatpush.msra.mxu2 %v5084_v4  ;;  %v5331_v4 = vld [vmem:[#allocation2 + $0xdf8] sm:$0xff] }
 0xc34   : > { %5380 = vmatpush.msrb.mxu2 %v6650_v3  ;;  %v5330_v3 = vld [vmem:[#allocation2 + $0xdf0] sm:$0xff] }
 0xc36   : > { %5381 = vmatpush.msrb.mxu2 %v6651_v46  ;;  %v6669_v46 = vld [vmem:[#allocation2 + $0x360] sm:$0xff] }
 0xc38   : > { %5382 = vmatpush.msrb.mxu2 %v6652_v13 }
 0xc39   : > { %5017 = vmatmul.f32.gmra.mxu0 %v10288_v37 }
 0xc41   : > { %5020 = vmatmul.f32.gmra.mxu0 %v10295_v62 }
 0xc42   : > { %v4790_v49 = vpop.f32.mrf.mxu0 }
 0xc43   : > { %v4857_v5 = vpop.f32.mrf.mxu1  ;;  %v4791_v2 = vadd.f32 %v10311_v29, %v4790_v49  ;;  %v6653_v49 = vld [vmem:[#allocation2 + $0x160] sm:$0xff] }
 0xc44   : > { %v4858_v39 = vadd.f32 %v10313_v10, %v4857_v5  ;;  %5383 = vmatpush.msrb.mxu2 %v6653_v49  ;;  %v5329_v49 = vld [vmem:[#allocation2 + $0xde8] sm:$0xff] }
 0xc48   : > { %v4731_v21 = vpop.f32.mrf.mxu3 }
 0xc49   : > { %5023 = vmatmul.f32.gmra.mxu0 %v10302_v40  ;;  %v10331_v38 = vadd.f32 %v10315_v44, %v4731_v21  ;;  %v6654_v21 = vld [vmem:[#allocation2 + $0x158] sm:$0xff] }
 0xc4a   : > { %5384 = vmatpush.msrb.mxu2 %v6654_v21  ;;  %v5328_v21 = vld [vmem:[#allocation2 + $0xde0] sm:$0xff] }
 0xc4b   : > { %v4879_v23 = vmul.f32 %v4858_v39, %v10331_v38  ;;  %v4812_v25 = vmul.f32 %v4791_v2, %v10331_v38  ;;  %v6655_v2 = vld [vmem:[#allocation2 + $0x150] sm:$0xff] }
 0xc4c   : > { %5385 = vmatpush.msrb.mxu2 %v6655_v2  ;;  %v6671_v2 = vld [vmem:[#allocation2 + $0x350] sm:$0xff] }
 0xc4d   : > { %4905 = vmatmul.f32.gmra.mxu2 %v4879_v23  ;;  %4946 = vmatmul.f32.gmra.mxu3 %v4812_v25  ;;  %v6657_v25 = vld [vmem:[#allocation2 + $0x140] sm:$0xff] }
 0xc4e   : > { %5386 = vmatpush.msrb.mxu2 %v6656_v58  ;;  %v5327_v58 = vld [vmem:[#allocation2 + $0xdd8] sm:$0xff] }
 0xc50   : > { %5387 = vmatpush.msrb.mxu2 %v6657_v25 }
 0xc53   : > { %v4793_v45 = vpop.f32.mrf.mxu0 }
 0xc54   : > { %v4860_v16 = vpop.f32.mrf.mxu1  ;;  %v4794_v36 = vadd.f32 %v10311_v29, %v4793_v45 }
 0xc55   : > { %v4861_v12 = vadd.f32 %v10313_v10, %v4860_v16  ;;  %v6658_v16 = vld [vmem:[#allocation2 + $0x138] sm:$0xff] }
 0xc56   : > { %5388 = vmatpush.msrb.mxu2 %v6658_v16 }
 0xc59   : > { %v4734_v42 = vpop.f32.mrf.mxu3 }
 0xc5a   : > { %v10338_v52 = vadd.f32 %v10315_v44, %v4734_v42 }
 0xc5b   : > { %v4796_v54 = vpop.f32.mrf.mxu0 }
 0xc5c   : > { %v4863_v53 = vpop.f32.mrf.mxu1  ;;  %v4880_v41 = vmul.f32 %v4861_v12, %v10338_v52  ;;  %v4813_v22 = vmul.f32 %v4794_v36, %v10338_v52  ;;  %v4797_v51 = vadd.f32 %v10311_v29, %v4796_v54  ;;  %v6659_v54 = vld [vmem:[#allocation2 + $0x130] sm:$0xff] }
 0xc5d   : > { %v4864_v30 = vadd.f32 %v10313_v10, %v4863_v53  ;;  %5389 = vmatpush.msrb.mxu2 %v6659_v54  ;;  %v6660_v53 = vld [vmem:[#allocation2 + $0x128] sm:$0xff]  ;;  %v6675_v54 = vld [vmem:[#allocation2 + $0x330] sm:$0xff] }
 0xc5e   : > { %4908 = vmatmul.f32.gmra.mxu2 %v4880_v41  ;;  %4949 = vmatmul.f32.gmra.mxu3 %v4813_v22  ;;  %v10370_v22 = vld [vmem:[#allocation2 + $0xfc0] ss:$0 sm:$0xff] }
 0xc5f   : > { %5390 = vmatpush.msrb.mxu2 %v6660_v53  ;;  %v5323_v53 = vld [vmem:[#allocation2 + $0xdb8] sm:$0xff] }
 0xc61   : > { %v4737_v63 = vpop.f32.mrf.mxu3  ;;  %5391 = vmatpush.msrb.mxu2 %v6661_v17  ;;  %v6676_v17 = vld [vmem:[#allocation2 + $0x328] sm:$0xff] }
 0xc62   : > { %v10345_v1 = vadd.f32 %v10315_v44, %v4737_v63 }
 0xc63   : > { %v4799_v26 = vpop.f32.mrf.mxu0 }
 0xc64   : > { %v4881_v31 = vmul.f32 %v4864_v30, %v10345_v1  ;;  %v4814_v28 = vmul.f32 %v4797_v51, %v10345_v1  ;;  %v4866_v48 = vpop.f32.mrf.mxu1  ;;  %v4800_v60 = vadd.f32 %v10311_v29, %v4799_v26 }
 0xc65   : > { %v4867_v8 = vadd.f32 %v10313_v10, %v4866_v48 }
 0xc66   : > { %4911 = vmatmul.f32.gmra.mxu2 %v4881_v31  ;;  %4952 = vmatmul.f32.gmra.mxu3 %v4814_v28  ;;  %v6662_v28 = vld [vmem:[#allocation2 + $0x118] sm:$0xff] }
 0xc67   : > { %5392 = vmatpush.msrb.mxu2 %v6662_v28 }
 0xc69   : > { %v4740_v9 = vpop.f32.mrf.mxu3 }
 0xc6a   : > { %v10352_v57 = vadd.f32 %v10315_v44, %v4740_v9  ;;  %v6663_v9 = vld [vmem:[#allocation2 + $0x110] sm:$0xff] }
 0xc6b   : > { %v4802_v27 = vpop.f32.mrf.mxu0  ;;  %5393 = vmatpush.msrb.mxu2 %v6663_v9  ;;  %v6680_v9 = vld [vmem:[#allocation2 + $0x308] sm:$0xff] }
 0xc6c   : > { %v4882_v43 = vmul.f32 %v4867_v8, %v10352_v57  ;;  %v4815_v56 = vmul.f32 %v4800_v60, %v10352_v57  ;;  %v4869_v24 = vpop.f32.mrf.mxu1  ;;  %v4803_v0 = vadd.f32 %v10311_v29, %v4802_v27 }
 0xc6d   : > { %v4870_v15 = vadd.f32 %v10313_v10, %v4869_v24  ;;  %v5333_v24 = vld [vmem:[#allocation2 + $0xe08] sm:$0xff] }
 0xc6e   : > { %4914 = vmatmul.f32.gmra.mxu2 %v4882_v43  ;;  %4955 = vmatmul.f32.gmra.mxu3 %v4815_v56  ;;  %v5335_v43 = vld [vmem:[#allocation2 + $0xe18] sm:$0xff] }
 0xc71   : > { %v4743_v32 = vpop.f32.mrf.mxu3 }
 0xc72   : > { %v10359_v33 = vadd.f32 %v10315_v44, %v4743_v32  ;;  %v6666_v32 = vld [vmem:[#allocation2 + $0x378] sm:$0xff] }
 0xc74   : > { %v4883_v14 = vmul.f32 %v4870_v15, %v10359_v33  ;;  %v4816_v11 = vmul.f32 %v4803_v0, %v10359_v33  ;;  %v6667_v0 = vld [vmem:[#allocation2 + $0x370] sm:$0xff] }
 0xc76   : > { %4917 = vmatmul.f32.gmra.mxu2 %v4883_v14  ;;  %4958 = vmatmul.f32.gmra.mxu3 %v4816_v11  ;;  %v6668_v14 = vld [vmem:[#allocation2 + $0x368] sm:$0xff] }
 0xc7d   : > { %v4805_v5 = vpop.f32.mrf.mxu0 }
 0xc7e   : > { %v4872_v39 = vpop.f32.mrf.mxu1  ;;  %v4806_v34 = vadd.f32 %v10311_v29, %v4805_v5  ;;  %v6670_v5 = vld [vmem:[#allocation2 + $0x358] sm:$0xff] }
 0xc7f   : > { %v4873_v61 = vadd.f32 %v10313_v10, %v4872_v39 }
 0xc83   : > { %v4746_v23 = vpop.f32.mrf.mxu3 }
 0xc84   : > { %v10366_v45 = vadd.f32 %v10315_v44, %v4746_v23  ;;  %v6672_v23 = vld [vmem:[#allocation2 + $0x348] sm:$0xff] }
 0xc86   : > { %v4808_v42 = vpop.f32.mrf.mxu0  ;;  %v4884_v36 = vmul.f32 %v4873_v61, %v10366_v45  ;;  %v4817_v12 = vmul.f32 %v4806_v34, %v10366_v45  ;;  %v5326_v34 = vld [vmem:[#allocation2 + $0xdd0] sm:$0xff]  ;;  %v6673_v61 = vld [vmem:[#allocation2 + $0x340] sm:$0xff] }
 0xc87   : > { %v4875_v41 = vpop.f32.mrf.mxu1  ;;  %v4809_v51 = vadd.f32 %v10311_v29, %v4808_v42  ;;  %v6664_v29 = vld [vmem:[#allocation2 + $0x108] sm:$0xff] }
 0xc88   : > { %4920 = vmatmul.f32.gmra.mxu2 %v4884_v36  ;;  %4961 = vmatmul.f32.gmra.mxu3 %v4817_v12  ;;  %v4876_v30 = vadd.f32 %v10313_v10, %v4875_v41  ;;  %v5336_v10 = vld [vmem:[#allocation2 + $0xe20] sm:$0xff]  ;;  %v5325_v42 = vld [vmem:[#allocation2 + $0xdc8] sm:$0xff]  ;;  %v6674_v36 = vld [vmem:[#allocation2 + $0x338] sm:$0xff] }
 0xc89   : > { %5394 = vmatpush.msrb.mxu2 %v6664_v29  ;;  %5339 = vmatpush.msra.mxu1 %v5336_v10  ;;  %v5324_v12 = vld [vmem:[#allocation2 + $0xdc0] sm:$0xff] }
 0xc8a   : > { %v6681_v29 = vld [vmem:[#allocation2 + $0x300] sm:$0xff] }
 0xc8b   : > { %5340 = vmatpush.msra.mxu1 %v5335_v43 }
 0xc8c   : > { %v4749_v63 = vpop.f32.mrf.mxu3 }
 0xc8d   : > { %v10375_v31 = vadd.f32 %v10315_v44, %v4749_v63  ;;  %v6665_v44 = vld [vmem:[#allocation2 + $0x100] sm:$0xff]  ;;  %5341 = vmatpush.msra.mxu1 %v5334_v6 }
 0xc8e   : > { %v5003_v18 = vpop.f32.mrf.mxu0  ;;  %5395 = vmatpush.msrb.mxu2 %v6665_v44 }
 0xc8f   : > { %v5004_v26 = vadd.f32 %v10370_v22, %v5003_v18  ;;  %v4885_v48 = vmul.f32 %v4876_v30, %v10375_v31  ;;  %v4818_v19 = vmul.f32 %v4809_v51, %v10375_v31  ;;  %5342 = vmatpush.msra.mxu1 %v5333_v24  ;;  %v5322_v51 = vld [vmem:[#allocation2 + $0xdb0] sm:$0xff]  ;;  %v6677_v30 = vld [vmem:[#allocation2 + $0x320] sm:$0xff]  ;;  %v5321_v18 = vld [vmem:[#allocation2 + $0xda8] sm:$0xff] }
 0xc91   : > { %v5027_v60 = vmul.f32 %v5004_v26, %v10320_v47  ;;  %4923 = vmatmul.f32.gmra.mxu2 %v4885_v48  ;;  %4964 = vmatmul.f32.gmra.mxu3 %v4818_v19  ;;  %v6678_v26 = vld [vmem:[#allocation2 + $0x318] sm:$0xff]  ;;  %v6679_v48 = vld [vmem:[#allocation2 + $0x310] sm:$0xff] }
 0xc92   : > { %5343 = vmatpush.msra.mxu1 %v5332_v20  ;;  %v5559_v20 = vld [vmem:[#allocation2 + $0x1038] sm:$0xff] }
 0xc93   : > { %5051 = vmatmul.f32.vlgmr.msrb.gmra.mxu1 %v5027_v60 }
 0xc94   : > { %5344 = vmatpush.msra.mxu1 %v5331_v4 }
 0xc96   : > { %v5006_v8 = vpop.f32.mrf.mxu0  ;;  %5345 = vmatpush.msra.mxu1 %v5330_v3  ;;  %v5553_v3 = vld [vmem:[#allocation2 + $0x1008] sm:$0xff] }
 0xc97   : > { %v5007_v56 = vadd.f32 %v10370_v22, %v5006_v8 }
 0xc98   : > { %5346 = vmatpush.msra.mxu1 %v5329_v49  ;;  %v5551_v49 = vld [vmem:[#allocation2 + $0xff8] sm:$0xff] }
 0xc99   : > { %v5028_v27 = vmul.f32 %v5007_v56, %v10331_v38  ;;  %5118 = vmatmul.f32.vlgmr.msra.gmra.mxu2 %v10253_v35 }
 0xc9a   : > { %5604 = vmatpush.msra.mxu2 %v6666_v32  ;;  %5347 = vmatpush.msra.mxu1 %v5328_v21  ;;  %v5560_v32 = vld [vmem:[#allocation2 + $0x1040] sm:$0xff]  ;;  %v5549_v21 = vld [vmem:[#allocation2 + $0xfe8] sm:$0xff] }
 0xc9b   : > { %5054 = vmatmul.f32.gmra.mxu1 %v5028_v27 }
 0xc9c   : > { %5605 = vmatpush.msra.mxu2 %v6667_v0  ;;  %5348 = vmatpush.msra.mxu1 %v5327_v58  ;;  %v5558_v0 = vld [vmem:[#allocation2 + $0x1030] sm:$0xff] }
 0xc9e   : > { %v5009_v15 = vpop.f32.mrf.mxu0  ;;  %5606 = vmatpush.msra.mxu2 %v6668_v14  ;;  %5349 = vmatpush.msra.mxu1 %v5326_v34  ;;  %v5555_v14 = vld [vmem:[#allocation2 + $0x1018] sm:$0xff] }
 0xc9f   : > { %v5010_v11 = vadd.f32 %v10370_v22, %v5009_v15  ;;  %v5557_v15 = vld [vmem:[#allocation2 + $0x1028] sm:$0xff] }
 0xca0   : > { %5607 = vmatpush.msra.mxu2 %v6669_v46  ;;  %5350 = vmatpush.msra.mxu1 %v5325_v42 }
 0xca1   : > { %v5029_v13 = vmul.f32 %v5010_v11, %v10338_v52  ;;  %5121 = vmatmul.f32.gmra.mxu2 %v10260_v55  ;;  %v5554_v11 = vld [vmem:[#allocation2 + $0x1010] sm:$0xff] }
 0xca2   : > { %5608 = vmatpush.msra.mxu2 %v6670_v5  ;;  %5351 = vmatpush.msra.mxu1 %v5324_v12  ;;  %v5550_v5 = vld [vmem:[#allocation2 + $0xff0] sm:$0xff] }
 0xca3   : > { %5057 = vmatmul.f32.gmra.mxu1 %v5029_v13  ;;  %v5552_v13 = vld [vmem:[#allocation2 + $0x1000] sm:$0xff] }
 0xca4   : > { %5609 = vmatpush.msra.mxu2 %v6671_v2  ;;  %5352 = vmatpush.msra.mxu1 %v5323_v53  ;;  %v5548_v2 = vld [vmem:[#allocation2 + $0xfe0] sm:$0xff] }
 0xca6   : > { %v5012_v39 = vpop.f32.mrf.mxu0  ;;  %5610 = vmatpush.msra.mxu2 %v6672_v23  ;;  %5353 = vmatpush.msra.mxu1 %v5322_v51  ;;  %v5546_v23 = vld [vmem:[#allocation2 + $0xfd0] sm:$0xff] }
 0xca7   : > { %v5013_v25 = vadd.f32 %v10370_v22, %v5012_v39  ;;  %v5547_v39 = vld [vmem:[#allocation2 + $0xfd8] sm:$0xff] }
 0xca8   : > { %5611 = vmatpush.msra.mxu2 %v6673_v61  ;;  %5354 = vmatpush.msra.mxu1 %v5321_v18  ;;  %v5441_v18 = vld [vmem:[#allocation2 + $0xf18] sm:$0xff] }
 0xca9   : > { %v5030_v16 = vmul.f32 %v5013_v25, %v10345_v1  ;;  %5124 = vmatmul.f32.gmra.mxu2 %v10267_v59  ;;  %v5545_v25 = vld [vmem:[#allocation2 + $0xfc8] sm:$0xff] }
 0xcaa   : > { %5612 = vmatpush.msra.mxu2 %v6674_v36  ;;  %5563 = vmatpush.msrb.mxu1 %v5560_v32  ;;  %v10428_v36 = vld [vmem:[#allocation2 + $0x10d0] ss:$0 sm:$0xff] }
 0xcab   : > { %5060 = vmatmul.f32.gmra.mxu1 %v5030_v16 }
 0xcac   : > { %5613 = vmatpush.msra.mxu2 %v6675_v54  ;;  %5564 = vmatpush.msrb.mxu1 %v5559_v20 }
 0xcae   : > { %v5015_v41 = vpop.f32.mrf.mxu0  ;;  %5614 = vmatpush.msra.mxu2 %v6676_v17  ;;  %5565 = vmatpush.msrb.mxu1 %v5558_v0  ;;  %v5430_v0 = vld [vmem:[#allocation2 + $0xec0] sm:$0xff] }
 0xcaf   : > { %v5016_v63 = vadd.f32 %v10370_v22, %v5015_v41  ;;  %v5444_v41 = vld [vmem:[#allocation2 + $0xf30] sm:$0xff] }
 0xcb0   : > { %5615 = vmatpush.msra.mxu2 %v6677_v30  ;;  %5566 = vmatpush.msrb.mxu1 %v5557_v15  ;;  %v5442_v30 = vld [vmem:[#allocation2 + $0xf20] sm:$0xff] }
 0xcb1   : > { %v5031_v28 = vmul.f32 %v5016_v63, %v10352_v57  ;;  %5127 = vmatmul.f32.gmra.mxu2 %v10274_v7  ;;  %5447 = vmatpush.msrb.mxu3 %v5444_v41  ;;  %v5443_v63 = vld [vmem:[#allocation2 + $0xf28] sm:$0xff]  ;;  %v5668_v41 = vld [vmem:[#allocation2 + $0x1110] sm:$0xff] }
 0xcb2   : > { %5616 = vmatpush.msra.mxu2 %v6678_v26  ;;  %v5440_v26 = vld [vmem:[#allocation2 + $0xf10] sm:$0xff] }
 0xcb3   : > { %5063 = vmatmul.f32.gmra.mxu1 %v5031_v28  ;;  %v10402_v24 = vpop.f32.mrf.mxu2  ;;  %5448 = vmatpush.msrb.mxu3 %v5443_v63 }
 0xcb4   : > { %5617 = vmatpush.msra.mxu2 %v6679_v48  ;;  %v5439_v48 = vld [vmem:[#allocation2 + $0xf08] sm:$0xff] }
 0xcb5   : > { %5449 = vmatpush.msrb.mxu3 %v5442_v30  ;;  %v5665_v30 = vld [vmem:[#allocation2 + $0x10f8] sm:$0xff] }
 0xcb6   : > { %v5018_v19 = vpop.f32.mrf.mxu0  ;;  %5618 = vmatpush.msra.mxu2 %v6680_v9  ;;  %v5438_v9 = vld [vmem:[#allocation2 + $0xf00] sm:$0xff] }
 0xcb7   : > { %v5019_v60 = vadd.f32 %v10370_v22, %v5018_v19  ;;  %5450 = vmatpush.msrb.mxu3 %v5441_v18  ;;  %v5663_v18 = vld [vmem:[#allocation2 + $0x10e8] sm:$0xff] }
 0xcb8   : > { %5619 = vmatpush.msra.mxu2 %v6681_v29  ;;  %v5437_v29 = vld [vmem:[#allocation2 + $0xef8] sm:$0xff] }
 0xcb9   : > { %v5032_v10 = vmul.f32 %v5019_v60, %v10359_v33  ;;  %5130 = vmatmul.f32.gmra.mxu2 %v10281_v50  ;;  %5451 = vmatpush.msrb.mxu3 %v5440_v26  ;;  %v5662_v26 = vld [vmem:[#allocation2 + $0x10e0] sm:$0xff] }
 0xcbb   : > { %5066 = vmatmul.f32.gmra.mxu1 %v5032_v10  ;;  %5452 = vmatpush.msrb.mxu3 %v5439_v48  ;;  %v5661_v48 = vld [vmem:[#allocation2 + $0x10d8] sm:$0xff] }
 0xcbd   : > { %5453 = vmatpush.msrb.mxu3 %v5438_v9 }
 0xcbe   : > { %v5021_v44 = vpop.f32.mrf.mxu0 }
 0xcbf   : > { %v5022_v8 = vadd.f32 %v10370_v22, %v5021_v44  ;;  %5454 = vmatpush.msrb.mxu3 %v5437_v29  ;;  %v5435_v44 = vld [vmem:[#allocation2 + $0xee8] sm:$0xff] }
 0xcc1   : > { %v5033_v43 = vmul.f32 %v5022_v8, %v10366_v45  ;;  %5133 = vmatmul.f32.gmra.mxu2 %v10288_v37 }
 0xcc3   : > { %5069 = vmatmul.f32.gmra.mxu1 %v5033_v43  ;;  %v5434_v43 = vld [vmem:[#allocation2 + $0xee0] sm:$0xff] }
 0xcc6   : > { %v5024_v56 = vpop.f32.mrf.mxu0 }
 0xcc7   : > { %v5025_v6 = vadd.f32 %v10370_v22, %v5024_v56  ;;  %v5556_v22 = vld [vmem:[#allocation2 + $0x1020] sm:$0xff] }
 0xcc8   : > { %5567 = vmatpush.msrb.mxu1 %v5556_v22  ;;  %v5429_v22 = vld [vmem:[#allocation2 + $0xeb8] sm:$0xff] }
 0xcc9   : > { %v5034_v27 = vmul.f32 %v5025_v6, %v10375_v31  ;;  %5136 = vmatmul.f32.gmra.mxu2 %v10295_v62  ;;  %v5433_v6 = vld [vmem:[#allocation2 + $0xed8] sm:$0xff] }
 0xcca   : > { %5568 = vmatpush.msrb.mxu1 %v5555_v14 }
 0xccb   : > { %5072 = vmatmul.f32.gmra.mxu1 %v5034_v27  ;;  %v5431_v27 = vld [vmem:[#allocation2 + $0xec8] sm:$0xff] }
 0xccc   : > { %5569 = vmatpush.msrb.mxu1 %v5554_v11 }
 0xcce   : > { %5570 = vmatpush.msrb.mxu1 %v5553_v3 }
 0xcd0   : > { %v10406_v4 = vpop.f32.mrf.mxu2  ;;  %5571 = vmatpush.msrb.mxu1 %v5552_v13 }
 0xcd1   : > { %5139 = vmatmul.f32.gmra.mxu2 %v10302_v40 }
 0xcd2   : > { %5572 = vmatpush.msrb.mxu1 %v5551_v49 }
 0xcd3   : > { %5355 = vmatmul.f32.vlgmr.msra.gmra.mxu1 %v10253_v35 }
 0xcd4   : > { %5573 = vmatpush.msrb.mxu1 %v5550_v5 }
 0xcd6   : > { %5574 = vmatpush.msrb.mxu1 %v5549_v21  ;;  %v4944_v21 = vpop.f32.mrf.mxu3 }
 0xcd8   : > { %5575 = vmatpush.msrb.mxu1 %v5548_v2 }
 0xcda   : > { %5576 = vmatpush.msrb.mxu1 %v5547_v39 }
 0xcdb   : > { %5358 = vmatmul.f32.gmra.mxu1 %v10260_v55 }
 0xcdc   : > { %5577 = vmatpush.msrb.mxu1 %v5546_v23  ;;  %v5675_v23 = vld [vmem:[#allocation2 + $0x1148] sm:$0xff] }
 0xcde   : > { %5578 = vmatpush.msrb.mxu1 %v5545_v25  ;;  %v4947_v39 = vpop.f32.mrf.mxu3  ;;  %v5674_v25 = vld [vmem:[#allocation2 + $0x1140] sm:$0xff] }
 0xce1   : > { %v10410_v46 = vpop.f32.mrf.mxu2 }
 0xce3   : > { %5361 = vmatmul.f32.gmra.mxu1 %v10267_v59 }
 0xce9   : > { %v10413_v58 = vpop.f32.mrf.mxu2 }
 0xceb   : > { %5364 = vmatmul.f32.gmra.mxu1 %v10274_v7 }
 0xcf1   : > { %v10416_v34 = vpop.f32.mrf.mxu2 }
 0xcf3   : > { %5367 = vmatmul.f32.gmra.mxu1 %v10281_v50 }
 0xcf9   : > { %v10419_v61 = vpop.f32.mrf.mxu2 }
 0xcfb   : > { %5370 = vmatmul.f32.gmra.mxu1 %v10288_v37 }
 0xd03   : > { %5373 = vmatmul.f32.gmra.mxu1 %v10295_v62 }
 0xd0b   : > { %5376 = vmatmul.f32.gmra.mxu1 %v10302_v40  ;;  %v10423_v16 = vpop.f32.mrf.mxu2 }
 0xd13   : > { %5579 = vmatmul.f32.vlgmr.msrb.gmra.mxu1 %v10253_v35 }
 0xd14   : > { %v10426_v42 = vpop.f32.mrf.mxu2 }
 0xd1b   : > { %5582 = vmatmul.f32.gmra.mxu1 %v10260_v55 }
 0xd1c   : > { %v5119_v12 = vpop.f32.mrf.mxu2 }
 0xd1d   : > { %v5120_v54 = vadd.f32 %v10428_v36, %v5119_v12  ;;  %v5673_v12 = vld [vmem:[#allocation2 + $0x1138] sm:$0xff] }
 0xd1f   : > { %v5143_v53 = vmul.f32 %v5120_v54, %v10320_v47  ;;  %v4950_v54 = vpop.f32.mrf.mxu3 }
 0xd21   : > { %5167 = vmatmul.f32.vlgmr.msra.gmra.mxu3 %v5143_v53  ;;  %v5670_v53 = vld [vmem:[#allocation2 + $0x1120] sm:$0xff] }
 0xd23   : > { %5585 = vmatmul.f32.gmra.mxu1 %v10267_v59 }
 0xd24   : > { %v5122_v17 = vpop.f32.mrf.mxu2 }
 0xd25   : > { %v5123_v51 = vadd.f32 %v10428_v36, %v5122_v17  ;;  %v5667_v17 = vld [vmem:[#allocation2 + $0x1108] sm:$0xff] }
 0xd27   : > { %v5144_v28 = vmul.f32 %v5123_v51, %v10331_v38  ;;  %v5436_v38 = vld [vmem:[#allocation2 + $0xef0] sm:$0xff]  ;;  %v4953_v63 = vpop.f32.mrf.mxu3  ;;  %v5666_v51 = vld [vmem:[#allocation2 + $0x1100] sm:$0xff] }
 0xd28   : > { %5455 = vmatpush.msrb.mxu3 %v5436_v38 }
 0xd29   : > { %5170 = vmatmul.f32.gmra.mxu3 %v5144_v28  ;;  %v5664_v28 = vld [vmem:[#allocation2 + $0x10f0] sm:$0xff] }
 0xd2a   : > { %5456 = vmatpush.msrb.mxu3 %v5435_v44 }
 0xd2b   : > { %5588 = vmatmul.f32.gmra.mxu1 %v10274_v7 }
 0xd2c   : > { %v5125_v47 = vpop.f32.mrf.mxu2  ;;  %5457 = vmatpush.msrb.mxu3 %v5434_v43 }
 0xd2d   : > { %v5126_v19 = vadd.f32 %v10428_v36, %v5125_v47 }
 0xd2e   : > { %5458 = vmatpush.msrb.mxu3 %v5433_v6  ;;  %v4948_v6 = vadd.f32 %v4947_v39, %v10406_v4 }
 0xd2f   : > { %v5145_v60 = vmul.f32 %v5126_v19, %v10338_v52  ;;  %v5432_v52 = vld [vmem:[#allocation2 + $0xed0] sm:$0xff]  ;;  %v4956_v47 = vpop.f32.mrf.mxu3 }
 0xd30   : > { %5459 = vmatpush.msrb.mxu3 %v5432_v52 }
 0xd31   : > { %5173 = vmatmul.f32.gmra.mxu3 %v5145_v60  ;;  %v5052_v60 = vpop.f32.mrf.mxu1 }
 0xd32   : > { %5460 = vmatpush.msrb.mxu3 %v5431_v27 }
 0xd33   : > { %5591 = vmatmul.f32.gmra.mxu1 %v10281_v50 }
 0xd34   : > { %v5128_v10 = vpop.f32.mrf.mxu2  ;;  %5461 = vmatpush.msrb.mxu3 %v5430_v0  ;;  %v4951_v0 = vadd.f32 %v4950_v54, %v10410_v46 }
 0xd35   : > { %v5129_v8 = vadd.f32 %v10428_v36, %v5128_v10  ;;  %v4945_v10 = vadd.f32 %v4944_v21, %v10402_v24 }
 0xd36   : > { %5462 = vmatpush.msrb.mxu3 %v5429_v22 }
 0xd37   : > { %v5146_v56 = vmul.f32 %v5129_v8, %v10345_v1  ;;  %v4959_v19 = vpop.f32.mrf.mxu3  ;;  %v5076_v44 = vadd.f32 %v5052_v60, %v4945_v10  ;;  %v6686_v60 = vld [vmem:[#allocation2 + $0x458] sm:$0xff] }
 0xd39   : > { %5176 = vmatmul.f32.gmra.mxu3 %v5146_v56  ;;  %v5055_v38 = vpop.f32.mrf.mxu1 }
 0xd3a   : > { %v5077_v52 = vadd.f32 %v5055_v38, %v4948_v6  ;;  %v6690_v6 = vld [vmem:[#allocation2 + $0x438] sm:$0xff] }
 0xd3b   : > { %5594 = vmatmul.f32.gmra.mxu1 %v10288_v37 }
 0xd3c   : > { %v5131_v32 = vpop.f32.mrf.mxu2 }
 0xd3d   : > { %v5132_v20 = vadd.f32 %v10428_v36, %v5131_v32 }
 0xd3f   : > { %v5147_v15 = vmul.f32 %v5132_v20, %v10352_v57  ;;  %v4962_v9 = vpop.f32.mrf.mxu3 }
 0xd41   : > { %5179 = vmatmul.f32.gmra.mxu3 %v5147_v15  ;;  %v5058_v56 = vpop.f32.mrf.mxu1 }
 0xd42   : > { %v5078_v24 = vadd.f32 %v5058_v56, %v4951_v0  ;;  %v6689_v56 = vld [vmem:[#allocation2 + $0x440] sm:$0xff] }
 0xd43   : > { %5597 = vmatmul.f32.gmra.mxu1 %v10295_v62 }
 0xd44   : > { %v5134_v1 = vpop.f32.mrf.mxu2 }
 0xd45   : > { %v5135_v14 = vadd.f32 %v10428_v36, %v5134_v1  ;;  %v4954_v1 = vadd.f32 %v4953_v63, %v10413_v58  ;;  %v4960_v58 = vadd.f32 %v4959_v19, %v10419_v61 }
 0xd47   : > { %v5148_v11 = vmul.f32 %v5135_v14, %v10359_v33  ;;  %v5676_v33 = vld [vmem:[#allocation2 + $0x1150] sm:$0xff]  ;;  %v4965_v29 = vpop.f32.mrf.mxu3 }
 0xd48   : > { %5679 = vmatpush.msra.mxu3 %v5676_v33 }
 0xd49   : > { %5182 = vmatmul.f32.gmra.mxu3 %v5148_v11  ;;  %v5061_v20 = vpop.f32.mrf.mxu1 }
 0xd4a   : > { %5680 = vmatpush.msra.mxu3 %v5675_v23  ;;  %v5079_v14 = vadd.f32 %v5061_v20, %v4954_v1  ;;  %v6692_v20 = vld [vmem:[#allocation2 + $0x428] sm:$0xff]  ;;  %v6695_v1 = vld [vmem:[#allocation2 + $0x410] sm:$0xff] }
 0xd4b   : > { %5600 = vmatmul.f32.gmra.mxu1 %v10302_v40 }
 0xd4c   : > { %v5137_v3 = vpop.f32.mrf.mxu2  ;;  %5681 = vmatpush.msra.mxu3 %v5674_v25 }
 0xd4d   : > { %v5138_v13 = vadd.f32 %v10428_v36, %v5137_v3 }
 0xd4e   : > { %5682 = vmatpush.msra.mxu3 %v5673_v12 }
 0xd4f   : > { %v5149_v49 = vmul.f32 %v5138_v13, %v10366_v45  ;;  %v5672_v45 = vld [vmem:[#allocation2 + $0x1130] sm:$0xff]  ;;  %v4957_v13 = vadd.f32 %v4956_v47, %v10416_v34  ;;  %v4963_v34 = vadd.f32 %v4962_v9, %v10423_v16  ;;  %v6684_v47 = vld [vmem:[#allocation2 + $0x468] sm:$0xff]  ;;  %v6685_v9 = vld [vmem:[#allocation2 + $0x460] sm:$0xff] }
 0xd50   : > { %5683 = vmatpush.msra.mxu3 %v5672_v45  ;;  %v4966_v45 = vadd.f32 %v4965_v29, %v10426_v42  ;;  %v6682_v42 = vld [vmem:[#allocation2 + $0x478] sm:$0xff]  ;;  %v6687_v29 = vld [vmem:[#allocation2 + $0x450] sm:$0xff] }
 0xd51   : > { %5185 = vmatmul.f32.gmra.mxu3 %v5149_v49  ;;  %v5064_v4 = vpop.f32.mrf.mxu1 }
 0xd52   : > { %v5080_v46 = vadd.f32 %v5064_v4, %v4957_v13 }
 0xd54   : > { %v5140_v57 = vpop.f32.mrf.mxu2 }
 0xd55   : > { %v5141_v5 = vadd.f32 %v10428_v36, %v5140_v57  ;;  %v5671_v36 = vld [vmem:[#allocation2 + $0x1128] sm:$0xff] }
 0xd56   : > { %5684 = vmatpush.msra.mxu3 %v5671_v36 }
 0xd57   : > { %v5150_v2 = vmul.f32 %v5141_v5, %v10375_v31  ;;  %v5669_v31 = vld [vmem:[#allocation2 + $0x1118] sm:$0xff] }
 0xd58   : > { %5685 = vmatpush.msra.mxu3 %v5670_v53 }
 0xd59   : > { %5188 = vmatmul.f32.gmra.mxu3 %v5150_v2  ;;  %v5067_v49 = vpop.f32.mrf.mxu1 }
 0xd5a   : > { %5686 = vmatpush.msra.mxu3 %v5669_v31  ;;  %v5081_v21 = vadd.f32 %v5067_v49, %v4960_v58 }
 0xd5c   : > { %5687 = vmatpush.msra.mxu3 %v5668_v41 }
 0xd5e   : > { %5688 = vmatpush.msra.mxu3 %v5667_v17 }
 0xd60   : > { %5689 = vmatpush.msra.mxu3 %v5666_v51 }
 0xd61   : > { %5463 = vmatmul.f32.vlgmr.msrb.gmra.mxu3 %v10253_v35  ;;  %v5070_v33 = vpop.f32.mrf.mxu1 }
 0xd62   : > { %5690 = vmatpush.msra.mxu3 %v5665_v30  ;;  %v5082_v23 = vadd.f32 %v5070_v33, %v4963_v34 }
 0xd64   : > { %5691 = vmatpush.msra.mxu3 %v5664_v28  ;;  %v6683_v28 = vld [vmem:[#allocation2 + $0x470] sm:$0xff] }
 0xd66   : > { %5692 = vmatpush.msra.mxu3 %v5663_v18 }
 0xd68   : > { %5693 = vmatpush.msra.mxu3 %v5662_v26 }
 0xd69   : > { %5466 = vmatmul.f32.gmra.mxu3 %v10260_v55  ;;  %v5073_v61 = vpop.f32.mrf.mxu1 }
 0xd6a   : > { %5694 = vmatpush.msra.mxu3 %v5661_v48  ;;  %v5083_v54 = vadd.f32 %v5073_v61, %v4966_v45 }
 0xd71   : > { %5469 = vmatmul.f32.gmra.mxu3 %v10267_v59 }
 0xd79   : > { %5472 = vmatmul.f32.gmra.mxu3 %v10274_v7 }
 0xd81   : > { %5475 = vmatmul.f32.gmra.mxu3 %v10281_v50 }
 0xd89   : > { %5478 = vmatmul.f32.gmra.mxu3 %v10288_v37 }
 0xd91   : > { %5481 = vmatmul.f32.gmra.mxu3 %v10295_v62 }
 0xd99   : > { %5484 = vmatmul.f32.gmra.mxu3 %v10302_v40 }
 0xda1   : > { %5695 = vmatmul.f32.vlgmr.msra.gmra.mxu3 %v10253_v35 }
 0xda4   : > { %v5168_v8 = vpop.f32.mrf.mxu3 }
 0xda5   : > { %v5192_v43 = vadd.f32 %v5168_v8, %v5076_v44  ;;  %v6688_v44 = vld [vmem:[#allocation2 + $0x448] sm:$0xff] }
 0xda7   : > { %5200 = vmax.xlane.f32.xlu2 %v5192_v43 }
 0xda9   : > { %5698 = vmatmul.f32.gmra.mxu3 %v10260_v55 }
 0xdac   : > { %v5171_v27 = vpop.f32.mrf.mxu3 }
 0xdad   : > { %v5193_v32 = vadd.f32 %v5171_v27, %v5077_v52  ;;  %v6691_v52 = vld [vmem:[#allocation2 + $0x430] sm:$0xff] }
 0xdaf   : > { %5202 = vmax.xlane.f32.xlu0 %v5193_v32 }
 0xdb1   : > { %5701 = vmatmul.f32.gmra.mxu3 %v10267_v59 }
 0xdb4   : > { %v5174_v15 = vpop.f32.mrf.mxu3 }
 0xdb5   : > { %v5194_v22 = vadd.f32 %v5174_v15, %v5078_v24  ;;  %v6693_v15 = vld [vmem:[#allocation2 + $0x420] sm:$0xff] }
 0xdb7   : > { %5204 = vmax.xlane.f32.xlu1 %v5194_v22 }
 0xdb9   : > { %5704 = vmatmul.f32.gmra.mxu3 %v10274_v7 }
 0xdbc   : > { %v5177_v11 = vpop.f32.mrf.mxu3 }
 0xdbd   : > { %v5195_v3 = vadd.f32 %v5177_v11, %v5079_v14  ;;  %v6696_v11 = vld [vmem:[#allocation2 + $0x408] sm:$0xff] }
 0xdbf   : > { %5206 = vmax.xlane.f32.xlu2 %v5195_v3 }
 0xdc1   : > { %5707 = vmatmul.f32.gmra.mxu3 %v10281_v50 }
 0xdc4   : > { %v5180_v57 = vpop.f32.mrf.mxu3 }
 0xdc5   : > { %v10471_v5 = vadd.f32 %v5180_v57, %v5080_v46  ;;  %v6697_v46 = vld [vmem:[#allocation2 + $0x400] sm:$0xff] }
 0xdc7   : > { %5208 = vmax.xlane.f32.xlu0 %v10471_v5 }
 0xdc9   : > { %5710 = vmatmul.f32.gmra.mxu3 %v10288_v37 }
 0xdcc   : > { %v5183_v2 = vpop.f32.mrf.mxu3 }
 0xdcd   : > { %v10476_v39 = vadd.f32 %v5183_v2, %v5081_v21 }
 0xdcf   : > { %5210 = vmax.xlane.f32.xlu1 %v10476_v39 }
 0xdd1   : > { %5713 = vmatmul.f32.gmra.mxu3 %v10295_v62 }
 0xdd4   : > { %v5186_v25 = vpop.f32.mrf.mxu3 }
 0xdd5   : > { %v10481_v12 = vadd.f32 %v5186_v25, %v5082_v23 }
 0xdd7   : > { %5212 = vmax.xlane.f32.xlu2 %v10481_v12 }
 0xdd9   : > { %5716 = vmatmul.f32.gmra.mxu3 %v10302_v40 }
 0xddc   : > { %v5189_v36 = vpop.f32.mrf.mxu3 }
 0xddd   : > { %v10486_v53 = vadd.f32 %v5189_v36, %v5083_v54 }
 0xddf   : > { %5214 = vmax.xlane.f32.xlu0 %v10486_v53 }
 0xe1a   : > { %v5201_v16 = vpop.xlane.xlu2 %5200 }
 0xe1b   : > { %v5216_v31 = vsub.f32 %v5192_v43, %v5201_v16 }
 0xe1d   : > { %v5224_v41 = vmul.f32 1.442695, %v5216_v31 }
 0xe1f   : > { %6418 = vpow2.f32 %v5224_v41 }
 0xe22   : > { %v5203_v17 = vpop.xlane.xlu0 %5202 }
 0xe23   : > { %v5217_v63 = vsub.f32 %v5193_v32, %v5203_v17 }
 0xe25   : > { %v10489_v51 = vpop.eup %6418  ;;  %v5226_v30 = vmul.f32 1.442695, %v5217_v63 }
 0xe26   : > { %5256 = vmatmul.f32.vlgmr.msra.gmra.mxu0 %v10489_v51 }
 0xe27   : > { %6420 = vpow2.f32 %v5226_v30  ;;  %5720 = vmatpush.msra.mxu0 %v6682_v42 }
 0xe29   : > { %5721 = vmatpush.msra.mxu0 %v6683_v28 }
 0xe2a   : > { %v5205_v18 = vpop.xlane.xlu1 %5204 }
 0xe2b   : > { %v5218_v26 = vsub.f32 %v5194_v22, %v5205_v18  ;;  %5722 = vmatpush.msra.mxu0 %v6684_v47  ;;  %v6694_v22 = vld [vmem:[#allocation2 + $0x418] sm:$0xff] }
 0xe2d   : > { %v10492_v48 = vpop.eup %6420  ;;  %v5228_v19 = vmul.f32 1.442695, %v5218_v26  ;;  %5723 = vmatpush.msra.mxu0 %v6685_v9 }
 0xe2e   : > { %5259 = vmatmul.f32.gmra.mxu0 %v10492_v48 }
 0xe2f   : > { %6422 = vpow2.f32 %v5228_v19  ;;  %5724 = vmatpush.msra.mxu0 %v6686_v60 }
 0xe31   : > { %5725 = vmatpush.msra.mxu0 %v6687_v29 }
 0xe32   : > { %v5207_v38 = vpop.xlane.xlu2 %5206 }
 0xe33   : > { %v5219_v10 = vsub.f32 %v5195_v3, %v5207_v38  ;;  %5726 = vmatpush.msra.mxu0 %v6688_v44 }
 0xe35   : > { %v10495_v8 = vpop.eup %6422  ;;  %v5230_v43 = vmul.f32 1.442695, %v5219_v10  ;;  %5727 = vmatpush.msra.mxu0 %v6689_v56 }
 0xe36   : > { %5262 = vmatmul.f32.gmra.mxu0 %v10495_v8 }
 0xe37   : > { %6424 = vpow2.f32 %v5230_v43  ;;  %5728 = vmatpush.msra.mxu0 %v6690_v6 }
 0xe39   : > { %5729 = vmatpush.msra.mxu0 %v6691_v52 }
 0xe3a   : > { %v5209_v27 = vpop.xlane.xlu0 %5208 }
 0xe3b   : > { %v5220_v32 = vsub.f32 %v10471_v5, %v5209_v27  ;;  %5730 = vmatpush.msra.mxu0 %v6692_v20 }
 0xe3d   : > { %v10499_v0 = vpop.eup %6424  ;;  %v5232_v24 = vmul.f32 1.442695, %v5220_v32  ;;  %5731 = vmatpush.msra.mxu0 %v6693_v15 }
 0xe3e   : > { %5265 = vmatmul.f32.gmra.mxu0 %v10499_v0 }
 0xe3f   : > { %6426 = vpow2.f32 %v5232_v24  ;;  %5732 = vmatpush.msra.mxu0 %v6694_v22 }
 0xe41   : > { %5733 = vmatpush.msra.mxu0 %v6695_v1 }
 0xe42   : > { %v5211_v4 = vpop.xlane.xlu1 %5210 }
 0xe43   : > { %v5221_v14 = vsub.f32 %v10476_v39, %v5211_v4  ;;  %5734 = vmatpush.msra.mxu0 %v6696_v11 }
 0xe45   : > { %v10503_v3 = vpop.eup %6426  ;;  %v5234_v13 = vmul.f32 1.442695, %v5221_v14  ;;  %5735 = vmatpush.msra.mxu0 %v6697_v46 }
 0xe46   : > { %5268 = vmatmul.f32.gmra.mxu0 %v10503_v3 }
 0xe47   : > { %6428 = vpow2.f32 %v5234_v13 }
 0xe4a   : > { %v5213_v49 = vpop.xlane.xlu2 %5212 }
 0xe4b   : > { %v5222_v57 = vsub.f32 %v10481_v12, %v5213_v49 }
 0xe4d   : > { %v10507_v5 = vpop.eup %6428  ;;  %v5236_v58 = vmul.f32 1.442695, %v5222_v57  ;;  %v10531_v57 = vpop.f32.mrf.mxu1 }
 0xe4e   : > { %5271 = vmatmul.f32.gmra.mxu0 %v10507_v5 }
 0xe4f   : > { %6430 = vpow2.f32 %v5236_v58  ;;  %v5792_v58 = vld [vmem:[#allocation2 + $0x11d8] sm:$0xff] }
 0xe50   : > { %5795 = vmatpush.msra.mxu1 %v5792_v58  ;;  %v10595_v58 = vld [vmem:[#allocation2 + $0x1048] ss:$0 sm:$0xff] }
 0xe52   : > { %v5215_v21 = vpop.xlane.xlu0 %5214 }
 0xe53   : > { %v5223_v2 = vsub.f32 %v10486_v53, %v5215_v21 }
 0xe55   : > { %v10511_v39 = vpop.eup %6430  ;;  %v5238_v33 = vmul.f32 1.442695, %v5223_v2  ;;  %v10535_v21 = vpop.f32.mrf.mxu1 }
 0xe56   : > { %5274 = vmatmul.f32.gmra.mxu0 %v10511_v39 }
 0xe57   : > { %6432 = vpow2.f32 %v5238_v33  ;;  %v5790_v33 = vld [vmem:[#allocation2 + $0x11c8] sm:$0xff] }
 0xe5d   : > { %v10514_v34 = vpop.eup %6432 }
 0xe5e   : > { %5277 = vmatmul.f32.gmra.mxu0 %v10514_v34 }
 0xea3   : > { %v5257_v23 = vpop.f32.mrf.mxu0 }
 0xea4   : > { %6434 = vrcp.f32 %v5257_v23 }
 0xeaa   : > { %v6435_v25 = vpop.eup %6434 }
 0xeab   : > { %v5289_v12 = vmul.f32 %v6435_v25, %v5257_v23  ;;  %v5260_v61 = vpop.f32.mrf.mxu0  ;;  %v5789_v23 = vld [vmem:[#allocation2 + $0x11c0] sm:$0xff] }
 0xeac   : > { %6436 = vrcp.f32 %v5260_v61 }
 0xead   : > { %v5297_v45 = vsub.f32 2.0, %v5289_v12 }
 0xeaf   : > { %v5305_v54 = vmul.f32 %v6435_v25, %v5297_v45  ;;  %v5788_v25 = vld [vmem:[#allocation2 + $0x11b8] sm:$0xff]  ;;  %v5787_v45 = vld [vmem:[#allocation2 + $0x11b0] sm:$0xff] }
 0xeb1   : > { %v10518_v36 = vmul.f32 %v10489_v51, %v5305_v54  ;;  %v5786_v54 = vld [vmem:[#allocation2 + $0x11a8] sm:$0xff] }
 0xeb2   : > { %v6437_v53 = vpop.eup %6436 }
 0xeb3   : > { %v5290_v16 = vmul.f32 %v6437_v53, %v5260_v61  ;;  %v5263_v31 = vpop.f32.mrf.mxu0  ;;  %5396 = vmatmul.f32.vlgmr.msrb.gmra.mxu2 %v10518_v36  ;;  %5504 = vmatmul.f32.vlgmr.msrb.gmra.mxu0 %v10518_v36 }
 0xeb4   : > { %6438 = vrcp.f32 %v5263_v31 }
 0xeb5   : > { %v5298_v41 = vsub.f32 2.0, %v5290_v16 }
 0xeb7   : > { %v5306_v17 = vmul.f32 %v6437_v53, %v5298_v41  ;;  %v5785_v41 = vld [vmem:[#allocation2 + $0x11a0] sm:$0xff] }
 0xeb9   : > { %v5314_v63 = vmul.f32 %v10492_v48, %v5306_v17  ;;  %v5784_v17 = vld [vmem:[#allocation2 + $0x1198] sm:$0xff] }
 0xeba   : > { %v6439_v30 = vpop.eup %6438 }
 0xebb   : > { %v5291_v42 = vmul.f32 %v6439_v30, %v5263_v31  ;;  %v5266_v28 = vpop.f32.mrf.mxu0  ;;  %5399 = vmatmul.f32.gmra.mxu2 %v5314_v63  ;;  %5507 = vmatmul.f32.gmra.mxu0 %v5314_v63 }
 0xebc   : > { %6440 = vrcp.f32 %v5266_v28 }
 0xebd   : > { %v5299_v51 = vsub.f32 2.0, %v5291_v42 }
 0xebf   : > { %v5307_v18 = vmul.f32 %v6439_v30, %v5299_v51  ;;  %v5783_v51 = vld [vmem:[#allocation2 + $0x1190] sm:$0xff] }
 0xec1   : > { %v5315_v26 = vmul.f32 %v10495_v8, %v5307_v18  ;;  %v5782_v18 = vld [vmem:[#allocation2 + $0x1188] sm:$0xff] }
 0xec2   : > { %v6441_v47 = vpop.eup %6440 }
 0xec3   : > { %v5292_v19 = vmul.f32 %v6441_v47, %v5266_v28  ;;  %v5269_v9 = vpop.f32.mrf.mxu0  ;;  %5402 = vmatmul.f32.gmra.mxu2 %v5315_v26  ;;  %5510 = vmatmul.f32.gmra.mxu0 %v5315_v26 }
 0xec4   : > { %6442 = vrcp.f32 %v5269_v9 }
 0xec5   : > { %v5300_v60 = vsub.f32 2.0, %v5292_v19 }
 0xec7   : > { %v5308_v29 = vmul.f32 %v6441_v47, %v5300_v60  ;;  %v5781_v60 = vld [vmem:[#allocation2 + $0x1180] sm:$0xff] }
 0xec9   : > { %v5316_v48 = vmul.f32 %v10499_v0, %v5308_v29  ;;  %v5780_v29 = vld [vmem:[#allocation2 + $0x1178] sm:$0xff] }
 0xeca   : > { %v6443_v38 = vpop.eup %6442 }
 0xecb   : > { %v5293_v10 = vmul.f32 %v6443_v38, %v5269_v9  ;;  %v5272_v44 = vpop.f32.mrf.mxu0  ;;  %5405 = vmatmul.f32.gmra.mxu2 %v5316_v48  ;;  %5513 = vmatmul.f32.gmra.mxu0 %v5316_v48 }
 0xecc   : > { %6444 = vrcp.f32 %v5272_v44 }
 0xecd   : > { %v5301_v43 = vsub.f32 2.0, %v5293_v10 }
 0xecf   : > { %v5309_v56 = vmul.f32 %v6443_v38, %v5301_v43  ;;  %v5778_v43 = vld [vmem:[#allocation2 + $0x1168] sm:$0xff] }
 0xed1   : > { %v5317_v8 = vmul.f32 %v10503_v3, %v5309_v56 }
 0xed2   : > { %v6445_v6 = vpop.eup %6444 }
 0xed3   : > { %v5294_v52 = vmul.f32 %v6445_v6, %v5272_v44  ;;  %v5275_v27 = vpop.f32.mrf.mxu0  ;;  %5408 = vmatmul.f32.gmra.mxu2 %v5317_v8  ;;  %5516 = vmatmul.f32.gmra.mxu0 %v5317_v8  ;;  %v5779_v44 = vld [vmem:[#allocation2 + $0x1170] sm:$0xff] }
 0xed4   : > { %6446 = vrcp.f32 %v5275_v27 }
 0xed5   : > { %v5302_v32 = vsub.f32 2.0, %v5294_v52 }
 0xed7   : > { %v5310_v20 = vmul.f32 %v6445_v6, %v5302_v32 }
 0xed9   : > { %v5318_v0 = vmul.f32 %v10507_v5, %v5310_v20  ;;  %v10533_v5 = vpop.f32.mrf.mxu3 }
 0xeda   : > { %v6447_v24 = vpop.eup %6446 }
 0xedb   : > { %v5295_v15 = vmul.f32 %v6447_v24, %v5275_v27  ;;  %v5278_v22 = vpop.f32.mrf.mxu0  ;;  %5411 = vmatmul.f32.gmra.mxu2 %v5318_v0  ;;  %5519 = vmatmul.f32.gmra.mxu0 %v5318_v0  ;;  %v5777_v27 = vld [vmem:[#allocation2 + $0x1160] sm:$0xff] }
 0xedc   : > { %6448 = vrcp.f32 %v5278_v22 }
 0xedd   : > { %v5303_v1 = vsub.f32 2.0, %v5295_v15 }
 0xedf   : > { %v5311_v4 = vmul.f32 %v6447_v24, %v5303_v1 }
 0xee1   : > { %v5319_v14 = vmul.f32 %v10511_v39, %v5311_v4  ;;  %v10537_v2 = vpop.f32.mrf.mxu3  ;;  %v5791_v39 = vld [vmem:[#allocation2 + $0x11d0] sm:$0xff]  ;;  %v10587_v4 = vld [vmem:[#allocation2 + $0xe28] ss:$0 sm:$0xff] }
 0xee2   : > { %v6449_v11 = vpop.eup %6448  ;;  %5796 = vmatpush.msra.mxu1 %v5791_v39 }
 0xee3   : > { %v5296_v3 = vmul.f32 %v6449_v11, %v5278_v22  ;;  %5414 = vmatmul.f32.gmra.mxu2 %v5319_v14  ;;  %5522 = vmatmul.f32.gmra.mxu0 %v5319_v14 }
 0xee4   : > { %5797 = vmatpush.msra.mxu1 %v5790_v33  ;;  %v10599_v33 = vld [vmem:[#allocation2 + $0x1158] ss:$0 sm:$0xff] }
 0xee5   : > { %v5304_v13 = vsub.f32 2.0, %v5296_v3  ;;  %v10591_v3 = vld [vmem:[#allocation2 + $0xf38] ss:$0 sm:$0xff] }
 0xee6   : > { %5798 = vmatpush.msra.mxu1 %v5789_v23  ;;  %v5465_v39 = vadd.f32 %v10591_v3, %v10533_v5  ;;  %v5468_v5 = vadd.f32 %v10591_v3, %v10537_v2 }
 0xee7   : > { %v5312_v46 = vmul.f32 %v6449_v11, %v5304_v13 }
 0xee8   : > { %5799 = vmatpush.msra.mxu1 %v5788_v25 }
 0xee9   : > { %v5320_v49 = vmul.f32 %v10514_v34, %v5312_v46  ;;  %v10539_v34 = vpop.f32.mrf.mxu1  ;;  %v10541_v12 = vpop.f32.mrf.mxu3 }
 0xeea   : > { %5800 = vmatpush.msra.mxu1 %v5787_v45  ;;  %v5471_v2 = vadd.f32 %v10591_v3, %v10541_v12 }
 0xeeb   : > { %5417 = vmatmul.f32.gmra.mxu2 %v5320_v49  ;;  %5525 = vmatmul.f32.gmra.mxu0 %v5320_v49 }
 0xeec   : > { %5801 = vmatpush.msra.mxu1 %v5786_v54 }
 0xeee   : > { %5802 = vmatpush.msra.mxu1 %v5785_v41 }
 0xef0   : > { %5803 = vmatpush.msra.mxu1 %v5784_v17 }
 0xef1   : > { %v10545_v53 = vpop.f32.mrf.mxu3 }
 0xef2   : > { %5804 = vmatpush.msra.mxu1 %v5783_v51 }
 0xef3   : > { %5620 = vmatmul.f32.vlgmr.msra.gmra.mxu2 %v10518_v36  ;;  %5736 = vmatmul.f32.vlgmr.msra.gmra.mxu0 %v10518_v36  ;;  %v10543_v36 = vpop.f32.mrf.mxu1 }
 0xef4   : > { %5805 = vmatpush.msra.mxu1 %v5782_v18 }
 0xef6   : > { %5806 = vmatpush.msra.mxu1 %v5781_v60 }
 0xef8   : > { %5807 = vmatpush.msra.mxu1 %v5780_v29 }
 0xef9   : > { %v10551_v30 = vpop.f32.mrf.mxu3 }
 0xefa   : > { %5808 = vmatpush.msra.mxu1 %v5779_v44 }
 0xefb   : > { %5623 = vmatmul.f32.gmra.mxu2 %v5314_v63  ;;  %5739 = vmatmul.f32.gmra.mxu0 %v5314_v63  ;;  %v10549_v63 = vpop.f32.mrf.mxu1 }
 0xefc   : > { %5809 = vmatpush.msra.mxu1 %v5778_v43 }
 0xefe   : > { %5810 = vmatpush.msra.mxu1 %v5777_v27 }
 0xf01   : > { %v10559_v19 = vpop.f32.mrf.mxu3 }
 0xf03   : > { %5626 = vmatmul.f32.gmra.mxu2 %v5315_v26  ;;  %5742 = vmatmul.f32.gmra.mxu0 %v5315_v26  ;;  %v10555_v26 = vpop.f32.mrf.mxu1 }
 0xf09   : > { %v10569_v56 = vpop.f32.mrf.mxu3 }
 0xf0b   : > { %5629 = vmatmul.f32.gmra.mxu2 %v5316_v48  ;;  %5745 = vmatmul.f32.gmra.mxu0 %v5316_v48  ;;  %v10565_v38 = vpop.f32.mrf.mxu1 }
 0xf11   : > { %v10577_v32 = vpop.f32.mrf.mxu3 }
 0xf13   : > { %5632 = vmatmul.f32.gmra.mxu2 %v5317_v8  ;;  %5748 = vmatmul.f32.gmra.mxu0 %v5317_v8  ;;  %v10575_v52 = vpop.f32.mrf.mxu1 }
 0xf19   : > { %v5696_v15 = vpop.f32.mrf.mxu3 }
 0xf1a   : > { %v5697_v41 = vadd.f32 %v10599_v33, %v5696_v15 }
 0xf1b   : > { %5635 = vmatmul.f32.gmra.mxu2 %v5318_v0  ;;  %5751 = vmatmul.f32.gmra.mxu0 %v5318_v0  ;;  %v5580_v24 = vpop.f32.mrf.mxu1 }
 0xf1c   : > { %v5581_v25 = vadd.f32 %v10595_v58, %v5580_v24 }
 0xf21   : > { %v5699_v13 = vpop.f32.mrf.mxu3 }
 0xf23   : > { %5638 = vmatmul.f32.gmra.mxu2 %v5319_v14  ;;  %5754 = vmatmul.f32.gmra.mxu0 %v5319_v14  ;;  %v5583_v14 = vpop.f32.mrf.mxu1 }
 0xf29   : > { %v5702_v43 = vpop.f32.mrf.mxu3 }
 0xf2b   : > { %5641 = vmatmul.f32.gmra.mxu2 %v5320_v49  ;;  %5757 = vmatmul.f32.gmra.mxu0 %v5320_v49  ;;  %v5357_v49 = vadd.f32 %v10587_v4, %v10531_v57  ;;  %v5586_v18 = vpop.f32.mrf.mxu1  ;;  %v5360_v57 = vadd.f32 %v10587_v4, %v10535_v21  ;;  %v5363_v21 = vadd.f32 %v10587_v4, %v10539_v34 }
 0xf30   : > { %v5505_v61 = vpop.f32.mrf.mxu0 }
 0xf31   : > { %v5529_v45 = vmul.f32 %v5505_v61, %v5465_v39  ;;  %v5584_v61 = vadd.f32 %v10595_v58, %v5583_v14 }
 0xf36   : > { %v5397_v16 = vpop.f32.mrf.mxu2 }
 0xf37   : > { %v5421_v23 = vmul.f32 %v5397_v16, %v5357_v49  ;;  %v5700_v49 = vadd.f32 %v10599_v33, %v5699_v13 }
 0xf38   : > { %v10547_v31 = vpop.f32.mrf.mxu0 }
 0xf39   : > { %v5537_v17 = vadd.f32 %v5529_v45, %v5421_v23  ;;  %v5530_v24 = vmul.f32 %v10547_v31, %v5468_v5  ;;  %v5705_v31 = vpop.f32.mrf.mxu3 }
 0xf3e   : > { %v5400_v42 = vpop.f32.mrf.mxu2 }
 0xf3f   : > { %v5422_v16 = vmul.f32 %v5400_v42, %v5360_v57 }
 0xf40   : > { %v10553_v28 = vpop.f32.mrf.mxu0 }
 0xf41   : > { %v5538_v39 = vadd.f32 %v5530_v24, %v5422_v16  ;;  %v5531_v13 = vmul.f32 %v10553_v28, %v5471_v2  ;;  %v5706_v24 = vadd.f32 %v10599_v33, %v5705_v31  ;;  %v5372_v31 = vadd.f32 %v10587_v4, %v10555_v26 }
 0xf46   : > { %v10557_v47 = vpop.f32.mrf.mxu2 }
 0xf47   : > { %v5423_v42 = vmul.f32 %v10557_v47, %v5363_v21  ;;  %v5474_v47 = vadd.f32 %v10591_v3, %v10545_v53 }
 0xf48   : > { %v10561_v9 = vpop.f32.mrf.mxu0 }
 0xf49   : > { %v5539_v57 = vadd.f32 %v5531_v13, %v5423_v42 }
 0xf4e   : > { %v10563_v48 = vpop.f32.mrf.mxu2 }
 0xf50   : > { %v10567_v10 = vpop.f32.mrf.mxu0 }
 0xf56   : > { %v10571_v8 = vpop.f32.mrf.mxu2 }
 0xf58   : > { %v10573_v6 = vpop.f32.mrf.mxu0 }
 0xf5e   : > { %v10579_v20 = vpop.f32.mrf.mxu2 }
 0xf60   : > { %v10581_v0 = vpop.f32.mrf.mxu0 }
 0xf66   : > { %v10583_v22 = vpop.f32.mrf.mxu2 }
 0xf68   : > { %v10585_v1 = vpop.f32.mrf.mxu0 }
 0xf6e   : > { %v10589_v11 = vpop.f32.mrf.mxu2 }
 0xf70   : > { %v5737_v46 = vpop.f32.mrf.mxu0 }
 0xf71   : > { %v5761_v29 = vmul.f32 %v5737_v46, %v5697_v41  ;;  %v5587_v41 = vadd.f32 %v10595_v58, %v5586_v18 }
 0xf76   : > { %v5621_v54 = vpop.f32.mrf.mxu2 }
 0xf77   : > { %v5645_v51 = vmul.f32 %v5621_v54, %v5581_v25  ;;  %v5589_v54 = vpop.f32.mrf.mxu1 }
 0xf78   : > { %v5740_v60 = vpop.f32.mrf.mxu0  ;;  %v5590_v28 = vadd.f32 %v10595_v58, %v5589_v54 }
 0xf79   : > { %v5653_v44 = vadd.f32 %v5645_v51, %v5537_v17  ;;  %v5762_v46 = vmul.f32 %v5740_v60, %v5700_v49  ;;  %v5703_v51 = vadd.f32 %v10599_v33, %v5702_v43  ;;  %v5708_v43 = vpop.f32.mrf.mxu3 }
 0xf7a   : > { %v5709_v2 = vadd.f32 %v10599_v33, %v5708_v43 }
 0xf7b   : > { %v5769_v27 = vadd.f32 %v5761_v29, %v5653_v44  ;;  %v5366_v29 = vadd.f32 %v10587_v4, %v10543_v36 }
 0xf7d   : > { %5811 = vmatmul.f32.vlgmr.msra.gmra.mxu1 %v5769_v27  ;;  %v5424_v5 = vmul.f32 %v10563_v48, %v5366_v29  ;;  %v5532_v27 = vmul.f32 %v10561_v9, %v5474_v47  ;;  %v5477_v48 = vadd.f32 %v10591_v3, %v10551_v30 }
 0xf7e   : > { %v5624_v15 = vpop.f32.mrf.mxu2 }
 0xf7f   : > { %v5646_v23 = vmul.f32 %v5624_v15, %v5584_v61  ;;  %v5592_v16 = vpop.f32.mrf.mxu1  ;;  %v5540_v15 = vadd.f32 %v5532_v27, %v5424_v5 }
 0xf80   : > { %v5743_v25 = vpop.f32.mrf.mxu0  ;;  %v5593_v9 = vadd.f32 %v10595_v58, %v5592_v16 }
 0xf81   : > { %v5654_v45 = vadd.f32 %v5646_v23, %v5538_v39  ;;  %v5763_v44 = vmul.f32 %v5743_v25, %v5703_v51  ;;  %v5369_v39 = vadd.f32 %v10587_v4, %v10549_v63  ;;  %v5711_v63 = vpop.f32.mrf.mxu3 }
 0xf83   : > { %v5770_v14 = vadd.f32 %v5762_v46, %v5654_v45  ;;  %v5425_v25 = vmul.f32 %v10571_v8, %v5369_v39  ;;  %v5533_v46 = vmul.f32 %v10567_v10, %v5477_v48  ;;  %v5480_v8 = vadd.f32 %v10591_v3, %v10559_v19 }
 0xf85   : > { %5814 = vmatmul.f32.gmra.mxu1 %v5770_v14  ;;  %v5541_v42 = vadd.f32 %v5533_v46, %v5425_v25 }
 0xf86   : > { %v5627_v17 = vpop.f32.mrf.mxu2 }
 0xf87   : > { %v5647_v34 = vmul.f32 %v5627_v17, %v5587_v41  ;;  %v5595_v45 = vpop.f32.mrf.mxu1  ;;  %v5426_v17 = vmul.f32 %v10579_v20, %v5372_v31  ;;  %v5483_v20 = vadd.f32 %v10591_v3, %v10569_v56 }
 0xf88   : > { %v5746_v60 = vpop.f32.mrf.mxu0  ;;  %v5596_v51 = vadd.f32 %v10595_v58, %v5595_v45 }
 0xf89   : > { %v5655_v12 = vadd.f32 %v5647_v34, %v5539_v57  ;;  %v5764_v53 = vmul.f32 %v5746_v60, %v5706_v24  ;;  %v5534_v57 = vmul.f32 %v10573_v6, %v5480_v8  ;;  %v5712_v60 = vadd.f32 %v10599_v33, %v5711_v63  ;;  %v5714_v19 = vpop.f32.mrf.mxu3 }
 0xf8a   : > { %v5535_v27 = vmul.f32 %v10581_v0, %v5483_v20 }
 0xf8b   : > { %v5771_v18 = vadd.f32 %v5763_v44, %v5655_v12  ;;  %v5542_v29 = vadd.f32 %v5534_v57, %v5426_v17  ;;  %v5375_v12 = vadd.f32 %v10587_v4, %v10565_v38 }
 0xf8d   : > { %5817 = vmatmul.f32.gmra.mxu1 %v5771_v18  ;;  %v5427_v18 = vmul.f32 %v10583_v22, %v5375_v12  ;;  %v5486_v22 = vadd.f32 %v10591_v3, %v10577_v32  ;;  %v6096_v32 = vld [vmem:[#allocation2 + $0x11e0] ss:$0 sm:$0xff] }
 0xf8e   : > { %v5630_v61 = vpop.f32.mrf.mxu2 }
 0xf8f   : > { %v5648_v36 = vmul.f32 %v5630_v61, %v5590_v28  ;;  %v5598_v26 = vpop.f32.mrf.mxu1  ;;  %v5715_v61 = vadd.f32 %v10599_v33, %v5714_v19  ;;  %v5543_v24 = vadd.f32 %v5535_v27, %v5427_v18  ;;  %v5536_v48 = vmul.f32 %v10585_v1, %v5486_v22 }
 0xf90   : > { %v5749_v49 = vpop.f32.mrf.mxu0  ;;  %v5599_v28 = vadd.f32 %v10595_v58, %v5598_v26 }
 0xf91   : > { %v5656_v23 = vadd.f32 %v5648_v36, %v5540_v15  ;;  %v5765_v41 = vmul.f32 %v5749_v49, %v5709_v2  ;;  %v5378_v15 = vadd.f32 %v10587_v4, %v10575_v52  ;;  %v6097_v2 = vld [vmem:[#allocation2 + $0x11e8] ss:$0 sm:$0xff] }
 0xf93   : > { %v5772_v21 = vadd.f32 %v5764_v53, %v5656_v23  ;;  %v5428_v39 = vmul.f32 %v10589_v11, %v5378_v15  ;;  %v5717_v23 = vpop.f32.mrf.mxu3 }
 0xf94   : > { %v5718_v52 = vadd.f32 %v10599_v33, %v5717_v23 }
 0xf95   : > { %5820 = vmatmul.f32.gmra.mxu1 %v5772_v21  ;;  %v5544_v4 = vadd.f32 %v5536_v48, %v5428_v39 }
 0xf96   : > { %v5633_v54 = vpop.f32.mrf.mxu2 }
 0xf97   : > { %v5649_v14 = vmul.f32 %v5633_v54, %v5593_v9  ;;  %v5601_v56 = vpop.f32.mrf.mxu1 }
 0xf98   : > { %v5752_v13 = vpop.f32.mrf.mxu0  ;;  %v5602_v0 = vadd.f32 %v10595_v58, %v5601_v56 }
 0xf99   : > { %v5657_v30 = vadd.f32 %v5649_v14, %v5541_v42  ;;  %v5766_v47 = vmul.f32 %v5752_v13, %v5712_v60 }
 0xf9b   : > { %v5773_v10 = vadd.f32 %v5765_v41, %v5657_v30 }
 0xf9d   : > { %5823 = vmatmul.f32.gmra.mxu1 %v5773_v10 }
 0xf9e   : > { %v5636_v34 = vpop.f32.mrf.mxu2 }
 0xf9f   : > { %v5650_v44 = vmul.f32 %v5636_v34, %v5596_v51 }
 0xfa0   : > { %v5755_v6 = vpop.f32.mrf.mxu0 }
 0xfa1   : > { %v5658_v5 = vadd.f32 %v5650_v44, %v5542_v29  ;;  %v5767_v36 = vmul.f32 %v5755_v6, %v5715_v61 }
 0xfa3   : > { %v5774_v16 = vadd.f32 %v5766_v47, %v5658_v5 }
 0xfa5   : > { %5826 = vmatmul.f32.gmra.mxu1 %v5774_v16 }
 0xfa6   : > { %v5639_v43 = vpop.f32.mrf.mxu2 }
 0xfa7   : > { %v5651_v38 = vmul.f32 %v5639_v43, %v5599_v28 }
 0xfa8   : > { %v5758_v25 = vpop.f32.mrf.mxu0 }
 0xfa9   : > { %v5659_v49 = vadd.f32 %v5651_v38, %v5543_v24  ;;  %v5768_v46 = vmul.f32 %v5758_v25, %v5718_v52 }
 0xfab   : > { %v5775_v53 = vadd.f32 %v5767_v36, %v5659_v49 }
 0xfad   : > { %5829 = vmatmul.f32.gmra.mxu1 %v5775_v53 }
 0xfae   : > { %v5642_v21 = vpop.f32.mrf.mxu2 }
 0xfaf   : > { %v5652_v9 = vmul.f32 %v5642_v21, %v5602_v0 }
 0xfb1   : > { %v5660_v45 = vadd.f32 %v5652_v9, %v5544_v4 }
 0xfb3   : > { %v5776_v54 = vadd.f32 %v5768_v46, %v5660_v45 }
 0xfb5   : > { %5832 = vmatmul.f32.gmra.mxu1 %v5776_v54 }
 0xffa   : > { %v5812_v11 = vpop.f32.mrf.mxu1 }
 0xffb   : > { %v5813_v3 = vadd.f32 %v6096_v32, %v5812_v11 }
 0xffd   : > { %v5836_v58 = vadd.f32 %v5813_v3, %v10253_v35 }
 0xfff   : > { %v5846_v1 = vmul.f32 %v6097_v2, %v5836_v58 }
0x1001   : > { %5854 = vst [vmem:[%s10664_s10] sm:$0xff] %v5846_v1 }
0x1002   : > { %v5815_v33 = vpop.f32.mrf.mxu1 }
0x1003   : > { %v5816_v42 = vadd.f32 %v6096_v32, %v5815_v33 }
0x1005   : > { %v5837_v14 = vadd.f32 %v5816_v42, %v10260_v55 }
0x1007   : > { %v5847_v63 = vmul.f32 %v6097_v2, %v5837_v14 }
0x1009   : > { %5855 = vst [vmem:[%s10664_s10 + $0x8] sm:$0xff] %v5847_v63 }
0x100a   : > { %v5818_v35 = vpop.f32.mrf.mxu1 }
0x100b   : > { %v5819_v31 = vadd.f32 %v6096_v32, %v5818_v35 }
0x100d   : > { %v5838_v41 = vadd.f32 %v5819_v31, %v10267_v59 }
0x100f   : > { %v5848_v30 = vmul.f32 %v6097_v2, %v5838_v41 }
0x1011   : > { %5856 = vst [vmem:[%s10664_s10 + $0x10] sm:$0xff] %v5848_v30 }
0x1012   : > { %v5821_v13 = vpop.f32.mrf.mxu1 }
0x1013   : > { %v5822_v8 = vadd.f32 %v6096_v32, %v5821_v13 }
0x1015   : > { %v5839_v17 = vadd.f32 %v5822_v8, %v10274_v7 }
0x1017   : > { %v5849_v10 = vmul.f32 %v6097_v2, %v5839_v17 }
0x1019   : > { %5857 = vst [vmem:[%s10664_s10 + $0x18] sm:$0xff] %v5849_v10 }
0x101a   : > { %v5824_v51 = vpop.f32.mrf.mxu1 }
0x101b   : > { %v5825_v57 = vadd.f32 %v6096_v32, %v5824_v51 }
0x101d   : > { %v5840_v55 = vadd.f32 %v5825_v57, %v10281_v50 }
0x101f   : > { %v5850_v34 = vmul.f32 %v6097_v2, %v5840_v55 }
0x1021   : > { %5858 = vst [vmem:[%s10664_s10 + $0x20] sm:$0xff] %v5850_v34 }
0x1022   : > { %v5827_v60 = vpop.f32.mrf.mxu1 }
0x1023   : > { %v5828_v29 = vadd.f32 %v6096_v32, %v5827_v60 }
0x1025   : > { %v5841_v59 = vadd.f32 %v5828_v29, %v10288_v37 }
0x1027   : > { %v5851_v44 = vmul.f32 %v6097_v2, %v5841_v59 }
0x1029   : > { %5859 = vst [vmem:[%s10664_s10 + $0x28] sm:$0xff] %v5851_v44 }
0x102a   : > { %v5830_v26 = vpop.f32.mrf.mxu1 }
0x102b   : > { %v5831_v12 = vadd.f32 %v6096_v32, %v5830_v26 }
0x102d   : > { %v5842_v7 = vadd.f32 %v5831_v12, %v10295_v62 }
0x102f   : > { %v5852_v47 = vmul.f32 %v6097_v2, %v5842_v7 }
0x1031   : > { %5860 = vst [vmem:[%s10664_s10 + $0x30] sm:$0xff] %v5852_v47 }
0x1032   : > { %v5833_v5 = vpop.f32.mrf.mxu1 }
0x1033   : > { %v5834_v19 = vadd.f32 %v6096_v32, %v5833_v5 }
0x1035   : > { %v5843_v20 = vadd.f32 %v5834_v19, %v10302_v40 }
0x1037   : > { %v5853_v50 = vmul.f32 %v6097_v2, %v5843_v20 }
0x1039   : > { %5861 = vst [vmem:[%s10664_s10 + $0x38] sm:$0xff] %v5853_v50 }
0x103a PF: > { %s15_s12 = sadd.s32 1, %s6772_s12  }
0x103b   : > { %p12_p7 = scmp.ge.s32.totalorder %s15_s12, 4  }
0x103d   :  { %14 = sbr.rel (!%p12_p7) target bundleno = 2 (0x2), region = 79 }
0x1042   :  { %5884 = vsyncpa [#allocation3], 1 }
0x1043   :  { %5886 = vsyncpa [#allocation3 + $0x1], 1 }
0x1044   :  { %5887 = vsyncpa [#allocation5], 1 }

</bundles_post_ra>
